<compile_context>
chip_gen: v7x
topology: tpu7x:2x2x1
jax: 0.10.0
libtpu: 0.0.40
codegen_flags: <defaults>
</compile_context>

<pallas_src>
import jax
import jax.numpy as jnp
from jax.experimental import pallas as pl
from jax.experimental.pallas import tpu as pltpu


def _im2col_patches(src_ref, H, W, taps):
    """Concatenate the given (dy, dx) taps of a zero-padded (H+2, W+2, C) ref
    along the channel (lane) axis and merge the leading spatial dims.

    Returns (H*W, len(taps)*C) in src_ref's dtype.  The scratch refs are kept
    in the MXU operand dtype, so on the bf16 path the lane-concat relayout
    moves half the bytes (cast happens *before* the concat, not after).
    """
    C = src_ref.shape[-1]
    parts = [src_ref[dy:dy + H, dx:dx + W, :] for dy, dx in taps]
    patches = parts[0] if len(parts) == 1 else jnp.concatenate(parts, axis=-1)
    return patches.reshape(H * W, len(taps) * C)     # leading-dims merge only


def _conv3x3(src_ref, w_ref, H, W, out_transposed):
    """3x3 / stride-1 / pad-1 convolution over a zero-padded VMEM ref.

    src_ref: (H+2, W+2, Cin), in the MXU operand dtype.
    w_ref:   (9*Cin, Cout) tap-major along K       if not out_transposed
             (Cout, 9*Cin) tap-major along K (rhs) if out_transposed
    Returns f32 (H*W, Cout) (normal) or f32 (Cout, H*W) (output-transposed).

    K-packing gate (sized for the 256-deep MXU of v6e/v7x; the extra packing
    for 128 <= Cin < 256 is harmless on v5e's 128-deep MXU):
      Cin < 128 : all 9 taps packed   -> 1 dot,  K = 9*Cin
      Cin < 256 : 3 taps (one ky row) -> 3 dots, K = 3*Cin
      else      : no packing          -> 9 dots, K = Cin (already >= 256)
    """
    Cin = src_ref.shape[-1]
    if Cin < 128:
        groups = [[(dy, dx) for dy in range(3) for dx in range(3)]]
    elif Cin < 256:
        groups = [[(dy, dx) for dx in range(3)] for dy in range(3)]
    else:
        groups = [[(dy, dx)] for dy in range(3) for dx in range(3)]

    acc = None
    k0 = 0
    for taps in groups:
        ksz = len(taps) * Cin
        patches = _im2col_patches(src_ref, H, W, taps)          # (H*W, ksz)
        if out_transposed:
            # out^T = W^T @ patches^T, expressed as an NT matmul (contract on
            # the minor dim of both operands) -> (Cout, H*W) with NO in-kernel
            # vreg transpose; the MXU handles the transposed-rhs form.
            part = jax.lax.dot_general(
                w_ref[:, k0:k0 + ksz], patches,
                (((1,), (1,)), ((), ())),
                preferred_element_type=jnp.float32)
        else:
            part = jnp.dot(patches, w_ref[k0:k0 + ksz, :],
                           preferred_element_type=jnp.float32)
        acc = part if acc is None else acc + part
        k0 += ksz
    return acc


def basic_block_kernel(x_ref, xres_ref, w1_ref, b1_ref, w2t_ref, b2_ref,
                       o_ref, xpad_ref, mid_ref):
    # x_ref:    (NB, H, W, Cin)   unpadded NHWC input tile (NB images)
    # xres_ref: (NB, Cin, H*W)    NCHW-flat residual view of the same input
    # w1_ref:   (9*Cin, Cmid)     conv1 weights * bn1 scale, tap-major along K
    # b1_ref:   (1, Cmid)         folded bn1 bias (f32)
    # w2t_ref:  (Cout, 9*Cmid)    conv2 weights * bn2 scale, transposed
    # b2_ref:   (Cout, 1)         folded bn2 bias (f32)
    # o_ref:    (NB, Cout, H*W)   NCHW-flat output tile (lane-dense store)
    # xpad_ref: (H+2, W+2, Cin)   VMEM scratch: zero-halo padded input
    # mid_ref:  (H+2, W+2, Cmid)  VMEM scratch: zero-halo padded conv1 output
    NB, H, W, Cin = x_ref.shape
    Hp, Wp = H + 2, W + 2
    Cmid = w1_ref.shape[-1]
    op_dtype = w1_ref.dtype            # MXU operand dtype (f32 or bf16)

    # Zero only the 4 one-pixel halo strips (the interiors are fully
    # overwritten for every image).  Re-zeroed every grid step (not
    # pl.when(pid == 0)) so the kernel stays correct when the "parallel"
    # batch axis is sharded across TensorCores (per-core scratch instances).
    for pad_ref, c in ((xpad_ref, Cin), (mid_ref, Cmid)):
        pad_ref[0:1, :, :] = jnp.zeros((1, Wp, c), op_dtype)
        pad_ref[H + 1:H + 2, :, :] = jnp.zeros((1, Wp, c), op_dtype)
        pad_ref[:, 0:1, :] = jnp.zeros((Hp, 1, c), op_dtype)
        pad_ref[:, W + 1:W + 2, :] = jnp.zeros((Hp, 1, c), op_dtype)

    for nb in range(NB):               # static unroll: NB images per grid step
        # ---- conv1 (3x3, stride 1, pad 1, no bias) + folded bn1 + relu
        xpad_ref[1:1 + H, 1:1 + W, :] = x_ref[nb].astype(op_dtype)
        acc1 = _conv3x3(xpad_ref, w1_ref, H, W, out_transposed=False)
        out1 = jnp.maximum(acc1 + b1_ref[...], 0.0)            # (H*W, Cmid) f32
        mid_ref[1:1 + H, 1:1 + W, :] = out1.reshape(H, W, Cmid).astype(op_dtype)

        # ---- conv2 (3x3, stride 1, pad 1, no bias) + folded bn2, computed
        # output-transposed so the store below is channels-major (NCHW-flat):
        # lane dim = H*W (dense vst), and the wrapper needs no out transpose.
        acc2_t = _conv3x3(mid_ref, w2t_ref, H, W, out_transposed=True)
        out2_t = acc2_t + b2_ref[...]                          # (Cout, H*W) f32

        # ---- residual add (downsample is None -> identity) + relu
        identity = xres_ref[nb].astype(jnp.float32)            # (Cin, H*W)
        o_ref[nb] = jnp.maximum(out2_t + identity, 0.0).astype(o_ref.dtype)


def _vmem_limit_bytes(fraction=0.72, fallback=48 * 1024 * 1024):
    """Generation-aware scoped-VMEM limit: ~72% of the physical per-core
    capacity (~46 MiB on v7x's 64 MiB, ~92 MiB on v5e/v6e's 128 MiB), leaving
    headroom for the framework and the 2-deep I/O double buffers on every
    generation instead of a hard-coded 64 MiB."""
    try:
        cap = getattr(pltpu.get_tpu_info(), "vmem_capacity_bytes", None)
        if cap:
            return int(fraction * cap)
    except Exception:
        pass
    return fallback


def _pick_batch_tile(N, per_image_block_bytes, budget_bytes=8 << 20, max_nb=8):
    """Pack multiple (small) images into one grid step to amortize the
    ~0.35us per-step overhead; large images naturally degrade to NB=1."""
    cap = int(max(1, min(max_nb, budget_bytes // max(per_image_block_bytes, 1))))
    nb = 1
    for cand in range(1, min(N, cap) + 1):
        if N % cand == 0:
            nb = cand
    return nb


def basic_block_forward(x_nchw, params, eps=1e-5, use_bf16_operands=False):
    """Pallas BasicBlock forward (eval-mode BN).  x_nchw: (N, Cin, H, W).

    use_bf16_operands=True runs both convs with bf16 MXU operands and bf16
    VMEM scratch (accumulation stays f32).  This is profitable on *all*
    current generations (v5e's MXU is bf16-native; the f32 epilogue stays on
    the VPU); default is False only to keep the bit-tighter f32 path.
    """
    (w1, g1, be1, m1, v1, w2, g2, be2, m2, v2) = params
    N, Cin, H, W = x_nchw.shape
    Cmid = w1.shape[0]
    Cout = w2.shape[0]
    assert Cin == Cout, "identity residual requires in_channels == out_channels"

    op_dtype = jnp.bfloat16 if use_bf16_operands else x_nchw.dtype

    # Conv input in NHWC (channels on the lane axis).  This transpose is the
    # one remaining wrapper-side HBM round trip (see TODO in the header).
    x_nhwc = jnp.transpose(x_nchw, (0, 2, 3, 1))
    # Residual in NCHW-flat form: a free reshape of the original buffer.
    x_res = x_nchw.reshape(N, Cin, H * W)

    # Fold eval-mode BatchNorm: bn(y) = y*s + b with s = g/sqrt(v+eps),
    # b = beta - mean*s.  The per-channel scale is folded into the conv
    # weight columns (in f32, *before* the optional bf16 cast), so the
    # in-kernel epilogue is only +bias and ReLU.
    s1 = g1 / jnp.sqrt(v1 + eps)
    b1 = (be1 - m1 * s1).astype(jnp.float32).reshape(1, Cmid)
    s2 = g2 / jnp.sqrt(v2 + eps)
    b2 = (be2 - m2 * s2).astype(jnp.float32).reshape(Cout, 1)

    # PyTorch conv weights (Cout, Cin, kh, kw) -> (kh*kw*Cin, Cout), tap-major
    # along K so they line up with the im2col patch columns.
    w1k = jnp.transpose(w1, (2, 3, 1, 0)).reshape(9 * Cin, Cmid)
    w1k = (w1k * s1[None, :]).astype(op_dtype)
    w2k = jnp.transpose(w2, (2, 3, 1, 0)).reshape(9 * Cmid, Cout)
    w2t = (w2k * s2[None, :]).T.astype(op_dtype)              # (Cout, 9*Cmid)

    itemsize = x_nchw.dtype.itemsize
    per_image_block_bytes = 2 * 3 * H * W * max(Cin, Cout) * itemsize
    NB = _pick_batch_tile(N, per_image_block_bytes)

    out_flat = pl.pallas_call(
        basic_block_kernel,
        out_shape=jax.ShapeDtypeStruct((N, Cout, H * W), x_nchw.dtype),
        grid_spec=pltpu.PrefetchScalarGridSpec(
            num_scalar_prefetch=0,
            grid=(N // NB,),
            in_specs=[
                pl.BlockSpec((NB, H, W, Cin), lambda n: (n, 0, 0, 0)),
                pl.BlockSpec((NB, Cin, H * W), lambda n: (n, 0, 0)),
                pl.BlockSpec((9 * Cin, Cmid), lambda n: (0, 0)),
                pl.BlockSpec((1, Cmid), lambda n: (0, 0)),
                pl.BlockSpec((Cout, 9 * Cmid), lambda n: (0, 0)),
                pl.BlockSpec((Cout, 1), lambda n: (0, 0)),
            ],
            out_specs=pl.BlockSpec((NB, Cout, H * W), lambda n: (n, 0, 0)),
            scratch_shapes=[
                pltpu.VMEM((H + 2, W + 2, Cin), op_dtype),
                pltpu.VMEM((H + 2, W + 2, Cmid), op_dtype),
            ],
        ),
        compiler_params=pltpu.CompilerParams(
            dimension_semantics=("parallel",),
            vmem_limit_bytes=_vmem_limit_bytes(),
        ),
    )(x_nhwc, x_res, w1k, b1, w2t, b2)

    # Output is already NCHW-flat: free metadata reshape, no transpose copy.
    return out_flat.reshape(N, Cout, H, W)


def ref_basic_block(x, params, eps=1e-5):
    """Pure-JAX reference (NCHW, eval-mode BN), mirrors the PyTorch forward."""
    (w1, g1, be1, m1, v1, w2, g2, be2, m2, v2) = params

    def bn(y, g, b, m, v):
        return ((y - m[None, :, None, None])
                / jnp.sqrt(v + eps)[None, :, None, None]
                * g[None, :, None, None] + b[None, :, None, None])

    dn = ('NCHW', 'OIHW', 'NCHW')
    out = jax.lax.conv_general_dilated(x, w1, (1, 1), ((1, 1), (1, 1)),
                                       dimension_numbers=dn)
    out = jnp.maximum(bn(out, g1, be1, m1, v1), 0.0)
    out = jax.lax.conv_general_dilated(out, w2, (1, 1), ((1, 1), (1, 1)),
                                       dimension_numbers=dn)
    out = bn(out, g2, be2, m2, v2)
    return jnp.maximum(out + x, 0.0)


if __name__ == "__main__":
    key = jax.random.PRNGKey(0)
    ks = jax.random.split(key, 12)

    # Small shapes consistent with BasicBlock(in_channels=8, out_channels=8).
    N, C, H, W = 2, 8, 16, 16
    x = jax.random.normal(ks[0], (N, C, H, W), jnp.float32)

    # Deterministic synthetic parameters (shapes as in __init__).
    w1 = jax.random.normal(ks[1], (C, C, 3, 3), jnp.float32) * 0.1   # conv1
    w2 = jax.random.normal(ks[2], (C, C, 3, 3), jnp.float32) * 0.1   # conv2
    g1 = jax.random.uniform(ks[3], (C,), jnp.float32, 0.5, 1.5)      # bn1 gamma
    be1 = jax.random.normal(ks[4], (C,), jnp.float32) * 0.1          # bn1 beta
    m1 = jax.random.normal(ks[5], (C,), jnp.float32) * 0.1           # bn1 mean
    v1 = jax.random.uniform(ks[6], (C,), jnp.float32, 0.5, 1.5)      # bn1 var
    g2 = jax.random.uniform(ks[7], (C,), jnp.float32, 0.5, 1.5)      # bn2 gamma
    be2 = jax.random.normal(ks[8], (C,), jnp.float32) * 0.1          # bn2 beta
    m2 = jax.random.normal(ks[9], (C,), jnp.float32) * 0.1           # bn2 mean
    v2 = jax.random.uniform(ks[10], (C,), jnp.float32, 0.5, 1.5)     # bn2 var

    params = (w1, g1, be1, m1, v1, w2, g2, be2, m2, v2)

    ref = jax.block_until_ready(ref_basic_block(x, params))

    # f32 MXU operands: tight check vs the f32 JAX reference.
    out = jax.block_until_ready(basic_block_forward(x, params))
    assert out.shape == (N, C, H, W), out.shape
    err_f32 = float(jnp.max(jnp.abs(out - ref)))
    assert err_f32 < 1e-3, f"f32 path mismatch vs reference: max_err={err_f32}"

    # bf16 MXU operands (profitable on v5e/v6e/v7x): looser tolerance since
    # the folded BN scale is quantized into the bf16 weights.
    out_bf16 = jax.block_until_ready(
        basic_block_forward(x, params, use_bf16_operands=True))
    err_bf16 = float(jnp.max(jnp.abs(out_bf16 - ref)))
    assert err_bf16 < 1e-1, f"bf16 path mismatch vs reference: max_err={err_bf16}"

    print("KERNEL_OK")
</pallas_src>

<mosaic_0001>
module attributes {stable_mosaic.version = 11 : i64} {
  func.func @basic_block_kernel(%arg0: i32, %arg1: memref<2x16x16x8xf32, #tpu.memory_space<vmem>>, %arg2: memref<2x8x256xf32, #tpu.memory_space<vmem>>, %arg3: memref<72x8xf32, #tpu.memory_space<vmem>>, %arg4: memref<1x8xf32, #tpu.memory_space<vmem>>, %arg5: memref<8x72xf32, #tpu.memory_space<vmem>>, %arg6: memref<8x1xf32, #tpu.memory_space<vmem>>, %arg7: memref<2x8x256xf32, #tpu.memory_space<vmem>>, %arg8: memref<18x18x8xf32, #tpu.memory_space<vmem>>, %arg9: memref<18x18x8xf32, #tpu.memory_space<vmem>>) attributes {dimension_semantics = [#tpu.dimension_semantics<parallel>], iteration_bounds = array<i64: 1>, scalar_prefetch = 0 : i64, scratch_operands = 2 : i64, tpu.core_type = #tpu.core_type<tc>, window_params = [{transform_indices = @transform_0, window_bounds = array<i64: 2, 16, 16, 8>}, {transform_indices = @transform_1, window_bounds = array<i64: 2, 8, 256>}, {pipeline_mode = #tpu.pipeline_mode<synchronous>, transform_indices = @transform_2, window_bounds = array<i64: 72, 8>}, {pipeline_mode = #tpu.pipeline_mode<synchronous>, transform_indices = @transform_3, window_bounds = array<i64: 1, 8>}, {pipeline_mode = #tpu.pipeline_mode<synchronous>, transform_indices = @transform_4, window_bounds = array<i64: 8, 72>}, {pipeline_mode = #tpu.pipeline_mode<synchronous>, transform_indices = @transform_5, window_bounds = array<i64: 8, 1>}, {transform_indices = @transform_6, window_bounds = array<i64: 2, 8, 256>}]} {
    %cst = arith.constant 0.000000e+00 : f32
    %0 = vector.broadcast %cst : f32 to vector<1x18x8xf32>
    %c0 = arith.constant 0 : index
    %c0_0 = arith.constant 0 : index
    %c0_1 = arith.constant 0 : index
    %1 = vector.load %arg8[%c0, %c0_0, %c0_1] : memref<18x18x8xf32, #tpu.memory_space<vmem>>, vector<1x18x8xf32>
    tpu.vector_store %arg8[%c0, %c0_0, %c0_1], %0 {strides = array<i32>} : memref<18x18x8xf32, #tpu.memory_space<vmem>>, vector<1x18x8xf32>,
    %cst_2 = arith.constant 0.000000e+00 : f32
    %2 = vector.broadcast %cst_2 : f32 to vector<1x18x8xf32>
    %c17 = arith.constant 17 : index
    %c0_3 = arith.constant 0 : index
    %c0_4 = arith.constant 0 : index
    %3 = vector.load %arg8[%c17, %c0_3, %c0_4] : memref<18x18x8xf32, #tpu.memory_space<vmem>>, vector<1x18x8xf32>
    tpu.vector_store %arg8[%c17, %c0_3, %c0_4], %2 {strides = array<i32>} : memref<18x18x8xf32, #tpu.memory_space<vmem>>, vector<1x18x8xf32>,
    %cst_5 = arith.constant 0.000000e+00 : f32
    %4 = vector.broadcast %cst_5 : f32 to vector<18x1x8xf32>
    %c0_6 = arith.constant 0 : index
    %c0_7 = arith.constant 0 : index
    %c0_8 = arith.constant 0 : index
    %5 = vector.load %arg8[%c0_6, %c0_7, %c0_8] : memref<18x18x8xf32, #tpu.memory_space<vmem>>, vector<18x1x8xf32>
    tpu.vector_store %arg8[%c0_6, %c0_7, %c0_8], %4 {strides = array<i32>} : memref<18x18x8xf32, #tpu.memory_space<vmem>>, vector<18x1x8xf32>,
    %cst_9 = arith.constant 0.000000e+00 : f32
    %6 = vector.broadcast %cst_9 : f32 to vector<18x1x8xf32>
    %c0_10 = arith.constant 0 : index
    %c17_11 = arith.constant 17 : index
    %c0_12 = arith.constant 0 : index
    %7 = vector.load %arg8[%c0_10, %c17_11, %c0_12] : memref<18x18x8xf32, #tpu.memory_space<vmem>>, vector<18x1x8xf32>
    tpu.vector_store %arg8[%c0_10, %c17_11, %c0_12], %6 {strides = array<i32>} : memref<18x18x8xf32, #tpu.memory_space<vmem>>, vector<18x1x8xf32>,
    %cst_13 = arith.constant 0.000000e+00 : f32
    %8 = vector.broadcast %cst_13 : f32 to vector<1x18x8xf32>
    %c0_14 = arith.constant 0 : index
    %c0_15 = arith.constant 0 : index
    %c0_16 = arith.constant 0 : index
    %9 = vector.load %arg9[%c0_14, %c0_15, %c0_16] : memref<18x18x8xf32, #tpu.memory_space<vmem>>, vector<1x18x8xf32>
    tpu.vector_store %arg9[%c0_14, %c0_15, %c0_16], %8 {strides = array<i32>} : memref<18x18x8xf32, #tpu.memory_space<vmem>>, vector<1x18x8xf32>,
    %cst_17 = arith.constant 0.000000e+00 : f32
    %10 = vector.broadcast %cst_17 : f32 to vector<1x18x8xf32>
    %c17_18 = arith.constant 17 : index
    %c0_19 = arith.constant 0 : index
    %c0_20 = arith.constant 0 : index
    %11 = vector.load %arg9[%c17_18, %c0_19, %c0_20] : memref<18x18x8xf32, #tpu.memory_space<vmem>>, vector<1x18x8xf32>
    tpu.vector_store %arg9[%c17_18, %c0_19, %c0_20], %10 {strides = array<i32>} : memref<18x18x8xf32, #tpu.memory_space<vmem>>, vector<1x18x8xf32>,
    %cst_21 = arith.constant 0.000000e+00 : f32
    %12 = vector.broadcast %cst_21 : f32 to vector<18x1x8xf32>
    %c0_22 = arith.constant 0 : index
    %c0_23 = arith.constant 0 : index
    %c0_24 = arith.constant 0 : index
    %13 = vector.load %arg9[%c0_22, %c0_23, %c0_24] : memref<18x18x8xf32, #tpu.memory_space<vmem>>, vector<18x1x8xf32>
    tpu.vector_store %arg9[%c0_22, %c0_23, %c0_24], %12 {strides = array<i32>} : memref<18x18x8xf32, #tpu.memory_space<vmem>>, vector<18x1x8xf32>,
    %cst_25 = arith.constant 0.000000e+00 : f32
    %14 = vector.broadcast %cst_25 : f32 to vector<18x1x8xf32>
    %c0_26 = arith.constant 0 : index
    %c17_27 = arith.constant 17 : index
    %c0_28 = arith.constant 0 : index
    %15 = vector.load %arg9[%c0_26, %c17_27, %c0_28] : memref<18x18x8xf32, #tpu.memory_space<vmem>>, vector<18x1x8xf32>
    tpu.vector_store %arg9[%c0_26, %c17_27, %c0_28], %14 {strides = array<i32>} : memref<18x18x8xf32, #tpu.memory_space<vmem>>, vector<18x1x8xf32>,
    %c0_29 = arith.constant 0 : index
    %c0_30 = arith.constant 0 : index
    %c0_31 = arith.constant 0 : index
    %c0_32 = arith.constant 0 : index
    %16 = vector.load %arg1[%c0_29, %c0_30, %c0_31, %c0_32] : memref<2x16x16x8xf32, #tpu.memory_space<vmem>>, vector<1x16x16x8xf32>
    %17 = vector.shape_cast %16 : vector<1x16x16x8xf32> to vector<16x16x8xf32>
    %c1 = arith.constant 1 : index
    %c1_33 = arith.constant 1 : index
    %c0_34 = arith.constant 0 : index
    %18 = vector.load %arg8[%c1, %c1_33, %c0_34] : memref<18x18x8xf32, #tpu.memory_space<vmem>>, vector<16x16x8xf32>
    tpu.vector_store %arg8[%c1, %c1_33, %c0_34], %17 {strides = array<i32>} : memref<18x18x8xf32, #tpu.memory_space<vmem>>, vector<16x16x8xf32>,
    %c0_35 = arith.constant 0 : index
    %c0_36 = arith.constant 0 : index
    %c0_37 = arith.constant 0 : index
    %19 = vector.load %arg8[%c0_35, %c0_36, %c0_37] : memref<18x18x8xf32, #tpu.memory_space<vmem>>, vector<16x16x8xf32>
    %c0_38 = arith.constant 0 : index
    %c1_39 = arith.constant 1 : index
    %c0_40 = arith.constant 0 : index
    %20 = vector.load %arg8[%c0_38, %c1_39, %c0_40] : memref<18x18x8xf32, #tpu.memory_space<vmem>>, vector<16x16x8xf32>
    %c0_41 = arith.constant 0 : index
    %c2 = arith.constant 2 : index
    %c0_42 = arith.constant 0 : index
    %21 = vector.load %arg8[%c0_41, %c2, %c0_42] : memref<18x18x8xf32, #tpu.memory_space<vmem>>, vector<16x16x8xf32>
    %c1_43 = arith.constant 1 : index
    %c0_44 = arith.constant 0 : index
    %c0_45 = arith.constant 0 : index
    %22 = vector.load %arg8[%c1_43, %c0_44, %c0_45] : memref<18x18x8xf32, #tpu.memory_space<vmem>>, vector<16x16x8xf32>
    %c1_46 = arith.constant 1 : index
    %c1_47 = arith.constant 1 : index
    %c0_48 = arith.constant 0 : index
    %23 = vector.load %arg8[%c1_46, %c1_47, %c0_48] : memref<18x18x8xf32, #tpu.memory_space<vmem>>, vector<16x16x8xf32>
    %c1_49 = arith.constant 1 : index
    %c2_50 = arith.constant 2 : index
    %c0_51 = arith.constant 0 : index
    %24 = vector.load %arg8[%c1_49, %c2_50, %c0_51] : memref<18x18x8xf32, #tpu.memory_space<vmem>>, vector<16x16x8xf32>
    %c2_52 = arith.constant 2 : index
    %c0_53 = arith.constant 0 : index
    %c0_54 = arith.constant 0 : index
    %25 = vector.load %arg8[%c2_52, %c0_53, %c0_54] : memref<18x18x8xf32, #tpu.memory_space<vmem>>, vector<16x16x8xf32>
    %c2_55 = arith.constant 2 : index
    %c1_56 = arith.constant 1 : index
    %c0_57 = arith.constant 0 : index
    %26 = vector.load %arg8[%c2_55, %c1_56, %c0_57] : memref<18x18x8xf32, #tpu.memory_space<vmem>>, vector<16x16x8xf32>
    %c2_58 = arith.constant 2 : index
    %c2_59 = arith.constant 2 : index
    %c0_60 = arith.constant 0 : index
    %27 = vector.load %arg8[%c2_58, %c2_59, %c0_60] : memref<18x18x8xf32, #tpu.memory_space<vmem>>, vector<16x16x8xf32>
    %28 = tpu.concatenate %19, %20, %21, %22, %23, %24, %25, %26, %27 in 2 : vector<16x16x8xf32>, vector<16x16x8xf32>, vector<16x16x8xf32>, vector<16x16x8xf32>, vector<16x16x8xf32>, vector<16x16x8xf32>, vector<16x16x8xf32>, vector<16x16x8xf32>, vector<16x16x8xf32> -> vector<16x16x72xf32>
    %29 = vector.shape_cast %28 : vector<16x16x72xf32> to vector<256x72xf32>
    %c0_61 = arith.constant 0 : index
    %c0_62 = arith.constant 0 : index
    %30 = vector.load %arg3[%c0_61, %c0_62] : memref<72x8xf32, #tpu.memory_space<vmem>>, vector<72x8xf32>
    %cst_63 = arith.constant dense<0.000000e+00> : vector<256x8xf32>
    %31 = tpu.matmul %29, %30, %cst_63 {dimension_numbers = #tpu.dot_dimension_numbers<[1], [0], [0], [1], [0, 0, 1, 1], [], []>} : vector<256x72xf32>, vector<72x8xf32>, vector<256x8xf32> -> vector<256x8xf32>
    %c0_64 = arith.constant 0 : index
    %c0_65 = arith.constant 0 : index
    %32 = vector.load %arg4[%c0_64, %c0_65] : memref<1x8xf32, #tpu.memory_space<vmem>>, vector<1x8xf32>
    %33 = vector.broadcast %32 : vector<1x8xf32> to vector<256x8xf32>
    %34 = arith.addf %31, %33 : vector<256x8xf32>
    %cst_66 = arith.constant 0.000000e+00 : f32
    %35 = vector.broadcast %cst_66 : f32 to vector<256x8xf32>
    %36 = arith.maximumf %34, %35 : vector<256x8xf32>
    %37 = vector.shape_cast %36 : vector<256x8xf32> to vector<16x16x8xf32>
    %c1_67 = arith.constant 1 : index
    %c1_68 = arith.constant 1 : index
    %c0_69 = arith.constant 0 : index
    %38 = vector.load %arg9[%c1_67, %c1_68, %c0_69] : memref<18x18x8xf32, #tpu.memory_space<vmem>>, vector<16x16x8xf32>
    tpu.vector_store %arg9[%c1_67, %c1_68, %c0_69], %37 {strides = array<i32>} : memref<18x18x8xf32, #tpu.memory_space<vmem>>, vector<16x16x8xf32>,
    %c0_70 = arith.constant 0 : index
    %c0_71 = arith.constant 0 : index
    %c0_72 = arith.constant 0 : index
    %39 = vector.load %arg9[%c0_70, %c0_71, %c0_72] : memref<18x18x8xf32, #tpu.memory_space<vmem>>, vector<16x16x8xf32>
    %c0_73 = arith.constant 0 : index
    %c1_74 = arith.constant 1 : index
    %c0_75 = arith.constant 0 : index
    %40 = vector.load %arg9[%c0_73, %c1_74, %c0_75] : memref<18x18x8xf32, #tpu.memory_space<vmem>>, vector<16x16x8xf32>
    %c0_76 = arith.constant 0 : index
    %c2_77 = arith.constant 2 : index
    %c0_78 = arith.constant 0 : index
    %41 = vector.load %arg9[%c0_76, %c2_77, %c0_78] : memref<18x18x8xf32, #tpu.memory_space<vmem>>, vector<16x16x8xf32>
    %c1_79 = arith.constant 1 : index
    %c0_80 = arith.constant 0 : index
    %c0_81 = arith.constant 0 : index
    %42 = vector.load %arg9[%c1_79, %c0_80, %c0_81] : memref<18x18x8xf32, #tpu.memory_space<vmem>>, vector<16x16x8xf32>
    %c1_82 = arith.constant 1 : index
    %c1_83 = arith.constant 1 : index
    %c0_84 = arith.constant 0 : index
    %43 = vector.load %arg9[%c1_82, %c1_83, %c0_84] : memref<18x18x8xf32, #tpu.memory_space<vmem>>, vector<16x16x8xf32>
    %c1_85 = arith.constant 1 : index
    %c2_86 = arith.constant 2 : index
    %c0_87 = arith.constant 0 : index
    %44 = vector.load %arg9[%c1_85, %c2_86, %c0_87] : memref<18x18x8xf32, #tpu.memory_space<vmem>>, vector<16x16x8xf32>
    %c2_88 = arith.constant 2 : index
    %c0_89 = arith.constant 0 : index
    %c0_90 = arith.constant 0 : index
    %45 = vector.load %arg9[%c2_88, %c0_89, %c0_90] : memref<18x18x8xf32, #tpu.memory_space<vmem>>, vector<16x16x8xf32>
    %c2_91 = arith.constant 2 : index
    %c1_92 = arith.constant 1 : index
    %c0_93 = arith.constant 0 : index
    %46 = vector.load %arg9[%c2_91, %c1_92, %c0_93] : memref<18x18x8xf32, #tpu.memory_space<vmem>>, vector<16x16x8xf32>
    %c2_94 = arith.constant 2 : index
    %c2_95 = arith.constant 2 : index
    %c0_96 = arith.constant 0 : index
    %47 = vector.load %arg9[%c2_94, %c2_95, %c0_96] : memref<18x18x8xf32, #tpu.memory_space<vmem>>, vector<16x16x8xf32>
    %48 = tpu.concatenate %39, %40, %41, %42, %43, %44, %45, %46, %47 in 2 : vector<16x16x8xf32>, vector<16x16x8xf32>, vector<16x16x8xf32>, vector<16x16x8xf32>, vector<16x16x8xf32>, vector<16x16x8xf32>, vector<16x16x8xf32>, vector<16x16x8xf32>, vector<16x16x8xf32> -> vector<16x16x72xf32>
    %49 = vector.shape_cast %48 : vector<16x16x72xf32> to vector<256x72xf32>
    %c0_97 = arith.constant 0 : index
    %c0_98 = arith.constant 0 : index
    %50 = vector.load %arg5[%c0_97, %c0_98] : memref<8x72xf32, #tpu.memory_space<vmem>>, vector<8x72xf32>
    %cst_99 = arith.constant dense<0.000000e+00> : vector<8x256xf32>
    %51 = tpu.matmul %50, %49, %cst_99 {dimension_numbers = #tpu.dot_dimension_numbers<[1], [1], [0], [0], [0, 0, 1, 0], [], []>} : vector<8x72xf32>, vector<256x72xf32>, vector<8x256xf32> -> vector<8x256xf32>
    %c0_100 = arith.constant 0 : index
    %c0_101 = arith.constant 0 : index
    %52 = vector.load %arg6[%c0_100, %c0_101] : memref<8x1xf32, #tpu.memory_space<vmem>>, vector<8x1xf32>
    %53 = vector.broadcast %52 : vector<8x1xf32> to vector<8x256xf32>
    %54 = arith.addf %51, %53 : vector<8x256xf32>
    %c0_102 = arith.constant 0 : index
    %c0_103 = arith.constant 0 : index
    %c0_104 = arith.constant 0 : index
    %55 = vector.load %arg2[%c0_102, %c0_103, %c0_104] : memref<2x8x256xf32, #tpu.memory_space<vmem>>, vector<1x8x256xf32>
    %56 = vector.shape_cast %55 : vector<1x8x256xf32> to vector<8x256xf32>
    %57 = arith.addf %54, %56 : vector<8x256xf32>
    %cst_105 = arith.constant 0.000000e+00 : f32
    %58 = vector.broadcast %cst_105 : f32 to vector<8x256xf32>
    %59 = arith.maximumf %57, %58 : vector<8x256xf32>
    %c0_106 = arith.constant 0 : index
    %c0_107 = arith.constant 0 : index
    %c0_108 = arith.constant 0 : index
    %60 = vector.load %arg7[%c0_106, %c0_107, %c0_108] : memref<2x8x256xf32, #tpu.memory_space<vmem>>, vector<1x8x256xf32>
    %61 = vector.shape_cast %60 : vector<1x8x256xf32> to vector<8x256xf32>
    %62 = vector.shape_cast %59 : vector<8x256xf32> to vector<1x8x256xf32>
    tpu.vector_store %arg7[%c0_106, %c0_107, %c0_108], %62 {strides = array<i32>} : memref<2x8x256xf32, #tpu.memory_space<vmem>>, vector<1x8x256xf32>,
    %c1_109 = arith.constant 1 : index
    %c0_110 = arith.constant 0 : index
    %c0_111 = arith.constant 0 : index
    %c0_112 = arith.constant 0 : index
    %63 = vector.load %arg1[%c1_109, %c0_110, %c0_111, %c0_112] : memref<2x16x16x8xf32, #tpu.memory_space<vmem>>, vector<1x16x16x8xf32>
    %64 = vector.shape_cast %63 : vector<1x16x16x8xf32> to vector<16x16x8xf32>
    %c1_113 = arith.constant 1 : index
    %c1_114 = arith.constant 1 : index
    %c0_115 = arith.constant 0 : index
    %65 = vector.load %arg8[%c1_113, %c1_114, %c0_115] : memref<18x18x8xf32, #tpu.memory_space<vmem>>, vector<16x16x8xf32>
    tpu.vector_store %arg8[%c1_113, %c1_114, %c0_115], %64 {strides = array<i32>} : memref<18x18x8xf32, #tpu.memory_space<vmem>>, vector<16x16x8xf32>,
    %c0_116 = arith.constant 0 : index
    %c0_117 = arith.constant 0 : index
    %c0_118 = arith.constant 0 : index
    %66 = vector.load %arg8[%c0_116, %c0_117, %c0_118] : memref<18x18x8xf32, #tpu.memory_space<vmem>>, vector<16x16x8xf32>
    %c0_119 = arith.constant 0 : index
    %c1_120 = arith.constant 1 : index
    %c0_121 = arith.constant 0 : index
    %67 = vector.load %arg8[%c0_119, %c1_120, %c0_121] : memref<18x18x8xf32, #tpu.memory_space<vmem>>, vector<16x16x8xf32>
    %c0_122 = arith.constant 0 : index
    %c2_123 = arith.constant 2 : index
    %c0_124 = arith.constant 0 : index
    %68 = vector.load %arg8[%c0_122, %c2_123, %c0_124] : memref<18x18x8xf32, #tpu.memory_space<vmem>>, vector<16x16x8xf32>
    %c1_125 = arith.constant 1 : index
    %c0_126 = arith.constant 0 : index
    %c0_127 = arith.constant 0 : index
    %69 = vector.load %arg8[%c1_125, %c0_126, %c0_127] : memref<18x18x8xf32, #tpu.memory_space<vmem>>, vector<16x16x8xf32>
    %c1_128 = arith.constant 1 : index
    %c1_129 = arith.constant 1 : index
    %c0_130 = arith.constant 0 : index
    %70 = vector.load %arg8[%c1_128, %c1_129, %c0_130] : memref<18x18x8xf32, #tpu.memory_space<vmem>>, vector<16x16x8xf32>
    %c1_131 = arith.constant 1 : index
    %c2_132 = arith.constant 2 : index
    %c0_133 = arith.constant 0 : index
    %71 = vector.load %arg8[%c1_131, %c2_132, %c0_133] : memref<18x18x8xf32, #tpu.memory_space<vmem>>, vector<16x16x8xf32>
    %c2_134 = arith.constant 2 : index
    %c0_135 = arith.constant 0 : index
    %c0_136 = arith.constant 0 : index
    %72 = vector.load %arg8[%c2_134, %c0_135, %c0_136] : memref<18x18x8xf32, #tpu.memory_space<vmem>>, vector<16x16x8xf32>
    %c2_137 = arith.constant 2 : index
    %c1_138 = arith.constant 1 : index
    %c0_139 = arith.constant 0 : index
    %73 = vector.load %arg8[%c2_137, %c1_138, %c0_139] : memref<18x18x8xf32, #tpu.memory_space<vmem>>, vector<16x16x8xf32>
    %c2_140 = arith.constant 2 : index
    %c2_141 = arith.constant 2 : index
    %c0_142 = arith.constant 0 : index
    %74 = vector.load %arg8[%c2_140, %c2_141, %c0_142] : memref<18x18x8xf32, #tpu.memory_space<vmem>>, vector<16x16x8xf32>
    %75 = tpu.concatenate %66, %67, %68, %69, %70, %71, %72, %73, %74 in 2 : vector<16x16x8xf32>, vector<16x16x8xf32>, vector<16x16x8xf32>, vector<16x16x8xf32>, vector<16x16x8xf32>, vector<16x16x8xf32>, vector<16x16x8xf32>, vector<16x16x8xf32>, vector<16x16x8xf32> -> vector<16x16x72xf32>
    %76 = vector.shape_cast %75 : vector<16x16x72xf32> to vector<256x72xf32>
    %c0_143 = arith.constant 0 : index
    %c0_144 = arith.constant 0 : index
    %77 = vector.load %arg3[%c0_143, %c0_144] : memref<72x8xf32, #tpu.memory_space<vmem>>, vector<72x8xf32>
    %cst_145 = arith.constant dense<0.000000e+00> : vector<256x8xf32>
    %78 = tpu.matmul %76, %77, %cst_145 {dimension_numbers = #tpu.dot_dimension_numbers<[1], [0], [0], [1], [0, 0, 1, 1], [], []>} : vector<256x72xf32>, vector<72x8xf32>, vector<256x8xf32> -> vector<256x8xf32>
    %c0_146 = arith.constant 0 : index
    %c0_147 = arith.constant 0 : index
    %79 = vector.load %arg4[%c0_146, %c0_147] : memref<1x8xf32, #tpu.memory_space<vmem>>, vector<1x8xf32>
    %80 = vector.broadcast %79 : vector<1x8xf32> to vector<256x8xf32>
    %81 = arith.addf %78, %80 : vector<256x8xf32>
    %cst_148 = arith.constant 0.000000e+00 : f32
    %82 = vector.broadcast %cst_148 : f32 to vector<256x8xf32>
    %83 = arith.maximumf %81, %82 : vector<256x8xf32>
    %84 = vector.shape_cast %83 : vector<256x8xf32> to vector<16x16x8xf32>
    %c1_149 = arith.constant 1 : index
    %c1_150 = arith.constant 1 : index
    %c0_151 = arith.constant 0 : index
    %85 = vector.load %arg9[%c1_149, %c1_150, %c0_151] : memref<18x18x8xf32, #tpu.memory_space<vmem>>, vector<16x16x8xf32>
    tpu.vector_store %arg9[%c1_149, %c1_150, %c0_151], %84 {strides = array<i32>} : memref<18x18x8xf32, #tpu.memory_space<vmem>>, vector<16x16x8xf32>,
    %c0_152 = arith.constant 0 : index
    %c0_153 = arith.constant 0 : index
    %c0_154 = arith.constant 0 : index
    %86 = vector.load %arg9[%c0_152, %c0_153, %c0_154] : memref<18x18x8xf32, #tpu.memory_space<vmem>>, vector<16x16x8xf32>
    %c0_155 = arith.constant 0 : index
    %c1_156 = arith.constant 1 : index
    %c0_157 = arith.constant 0 : index
    %87 = vector.load %arg9[%c0_155, %c1_156, %c0_157] : memref<18x18x8xf32, #tpu.memory_space<vmem>>, vector<16x16x8xf32>
    %c0_158 = arith.constant 0 : index
    %c2_159 = arith.constant 2 : index
    %c0_160 = arith.constant 0 : index
    %88 = vector.load %arg9[%c0_158, %c2_159, %c0_160] : memref<18x18x8xf32, #tpu.memory_space<vmem>>, vector<16x16x8xf32>
    %c1_161 = arith.constant 1 : index
    %c0_162 = arith.constant 0 : index
    %c0_163 = arith.constant 0 : index
    %89 = vector.load %arg9[%c1_161, %c0_162, %c0_163] : memref<18x18x8xf32, #tpu.memory_space<vmem>>, vector<16x16x8xf32>
    %c1_164 = arith.constant 1 : index
    %c1_165 = arith.constant 1 : index
    %c0_166 = arith.constant 0 : index
    %90 = vector.load %arg9[%c1_164, %c1_165, %c0_166] : memref<18x18x8xf32, #tpu.memory_space<vmem>>, vector<16x16x8xf32>
    %c1_167 = arith.constant 1 : index
    %c2_168 = arith.constant 2 : index
    %c0_169 = arith.constant 0 : index
    %91 = vector.load %arg9[%c1_167, %c2_168, %c0_169] : memref<18x18x8xf32, #tpu.memory_space<vmem>>, vector<16x16x8xf32>
    %c2_170 = arith.constant 2 : index
    %c0_171 = arith.constant 0 : index
    %c0_172 = arith.constant 0 : index
    %92 = vector.load %arg9[%c2_170, %c0_171, %c0_172] : memref<18x18x8xf32, #tpu.memory_space<vmem>>, vector<16x16x8xf32>
    %c2_173 = arith.constant 2 : index
    %c1_174 = arith.constant 1 : index
    %c0_175 = arith.constant 0 : index
    %93 = vector.load %arg9[%c2_173, %c1_174, %c0_175] : memref<18x18x8xf32, #tpu.memory_space<vmem>>, vector<16x16x8xf32>
    %c2_176 = arith.constant 2 : index
    %c2_177 = arith.constant 2 : index
    %c0_178 = arith.constant 0 : index
    %94 = vector.load %arg9[%c2_176, %c2_177, %c0_178] : memref<18x18x8xf32, #tpu.memory_space<vmem>>, vector<16x16x8xf32>
    %95 = tpu.concatenate %86, %87, %88, %89, %90, %91, %92, %93, %94 in 2 : vector<16x16x8xf32>, vector<16x16x8xf32>, vector<16x16x8xf32>, vector<16x16x8xf32>, vector<16x16x8xf32>, vector<16x16x8xf32>, vector<16x16x8xf32>, vector<16x16x8xf32>, vector<16x16x8xf32> -> vector<16x16x72xf32>
    %96 = vector.shape_cast %95 : vector<16x16x72xf32> to vector<256x72xf32>
    %c0_179 = arith.constant 0 : index
    %c0_180 = arith.constant 0 : index
    %97 = vector.load %arg5[%c0_179, %c0_180] : memref<8x72xf32, #tpu.memory_space<vmem>>, vector<8x72xf32>
    %cst_181 = arith.constant dense<0.000000e+00> : vector<8x256xf32>
    %98 = tpu.matmul %97, %96, %cst_181 {dimension_numbers = #tpu.dot_dimension_numbers<[1], [1], [0], [0], [0, 0, 1, 0], [], []>} : vector<8x72xf32>, vector<256x72xf32>, vector<8x256xf32> -> vector<8x256xf32>
    %c0_182 = arith.constant 0 : index
    %c0_183 = arith.constant 0 : index
    %99 = vector.load %arg6[%c0_182, %c0_183] : memref<8x1xf32, #tpu.memory_space<vmem>>, vector<8x1xf32>
    %100 = vector.broadcast %99 : vector<8x1xf32> to vector<8x256xf32>
    %101 = arith.addf %98, %100 : vector<8x256xf32>
    %c1_184 = arith.constant 1 : index
    %c0_185 = arith.constant 0 : index
    %c0_186 = arith.constant 0 : index
    %102 = vector.load %arg2[%c1_184, %c0_185, %c0_186] : memref<2x8x256xf32, #tpu.memory_space<vmem>>, vector<1x8x256xf32>
    %103 = vector.shape_cast %102 : vector<1x8x256xf32> to vector<8x256xf32>
    %104 = arith.addf %101, %103 : vector<8x256xf32>
    %cst_187 = arith.constant 0.000000e+00 : f32
    %105 = vector.broadcast %cst_187 : f32 to vector<8x256xf32>
    %106 = arith.maximumf %104, %105 : vector<8x256xf32>
    %c1_188 = arith.constant 1 : index
    %c0_189 = arith.constant 0 : index
    %c0_190 = arith.constant 0 : index
    %107 = vector.load %arg7[%c1_188, %c0_189, %c0_190] : memref<2x8x256xf32, #tpu.memory_space<vmem>>, vector<1x8x256xf32>
    %108 = vector.shape_cast %107 : vector<1x8x256xf32> to vector<8x256xf32>
    %109 = vector.shape_cast %106 : vector<8x256xf32> to vector<1x8x256xf32>
    tpu.vector_store %arg7[%c1_188, %c0_189, %c0_190], %109 {strides = array<i32>} : memref<2x8x256xf32, #tpu.memory_space<vmem>>, vector<1x8x256xf32>,
    return
  }
  func.func @transform_0(%arg0: i32) -> (i32, i32, i32, i32) {
    %c0_i32 = arith.constant 0 : i32
    %c0_i32_0 = arith.constant 0 : i32
    %c0_i32_1 = arith.constant 0 : i32
    %c0_i32_2 = arith.constant 0 : i32
    return %arg0, %c0_i32, %c0_i32_0, %c0_i32_1 : i32, i32, i32, i32
  }
  func.func @transform_1(%arg0: i32) -> (i32, i32, i32) {
    %c0_i32 = arith.constant 0 : i32
    %c0_i32_0 = arith.constant 0 : i32
    %c0_i32_1 = arith.constant 0 : i32
    return %arg0, %c0_i32, %c0_i32_0 : i32, i32, i32
  }
  func.func @transform_2(%arg0: i32) -> (i32, i32) {
    %c0_i32 = arith.constant 0 : i32
    %c0_i32_0 = arith.constant 0 : i32
    %c0_i32_1 = arith.constant 0 : i32
    return %c0_i32, %c0_i32_0 : i32, i32
  }
  func.func @transform_3(%arg0: i32) -> (i32, i32) {
    %c0_i32 = arith.constant 0 : i32
    %c0_i32_0 = arith.constant 0 : i32
    %c0_i32_1 = arith.constant 0 : i32
    return %c0_i32, %c0_i32_0 : i32, i32
  }
  func.func @transform_4(%arg0: i32) -> (i32, i32) {
    %c0_i32 = arith.constant 0 : i32
    %c0_i32_0 = arith.constant 0 : i32
    %c0_i32_1 = arith.constant 0 : i32
    return %c0_i32, %c0_i32_0 : i32, i32
  }
  func.func @transform_5(%arg0: i32) -> (i32, i32) {
    %c0_i32 = arith.constant 0 : i32
    %c0_i32_0 = arith.constant 0 : i32
    %c0_i32_1 = arith.constant 0 : i32
    return %c0_i32, %c0_i32_0 : i32, i32
  }
  func.func @transform_6(%arg0: i32) -> (i32, i32, i32) {
    %c0_i32 = arith.constant 0 : i32
    %c0_i32_0 = arith.constant 0 : i32
    %c0_i32_1 = arith.constant 0 : i32
    return %arg0, %c0_i32, %c0_i32_0 : i32, i32, i32
  }
}

</mosaic_0001>

<bundles_post_ra>
// kernel: tpu_custom_call.1
= control target key start
LH: loop header
LB: loop body
LE: loop exit
PB: predicated region body
PF: predicated region fallthrough
CT: control target
= control target key end

     0   :  { %vm24_vm0 = vcmask 64512   ;;  %vm27_vm1 = vcmask 58368   ;;  %v9701_v2 = vmov 0.0   ;;  %vm33_vm2 = vcmask 57344   ;;  %s9702_s19 = smov 8   ;;  %s15834_s0 = inlined_call_operand.vmem [shape: f32[2,16,16,8], index: 0, kind: input, shape index: {}]   ;;  %s15835_s1 = inlined_call_operand.vmem [shape: f32[2,8,256], index: 1, kind: input, shape index: {}]   ;;  %s15836_s2 = inlined_call_operand.vmem [shape: f32[72,8], index: 2, kind: input, shape index: {}]   ;;  %s15837_s3 = inlined_call_operand.vmem [shape: f32[1,8], index: 3, kind: input, shape index: {}]   ;;  %s15838_s4 = inlined_call_operand.vmem [shape: f32[8,72], index: 4, kind: input, shape index: {}]   ;;  %s15839_s5 = inlined_call_operand.vmem [shape: f32[8,1], index: 5, kind: input, shape index: {}]   ;;  %s15840_s6 = inlined_call_operand.hbm [shape: f32[2,8,256], index: 6, kind: output, shape index: {}]  }
   0x1   :  { %v113_v0 = vld [vmem:[%s15834_s0] sm:$0xff]  ;;  %v114_v1 = vld [vmem:[%s15834_s0 + $0x8] sm:$0xff]  ;;  %25 = vst.msk [vmem:[#allocation2] sm:$0xff] %vm24_vm0, %v9701_v2  ;;  %26 = vst.msk [vmem:[#allocation2 + $0x8] sm:$0xff] %vm24_vm0, %v9701_v2 }
   0x2   :  { %146 = vst.msk [vmem:[#allocation2 + $0x19] sm:$0xff] %vm24_vm0, %v113_v0  ;;  %30 = vst.msk [vmem:[#allocation2 + $0x198] sm:$0xff] %vm24_vm0, %v9701_v2  ;;  %v116_v3 = vld [vmem:[%s15834_s0 + $0x18] sm:$0xff]  ;;  %v115_v4 = vld [vmem:[%s15834_s0 + $0x10] sm:$0xff] }
   0x3   :  { %31 = vst.msk [vmem:[#allocation2 + $0x1a0] sm:$0xff] %vm24_vm0, %v9701_v2  ;;  %70 = vst.msk [vmem:[#allocation3] sm:$0xff] %vm24_vm0, %v9701_v2  ;;  %v118_v5 = vld [vmem:[%s15834_s0 + $0x28] sm:$0xff]  ;;  %v9791_v6 = vld [vmem:[%s15834_s0 + $0x20] sm:$0xff] }
   0x4   :  { %71 = vst.msk [vmem:[#allocation3 + $0x8] sm:$0xff] %vm24_vm0, %v9701_v2  ;;  %74 = vst.msk [vmem:[#allocation3 + $0x198] sm:$0xff] %vm24_vm0, %v9701_v2  ;;  %v9796_v7 = vld [vmem:[%s15834_s0 + $0x38] sm:$0xff]  ;;  %v9801_v8 = vld [vmem:[%s15834_s0 + $0x30] sm:$0xff] }
   0x5   :  { %75 = vst.msk [vmem:[#allocation3 + $0x1a0] sm:$0xff] %vm24_vm0, %v9701_v2  ;;  %147 = vst.msk [vmem:[#allocation2 + $0x21] sm:$0xff] %vm24_vm0, %v114_v1  ;;  %v122_v9 = vld [vmem:[%s15834_s0 + $0x48] sm:$0xff]  ;;  %v121_v10 = vld [vmem:[%s15834_s0 + $0x40] sm:$0xff] }
   0x6   :  { %28 = vst.msk [vmem:[#allocation2 + $0x10] sm:$0x3] %vm27_vm1, %v9701_v2  ;;  %32 = vst.msk [vmem:[#allocation2 + $0x1a8] sm:$0x3] %vm27_vm1, %v9701_v2  ;;  %v124_v11 = vld [vmem:[%s15834_s0 + $0x58] sm:$0xff]  ;;  %v123_v12 = vld [vmem:[%s15834_s0 + $0x50] sm:$0xff] }
   0x7   :  { %72 = vst.msk [vmem:[#allocation3 + $0x10] sm:$0x3] %vm27_vm1, %v9701_v2  ;;  %76 = vst.msk [vmem:[#allocation3 + $0x1a8] sm:$0x3] %vm27_vm1, %v9701_v2  ;;  %v126_v13 = vld [vmem:[%s15834_s0 + $0x68] sm:$0xff]  ;;  %v125_v14 = vld [vmem:[%s15834_s0 + $0x60] sm:$0xff] }
   0x8   :  { %149 = vst.msk [vmem:[#allocation2 + $0x39] sm:$0xff] %vm24_vm0, %v116_v3  ;;  %148 = vst.msk [vmem:[#allocation2 + $0x31] sm:$0xff] %vm24_vm0, %v115_v4  ;;  %v128_v15 = vld [vmem:[%s15834_s0 + $0x78] sm:$0xff]  ;;  %v127_v16 = vld [vmem:[%s15834_s0 + $0x70] sm:$0xff] }
   0x9   :  { %151 = vst.msk [vmem:[#allocation2 + $0x51] sm:$0xff] %vm24_vm0, %v118_v5  ;;  %150 = vst.msk [vmem:[#allocation2 + $0x49] sm:$0xff] %vm24_vm0, %v9791_v6  ;;  %v130_v17 = vld [vmem:[%s15834_s0 + $0x88] sm:$0xff]  ;;  %v129_v18 = vld [vmem:[%s15834_s0 + $0x80] sm:$0xff] }
   0xa   :  { %52 = vst.msk [vmem:[#allocation2 + $0x11] sm:$0x1] %vm33_vm2, %v9701_v2  ;;  %34 = vst.msk [vmem:[#allocation2] sm:$0x1] %vm33_vm2, %v9701_v2  ;;  %v132_v19 = vld [vmem:[%s15834_s0 + $0x98] sm:$0xff]  ;;  %v131_v20 = vld [vmem:[%s15834_s0 + $0x90] sm:$0xff] }
   0xb   :  { %35 = vst.msk [vmem:[#allocation2 + $0x18] sm:$0x1] %vm33_vm2, %v9701_v2  ;;  %36 = vst.msk [vmem:[#allocation2 + $0x30] sm:$0x1] %vm33_vm2, %v9701_v2  ;;  %v134_v21 = vld [vmem:[%s15834_s0 + $0xa8] sm:$0xff]  ;;  %v133_v22 = vld [vmem:[%s15834_s0 + $0xa0] sm:$0xff] }
   0xc   :  { %37 = vst.msk [vmem:[#allocation2 + $0x48] sm:$0x1] %vm33_vm2, %v9701_v2  ;;  %38 = vst.msk [vmem:[#allocation2 + $0x60] sm:$0x1] %vm33_vm2, %v9701_v2  ;;  %v136_v23 = vld [vmem:[%s15834_s0 + $0xb8] sm:$0xff]  ;;  %v210_v25 = vld [vmem:[#allocation2 + $0x1] sm:$0xff] }
   0xd   :  { %39 = vst.msk [vmem:[#allocation2 + $0x78] sm:$0x1] %vm33_vm2, %v9701_v2  ;;  %40 = vst.msk [vmem:[#allocation2 + $0x90] sm:$0x1] %vm33_vm2, %v9701_v2  ;;  %v10010_v24 = vld [vmem:[#allocation2 + $0x19] sm:$0xff]  ;;  %499 = vrot.lane.b32.xlu0 %v210_v25, %s9702_s19  ;;  %v10018_v26 = vld [vmem:[#allocation2 + $0x21] sm:$0xff] }
   0xe   :  { %41 = vst.msk [vmem:[#allocation2 + $0xa8] sm:$0x1] %vm33_vm2, %v9701_v2  ;;  %42 = vst.msk [vmem:[#allocation2 + $0xc0] sm:$0x1] %vm33_vm2, %v9701_v2  ;;  %503 = vrot.lane.b32.xlu1 %v10010_v24, %s9702_s19  ;;  %v211_v27 = vld [vmem:[#allocation2 + $0x9] sm:$0xff]  ;;  %v137_v34 = vld [vmem:[%s15834_s0 + $0xc0] sm:$0xff] }
   0xf   :  { %43 = vst.msk [vmem:[#allocation2 + $0xd8] sm:$0x1] %vm33_vm2, %v9701_v2  ;;  %44 = vst.msk [vmem:[#allocation2 + $0xf0] sm:$0x1] %vm33_vm2, %v9701_v2  ;;  %v10023_v28 = vld [vmem:[#allocation2 + $0x39] sm:$0xff]  ;;  %v10025_v29 = vld [vmem:[#allocation2 + $0x31] sm:$0xff] }
  0x10   :  { %45 = vst.msk [vmem:[#allocation2 + $0x108] sm:$0x1] %vm33_vm2, %v9701_v2  ;;  %46 = vst.msk [vmem:[#allocation2 + $0x120] sm:$0x1] %vm33_vm2, %v9701_v2  ;;  %v10027_v30 = vld [vmem:[#allocation2 + $0x51] sm:$0xff]  ;;  %v138_v32 = vld [vmem:[%s15834_s0 + $0xc8] sm:$0xff] }
  0x11   :  { %47 = vst.msk [vmem:[#allocation2 + $0x138] sm:$0x1] %vm33_vm2, %v9701_v2  ;;  %48 = vst.msk [vmem:[#allocation2 + $0x150] sm:$0x1] %vm33_vm2, %v9701_v2  ;;  %501 = vrot.lane.b32.xlu0 %v211_v27, %s9702_s19  ;;  %v135_v31 = vld [vmem:[%s15834_s0 + $0xb0] sm:$0xff]  ;;  %v140_v35 = vld [vmem:[%s15834_s0 + $0xd8] sm:$0xff] }
  0x12   :  { %49 = vst.msk [vmem:[#allocation2 + $0x168] sm:$0x1] %vm33_vm2, %v9701_v2  ;;  %50 = vst.msk [vmem:[#allocation2 + $0x180] sm:$0x1] %vm33_vm2, %v9701_v2  ;;  %505 = vrot.lane.b32.xlu1 %v10018_v26, %s9702_s19  ;;  %v10039_v33 = vld [vmem:[#allocation2 + $0x49] sm:$0xff]  ;;  %v141_v38 = vld [vmem:[%s15834_s0 + $0xe0] sm:$0xff] }
  0x13   :  { %51 = vst.msk [vmem:[#allocation2 + $0x198] sm:$0x1] %vm33_vm2, %v9701_v2  ;;  %53 = vst.msk [vmem:[#allocation2 + $0x29] sm:$0x1] %vm33_vm2, %v9701_v2  ;;  %v139_v36 = vld [vmem:[%s15834_s0 + $0xd0] sm:$0xff]  ;;  %v142_v37 = vld [vmem:[%s15834_s0 + $0xe8] sm:$0xff] }
  0x14   :  { %54 = vst.msk [vmem:[#allocation2 + $0x41] sm:$0x1] %vm33_vm2, %v9701_v2  ;;  %55 = vst.msk [vmem:[#allocation2 + $0x59] sm:$0x1] %vm33_vm2, %v9701_v2 }
  0x15   :  { %56 = vst.msk [vmem:[#allocation2 + $0x71] sm:$0x1] %vm33_vm2, %v9701_v2  ;;  %57 = vst.msk [vmem:[#allocation2 + $0x89] sm:$0x1] %vm33_vm2, %v9701_v2  ;;  %507 = vrot.lane.b32.xlu0 %v10025_v29, %s9702_s19 }
  0x16   :  { %58 = vst.msk [vmem:[#allocation2 + $0xa1] sm:$0x1] %vm33_vm2, %v9701_v2  ;;  %59 = vst.msk [vmem:[#allocation2 + $0xb9] sm:$0x1] %vm33_vm2, %v9701_v2  ;;  %509 = vrot.lane.b32.xlu1 %v10023_v28, %s9702_s19 }
  0x17   :  { %60 = vst.msk [vmem:[#allocation2 + $0xd1] sm:$0x1] %vm33_vm2, %v9701_v2  ;;  %61 = vst.msk [vmem:[#allocation2 + $0xe9] sm:$0x1] %vm33_vm2, %v9701_v2 }
  0x18   :  { %62 = vst.msk [vmem:[#allocation2 + $0x101] sm:$0x1] %vm33_vm2, %v9701_v2  ;;  %63 = vst.msk [vmem:[#allocation2 + $0x119] sm:$0x1] %vm33_vm2, %v9701_v2 }
  0x19   :  { %64 = vst.msk [vmem:[#allocation2 + $0x131] sm:$0x1] %vm33_vm2, %v9701_v2  ;;  %65 = vst.msk [vmem:[#allocation2 + $0x149] sm:$0x1] %vm33_vm2, %v9701_v2  ;;  %511 = vrot.lane.b32.xlu0 %v10039_v33, %s9702_s19 }
  0x1a   :  { %66 = vst.msk [vmem:[#allocation2 + $0x161] sm:$0x1] %vm33_vm2, %v9701_v2  ;;  %67 = vst.msk [vmem:[#allocation2 + $0x179] sm:$0x1] %vm33_vm2, %v9701_v2  ;;  %513 = vrot.lane.b32.xlu1 %v10027_v30, %s9702_s19 }
  0x1b   :  { %68 = vst.msk [vmem:[#allocation2 + $0x191] sm:$0x1] %vm33_vm2, %v9701_v2  ;;  %69 = vst.msk [vmem:[#allocation2 + $0x1a9] sm:$0x1] %vm33_vm2, %v9701_v2 }
  0x1c   :  { %77 = vst.msk [vmem:[#allocation3] sm:$0x1] %vm33_vm2, %v9701_v2  ;;  %78 = vst.msk [vmem:[#allocation3 + $0x18] sm:$0x1] %vm33_vm2, %v9701_v2 }
  0x1d   :  { %79 = vst.msk [vmem:[#allocation3 + $0x30] sm:$0x1] %vm33_vm2, %v9701_v2  ;;  %80 = vst.msk [vmem:[#allocation3 + $0x48] sm:$0x1] %vm33_vm2, %v9701_v2 }
  0x1e   :  { %81 = vst.msk [vmem:[#allocation3 + $0x60] sm:$0x1] %vm33_vm2, %v9701_v2  ;;  %82 = vst.msk [vmem:[#allocation3 + $0x78] sm:$0x1] %vm33_vm2, %v9701_v2 }
  0x1f   :  { %83 = vst.msk [vmem:[#allocation3 + $0x90] sm:$0x1] %vm33_vm2, %v9701_v2  ;;  %84 = vst.msk [vmem:[#allocation3 + $0xa8] sm:$0x1] %vm33_vm2, %v9701_v2 }
  0x20   :  { %85 = vst.msk [vmem:[#allocation3 + $0xc0] sm:$0x1] %vm33_vm2, %v9701_v2  ;;  %86 = vst.msk [vmem:[#allocation3 + $0xd8] sm:$0x1] %vm33_vm2, %v9701_v2 }
  0x21   :  { %87 = vst.msk [vmem:[#allocation3 + $0xf0] sm:$0x1] %vm33_vm2, %v9701_v2  ;;  %88 = vst.msk [vmem:[#allocation3 + $0x108] sm:$0x1] %vm33_vm2, %v9701_v2 }
  0x22   :  { %89 = vst.msk [vmem:[#allocation3 + $0x120] sm:$0x1] %vm33_vm2, %v9701_v2  ;;  %90 = vst.msk [vmem:[#allocation3 + $0x138] sm:$0x1] %vm33_vm2, %v9701_v2 }
  0x23   :  { %91 = vst.msk [vmem:[#allocation3 + $0x150] sm:$0x1] %vm33_vm2, %v9701_v2  ;;  %92 = vst.msk [vmem:[#allocation3 + $0x168] sm:$0x1] %vm33_vm2, %v9701_v2 }
  0x24   :  { %93 = vst.msk [vmem:[#allocation3 + $0x180] sm:$0x1] %vm33_vm2, %v9701_v2  ;;  %94 = vst.msk [vmem:[#allocation3 + $0x198] sm:$0x1] %vm33_vm2, %v9701_v2 }
  0x25   :  { %95 = vst.msk [vmem:[#allocation3 + $0x11] sm:$0x1] %vm33_vm2, %v9701_v2  ;;  %96 = vst.msk [vmem:[#allocation3 + $0x29] sm:$0x1] %vm33_vm2, %v9701_v2 }
  0x26   :  { %97 = vst.msk [vmem:[#allocation3 + $0x41] sm:$0x1] %vm33_vm2, %v9701_v2  ;;  %98 = vst.msk [vmem:[#allocation3 + $0x59] sm:$0x1] %vm33_vm2, %v9701_v2 }
  0x27   :  { %99 = vst.msk [vmem:[#allocation3 + $0x71] sm:$0x1] %vm33_vm2, %v9701_v2  ;;  %100 = vst.msk [vmem:[#allocation3 + $0x89] sm:$0x1] %vm33_vm2, %v9701_v2 }
  0x28   :  { %101 = vst.msk [vmem:[#allocation3 + $0xa1] sm:$0x1] %vm33_vm2, %v9701_v2  ;;  %102 = vst.msk [vmem:[#allocation3 + $0xb9] sm:$0x1] %vm33_vm2, %v9701_v2 }
  0x29   :  { %103 = vst.msk [vmem:[#allocation3 + $0xd1] sm:$0x1] %vm33_vm2, %v9701_v2  ;;  %104 = vst.msk [vmem:[#allocation3 + $0xe9] sm:$0x1] %vm33_vm2, %v9701_v2 }
  0x2a   :  { %105 = vst.msk [vmem:[#allocation3 + $0x101] sm:$0x1] %vm33_vm2, %v9701_v2  ;;  %106 = vst.msk [vmem:[#allocation3 + $0x119] sm:$0x1] %vm33_vm2, %v9701_v2 }
  0x2b   :  { %107 = vst.msk [vmem:[#allocation3 + $0x131] sm:$0x1] %vm33_vm2, %v9701_v2  ;;  %108 = vst.msk [vmem:[#allocation3 + $0x149] sm:$0x1] %vm33_vm2, %v9701_v2 }
  0x2c   :  { %109 = vst.msk [vmem:[#allocation3 + $0x161] sm:$0x1] %vm33_vm2, %v9701_v2  ;;  %110 = vst.msk [vmem:[#allocation3 + $0x179] sm:$0x1] %vm33_vm2, %v9701_v2 }
  0x2d   :  { %111 = vst.msk [vmem:[#allocation3 + $0x191] sm:$0x1] %vm33_vm2, %v9701_v2  ;;  %112 = vst.msk [vmem:[#allocation3 + $0x1a9] sm:$0x1] %vm33_vm2, %v9701_v2 }
  0x2e   :  { %153 = vst.msk [vmem:[#allocation2 + $0x69] sm:$0xff] %vm24_vm0, %v9796_v7  ;;  %152 = vst.msk [vmem:[#allocation2 + $0x61] sm:$0xff] %vm24_vm0, %v9801_v8 }
  0x2f   :  { %155 = vst.msk [vmem:[#allocation2 + $0x81] sm:$0xff] %vm24_vm0, %v122_v9  ;;  %154 = vst.msk [vmem:[#allocation2 + $0x79] sm:$0xff] %vm24_vm0, %v121_v10 }
  0x30   :  { %157 = vst.msk [vmem:[#allocation2 + $0x99] sm:$0xff] %vm24_vm0, %v124_v11  ;;  %156 = vst.msk [vmem:[#allocation2 + $0x91] sm:$0xff] %vm24_vm0, %v123_v12 }
  0x31   :  { %159 = vst.msk [vmem:[#allocation2 + $0xb1] sm:$0xff] %vm24_vm0, %v126_v13  ;;  %158 = vst.msk [vmem:[#allocation2 + $0xa9] sm:$0xff] %vm24_vm0, %v125_v14 }
  0x32   :  { %161 = vst.msk [vmem:[#allocation2 + $0xc9] sm:$0xff] %vm24_vm0, %v128_v15  ;;  %160 = vst.msk [vmem:[#allocation2 + $0xc1] sm:$0xff] %vm24_vm0, %v127_v16 }
  0x33   :  { %163 = vst.msk [vmem:[#allocation2 + $0xe1] sm:$0xff] %vm24_vm0, %v130_v17  ;;  %162 = vst.msk [vmem:[#allocation2 + $0xd9] sm:$0xff] %vm24_vm0, %v129_v18 }
  0x34   :  { %165 = vst.msk [vmem:[#allocation2 + $0xf9] sm:$0xff] %vm24_vm0, %v132_v19  ;;  %164 = vst.msk [vmem:[#allocation2 + $0xf1] sm:$0xff] %vm24_vm0, %v131_v20 }
  0x35   :  { %167 = vst.msk [vmem:[#allocation2 + $0x111] sm:$0xff] %vm24_vm0, %v134_v21  ;;  %166 = vst.msk [vmem:[#allocation2 + $0x109] sm:$0xff] %vm24_vm0, %v133_v22  ;;  %v10067_v39 = vld [vmem:[#allocation2 + $0x69] sm:$0xff]  ;;  %v10069_v40 = vld [vmem:[#allocation2 + $0x61] sm:$0xff] }
  0x36   :  { %169 = vst.msk [vmem:[#allocation2 + $0x129] sm:$0xff] %vm24_vm0, %v136_v23  ;;  %168 = vst.msk [vmem:[#allocation2 + $0x121] sm:$0xff] %vm24_vm0, %v135_v31  ;;  %517 = vrot.lane.b32.xlu1 %v10067_v39, %s9702_s19  ;;  %515 = vrot.lane.b32.xlu0 %v10069_v40, %s9702_s19  ;;  %v10075_v41 = vld [vmem:[#allocation2 + $0x81] sm:$0xff]  ;;  %v10077_v42 = vld [vmem:[#allocation2 + $0x79] sm:$0xff] }
  0x37   :  { %171 = vst.msk [vmem:[#allocation2 + $0x141] sm:$0xff] %vm24_vm0, %v138_v32  ;;  %170 = vst.msk [vmem:[#allocation2 + $0x139] sm:$0xff] %vm24_vm0, %v137_v34  ;;  %v10083_v43 = vld [vmem:[#allocation2 + $0x99] sm:$0xff]  ;;  %v10085_v44 = vld [vmem:[#allocation2 + $0x91] sm:$0xff] }
  0x38   :  { %173 = vst.msk [vmem:[#allocation2 + $0x159] sm:$0xff] %vm24_vm0, %v140_v35  ;;  %172 = vst.msk [vmem:[#allocation2 + $0x151] sm:$0xff] %vm24_vm0, %v139_v36  ;;  %v10091_v45 = vld [vmem:[#allocation2 + $0xb1] sm:$0xff]  ;;  %v10093_v46 = vld [vmem:[#allocation2 + $0xa9] sm:$0xff] }
  0x39   :  { %175 = vst.msk [vmem:[#allocation2 + $0x171] sm:$0xff] %vm24_vm0, %v142_v37  ;;  %174 = vst.msk [vmem:[#allocation2 + $0x169] sm:$0xff] %vm24_vm0, %v141_v38  ;;  %v10099_v47 = vld [vmem:[#allocation2 + $0xc9] sm:$0xff]  ;;  %v10101_v48 = vld [vmem:[#allocation2 + $0xc1] sm:$0xff] }
  0x3a   :  { %521 = vrot.lane.b32.xlu1 %v10075_v41, %s9702_s19  ;;  %519 = vrot.lane.b32.xlu0 %v10077_v42, %s9702_s19 }
  0x3e   :  { %525 = vrot.lane.b32.xlu1 %v10083_v43, %s9702_s19  ;;  %523 = vrot.lane.b32.xlu0 %v10085_v44, %s9702_s19 }
  0x42   :  { %529 = vrot.lane.b32.xlu1 %v10091_v45, %s9702_s19  ;;  %527 = vrot.lane.b32.xlu0 %v10093_v46, %s9702_s19 }
  0x43   :  { %11 = vsyncpa [#allocation5], 0  ;;  %v10107_v49 = vld [vmem:[#allocation2 + $0xe1] sm:$0xff]  ;;  %v10109_v50 = vld [vmem:[#allocation2 + $0xd9] sm:$0xff]  ;;  %s9703_s14 = smov 16   ;;  %s9704_s15 = smov 24  }
  0x44   :  { %v10115_v51 = vld [vmem:[#allocation2 + $0xf9] sm:$0xff]  ;;  %v10117_v52 = vld [vmem:[#allocation2 + $0xf1] sm:$0xff]  ;;  %v10125_v54 = vld [vmem:[#allocation2 + $0x109] sm:$0xff]  ;;  %s9705_s21 = smov 32   ;;  %s9706_s22 = smov 40   ;;  %vm1523_vm3 = vcmask 130048  }
  0x45   :  { %v10123_v53 = vld [vmem:[#allocation2 + $0x111] sm:$0xff]  ;;  %v10131_v55 = vld [vmem:[#allocation2 + $0x129] sm:$0xff]  ;;  %v10133_v56 = vld [vmem:[#allocation2 + $0x121] sm:$0xff]  ;;  %s9707_s23 = smov 48   ;;  %s9708_s28 = smov 56   ;;  %vm1556_vm4 = vcmask 195584  }
  0x46   :  { %533 = vrot.lane.b32.xlu1 %v10099_v47, %s9702_s19  ;;  %531 = vrot.lane.b32.xlu0 %v10101_v48, %s9702_s19  ;;  %v10139_v57 = vld [vmem:[#allocation2 + $0x141] sm:$0xff]  ;;  %v10141_v58 = vld [vmem:[#allocation2 + $0x139] sm:$0xff]  ;;  %v143_v59 = vld [vmem:[%s15834_s0 + $0xf0] sm:$0xff]  ;;  %s9709_s30 = smov 64   ;;  %vm1589_vm5 = vcmask 261120   ;;  %vm1622_vm6 = vcmask 326656  }
  0x47   :  { %v144_v60 = vld [vmem:[%s15834_s0 + $0xf8] sm:$0xff]  ;;  %176 = vst.msk [vmem:[#allocation2 + $0x181] sm:$0xff] %vm24_vm0, %v143_v59  ;;  %v10165_v0 = vld [vmem:[#allocation2 + $0x169] sm:$0xff]  ;;  %vm1655_vm7 = vcmask 392192   ;;  %vm1688_vm8 = vcmask 457728   ;;  %vm1721_vm9 = vcmask 523264  }
  0x48   :  { %177 = vst.msk [vmem:[#allocation2 + $0x189] sm:$0xff] %vm24_vm0, %v144_v60  ;;  %v10155_v61 = vld [vmem:[#allocation2 + $0x159] sm:$0xff]  ;;  %v10157_v62 = vld [vmem:[#allocation2 + $0x151] sm:$0xff]  ;;  %v242_v2 = vld [vmem:[#allocation2 + $0x2] sm:$0xff]  ;;  %vm1770_vm10 = vcmask 588800  }
  0x49   :  { %v10163_v63 = vld [vmem:[#allocation2 + $0x171] sm:$0xff]  ;;  %v10173_v3 = vld [vmem:[#allocation2 + $0x22] sm:$0xff]  ;;  %v10175_v4 = vld [vmem:[#allocation2 + $0x1a] sm:$0xff] }
  0x4a   :  { %537 = vrot.lane.b32.xlu1 %v10107_v49, %s9702_s19  ;;  %535 = vrot.lane.b32.xlu0 %v10109_v50, %s9702_s19  ;;  %v243_v1 = vld [vmem:[#allocation2 + $0xa] sm:$0xff]  ;;  %v10181_v5 = vld [vmem:[#allocation2 + $0x3a] sm:$0xff]  ;;  %v10183_v6 = vld [vmem:[#allocation2 + $0x32] sm:$0xff] }
  0x4b   :  { %v10189_v7 = vld [vmem:[#allocation2 + $0x52] sm:$0xff]  ;;  %v10191_v8 = vld [vmem:[#allocation2 + $0x4a] sm:$0xff]  ;;  %v10199_v10 = vld [vmem:[#allocation2 + $0x62] sm:$0xff] }
  0x4c   :  { %v10197_v9 = vld [vmem:[#allocation2 + $0x6a] sm:$0xff]  ;;  %v10205_v11 = vld [vmem:[#allocation2 + $0x82] sm:$0xff]  ;;  %v10207_v12 = vld [vmem:[#allocation2 + $0x7a] sm:$0xff] }
  0x4d   :  { %v10213_v13 = vld [vmem:[#allocation2 + $0x9a] sm:$0xff]  ;;  %v10215_v14 = vld [vmem:[#allocation2 + $0x92] sm:$0xff]  ;;  %v10223_v16 = vld [vmem:[#allocation2 + $0xaa] sm:$0xff] }
  0x4e   :  { %541 = vrot.lane.b32.xlu1 %v10115_v51, %s9702_s19  ;;  %539 = vrot.lane.b32.xlu0 %v10117_v52, %s9702_s19  ;;  %v10221_v15 = vld [vmem:[#allocation2 + $0xb2] sm:$0xff]  ;;  %v10229_v17 = vld [vmem:[#allocation2 + $0xca] sm:$0xff]  ;;  %v10231_v18 = vld [vmem:[#allocation2 + $0xc2] sm:$0xff] }
  0x4f   :  { %v10237_v19 = vld [vmem:[#allocation2 + $0xe2] sm:$0xff]  ;;  %v10239_v20 = vld [vmem:[#allocation2 + $0xda] sm:$0xff]  ;;  %v10247_v22 = vld [vmem:[#allocation2 + $0xf2] sm:$0xff] }
  0x50   :  { %v10245_v21 = vld [vmem:[#allocation2 + $0xfa] sm:$0xff]  ;;  %v10253_v23 = vld [vmem:[#allocation2 + $0x112] sm:$0xff]  ;;  %v10255_v25 = vld [vmem:[#allocation2 + $0x10a] sm:$0xff] }
  0x51   :  { %v10261_v27 = vld [vmem:[#allocation2 + $0x12a] sm:$0xff]  ;;  %v10263_v31 = vld [vmem:[#allocation2 + $0x122] sm:$0xff]  ;;  %v10271_v34 = vld [vmem:[#allocation2 + $0x13a] sm:$0xff] }
  0x52   :  { %545 = vrot.lane.b32.xlu1 %v10123_v53, %s9702_s19  ;;  %543 = vrot.lane.b32.xlu0 %v10125_v54, %s9702_s19  ;;  %v10269_v32 = vld [vmem:[#allocation2 + $0x142] sm:$0xff]  ;;  %v10281_v37 = vld [vmem:[#allocation2 + $0x15a] sm:$0xff]  ;;  %v10283_v38 = vld [vmem:[#allocation2 + $0x152] sm:$0xff] }
  0x53   :  { %15986 = vst [vmem:[#allocation9_spill] sm:$0xff] %v10281_v37  ;;  %15987 = vst [vmem:[#allocation10_spill] sm:$0xff] %v10283_v38 }
  0x54   :  { %vm13294_vm11 = vmpackc.low %vm1770_vm10, %vm1770_vm10 }
  0x56   :  { %549 = vrot.lane.b32.xlu1 %v10131_v55, %s9702_s19  ;;  %547 = vrot.lane.b32.xlu0 %v10133_v56, %s9702_s19 }
  0x5a   :  { %553 = vrot.lane.b32.xlu1 %v10139_v57, %s9702_s19  ;;  %551 = vrot.lane.b32.xlu0 %v10141_v58, %s9702_s19 }
  0x5e   :  { %557 = vrot.lane.b32.xlu1 %v10155_v61, %s9702_s19  ;;  %555 = vrot.lane.b32.xlu0 %v10157_v62, %s9702_s19 }
  0x62   :  { %561 = vrot.lane.b32.xlu1 %v10163_v63, %s9702_s19  ;;  %559 = vrot.lane.b32.xlu0 %v10165_v0, %s9702_s19 }
  0x66   :  { %629 = vrot.lane.b32.xlu1 %v243_v1, %s9703_s14  ;;  %627 = vrot.lane.b32.xlu0 %v242_v2, %s9703_s14  ;;  %v10293_v1 = vld [vmem:[#allocation2 + $0x172] sm:$0xff]  ;;  %v10295_v2 = vld [vmem:[#allocation2 + $0x16a] sm:$0xff] }
  0x67   :  { %15990 = vst [vmem:[#allocation13_spill] sm:$0xff] %v10293_v1  ;;  %15991 = vst [vmem:[#allocation14_spill] sm:$0xff] %v10295_v2 }
  0x6a   :  { %633 = vrot.lane.b32.xlu1 %v10173_v3, %s9703_s14  ;;  %631 = vrot.lane.b32.xlu0 %v10175_v4, %s9703_s14 }
  0x6e   :  { %637 = vrot.lane.b32.xlu1 %v10181_v5, %s9703_s14  ;;  %635 = vrot.lane.b32.xlu0 %v10183_v6, %s9703_s14 }
  0x72   :  { %641 = vrot.lane.b32.xlu1 %v10189_v7, %s9703_s14  ;;  %639 = vrot.lane.b32.xlu0 %v10191_v8, %s9703_s14 }
  0x76   :  { %645 = vrot.lane.b32.xlu1 %v10197_v9, %s9703_s14  ;;  %643 = vrot.lane.b32.xlu0 %v10199_v10, %s9703_s14 }
  0x7a   :  { %649 = vrot.lane.b32.xlu1 %v10205_v11, %s9703_s14  ;;  %647 = vrot.lane.b32.xlu0 %v10207_v12, %s9703_s14 }
  0x7e   :  { %653 = vrot.lane.b32.xlu1 %v10213_v13, %s9703_s14  ;;  %651 = vrot.lane.b32.xlu0 %v10215_v14, %s9703_s14 }
  0x7f   :  { %v10275_v36 = vpop.permute.xlu0 %499 }
  0x80   :  { %v10273_v35 = vpop.permute.xlu1 %503  ;;  %15985 = vst [vmem:[#allocation8_spill] sm:$0xff] %v10275_v36 }
  0x81   :  { %15984 = vst [vmem:[#allocation7_spill] sm:$0xff] %v10273_v35 }
  0x82   :  { %657 = vrot.lane.b32.xlu1 %v10221_v15, %s9703_s14  ;;  %655 = vrot.lane.b32.xlu0 %v10223_v16, %s9703_s14 }
  0x83   :  { %v10287_v60 = vpop.permute.xlu0 %501 }
  0x84   :  { %v10285_v59 = vpop.permute.xlu1 %505  ;;  %15989 = vst [vmem:[#allocation12_spill] sm:$0xff] %v10287_v60 }
  0x85   :  { %15988 = vst [vmem:[#allocation11_spill] sm:$0xff] %v10285_v59 }
  0x86   :  { %661 = vrot.lane.b32.xlu1 %v10229_v17, %s9703_s14  ;;  %659 = vrot.lane.b32.xlu0 %v10231_v18, %s9703_s14 }
  0x87   :  { %v10299_v36 = vpop.permute.xlu0 %507 }
  0x88   :  { %v10297_v35 = vpop.permute.xlu1 %509  ;;  %15993 = vst [vmem:[#allocation16_spill] sm:$0xff] %v10299_v36  ;;  %v7782_v36 = vld [vmem:[%s15834_s0 + $0x100] sm:$0xff] }
  0x89   :  { %15992 = vst [vmem:[#allocation15_spill] sm:$0xff] %v10297_v35 }
  0x8a   :  { %665 = vrot.lane.b32.xlu1 %v10237_v19, %s9703_s14  ;;  %663 = vrot.lane.b32.xlu0 %v10239_v20, %s9703_s14 }
  0x8b   :  { %v10307_v60 = vpop.permute.xlu0 %511 }
  0x8c   :  { %v10305_v59 = vpop.permute.xlu1 %513  ;;  %15995 = vst [vmem:[#allocation18_spill] sm:$0xff] %v10307_v60 }
  0x8d   :  { %15994 = vst [vmem:[#allocation17_spill] sm:$0xff] %v10305_v59  ;;  %v7783_v59 = vld [vmem:[%s15834_s0 + $0x108] sm:$0xff] }
  0x8e   :  { %669 = vrot.lane.b32.xlu1 %v10245_v21, %s9703_s14  ;;  %667 = vrot.lane.b32.xlu0 %v10247_v22, %s9703_s14 }
  0x92   :  { %673 = vrot.lane.b32.xlu1 %v10253_v23, %s9703_s14  ;;  %671 = vrot.lane.b32.xlu0 %v10255_v25, %s9703_s14 }
  0x96   :  { %677 = vrot.lane.b32.xlu1 %v10261_v27, %s9703_s14  ;;  %675 = vrot.lane.b32.xlu0 %v10263_v31, %s9703_s14 }
  0x9a   :  { %681 = vrot.lane.b32.xlu1 %v10269_v32, %s9703_s14  ;;  %679 = vrot.lane.b32.xlu0 %v10271_v34, %s9703_s14 }
  0x9e   :  { %685 = vrot.lane.b32.xlu1 %v10281_v37, %s9703_s14  ;;  %683 = vrot.lane.b32.xlu0 %v10283_v38, %s9703_s14  ;;  %v10309_v37 = vld [vmem:[#allocation2 + $0x18] sm:$0xff]  ;;  %v10311_v38 = vld [vmem:[#allocation2 + $0x20] sm:$0xff] }
  0x9f   :  { %15996 = vst [vmem:[#allocation19_spill] sm:$0xff] %v10309_v37  ;;  %15997 = vst [vmem:[#allocation20_spill] sm:$0xff] %v10311_v38 }
  0xa0   :  { %3944 = vst.msk [vmem:[#allocation2 + $0x19] sm:$0xff] %vm24_vm0, %v7782_v36  ;;  %3945 = vst.msk [vmem:[#allocation2 + $0x21] sm:$0xff] %vm24_vm0, %v7783_v59  ;;  %v10341_v36 = vld [vmem:[#allocation2 + $0x50] sm:$0xff]  ;;  %v10343_v59 = vld [vmem:[#allocation2 + $0x48] sm:$0xff] }
  0xa1   :  { %16004 = vst [vmem:[#allocation27_spill] sm:$0xff] %v10341_v36  ;;  %16005 = vst [vmem:[#allocation28_spill] sm:$0xff] %v10343_v59 }
  0xa2   :  { %689 = vrot.lane.b32.xlu1 %v10293_v1, %s9703_s14  ;;  %687 = vrot.lane.b32.xlu0 %v10295_v2, %s9703_s14  ;;  %v10331_v2 = vld [vmem:[#allocation2 + $0x30] sm:$0xff] }
  0xa3   :  { %16001 = vst [vmem:[#allocation24_spill] sm:$0xff] %v10331_v2 }
  0xa6   :  { %757 = vrot.lane.b32.xlu1 %v10311_v38, %s9704_s15  ;;  %755 = vrot.lane.b32.xlu0 %v10309_v37, %s9704_s15  ;;  %v10329_v38 = vld [vmem:[#allocation2 + $0x38] sm:$0xff] }
  0xa7   :  { %16000 = vst [vmem:[#allocation23_spill] sm:$0xff] %v10329_v38 }
  0xa8   :  { %v10325_v60 = vpop.permute.xlu1 %517  ;;  %v10327_v35 = vpop.permute.xlu0 %515 }
  0xa9   :  { %15998 = vst [vmem:[#allocation21_spill] sm:$0xff] %v10325_v60  ;;  %15999 = vst [vmem:[#allocation22_spill] sm:$0xff] %v10327_v35 }
  0xaa   :  { %761 = vrot.lane.b32.xlu1 %v10329_v38, %s9704_s15  ;;  %759 = vrot.lane.b32.xlu0 %v10331_v2, %s9704_s15  ;;  %v10353_v38 = vld [vmem:[#allocation2 + $0x68] sm:$0xff]  ;;  %v10355_v2 = vld [vmem:[#allocation2 + $0x60] sm:$0xff] }
  0xab   :  { %16008 = vst [vmem:[#allocation31_spill] sm:$0xff] %v10353_v38  ;;  %16009 = vst [vmem:[#allocation32_spill] sm:$0xff] %v10355_v2 }
  0xac   :  { %v10337_v37 = vpop.permute.xlu1 %521  ;;  %v10339_v1 = vpop.permute.xlu0 %519 }
  0xad   :  { %16002 = vst [vmem:[#allocation25_spill] sm:$0xff] %v10337_v37  ;;  %16003 = vst [vmem:[#allocation26_spill] sm:$0xff] %v10339_v1 }
  0xae   :  { %765 = vrot.lane.b32.xlu1 %v10341_v36, %s9704_s15  ;;  %763 = vrot.lane.b32.xlu0 %v10343_v59, %s9704_s15  ;;  %v10365_v36 = vld [vmem:[#allocation2 + $0x80] sm:$0xff]  ;;  %v10367_v59 = vld [vmem:[#allocation2 + $0x78] sm:$0xff] }
  0xaf   :  { %16012 = vst [vmem:[#allocation35_spill] sm:$0xff] %v10365_v36  ;;  %16013 = vst [vmem:[#allocation36_spill] sm:$0xff] %v10367_v59 }
  0xb0   :  { %v10349_v35 = vpop.permute.xlu1 %525  ;;  %v10351_v60 = vpop.permute.xlu0 %523 }
  0xb1   :  { %16006 = vst [vmem:[#allocation29_spill] sm:$0xff] %v10349_v35  ;;  %16007 = vst [vmem:[#allocation30_spill] sm:$0xff] %v10351_v60 }
  0xb2   :  { %769 = vrot.lane.b32.xlu1 %v10353_v38, %s9704_s15  ;;  %767 = vrot.lane.b32.xlu0 %v10355_v2, %s9704_s15  ;;  %v10377_v38 = vld [vmem:[#allocation2 + $0x98] sm:$0xff]  ;;  %v10379_v2 = vld [vmem:[#allocation2 + $0x90] sm:$0xff] }
  0xb3   :  { %16016 = vst [vmem:[#allocation39_spill] sm:$0xff] %v10377_v38  ;;  %16017 = vst [vmem:[#allocation40_spill] sm:$0xff] %v10379_v2 }
  0xb4   :  { %v10361_v1 = vpop.permute.xlu1 %529  ;;  %v10363_v37 = vpop.permute.xlu0 %527 }
  0xb5   :  { %16010 = vst [vmem:[#allocation33_spill] sm:$0xff] %v10361_v1  ;;  %16011 = vst [vmem:[#allocation34_spill] sm:$0xff] %v10363_v37 }
  0xb6   :  { %773 = vrot.lane.b32.xlu1 %v10365_v36, %s9704_s15  ;;  %771 = vrot.lane.b32.xlu0 %v10367_v59, %s9704_s15  ;;  %v10389_v36 = vld [vmem:[#allocation2 + $0xb0] sm:$0xff]  ;;  %v10391_v59 = vld [vmem:[#allocation2 + $0xa8] sm:$0xff] }
  0xb7   :  { %16020 = vst [vmem:[#allocation43_spill] sm:$0xff] %v10389_v36  ;;  %16021 = vst [vmem:[#allocation44_spill] sm:$0xff] %v10391_v59 }
  0xb8   :  { %v10373_v60 = vpop.permute.xlu1 %533  ;;  %v10375_v35 = vpop.permute.xlu0 %531 }
  0xb9   :  { %16014 = vst [vmem:[#allocation37_spill] sm:$0xff] %v10373_v60  ;;  %16015 = vst [vmem:[#allocation38_spill] sm:$0xff] %v10375_v35 }
  0xba   :  { %777 = vrot.lane.b32.xlu1 %v10377_v38, %s9704_s15  ;;  %775 = vrot.lane.b32.xlu0 %v10379_v2, %s9704_s15  ;;  %v10401_v38 = vld [vmem:[#allocation2 + $0xc8] sm:$0xff]  ;;  %v10403_v2 = vld [vmem:[#allocation2 + $0xc0] sm:$0xff] }
  0xbb   :  { %16024 = vst [vmem:[#allocation47_spill] sm:$0xff] %v10401_v38  ;;  %16025 = vst [vmem:[#allocation48_spill] sm:$0xff] %v10403_v2 }
  0xbc   :  { %v10385_v37 = vpop.permute.xlu1 %537  ;;  %v10387_v1 = vpop.permute.xlu0 %535 }
  0xbd   :  { %16018 = vst [vmem:[#allocation41_spill] sm:$0xff] %v10385_v37  ;;  %16019 = vst [vmem:[#allocation42_spill] sm:$0xff] %v10387_v1 }
  0xbe   :  { %781 = vrot.lane.b32.xlu1 %v10389_v36, %s9704_s15  ;;  %779 = vrot.lane.b32.xlu0 %v10391_v59, %s9704_s15  ;;  %v10413_v36 = vld [vmem:[#allocation2 + $0xe0] sm:$0xff]  ;;  %v10415_v59 = vld [vmem:[#allocation2 + $0xd8] sm:$0xff] }
  0xbf   :  { %16028 = vst [vmem:[#allocation51_spill] sm:$0xff] %v10413_v36  ;;  %16029 = vst [vmem:[#allocation52_spill] sm:$0xff] %v10415_v59 }
  0xc0   :  { %v10397_v35 = vpop.permute.xlu1 %541  ;;  %v10399_v60 = vpop.permute.xlu0 %539 }
  0xc1   :  { %16022 = vst [vmem:[#allocation45_spill] sm:$0xff] %v10397_v35  ;;  %16023 = vst [vmem:[#allocation46_spill] sm:$0xff] %v10399_v60 }
  0xc2   :  { %785 = vrot.lane.b32.xlu1 %v10401_v38, %s9704_s15  ;;  %783 = vrot.lane.b32.xlu0 %v10403_v2, %s9704_s15  ;;  %v10425_v38 = vld [vmem:[#allocation2 + $0xf8] sm:$0xff]  ;;  %v10427_v2 = vld [vmem:[#allocation2 + $0xf0] sm:$0xff] }
  0xc3   :  { %16032 = vst [vmem:[#allocation55_spill] sm:$0xff] %v10425_v38  ;;  %16033 = vst [vmem:[#allocation56_spill] sm:$0xff] %v10427_v2 }
  0xc4   :  { %v10409_v1 = vpop.permute.xlu1 %545  ;;  %v10411_v37 = vpop.permute.xlu0 %543 }
  0xc5   :  { %16026 = vst [vmem:[#allocation49_spill] sm:$0xff] %v10409_v1  ;;  %16027 = vst [vmem:[#allocation50_spill] sm:$0xff] %v10411_v37 }
  0xc6   :  { %789 = vrot.lane.b32.xlu1 %v10413_v36, %s9704_s15  ;;  %787 = vrot.lane.b32.xlu0 %v10415_v59, %s9704_s15  ;;  %v10437_v36 = vld [vmem:[#allocation2 + $0x110] sm:$0xff]  ;;  %v10439_v59 = vld [vmem:[#allocation2 + $0x108] sm:$0xff] }
  0xc7   :  { %16036 = vst [vmem:[#allocation59_spill] sm:$0xff] %v10437_v36  ;;  %16037 = vst [vmem:[#allocation60_spill] sm:$0xff] %v10439_v59 }
  0xc8   :  { %v10421_v60 = vpop.permute.xlu1 %549  ;;  %v10423_v35 = vpop.permute.xlu0 %547 }
  0xc9   :  { %16030 = vst [vmem:[#allocation53_spill] sm:$0xff] %v10421_v60  ;;  %16031 = vst [vmem:[#allocation54_spill] sm:$0xff] %v10423_v35 }
  0xca   :  { %793 = vrot.lane.b32.xlu1 %v10425_v38, %s9704_s15  ;;  %791 = vrot.lane.b32.xlu0 %v10427_v2, %s9704_s15  ;;  %v10449_v38 = vld [vmem:[#allocation2 + $0x128] sm:$0xff]  ;;  %v10451_v2 = vld [vmem:[#allocation2 + $0x120] sm:$0xff] }
  0xcb   :  { %16040 = vst [vmem:[#allocation63_spill] sm:$0xff] %v10449_v38  ;;  %16041 = vst [vmem:[#allocation64_spill] sm:$0xff] %v10451_v2 }
  0xcc   :  { %v10433_v37 = vpop.permute.xlu1 %553  ;;  %v10435_v1 = vpop.permute.xlu0 %551 }
  0xcd   :  { %16034 = vst [vmem:[#allocation57_spill] sm:$0xff] %v10433_v37  ;;  %16035 = vst [vmem:[#allocation58_spill] sm:$0xff] %v10435_v1 }
  0xce   :  { %797 = vrot.lane.b32.xlu1 %v10437_v36, %s9704_s15  ;;  %795 = vrot.lane.b32.xlu0 %v10439_v59, %s9704_s15  ;;  %v10461_v36 = vld [vmem:[#allocation2 + $0x140] sm:$0xff]  ;;  %v10463_v59 = vld [vmem:[#allocation2 + $0x138] sm:$0xff] }
  0xcf   :  { %16044 = vst [vmem:[#allocation67_spill] sm:$0xff] %v10461_v36  ;;  %16045 = vst [vmem:[#allocation68_spill] sm:$0xff] %v10463_v59 }
  0xd0   :  { %v10445_v35 = vpop.permute.xlu1 %557  ;;  %v10447_v60 = vpop.permute.xlu0 %555 }
  0xd1   :  { %16038 = vst [vmem:[#allocation61_spill] sm:$0xff] %v10445_v35  ;;  %16039 = vst [vmem:[#allocation62_spill] sm:$0xff] %v10447_v60 }
  0xd2   :  { %801 = vrot.lane.b32.xlu1 %v10449_v38, %s9704_s15  ;;  %799 = vrot.lane.b32.xlu0 %v10451_v2, %s9704_s15  ;;  %v10473_v38 = vld [vmem:[#allocation2 + $0x158] sm:$0xff]  ;;  %v10475_v2 = vld [vmem:[#allocation2 + $0x150] sm:$0xff] }
  0xd3   :  { %16048 = vst [vmem:[#allocation71_spill] sm:$0xff] %v10473_v38  ;;  %16049 = vst [vmem:[#allocation72_spill] sm:$0xff] %v10475_v2 }
  0xd4   :  { %v10457_v1 = vpop.permute.xlu1 %561  ;;  %v10459_v37 = vpop.permute.xlu0 %559 }
  0xd5   :  { %16042 = vst [vmem:[#allocation65_spill] sm:$0xff] %v10457_v1  ;;  %16043 = vst [vmem:[#allocation66_spill] sm:$0xff] %v10459_v37 }
  0xd6   :  { %805 = vrot.lane.b32.xlu1 %v10461_v36, %s9704_s15  ;;  %803 = vrot.lane.b32.xlu0 %v10463_v59, %s9704_s15  ;;  %v10485_v36 = vld [vmem:[#allocation2 + $0x170] sm:$0xff]  ;;  %v10487_v59 = vld [vmem:[#allocation2 + $0x168] sm:$0xff] }
  0xd8   :  { %v10469_v60 = vpop.permute.xlu1 %629  ;;  %v10471_v35 = vpop.permute.xlu0 %627 }
  0xd9   :  { %16046 = vst [vmem:[#allocation69_spill] sm:$0xff] %v10469_v60  ;;  %16047 = vst [vmem:[#allocation70_spill] sm:$0xff] %v10471_v35  ;;  %v10493_v35 = vld [vmem:[#allocation2 + $0x188] sm:$0xff]  ;;  %v10495_v60 = vld [vmem:[#allocation2 + $0x180] sm:$0xff] }
  0xda   :  { %809 = vrot.lane.b32.xlu1 %v10473_v38, %s9704_s15  ;;  %807 = vrot.lane.b32.xlu0 %v10475_v2, %s9704_s15 }
  0xdc   :  { %v10481_v37 = vpop.permute.xlu1 %633  ;;  %v10483_v1 = vpop.permute.xlu0 %631 }
  0xdd   :  { %16050 = vst [vmem:[#allocation73_spill] sm:$0xff] %v10481_v37  ;;  %16051 = vst [vmem:[#allocation74_spill] sm:$0xff] %v10483_v1 }
  0xde   :  { %813 = vrot.lane.b32.xlu1 %v10485_v36, %s9704_s15  ;;  %811 = vrot.lane.b32.xlu0 %v10487_v59, %s9704_s15 }
  0xe0   :  { %v10497_v38 = vpop.permute.xlu1 %637  ;;  %v10499_v2 = vpop.permute.xlu0 %635 }
  0xe1   :  { %16052 = vst [vmem:[#allocation75_spill] sm:$0xff] %v10497_v38  ;;  %16053 = vst [vmem:[#allocation76_spill] sm:$0xff] %v10499_v2 }
  0xe2   :  { %817 = vrot.lane.b32.xlu1 %v10493_v35, %s9704_s15  ;;  %815 = vrot.lane.b32.xlu0 %v10495_v60, %s9704_s15 }
  0xe4   :  { %v10505_v1 = vpop.permute.xlu1 %641  ;;  %v10507_v37 = vpop.permute.xlu0 %639 }
  0xe5   :  { %16054 = vst [vmem:[#allocation77_spill] sm:$0xff] %v10505_v1  ;;  %16055 = vst [vmem:[#allocation78_spill] sm:$0xff] %v10507_v37 }
  0xe6   :  { %885 = vrot.lane.b32.xlu1 %v10018_v26, %s9705_s21  ;;  %883 = vrot.lane.b32.xlu0 %v10010_v24, %s9705_s21 }
  0xe8   :  { %v10513_v38 = vpop.permute.xlu1 %645  ;;  %v10515_v2 = vpop.permute.xlu0 %643 }
  0xea   :  { %889 = vrot.lane.b32.xlu1 %v10023_v28, %s9705_s21  ;;  %887 = vrot.lane.b32.xlu0 %v10025_v29, %s9705_s21 }
  0xec   :  { %v10521_v1 = vpop.permute.xlu1 %649  ;;  %v10523_v37 = vpop.permute.xlu0 %647 }
  0xee   :  { %893 = vrot.lane.b32.xlu1 %v10027_v30, %s9705_s21  ;;  %891 = vrot.lane.b32.xlu0 %v10039_v33, %s9705_s21 }
  0xf0   :  { %v10529_v24 = vpop.permute.xlu1 %653  ;;  %v10531_v26 = vpop.permute.xlu0 %651 }
  0xf1   :  { %16056 = vst [vmem:[#allocation79_spill] sm:$0xff] %v10529_v24  ;;  %16057 = vst [vmem:[#allocation80_spill] sm:$0xff] %v10531_v26 }
  0xf2   :  { %897 = vrot.lane.b32.xlu1 %v10067_v39, %s9705_s21  ;;  %895 = vrot.lane.b32.xlu0 %v10069_v40, %s9705_s21 }
  0xf4   :  { %v10537_v28 = vpop.permute.xlu1 %657  ;;  %v10539_v29 = vpop.permute.xlu0 %655 }
  0xf5   :  { %16058 = vst [vmem:[#allocation81_spill] sm:$0xff] %v10537_v28  ;;  %16059 = vst [vmem:[#allocation82_spill] sm:$0xff] %v10539_v29 }
  0xf6   :  { %901 = vrot.lane.b32.xlu1 %v10075_v41, %s9705_s21  ;;  %899 = vrot.lane.b32.xlu0 %v10077_v42, %s9705_s21 }
  0xf8   :  { %v10545_v30 = vpop.permute.xlu1 %661  ;;  %v10547_v33 = vpop.permute.xlu0 %659 }
  0xf9   :  { %16060 = vst [vmem:[#allocation83_spill] sm:$0xff] %v10545_v30  ;;  %16061 = vst [vmem:[#allocation84_spill] sm:$0xff] %v10547_v33 }
  0xfa   :  { %905 = vrot.lane.b32.xlu1 %v10083_v43, %s9705_s21  ;;  %903 = vrot.lane.b32.xlu0 %v10085_v44, %s9705_s21 }
  0xfc   :  { %v10553_v39 = vpop.permute.xlu1 %665  ;;  %v10555_v40 = vpop.permute.xlu0 %663 }
  0xfd   :  { %16062 = vst [vmem:[#allocation85_spill] sm:$0xff] %v10553_v39  ;;  %16063 = vst [vmem:[#allocation86_spill] sm:$0xff] %v10555_v40  ;;  %v16128_v40 = vld [vmem:[#allocation51_spill] sm:$0xff] }
  0xfe   :  { %909 = vrot.lane.b32.xlu1 %v10091_v45, %s9705_s21  ;;  %907 = vrot.lane.b32.xlu0 %v10093_v46, %s9705_s21 }
 0x100   :  { %v10561_v41 = vpop.permute.xlu1 %669  ;;  %v10563_v42 = vpop.permute.xlu0 %667 }
 0x101   :  { %16064 = vst [vmem:[#allocation87_spill] sm:$0xff] %v10561_v41  ;;  %16065 = vst [vmem:[#allocation88_spill] sm:$0xff] %v10563_v42  ;;  %v16120_v42 = vld [vmem:[#allocation43_spill] sm:$0xff] }
 0x102   :  { %913 = vrot.lane.b32.xlu1 %v10099_v47, %s9705_s21  ;;  %911 = vrot.lane.b32.xlu0 %v10101_v48, %s9705_s21 }
 0x104   :  { %v10569_v43 = vpop.permute.xlu1 %673  ;;  %v10571_v44 = vpop.permute.xlu0 %671 }
 0x105   :  { %16066 = vst [vmem:[#allocation89_spill] sm:$0xff] %v10569_v43  ;;  %16067 = vst [vmem:[#allocation90_spill] sm:$0xff] %v10571_v44  ;;  %v16112_v44 = vld [vmem:[#allocation35_spill] sm:$0xff] }
 0x106   :  { %917 = vrot.lane.b32.xlu1 %v10107_v49, %s9705_s21  ;;  %915 = vrot.lane.b32.xlu0 %v10109_v50, %s9705_s21 }
 0x108   :  { %v10577_v45 = vpop.permute.xlu1 %677  ;;  %v10579_v46 = vpop.permute.xlu0 %675 }
 0x109   :  { %16068 = vst [vmem:[#allocation91_spill] sm:$0xff] %v10577_v45  ;;  %16069 = vst [vmem:[#allocation92_spill] sm:$0xff] %v10579_v46 }
 0x10a   :  { %921 = vrot.lane.b32.xlu1 %v10115_v51, %s9705_s21  ;;  %919 = vrot.lane.b32.xlu0 %v10117_v52, %s9705_s21 }
 0x10c   :  { %v10585_v47 = vpop.permute.xlu1 %681  ;;  %v10587_v48 = vpop.permute.xlu0 %679 }
 0x10d   :  { %16070 = vst [vmem:[#allocation93_spill] sm:$0xff] %v10585_v47  ;;  %16071 = vst [vmem:[#allocation94_spill] sm:$0xff] %v10587_v48 }
 0x10e   :  { %925 = vrot.lane.b32.xlu1 %v10123_v53, %s9705_s21  ;;  %923 = vrot.lane.b32.xlu0 %v10125_v54, %s9705_s21 }
 0x110   :  { %v10593_v49 = vpop.permute.xlu1 %685  ;;  %v10595_v50 = vpop.permute.xlu0 %683 }
 0x111   :  { %16072 = vst [vmem:[#allocation95_spill] sm:$0xff] %v10593_v49  ;;  %16073 = vst [vmem:[#allocation96_spill] sm:$0xff] %v10595_v50 }
 0x112   :  { %929 = vrot.lane.b32.xlu1 %v10131_v55, %s9705_s21  ;;  %927 = vrot.lane.b32.xlu0 %v10133_v56, %s9705_s21 }
 0x114   :  { %v10601_v51 = vpop.permute.xlu1 %689  ;;  %v10603_v52 = vpop.permute.xlu0 %687 }
 0x115   :  { %16074 = vst [vmem:[#allocation97_spill] sm:$0xff] %v10601_v51  ;;  %16075 = vst [vmem:[#allocation98_spill] sm:$0xff] %v10603_v52 }
 0x116   :  { %933 = vrot.lane.b32.xlu1 %v10139_v57, %s9705_s21  ;;  %931 = vrot.lane.b32.xlu0 %v10141_v58, %s9705_s21  ;;  %v10625_v57 = vld [vmem:[#allocation2 + $0x189] sm:$0xff]  ;;  %v10627_v58 = vld [vmem:[#allocation2 + $0x181] sm:$0xff] }
 0x118   :  { %v10609_v53 = vpop.permute.xlu1 %757  ;;  %v10611_v54 = vpop.permute.xlu0 %755 }
 0x11a   :  { %937 = vrot.lane.b32.xlu1 %v10155_v61, %s9705_s21  ;;  %935 = vrot.lane.b32.xlu0 %v10157_v62, %s9705_s21 }
 0x11c   :  { %v10617_v55 = vpop.permute.xlu1 %761  ;;  %v10619_v56 = vpop.permute.xlu0 %759 }
 0x11e   :  { %941 = vrot.lane.b32.xlu1 %v10163_v63, %s9705_s21  ;;  %939 = vrot.lane.b32.xlu0 %v10165_v0, %s9705_s21 }
 0x120   :  { %v10629_v52 = vpop.permute.xlu1 %765  ;;  %v10631_v61 = vpop.permute.xlu0 %763 }
 0x122   :  { %945 = vrot.lane.b32.xlu1 %v10625_v57, %s9705_s21  ;;  %943 = vrot.lane.b32.xlu0 %v10627_v58, %s9705_s21 }
 0x124   :  { %v10637_v62 = vpop.permute.xlu1 %769  ;;  %v10639_v63 = vpop.permute.xlu0 %767 }
 0x126   :  { %1013 = vrot.lane.b32.xlu1 %v10173_v3, %s9706_s22  ;;  %1011 = vrot.lane.b32.xlu0 %v10175_v4, %s9706_s22 }
 0x128   :  { %v10645_v0 = vpop.permute.xlu1 %773  ;;  %v10647_v51 = vpop.permute.xlu0 %771 }
 0x12a   :  { %1017 = vrot.lane.b32.xlu1 %v10181_v5, %s9706_s22  ;;  %1015 = vrot.lane.b32.xlu0 %v10183_v6, %s9706_s22 }
 0x12c   :  { %v10653_v50 = vpop.permute.xlu1 %777  ;;  %v10655_v49 = vpop.permute.xlu0 %775 }
 0x12d   :  { %16076 = vst [vmem:[#allocation99_spill] sm:$0xff] %v10653_v50  ;;  %16077 = vst [vmem:[#allocation100_spill] sm:$0xff] %v10655_v49  ;;  %v16221_v50 = vld [vmem:[#allocation70_spill] sm:$0xff] }
 0x12e   :  { %1021 = vrot.lane.b32.xlu1 %v10189_v7, %s9706_s22  ;;  %1019 = vrot.lane.b32.xlu0 %v10191_v8, %s9706_s22 }
 0x130   :  { %v10661_v3 = vpop.permute.xlu1 %781  ;;  %v10663_v4 = vpop.permute.xlu0 %779 }
 0x131   :  { %16078 = vst [vmem:[#allocation101_spill] sm:$0xff] %v10661_v3  ;;  %16079 = vst [vmem:[#allocation102_spill] sm:$0xff] %v10663_v4 }
 0x132   :  { %1025 = vrot.lane.b32.xlu1 %v10197_v9, %s9706_s22  ;;  %1023 = vrot.lane.b32.xlu0 %v10199_v10, %s9706_s22 }
 0x134   :  { %v10669_v5 = vpop.permute.xlu1 %785  ;;  %v10671_v6 = vpop.permute.xlu0 %783 }
 0x135   :  { %16080 = vst [vmem:[#allocation103_spill] sm:$0xff] %v10669_v5  ;;  %16081 = vst [vmem:[#allocation104_spill] sm:$0xff] %v10671_v6 }
 0x136   :  { %1029 = vrot.lane.b32.xlu1 %v10205_v11, %s9706_s22  ;;  %1027 = vrot.lane.b32.xlu0 %v10207_v12, %s9706_s22 }
 0x138   :  { %v10677_v7 = vpop.permute.xlu1 %789  ;;  %v10679_v8 = vpop.permute.xlu0 %787 }
 0x139   :  { %16082 = vst [vmem:[#allocation105_spill] sm:$0xff] %v10677_v7  ;;  %16083 = vst [vmem:[#allocation106_spill] sm:$0xff] %v10679_v8 }
 0x13a   :  { %1033 = vrot.lane.b32.xlu1 %v10213_v13, %s9706_s22  ;;  %1031 = vrot.lane.b32.xlu0 %v10215_v14, %s9706_s22 }
 0x13c   :  { %v10685_v9 = vpop.permute.xlu1 %793  ;;  %v10687_v10 = vpop.permute.xlu0 %791 }
 0x13d   :  { %16084 = vst [vmem:[#allocation107_spill] sm:$0xff] %v10685_v9  ;;  %16085 = vst [vmem:[#allocation108_spill] sm:$0xff] %v10687_v10  ;;  %v16124_v10 = vld [vmem:[#allocation47_spill] sm:$0xff] }
 0x13e   :  { %1037 = vrot.lane.b32.xlu1 %v10221_v15, %s9706_s22  ;;  %1035 = vrot.lane.b32.xlu0 %v10223_v16, %s9706_s22 }
 0x140   :  { %v10693_v11 = vpop.permute.xlu1 %797  ;;  %v10695_v12 = vpop.permute.xlu0 %795 }
 0x141   :  { %16086 = vst [vmem:[#allocation109_spill] sm:$0xff] %v10693_v11  ;;  %16087 = vst [vmem:[#allocation110_spill] sm:$0xff] %v10695_v12  ;;  %v16116_v12 = vld [vmem:[#allocation39_spill] sm:$0xff] }
 0x142   :  { %1041 = vrot.lane.b32.xlu1 %v10229_v17, %s9706_s22  ;;  %1039 = vrot.lane.b32.xlu0 %v10231_v18, %s9706_s22 }
 0x144   :  { %v10701_v13 = vpop.permute.xlu1 %801  ;;  %v10703_v14 = vpop.permute.xlu0 %799 }
 0x145   :  { %16088 = vst [vmem:[#allocation111_spill] sm:$0xff] %v10701_v13  ;;  %16089 = vst [vmem:[#allocation112_spill] sm:$0xff] %v10703_v14  ;;  %v16108_v14 = vld [vmem:[#allocation31_spill] sm:$0xff] }
 0x146   :  { %1045 = vrot.lane.b32.xlu1 %v10237_v19, %s9706_s22  ;;  %1043 = vrot.lane.b32.xlu0 %v10239_v20, %s9706_s22 }
 0x148   :  { %v10709_v15 = vpop.permute.xlu1 %805  ;;  %v10711_v16 = vpop.permute.xlu0 %803 }
 0x149   :  { %16090 = vst [vmem:[#allocation113_spill] sm:$0xff] %v10709_v15  ;;  %16091 = vst [vmem:[#allocation114_spill] sm:$0xff] %v10711_v16  ;;  %v16104_v16 = vld [vmem:[#allocation27_spill] sm:$0xff]  ;;  %v16105_v15 = vld [vmem:[#allocation28_spill] sm:$0xff] }
 0x14a   :  { %1049 = vrot.lane.b32.xlu1 %v10245_v21, %s9706_s22  ;;  %1047 = vrot.lane.b32.xlu0 %v10247_v22, %s9706_s22 }
 0x14c   :  { %v10717_v17 = vpop.permute.xlu1 %809  ;;  %v10719_v18 = vpop.permute.xlu0 %807 }
 0x14d   :  { %16092 = vst [vmem:[#allocation115_spill] sm:$0xff] %v10717_v17  ;;  %16093 = vst [vmem:[#allocation116_spill] sm:$0xff] %v10719_v18  ;;  %v16103_v17 = vld [vmem:[#allocation24_spill] sm:$0xff] }
 0x14e   :  { %1053 = vrot.lane.b32.xlu1 %v10253_v23, %s9706_s22  ;;  %1051 = vrot.lane.b32.xlu0 %v10255_v25, %s9706_s22 }
 0x150   :  { %v10725_v19 = vpop.permute.xlu1 %813  ;;  %v10727_v20 = vpop.permute.xlu0 %811 }
 0x151   :  { %16094 = vst [vmem:[#allocation117_spill] sm:$0xff] %v10725_v19  ;;  %16095 = vst [vmem:[#allocation118_spill] sm:$0xff] %v10727_v20  ;;  %v16098_v20 = vld [vmem:[#allocation9_spill] sm:$0xff]  ;;  %v10759_v19 = vld [vmem:[#allocation2 + $0x182] sm:$0xff] }
 0x152   :  { %1057 = vrot.lane.b32.xlu1 %v10261_v27, %s9706_s22  ;;  %1055 = vrot.lane.b32.xlu0 %v10263_v31, %s9706_s22  ;;  %v16099_v27 = vld [vmem:[#allocation10_spill] sm:$0xff] }
 0x154   :  { %v10733_v21 = vpop.permute.xlu1 %817  ;;  %v10735_v22 = vpop.permute.xlu0 %815 }
 0x155   :  { %16096 = vst [vmem:[#allocation119_spill] sm:$0xff] %v10733_v21  ;;  %16097 = vst [vmem:[#allocation120_spill] sm:$0xff] %v10735_v22  ;;  %v16100_v22 = vld [vmem:[#allocation13_spill] sm:$0xff] }
 0x156   :  { %1061 = vrot.lane.b32.xlu1 %v10269_v32, %s9706_s22  ;;  %1059 = vrot.lane.b32.xlu0 %v10271_v34, %s9706_s22  ;;  %v16101_v32 = vld [vmem:[#allocation14_spill] sm:$0xff]  ;;  %v10757_v34 = vld [vmem:[#allocation2 + $0x18a] sm:$0xff] }
 0x158   :  { %v10741_v23 = vpop.permute.xlu1 %885  ;;  %v10743_v25 = vpop.permute.xlu0 %883 }
 0x15a   :  { %1065 = vrot.lane.b32.xlu1 %v16098_v20, %s9706_s22  ;;  %1063 = vrot.lane.b32.xlu0 %v16099_v27, %s9706_s22 }
 0x15c   :  { %v10749_v31 = vpop.permute.xlu1 %889  ;;  %v10751_v21 = vpop.permute.xlu0 %887 }
 0x15e   :  { %1069 = vrot.lane.b32.xlu1 %v16100_v22, %s9706_s22  ;;  %1067 = vrot.lane.b32.xlu0 %v16101_v32, %s9706_s22  ;;  %v16102_v32 = vld [vmem:[#allocation23_spill] sm:$0xff] }
 0x160   :  { %v10761_v18 = vpop.permute.xlu1 %893  ;;  %v10763_v20 = vpop.permute.xlu0 %891 }
 0x162   :  { %1073 = vrot.lane.b32.xlu1 %v10757_v34, %s9706_s22  ;;  %1071 = vrot.lane.b32.xlu0 %v10759_v19, %s9706_s22 }
 0x164   :  { %v10769_v27 = vpop.permute.xlu1 %897  ;;  %v10771_v22 = vpop.permute.xlu0 %895 }
 0x166   :  { %1141 = vrot.lane.b32.xlu1 %v16102_v32, %s9707_s23  ;;  %1139 = vrot.lane.b32.xlu0 %v16103_v17, %s9707_s23  ;;  %v16109_v32 = vld [vmem:[#allocation32_spill] sm:$0xff] }
 0x168   :  { %v10777_v48 = vpop.permute.xlu1 %901  ;;  %v10779_v47 = vpop.permute.xlu0 %899 }
 0x16a   :  { %1145 = vrot.lane.b32.xlu1 %v16104_v16, %s9707_s23  ;;  %1143 = vrot.lane.b32.xlu0 %v16105_v15, %s9707_s23  ;;  %v16113_v16 = vld [vmem:[#allocation36_spill] sm:$0xff] }
 0x16c   :  { %v10785_v46 = vpop.permute.xlu1 %905  ;;  %v10787_v45 = vpop.permute.xlu0 %903 }
 0x16d   :  { %16106 = vst [vmem:[#allocation9_spill] sm:$0xff] %v10785_v46  ;;  %16107 = vst [vmem:[#allocation10_spill] sm:$0xff] %v10787_v45 }
 0x16e   :  { %1149 = vrot.lane.b32.xlu1 %v16108_v14, %s9707_s23  ;;  %1147 = vrot.lane.b32.xlu0 %v16109_v32, %s9707_s23  ;;  %v16117_v14 = vld [vmem:[#allocation40_spill] sm:$0xff] }
 0x170   :  { %v10793_v17 = vpop.permute.xlu1 %909  ;;  %v10795_v13 = vpop.permute.xlu0 %907 }
 0x171   :  { %16110 = vst [vmem:[#allocation13_spill] sm:$0xff] %v10793_v17  ;;  %16111 = vst [vmem:[#allocation14_spill] sm:$0xff] %v10795_v13 }
 0x172   :  { %1153 = vrot.lane.b32.xlu1 %v16112_v44, %s9707_s23  ;;  %1151 = vrot.lane.b32.xlu0 %v16113_v16, %s9707_s23  ;;  %v16121_v44 = vld [vmem:[#allocation44_spill] sm:$0xff] }
 0x174   :  { %v10801_v15 = vpop.permute.xlu1 %913  ;;  %v10803_v43 = vpop.permute.xlu0 %911 }
 0x175   :  { %16114 = vst [vmem:[#allocation23_spill] sm:$0xff] %v10801_v15  ;;  %16115 = vst [vmem:[#allocation24_spill] sm:$0xff] %v10803_v43 }
 0x176   :  { %1157 = vrot.lane.b32.xlu1 %v16116_v12, %s9707_s23  ;;  %1155 = vrot.lane.b32.xlu0 %v16117_v14, %s9707_s23  ;;  %v16125_v12 = vld [vmem:[#allocation48_spill] sm:$0xff] }
 0x178   :  { %v10809_v32 = vpop.permute.xlu1 %917  ;;  %v10811_v11 = vpop.permute.xlu0 %915 }
 0x179   :  { %16118 = vst [vmem:[#allocation27_spill] sm:$0xff] %v10809_v32  ;;  %16119 = vst [vmem:[#allocation28_spill] sm:$0xff] %v10811_v11 }
 0x17a   :  { %1161 = vrot.lane.b32.xlu1 %v16120_v42, %s9707_s23  ;;  %1159 = vrot.lane.b32.xlu0 %v16121_v44, %s9707_s23  ;;  %v16129_v42 = vld [vmem:[#allocation52_spill] sm:$0xff] }
 0x17c   :  { %v10817_v16 = vpop.permute.xlu1 %921  ;;  %v10819_v41 = vpop.permute.xlu0 %919 }
 0x17d   :  { %16122 = vst [vmem:[#allocation31_spill] sm:$0xff] %v10817_v16  ;;  %16123 = vst [vmem:[#allocation32_spill] sm:$0xff] %v10819_v41  ;;  %v16132_v41 = vld [vmem:[#allocation55_spill] sm:$0xff] }
 0x17e   :  { %1165 = vrot.lane.b32.xlu1 %v16124_v10, %s9707_s23  ;;  %1163 = vrot.lane.b32.xlu0 %v16125_v12, %s9707_s23  ;;  %v16133_v10 = vld [vmem:[#allocation56_spill] sm:$0xff] }
 0x180   :  { %v10825_v14 = vpop.permute.xlu1 %925  ;;  %v10827_v9 = vpop.permute.xlu0 %923 }
 0x181   :  { %16126 = vst [vmem:[#allocation35_spill] sm:$0xff] %v10825_v14  ;;  %16127 = vst [vmem:[#allocation36_spill] sm:$0xff] %v10827_v9  ;;  %v16136_v9 = vld [vmem:[#allocation59_spill] sm:$0xff] }
 0x182   :  { %1169 = vrot.lane.b32.xlu1 %v16128_v40, %s9707_s23  ;;  %1167 = vrot.lane.b32.xlu0 %v16129_v42, %s9707_s23  ;;  %v16137_v40 = vld [vmem:[#allocation60_spill] sm:$0xff] }
 0x184   :  { %v10833_v44 = vpop.permute.xlu1 %929  ;;  %v10835_v16 = vpop.permute.xlu0 %927 }
 0x185   :  { %16130 = vst [vmem:[#allocation39_spill] sm:$0xff] %v10833_v44  ;;  %16131 = vst [vmem:[#allocation40_spill] sm:$0xff] %v10835_v16  ;;  %v16140_v16 = vld [vmem:[#allocation63_spill] sm:$0xff] }
 0x186   :  { %1173 = vrot.lane.b32.xlu1 %v16132_v41, %s9707_s23  ;;  %1171 = vrot.lane.b32.xlu0 %v16133_v10, %s9707_s23  ;;  %v16141_v41 = vld [vmem:[#allocation64_spill] sm:$0xff] }
 0x188   :  { %v10841_v12 = vpop.permute.xlu1 %933  ;;  %v10843_v14 = vpop.permute.xlu0 %931 }
 0x189   :  { %16134 = vst [vmem:[#allocation43_spill] sm:$0xff] %v10841_v12  ;;  %16135 = vst [vmem:[#allocation44_spill] sm:$0xff] %v10843_v14  ;;  %v16144_v14 = vld [vmem:[#allocation67_spill] sm:$0xff] }
 0x18a   :  { %1177 = vrot.lane.b32.xlu1 %v16136_v9, %s9707_s23  ;;  %1175 = vrot.lane.b32.xlu0 %v16137_v40, %s9707_s23  ;;  %v16145_v9 = vld [vmem:[#allocation68_spill] sm:$0xff] }
 0x18c   :  { %v10849_v42 = vpop.permute.xlu1 %937  ;;  %v10851_v44 = vpop.permute.xlu0 %935 }
 0x18d   :  { %16138 = vst [vmem:[#allocation47_spill] sm:$0xff] %v10849_v42  ;;  %16139 = vst [vmem:[#allocation48_spill] sm:$0xff] %v10851_v44  ;;  %v16148_v44 = vld [vmem:[#allocation71_spill] sm:$0xff] }
 0x18e   :  { %1181 = vrot.lane.b32.xlu1 %v16140_v16, %s9707_s23  ;;  %1179 = vrot.lane.b32.xlu0 %v16141_v41, %s9707_s23  ;;  %v16149_v16 = vld [vmem:[#allocation72_spill] sm:$0xff] }
 0x190   :  { %v10857_v10 = vpop.permute.xlu1 %941  ;;  %v10859_v12 = vpop.permute.xlu0 %939 }
 0x191   :  { %16142 = vst [vmem:[#allocation51_spill] sm:$0xff] %v10857_v10  ;;  %16143 = vst [vmem:[#allocation52_spill] sm:$0xff] %v10859_v12 }
 0x192   :  { %1185 = vrot.lane.b32.xlu1 %v16144_v14, %s9707_s23  ;;  %1183 = vrot.lane.b32.xlu0 %v16145_v9, %s9707_s23 }
 0x194   :  { %v10865_v40 = vpop.permute.xlu1 %945  ;;  %v10867_v42 = vpop.permute.xlu0 %943 }
 0x195   :  { %16146 = vst [vmem:[#allocation55_spill] sm:$0xff] %v10865_v40  ;;  %16147 = vst [vmem:[#allocation56_spill] sm:$0xff] %v10867_v42  ;;  %v403_v40 = vld [vmem:[#allocation2 + $0x31] sm:$0xff] }
 0x196   :  { %1189 = vrot.lane.b32.xlu1 %v16148_v44, %s9707_s23  ;;  %1187 = vrot.lane.b32.xlu0 %v16149_v16, %s9707_s23  ;;  %v7812_v44 = vld [vmem:[%s15834_s0 + $0x1f0] sm:$0xff]  ;;  %v402_v16 = vld [vmem:[#allocation2 + $0x1a0] sm:$0xff] }
 0x197   :  { %3974 = vst.msk [vmem:[#allocation2 + $0x181] sm:$0xff] %vm24_vm0, %v7812_v44  ;;  %v406_v44 = vld [vmem:[#allocation2 + $0x51] sm:$0xff] }
 0x198   :  { %v10873_v41 = vpop.permute.xlu1 %1013  ;;  %v10875_v10 = vpop.permute.xlu0 %1011 }
 0x19a   :  { %1193 = vrot.lane.b32.xlu1 %v10485_v36, %s9707_s23  ;;  %1191 = vrot.lane.b32.xlu0 %v10487_v59, %s9707_s23  ;;  %v7813_v36 = vld [vmem:[%s15834_s0 + $0x1f8] sm:$0xff] }
 0x19b   :  { %v401_v59 = vld [vmem:[#allocation2 + $0x198] sm:$0xff]  ;;  %3975 = vst.msk [vmem:[#allocation2 + $0x189] sm:$0xff] %vm24_vm0, %v7813_v36  ;;  %v405_v36 = vld [vmem:[#allocation2 + $0x49] sm:$0xff] }
 0x19c   :  { %v10881_v14 = vpop.permute.xlu1 %1017  ;;  %v10883_v9 = vpop.permute.xlu0 %1015 }
 0x19e   :  { %1197 = vrot.lane.b32.xlu1 %v10493_v35, %s9707_s23  ;;  %1195 = vrot.lane.b32.xlu0 %v10495_v60, %s9707_s23  ;;  %v404_v60 = vld [vmem:[#allocation2 + $0x39] sm:$0xff] }
 0x1a0   :  { %v10897_v42 = vpop.permute.xlu1 %1021  ;;  %v10899_v35 = vpop.permute.xlu0 %1019 }
 0x1a2   :  { %1201 = vrot.lane.b32.xlu1 %v402_v16, %s9707_s23  ;;  %1199 = vrot.lane.b32.xlu0 %v401_v59, %s9707_s23  ;;  %v408_v16 = vld [vmem:[#allocation2 + $0x69] sm:$0xff]  ;;  %v407_v59 = vld [vmem:[#allocation2 + $0x61] sm:$0xff] }
 0x1a4   :  { %v10903_v12 = vpop.permute.xlu1 %1025  ;;  %v10905_v39 = vpop.permute.xlu0 %1023 }
 0x1a6   :  { %1269 = vrot.lane.b32.xlu1 %v404_v60, %s9708_s28  ;;  %1267 = vrot.lane.b32.xlu0 %v403_v40, %s9708_s28  ;;  %v410_v40 = vld [vmem:[#allocation2 + $0x81] sm:$0xff]  ;;  %v409_v60 = vld [vmem:[#allocation2 + $0x79] sm:$0xff] }
 0x1a8   :  { %v10909_v11 = vpop.permute.xlu1 %1029  ;;  %v10911_v32 = vpop.permute.xlu0 %1027 }
 0x1aa   :  { %1273 = vrot.lane.b32.xlu1 %v406_v44, %s9708_s28  ;;  %1271 = vrot.lane.b32.xlu0 %v405_v36, %s9708_s28  ;;  %v412_v44 = vld [vmem:[#allocation2 + $0x99] sm:$0xff]  ;;  %v411_v36 = vld [vmem:[#allocation2 + $0x91] sm:$0xff] }
 0x1ac   :  { %v10915_v8 = vpop.permute.xlu1 %1033  ;;  %v10917_v7 = vpop.permute.xlu0 %1031 }
 0x1ad   :  { %16150 = vst [vmem:[#allocation59_spill] sm:$0xff] %v10915_v8  ;;  %16151 = vst [vmem:[#allocation60_spill] sm:$0xff] %v10917_v7 }
 0x1ae   :  { %1277 = vrot.lane.b32.xlu1 %v408_v16, %s9708_s28  ;;  %1275 = vrot.lane.b32.xlu0 %v407_v59, %s9708_s28  ;;  %v414_v16 = vld [vmem:[#allocation2 + $0xb1] sm:$0xff]  ;;  %v413_v59 = vld [vmem:[#allocation2 + $0xa9] sm:$0xff] }
 0x1b0   :  { %v10921_v33 = vpop.permute.xlu1 %1037  ;;  %v10923_v30 = vpop.permute.xlu0 %1035 }
 0x1b1   :  { %16152 = vst [vmem:[#allocation63_spill] sm:$0xff] %v10921_v33  ;;  %16153 = vst [vmem:[#allocation64_spill] sm:$0xff] %v10923_v30 }
 0x1b2   :  { %1281 = vrot.lane.b32.xlu1 %v410_v40, %s9708_s28  ;;  %1279 = vrot.lane.b32.xlu0 %v409_v60, %s9708_s28  ;;  %v416_v40 = vld [vmem:[#allocation2 + $0xc9] sm:$0xff]  ;;  %v415_v60 = vld [vmem:[#allocation2 + $0xc1] sm:$0xff] }
 0x1b4   :  { %v10927_v43 = vpop.permute.xlu1 %1041  ;;  %v10929_v15 = vpop.permute.xlu0 %1039 }
 0x1b5   :  { %16154 = vst [vmem:[#allocation67_spill] sm:$0xff] %v10927_v43  ;;  %16155 = vst [vmem:[#allocation68_spill] sm:$0xff] %v10929_v15 }
 0x1b6   :  { %1285 = vrot.lane.b32.xlu1 %v412_v44, %s9708_s28  ;;  %1283 = vrot.lane.b32.xlu0 %v411_v36, %s9708_s28  ;;  %v418_v44 = vld [vmem:[#allocation2 + $0xe1] sm:$0xff]  ;;  %v417_v36 = vld [vmem:[#allocation2 + $0xd9] sm:$0xff] }
 0x1b8   :  { %v10933_v6 = vpop.permute.xlu1 %1045  ;;  %v10935_v5 = vpop.permute.xlu0 %1043 }
 0x1b9   :  { %16156 = vst [vmem:[#allocation71_spill] sm:$0xff] %v10933_v6  ;;  %16157 = vst [vmem:[#allocation72_spill] sm:$0xff] %v10935_v5 }
 0x1ba   :  { %1289 = vrot.lane.b32.xlu1 %v414_v16, %s9708_s28  ;;  %1287 = vrot.lane.b32.xlu0 %v413_v59, %s9708_s28  ;;  %v420_v16 = vld [vmem:[#allocation2 + $0xf9] sm:$0xff]  ;;  %v419_v59 = vld [vmem:[#allocation2 + $0xf1] sm:$0xff] }
 0x1bc   :  { %v10939_v29 = vpop.permute.xlu1 %1049  ;;  %v10941_v43 = vpop.permute.xlu0 %1047 }
 0x1bd   :  { %16158 = vst [vmem:[#allocation121_spill] sm:$0xff] %v10939_v29  ;;  %16159 = vst [vmem:[#allocation122_spill] sm:$0xff] %v10941_v43  ;;  %v423_v43 = vld [vmem:[#allocation2 + $0x121] sm:$0xff] }
 0x1be   :  { %1293 = vrot.lane.b32.xlu1 %v416_v40, %s9708_s28  ;;  %1291 = vrot.lane.b32.xlu0 %v415_v60, %s9708_s28  ;;  %v1754_v40 = vld [vmem:[%s15836_s2] sm:$0xff]  ;;  %v1755_v60 = vld [vmem:[%s15836_s2 + $0x8] sm:$0xff] }
 0x1c0   :  { %v10945_v15 = vpop.permute.xlu1 %1053  ;;  %v10947_v6 = vpop.permute.xlu0 %1051 }
 0x1c1   :  { %16160 = vst [vmem:[#allocation123_spill] sm:$0xff] %v10945_v15  ;;  %16161 = vst [vmem:[#allocation124_spill] sm:$0xff] %v10947_v6  ;;  %v8164_v6 = vpack.c.bf16 %v1755_v60, %v1754_v40 }
 0x1c2   :  { %1297 = vrot.lane.b32.xlu1 %v418_v44, %s9708_s28  ;;  %1295 = vrot.lane.b32.xlu0 %v417_v36, %s9708_s28  ;;  %v422_v44 = vld [vmem:[#allocation2 + $0x111] sm:$0xff]  ;;  %v421_v36 = vld [vmem:[#allocation2 + $0x109] sm:$0xff] }
 0x1c3   :  { %8165 = vmatprep.subr.bf16.mxu0 %v8164_v6 }
 0x1c4   :  { %v10951_v5 = vpop.permute.xlu1 %1057  ;;  %v10953_v29 = vpop.permute.xlu0 %1055  ;;  %8167 = vmatpush3.bf16.msra.mxu0 %v8164_v6  ;;  %v425_v6 = vld [vmem:[#allocation2 + $0x139] sm:$0xff] }
 0x1c5   :  { %16162 = vst [vmem:[#allocation125_spill] sm:$0xff] %v10951_v5  ;;  %16163 = vst [vmem:[#allocation126_spill] sm:$0xff] %v10953_v29  ;;  %v424_v29 = vld [vmem:[#allocation2 + $0x129] sm:$0xff] }
 0x1c6   :  { %1301 = vrot.lane.b32.xlu1 %v420_v16, %s9708_s28  ;;  %1299 = vrot.lane.b32.xlu0 %v419_v59, %s9708_s28  ;;  %v1756_v16 = vld [vmem:[%s15836_s2 + $0x10] sm:$0xff]  ;;  %v1757_v59 = vld [vmem:[%s15836_s2 + $0x18] sm:$0xff] }
 0x1c7   :  { %v8168_v40 = vpack.c.bf16 %v1757_v59, %v1756_v16 }
 0x1c8   :  { %v10963_v15 = vpop.permute.xlu1 %1061  ;;  %v10965_v5 = vpop.permute.xlu0 %1059 }
 0x1c9   :  { %16164 = vst [vmem:[#allocation127_spill] sm:$0xff] %v10963_v15  ;;  %16165 = vst [vmem:[#allocation128_spill] sm:$0xff] %v10965_v5  ;;  %8169 = vmatprep.subr.bf16.mxu0 %v8168_v40  ;;  %v426_v15 = vld [vmem:[#allocation2 + $0x141] sm:$0xff] }
 0x1ca   :  { %1305 = vrot.lane.b32.xlu1 %v422_v44, %s9708_s28  ;;  %1303 = vrot.lane.b32.xlu0 %v421_v36, %s9708_s28  ;;  %v1758_v44 = vld [vmem:[%s15836_s2 + $0x20] sm:$0xff]  ;;  %v1759_v36 = vld [vmem:[%s15836_s2 + $0x28] sm:$0xff] }
 0x1cb   :  { %8171 = vmatpush3.bf16.msra.mxu0 %v8168_v40  ;;  %v8172_v16 = vpack.c.bf16 %v1759_v36, %v1758_v44  ;;  %v427_v40 = vld [vmem:[#allocation2 + $0x151] sm:$0xff] }
 0x1cc   :  { %v10975_v60 = vpop.permute.xlu1 %1065  ;;  %v10977_v5 = vpop.permute.xlu0 %1063 }
 0x1cd   :  { %16166 = vst [vmem:[#allocation129_spill] sm:$0xff] %v10975_v60  ;;  %16167 = vst [vmem:[#allocation130_spill] sm:$0xff] %v10977_v5  ;;  %8173 = vmatprep.subr.bf16.mxu0 %v8172_v16  ;;  %v428_v60 = vld [vmem:[#allocation2 + $0x159] sm:$0xff] }
 0x1ce   :  { %1309 = vrot.lane.b32.xlu1 %v424_v29, %s9708_s28  ;;  %1307 = vrot.lane.b32.xlu0 %v423_v43, %s9708_s28  ;;  %v1760_v29 = vld [vmem:[%s15836_s2 + $0x30] sm:$0xff]  ;;  %v1761_v43 = vld [vmem:[%s15836_s2 + $0x38] sm:$0xff] }
 0x1cf   :  { %8175 = vmatpush3.bf16.msra.mxu0 %v8172_v16  ;;  %v8176_v44 = vpack.c.bf16 %v1761_v43, %v1760_v29  ;;  %v1762_v16 = vld [vmem:[%s15836_s2 + $0x40] sm:$0xff] }
 0x1d0   :  { %v10987_v59 = vpop.permute.xlu1 %1069  ;;  %v10989_v5 = vpop.permute.xlu0 %1067  ;;  %v434_v43 = vld [vmem:[#allocation2 + $0x1a1] sm:$0xff] }
 0x1d1   :  { %16168 = vst [vmem:[#allocation131_spill] sm:$0xff] %v10987_v59  ;;  %16169 = vst [vmem:[#allocation132_spill] sm:$0xff] %v10989_v5  ;;  %8177 = vmatprep.subr.bf16.mxu0 %v8176_v44 }
 0x1d2   :  { %1313 = vrot.lane.b32.xlu1 %v426_v15, %s9708_s28  ;;  %1311 = vrot.lane.b32.xlu0 %v425_v6, %s9708_s28  ;;  %v430_v15 = vld [vmem:[#allocation2 + $0x171] sm:$0xff]  ;;  %v429_v6 = vld [vmem:[#allocation2 + $0x169] sm:$0xff] }
 0x1d3   :  { %8179 = vmatpush3.bf16.msra.mxu0 %v8176_v44 }
 0x1d4   :  { %v10999_v36 = vpop.permute.xlu1 %1073  ;;  %v11001_v5 = vpop.permute.xlu0 %1071  ;;  %8048 = vmatprep.subr.mxu0 %v1762_v16 }
 0x1d5   :  { %16170 = vst [vmem:[#allocation133_spill] sm:$0xff] %v10999_v36  ;;  %16171 = vst [vmem:[#allocation134_spill] sm:$0xff] %v11001_v5 }
 0x1d6   :  { %1317 = vrot.lane.b32.xlu1 %v428_v60, %s9708_s28  ;;  %1315 = vrot.lane.b32.xlu0 %v427_v40, %s9708_s28  ;;  %v433_v40 = vld [vmem:[#allocation2 + $0x199] sm:$0xff] }
 0x1d7   :  { %8049 = vmatpush3.msra.mxu0 %v1762_v16 }
 0x1d8   :  { %v11005_v59 = vpop.permute.xlu1 %1141  ;;  %v11007_v28 = vpop.permute.xlu0 %1139 }
 0x1da   :  { %1321 = vrot.lane.b32.xlu1 %v430_v15, %s9708_s28  ;;  %1319 = vrot.lane.b32.xlu0 %v429_v6, %s9708_s28  ;;  %v436_v15 = vld [vmem:[#allocation2 + $0x3a] sm:$0xff]  ;;  %v435_v6 = vld [vmem:[#allocation2 + $0x32] sm:$0xff] }
 0x1dc   :  { %v11014_v60 = vpop.permute.xlu1 %1145  ;;  %v11016_v29 = vpop.permute.xlu0 %1143 }
 0x1de   :  { %1325 = vrot.lane.b32.xlu1 %v10625_v57, %s9708_s28  ;;  %1323 = vrot.lane.b32.xlu0 %v10627_v58, %s9708_s28  ;;  %v438_v57 = vld [vmem:[#allocation2 + $0x52] sm:$0xff]  ;;  %v437_v58 = vld [vmem:[#allocation2 + $0x4a] sm:$0xff] }
 0x1e0   :  { %v11022_v44 = vpop.permute.xlu1 %1149  ;;  %v11024_v5 = vpop.permute.xlu0 %1147 }
 0x1e2   :  { %1329 = vrot.lane.b32.xlu1 %v434_v43, %s9708_s28  ;;  %1327 = vrot.lane.b32.xlu0 %v433_v40, %s9708_s28  ;;  %v440_v43 = vld [vmem:[#allocation2 + $0x6a] sm:$0xff]  ;;  %v439_v40 = vld [vmem:[#allocation2 + $0x62] sm:$0xff] }
 0x1e4   :  { %v11028_v16 = vpop.permute.xlu1 %1153  ;;  %v11030_v36 = vpop.permute.xlu0 %1151 }
 0x1e6   :  { %1397 = vrot.lane.b32.xlu1 %v436_v15, %s9709_s30  ;;  %1395 = vrot.lane.b32.xlu0 %v435_v6, %s9709_s30  ;;  %v442_v15 = vld [vmem:[#allocation2 + $0x82] sm:$0xff]  ;;  %v441_v6 = vld [vmem:[#allocation2 + $0x7a] sm:$0xff] }
 0x1e8   :  { %v11034_v30 = vpop.permute.xlu1 %1157  ;;  %v11036_v33 = vpop.permute.xlu0 %1155 }
 0x1e9   :  { %16172 = vst [vmem:[#allocation135_spill] sm:$0xff] %v11034_v30  ;;  %16173 = vst [vmem:[#allocation136_spill] sm:$0xff] %v11036_v33  ;;  %v16222_v33 = vld [vmem:[#allocation7_spill] sm:$0xff] }
 0x1ea   :  { %1401 = vrot.lane.b32.xlu1 %v438_v57, %s9709_s30  ;;  %1399 = vrot.lane.b32.xlu0 %v437_v58, %s9709_s30  ;;  %v444_v57 = vld [vmem:[#allocation2 + $0x9a] sm:$0xff]  ;;  %v443_v58 = vld [vmem:[#allocation2 + $0x92] sm:$0xff] }
 0x1eb   :  { %v16223_v30 = vld [vmem:[#allocation19_spill] sm:$0xff] }
 0x1ec   :  { %v11040_v13 = vpop.permute.xlu1 %1161  ;;  %v11042_v17 = vpop.permute.xlu0 %1159 }
 0x1ed   :  { %16174 = vst [vmem:[#allocation137_spill] sm:$0xff] %v11040_v13  ;;  %16175 = vst [vmem:[#allocation138_spill] sm:$0xff] %v11042_v17 }
 0x1ee   :  { %1405 = vrot.lane.b32.xlu1 %v440_v43, %s9709_s30  ;;  %1403 = vrot.lane.b32.xlu0 %v439_v40, %s9709_s30  ;;  %v446_v43 = vld [vmem:[#allocation2 + $0xb2] sm:$0xff]  ;;  %v445_v40 = vld [vmem:[#allocation2 + $0xaa] sm:$0xff] }
 0x1f0   :  { %v11046_v4 = vpop.permute.xlu1 %1165  ;;  %v11048_v3 = vpop.permute.xlu0 %1163 }
 0x1f1   :  { %16176 = vst [vmem:[#allocation139_spill] sm:$0xff] %v11046_v4  ;;  %16177 = vst [vmem:[#allocation140_spill] sm:$0xff] %v11048_v3 }
 0x1f2   :  { %1409 = vrot.lane.b32.xlu1 %v442_v15, %s9709_s30  ;;  %1407 = vrot.lane.b32.xlu0 %v441_v6, %s9709_s30  ;;  %v448_v15 = vld [vmem:[#allocation2 + $0xca] sm:$0xff]  ;;  %v447_v6 = vld [vmem:[#allocation2 + $0xc2] sm:$0xff] }
 0x1f4   :  { %v11052_v26 = vpop.permute.xlu1 %1169  ;;  %v11054_v13 = vpop.permute.xlu0 %1167 }
 0x1f5   :  { %16178 = vst [vmem:[#allocation141_spill] sm:$0xff] %v11052_v26  ;;  %16179 = vst [vmem:[#allocation142_spill] sm:$0xff] %v11054_v13 }
 0x1f6   :  { %1413 = vrot.lane.b32.xlu1 %v444_v57, %s9709_s30  ;;  %1411 = vrot.lane.b32.xlu0 %v443_v58, %s9709_s30  ;;  %v450_v57 = vld [vmem:[#allocation2 + $0xe2] sm:$0xff]  ;;  %v449_v58 = vld [vmem:[#allocation2 + $0xda] sm:$0xff] }
 0x1f8   :  { %v11058_v17 = vpop.permute.xlu1 %1173  ;;  %v11060_v4 = vpop.permute.xlu0 %1171 }
 0x1f9   :  { %16180 = vst [vmem:[#allocation143_spill] sm:$0xff] %v11058_v17  ;;  %16181 = vst [vmem:[#allocation144_spill] sm:$0xff] %v11060_v4 }
 0x1fa   :  { %1417 = vrot.lane.b32.xlu1 %v446_v43, %s9709_s30  ;;  %1415 = vrot.lane.b32.xlu0 %v445_v40, %s9709_s30  ;;  %v452_v43 = vld [vmem:[#allocation2 + $0xfa] sm:$0xff]  ;;  %v451_v40 = vld [vmem:[#allocation2 + $0xf2] sm:$0xff] }
 0x1fc   :  { %v11064_v3 = vpop.permute.xlu1 %1177  ;;  %v11066_v26 = vpop.permute.xlu0 %1175 }
 0x1fd   :  { %16182 = vst [vmem:[#allocation145_spill] sm:$0xff] %v11064_v3  ;;  %16183 = vst [vmem:[#allocation146_spill] sm:$0xff] %v11066_v26 }
 0x1fe   :  { %1421 = vrot.lane.b32.xlu1 %v448_v15, %s9709_s30  ;;  %1419 = vrot.lane.b32.xlu0 %v447_v6, %s9709_s30  ;;  %v454_v15 = vld [vmem:[#allocation2 + $0x112] sm:$0xff]  ;;  %v453_v6 = vld [vmem:[#allocation2 + $0x10a] sm:$0xff] }
 0x200   :  { %v11070_v13 = vpop.permute.xlu1 %1181  ;;  %v11072_v17 = vpop.permute.xlu0 %1179 }
 0x201   :  { %16184 = vst [vmem:[#allocation147_spill] sm:$0xff] %v11070_v13  ;;  %16185 = vst [vmem:[#allocation148_spill] sm:$0xff] %v11072_v17 }
 0x202   :  { %1425 = vrot.lane.b32.xlu1 %v450_v57, %s9709_s30  ;;  %1423 = vrot.lane.b32.xlu0 %v449_v58, %s9709_s30  ;;  %v456_v57 = vld [vmem:[#allocation2 + $0x12a] sm:$0xff]  ;;  %v455_v58 = vld [vmem:[#allocation2 + $0x122] sm:$0xff] }
 0x204   :  { %v11076_v4 = vpop.permute.xlu1 %1185  ;;  %v11078_v3 = vpop.permute.xlu0 %1183 }
 0x205   :  { %16186 = vst [vmem:[#allocation149_spill] sm:$0xff] %v11076_v4  ;;  %16187 = vst [vmem:[#allocation150_spill] sm:$0xff] %v11078_v3 }
 0x206   :  { %1429 = vrot.lane.b32.xlu1 %v452_v43, %s9709_s30  ;;  %1427 = vrot.lane.b32.xlu0 %v451_v40, %s9709_s30  ;;  %v458_v43 = vld [vmem:[#allocation2 + $0x142] sm:$0xff]  ;;  %v457_v40 = vld [vmem:[#allocation2 + $0x13a] sm:$0xff] }
 0x208   :  { %v11082_v26 = vpop.permute.xlu1 %1189  ;;  %v11084_v13 = vpop.permute.xlu0 %1187 }
 0x209   :  { %16188 = vst [vmem:[#allocation151_spill] sm:$0xff] %v11082_v26  ;;  %16189 = vst [vmem:[#allocation152_spill] sm:$0xff] %v11084_v13 }
 0x20a   :  { %1433 = vrot.lane.b32.xlu1 %v454_v15, %s9709_s30  ;;  %1431 = vrot.lane.b32.xlu0 %v453_v6, %s9709_s30  ;;  %v460_v15 = vld [vmem:[#allocation2 + $0x15a] sm:$0xff]  ;;  %v459_v6 = vld [vmem:[#allocation2 + $0x152] sm:$0xff] }
 0x20c   :  { %v11088_v17 = vpop.permute.xlu1 %1193  ;;  %v11090_v4 = vpop.permute.xlu0 %1191 }
 0x20d   :  { %16190 = vst [vmem:[#allocation153_spill] sm:$0xff] %v11088_v17  ;;  %16191 = vst [vmem:[#allocation154_spill] sm:$0xff] %v11090_v4 }
 0x20e   :  { %1437 = vrot.lane.b32.xlu1 %v456_v57, %s9709_s30  ;;  %1435 = vrot.lane.b32.xlu0 %v455_v58, %s9709_s30  ;;  %v462_v57 = vld [vmem:[#allocation2 + $0x172] sm:$0xff]  ;;  %v461_v58 = vld [vmem:[#allocation2 + $0x16a] sm:$0xff] }
 0x210   :  { %v11094_v3 = vpop.permute.xlu1 %1197  ;;  %v11096_v26 = vpop.permute.xlu0 %1195 }
 0x211   :  { %16192 = vst [vmem:[#allocation155_spill] sm:$0xff] %v11094_v3  ;;  %16193 = vst [vmem:[#allocation156_spill] sm:$0xff] %v11096_v26 }
 0x212   :  { %1441 = vrot.lane.b32.xlu1 %v458_v43, %s9709_s30  ;;  %1439 = vrot.lane.b32.xlu0 %v457_v40, %s9709_s30 }
 0x214   :  { %v11100_v13 = vpop.permute.xlu1 %1201  ;;  %v11102_v17 = vpop.permute.xlu0 %1199 }
 0x215   :  { %16194 = vst [vmem:[#allocation157_spill] sm:$0xff] %v11100_v13  ;;  %16195 = vst [vmem:[#allocation158_spill] sm:$0xff] %v11102_v17 }
 0x216   :  { %1445 = vrot.lane.b32.xlu1 %v460_v15, %s9709_s30  ;;  %1443 = vrot.lane.b32.xlu0 %v459_v6, %s9709_s30  ;;  %v466_v15 = vld [vmem:[#allocation2 + $0x1a2] sm:$0xff]  ;;  %v465_v6 = vld [vmem:[#allocation2 + $0x19a] sm:$0xff] }
 0x218   :  { %v11106_v4 = vpop.permute.xlu1 %1269  ;;  %v11108_v3 = vpop.permute.xlu0 %1267 }
 0x21a   :  { %1449 = vrot.lane.b32.xlu1 %v462_v57, %s9709_s30  ;;  %1447 = vrot.lane.b32.xlu0 %v461_v58, %s9709_s30 }
 0x21c   :  { %v11112_v43 = vpop.permute.xlu1 %1273  ;;  %v11114_v40 = vpop.permute.xlu0 %1271 }
 0x21e   :  { %1453 = vrot.lane.b32.xlu1 %v10757_v34, %s9709_s30  ;;  %1451 = vrot.lane.b32.xlu0 %v10759_v19, %s9709_s30 }
 0x220   :  { %v11120_v17 = vpop.permute.xlu1 %1277  ;;  %v11122_v13 = vpop.permute.xlu0 %1275 }
 0x222   :  { %1457 = vrot.lane.b32.xlu1 %v466_v15, %s9709_s30  ;;  %1455 = vrot.lane.b32.xlu0 %v465_v6, %s9709_s30 }
 0x224   :  { %v11126_v57 = vpop.permute.xlu1 %1281  ;;  %v11128_v58 = vpop.permute.xlu0 %1279 }
 0x228   :  { %v11130_v26 = vpop.permute.xlu1 %1285  ;;  %v11132_v34 = vpop.permute.xlu0 %1283 }
 0x229   :  { %16196 = vst [vmem:[#allocation159_spill] sm:$0xff] %v11130_v26  ;;  %16197 = vst [vmem:[#allocation160_spill] sm:$0xff] %v11132_v34 }
 0x22c   :  { %v11134_v24 = vpop.permute.xlu1 %1289  ;;  %v11136_v19 = vpop.permute.xlu0 %1287 }
 0x22d   :  { %16198 = vst [vmem:[#allocation161_spill] sm:$0xff] %v11134_v24  ;;  %16199 = vst [vmem:[#allocation162_spill] sm:$0xff] %v11136_v19 }
 0x230   :  { %v11138_v7 = vpop.permute.xlu1 %1293  ;;  %v11140_v8 = vpop.permute.xlu0 %1291 }
 0x231   :  { %16200 = vst [vmem:[#allocation163_spill] sm:$0xff] %v11138_v7  ;;  %16201 = vst [vmem:[#allocation164_spill] sm:$0xff] %v11140_v8 }
 0x234   :  { %v11142_v45 = vpop.permute.xlu1 %1297  ;;  %v11144_v15 = vpop.permute.xlu0 %1295 }
 0x235   :  { %16202 = vst [vmem:[#allocation165_spill] sm:$0xff] %v11142_v45  ;;  %16203 = vst [vmem:[#allocation166_spill] sm:$0xff] %v11144_v15 }
 0x238   :  { %v11146_v6 = vpop.permute.xlu1 %1301  ;;  %v11148_v46 = vpop.permute.xlu0 %1299 }
 0x239   :  { %16204 = vst [vmem:[#allocation167_spill] sm:$0xff] %v11146_v6  ;;  %16205 = vst [vmem:[#allocation168_spill] sm:$0xff] %v11148_v46  ;;  %v178_v46 = vld [vmem:[#allocation2] sm:$0xff] }
 0x23c   :  { %v11150_v49 = vpop.permute.xlu1 %1305  ;;  %v11152_v26 = vpop.permute.xlu0 %1303 }
 0x23d   :  { %16206 = vst [vmem:[#allocation169_spill] sm:$0xff] %v11150_v49  ;;  %16207 = vst [vmem:[#allocation170_spill] sm:$0xff] %v11152_v26  ;;  %v179_v49 = vld [vmem:[#allocation2 + $0x8] sm:$0xff] }
 0x240   :  { %v11154_v34 = vpop.permute.xlu1 %1309  ;;  %v11156_v24 = vpop.permute.xlu0 %1307 }
 0x241   :  { %16208 = vst [vmem:[#allocation171_spill] sm:$0xff] %v11154_v34  ;;  %16209 = vst [vmem:[#allocation172_spill] sm:$0xff] %v11156_v24  ;;  %v16218_v24 = vld [vmem:[#allocation8_spill] sm:$0xff] }
 0x244   :  { %v11158_v19 = vpop.permute.xlu1 %1313  ;;  %v11160_v7 = vpop.permute.xlu0 %1311 }
 0x245   :  { %16210 = vst [vmem:[#allocation173_spill] sm:$0xff] %v11158_v19  ;;  %16211 = vst [vmem:[#allocation174_spill] sm:$0xff] %v11160_v7  ;;  %v1491_v19 = vsel %vm24_vm0, %v178_v46, %v16218_v24  ;;  %v16219_v7 = vld [vmem:[#allocation12_spill] sm:$0xff] }
 0x248   :  { %v11162_v8 = vpop.permute.xlu1 %1317  ;;  %v11164_v45 = vpop.permute.xlu0 %1315 }
 0x249   :  { %16212 = vst [vmem:[#allocation175_spill] sm:$0xff] %v11162_v8  ;;  %16213 = vst [vmem:[#allocation176_spill] sm:$0xff] %v11164_v45  ;;  %v1492_v8 = vsel %vm24_vm0, %v179_v49, %v16219_v7  ;;  %v16220_v45 = vld [vmem:[#allocation69_spill] sm:$0xff]  ;;  %v16225_v7 = vld [vmem:[#allocation20_spill] sm:$0xff] }
 0x24c   :  { %v11166_v15 = vpop.permute.xlu1 %1321  ;;  %v11168_v6 = vpop.permute.xlu0 %1319 }
 0x24d   :  { %16214 = vst [vmem:[#allocation177_spill] sm:$0xff] %v11166_v15  ;;  %16215 = vst [vmem:[#allocation178_spill] sm:$0xff] %v11168_v6  ;;  %v1525_v15 = vsel %vm1523_vm3, %v1492_v8, %v16220_v45  ;;  %v1524_v6 = vsel %vm1523_vm3, %v1491_v19, %v16221_v50  ;;  %v16224_v45 = vld [vmem:[#allocation11_spill] sm:$0xff] }
 0x24e   :  { %v1557_v24 = vsel %vm1556_vm4, %v1524_v6, %v10611_v54  ;;  %v1494_v50 = vsel %vm24_vm0, %v16225_v7, %v16224_v45 }
 0x250   :  { %v11170_v26 = vpop.permute.xlu1 %1325  ;;  %v11172_v34 = vpop.permute.xlu0 %1323 }
 0x251   :  { %16216 = vst [vmem:[#allocation179_spill] sm:$0xff] %v11170_v26  ;;  %16217 = vst [vmem:[#allocation180_spill] sm:$0xff] %v11172_v34  ;;  %v1493_v26 = vsel %vm24_vm0, %v16223_v30, %v16222_v33  ;;  %v1558_v34 = vsel %vm1556_vm4, %v1525_v15, %v10609_v53  ;;  %v1590_v30 = vsel %vm1589_vm5, %v1557_v24, %v10743_v25  ;;  %v16226_v33 = vld [vmem:[#allocation73_spill] sm:$0xff]  ;;  %v16227_v15 = vld [vmem:[#allocation74_spill] sm:$0xff] }
 0x252   :  { %v1591_v8 = vsel %vm1589_vm5, %v1558_v34, %v10741_v23  ;;  %v1527_v53 = vsel %vm1523_vm3, %v1494_v50, %v16226_v33  ;;  %v1623_v19 = vsel %vm1622_vm6, %v1590_v30, %v10875_v10  ;;  %v1526_v6 = vsel %vm1523_vm3, %v1493_v26, %v16227_v15  ;;  %v9585_v50 = vld [vmem:[#allocation2 + $0x38] sm:$0xff]  ;;  %v16229_v30 = vld [vmem:[#allocation16_spill] sm:$0xff] }
 0x253   :  { %v1624_v54 = vsel %vm1622_vm6, %v1591_v8, %v10873_v41  ;;  %v1656_v25 = vsel %vm1655_vm7, %v1623_v19, %v11007_v28  ;;  %v1560_v34 = vsel %vm1556_vm4, %v1527_v53, %v10617_v55  ;;  %v1559_v41 = vsel %vm1556_vm4, %v1526_v6, %v10619_v56  ;;  %v16228_v56 = vld [vmem:[#allocation15_spill] sm:$0xff] }
 0x254   :  { %v11189_v46 = vpop.permute.xlu1 %1329  ;;  %v11191_v49 = vpop.permute.xlu0 %1327  ;;  %v1657_v23 = vsel %vm1655_vm7, %v1624_v54, %v11005_v59  ;;  %v1689_v24 = vsel %vm1688_vm8, %v1656_v25, %v11108_v3  ;;  %v1593_v59 = vsel %vm1589_vm5, %v1560_v34, %v10749_v31  ;;  %v1592_v28 = vsel %vm1589_vm5, %v1559_v41, %v10751_v21  ;;  %v16230_v21 = vld [vmem:[#allocation75_spill] sm:$0xff]  ;;  %v16231_v54 = vld [vmem:[#allocation76_spill] sm:$0xff] }
 0x255   :  { %v1690_v10 = vsel %vm1688_vm8, %v1657_v23, %v11106_v4  ;;  %v1496_v8 = vsel %vm24_vm0, %v9585_v50, %v16228_v56  ;;  %v9586_v4 = vld [vmem:[#allocation2 + $0x30] sm:$0xff]  ;;  %v1626_v33 = vsel %vm1622_vm6, %v1593_v59, %v10881_v14  ;;  %v1625_v31 = vsel %vm1622_vm6, %v1592_v28, %v10883_v9 }
 0x256   :  { %v1495_v3 = vsel %vm24_vm0, %v9586_v4, %v16229_v30  ;;  %v1529_v53 = vsel %vm1523_vm3, %v1496_v8, %v16230_v21  ;;  %v1659_v15 = vsel %vm1655_vm7, %v1626_v33, %v11014_v60  ;;  %v1658_v6 = vsel %vm1655_vm7, %v1625_v31, %v11016_v29  ;;  %v9589_v31 = vld [vmem:[#allocation2 + $0x68] sm:$0xff] }
 0x257   :  { %v1528_v19 = vsel %vm1523_vm3, %v1495_v3, %v16231_v54  ;;  %v1562_v14 = vsel %vm1556_vm4, %v1529_v53, %v10629_v52  ;;  %v1692_v23 = vsel %vm1688_vm8, %v1659_v15, %v11112_v43  ;;  %v1691_v25 = vsel %vm1688_vm8, %v1658_v6, %v11114_v40  ;;  %v9588_v43 = vld [vmem:[#allocation2 + $0x48] sm:$0xff]  ;;  %v16237_v53 = vld [vmem:[#allocation22_spill] sm:$0xff] }
 0x258   :  { %v1398_v26 = vpop.permute.xlu1 %1397  ;;  %v1396_v45 = vpop.permute.xlu0 %1395  ;;  %v1561_v9 = vsel %vm1556_vm4, %v1528_v19, %v10631_v61  ;;  %v1595_v60 = vsel %vm1589_vm5, %v1562_v14, %v10761_v18  ;;  %v16232_v61 = vld [vmem:[#allocation17_spill] sm:$0xff] }
 0x259   :  { %v1723_v7 = vsel %vm1721_vm9, %v1690_v10, %v1398_v26  ;;  %v1722_v55 = vsel %vm1721_vm9, %v1689_v24, %v1396_v45  ;;  %v1594_v29 = vsel %vm1589_vm5, %v1561_v9, %v10763_v20  ;;  %v9587_v24 = vld [vmem:[#allocation2 + $0x50] sm:$0xff]  ;;  %v16233_v45 = vld [vmem:[#allocation18_spill] sm:$0xff]  ;;  %v1628_v59 = vsel %vm1622_vm6, %v1595_v60, %v10897_v42 }
 0x25a   :  { %8050 = vmatprep.mubr.msk.f32.mxu0 %vm1770_vm10, %v1722_v55  ;;  %v1498_v26 = vsel %vm24_vm0, %v9587_v24, %v16232_v61  ;;  %v1497_v40 = vsel %vm24_vm0, %v9588_v43, %v16233_v45  ;;  %v1627_v18 = vsel %vm1622_vm6, %v1594_v29, %v10899_v35  ;;  %v16234_v20 = vld [vmem:[#allocation77_spill] sm:$0xff]  ;;  %v1661_v50 = vsel %vm1655_vm7, %v1628_v59, %v11022_v44  ;;  %v16241_v24 = vld [vmem:[#allocation136_spill] sm:$0xff]  ;;  %v16244_v45 = vld [vmem:[#allocation159_spill] sm:$0xff] }
 0x25b   :  { %8051 = vmatmul.mubr.msk.f32.vlgmr.msra.gmra.mrb[0].mxu0 %vm1770_vm10, %v1723_v7  ;;  %v1531_v28 = vsel %vm1523_vm3, %v1498_v26, %v16234_v20  ;;  %v16235_v7 = vld [vmem:[#allocation78_spill] sm:$0xff]  ;;  %v1660_v56 = vsel %vm1655_vm7, %v1627_v18, %v11024_v5  ;;  %v1694_v8 = vsel %vm1688_vm8, %v1661_v50, %v11120_v17  ;;  %v9590_v17 = vld [vmem:[#allocation2 + $0x60] sm:$0xff]  ;;  %v16246_v20 = vld [vmem:[#allocation9_spill] sm:$0xff] }
 0x25c   :  { %v1402_v34 = vpop.permute.xlu1 %1401  ;;  %v1400_v41 = vpop.permute.xlu0 %1399  ;;  %v1530_v55 = vsel %vm1523_vm3, %v1497_v40, %v16235_v7  ;;  %v1564_v42 = vsel %vm1556_vm4, %v1531_v28, %v10637_v62  ;;  %v1693_v4 = vsel %vm1688_vm8, %v1660_v56, %v11122_v13  ;;  %v1499_v13 = vsel %vm24_vm0, %v9590_v17, %v16237_v53  ;;  %v16245_v40 = vld [vmem:[#allocation160_spill] sm:$0xff]  ;;  %v16247_v7 = vld [vmem:[#allocation10_spill] sm:$0xff]  ;;  %v16254_v53 = vld [vmem:[#allocation137_spill] sm:$0xff] }
 0x25d   :  { %v1725_v10 = vsel %vm1721_vm9, %v1692_v23, %v1402_v34  ;;  %v1724_v52 = vsel %vm1721_vm9, %v1691_v25, %v1400_v41  ;;  %v1563_v35 = vsel %vm1556_vm4, %v1530_v55, %v10639_v63  ;;  %v1597_v44 = vsel %vm1589_vm5, %v1564_v42, %v10769_v27  ;;  %v16236_v63 = vld [vmem:[#allocation21_spill] sm:$0xff]  ;;  %v9591_v25 = vld [vmem:[#allocation2 + $0x80] sm:$0xff]  ;;  %v16239_v41 = vld [vmem:[#allocation26_spill] sm:$0xff] }
 0x25e   :  { %8053 = vmatprep.mubr.msk.f32.mxu0 %vm1770_vm10, %v1724_v52  ;;  %v1596_v5 = vsel %vm1589_vm5, %v1563_v35, %v10771_v22  ;;  %v1500_v21 = vsel %vm24_vm0, %v9589_v31, %v16236_v63  ;;  %v1630_v54 = vsel %vm1622_vm6, %v1597_v44, %v10903_v12  ;;  %v1532_v19 = vsel %vm1523_vm3, %v1499_v13, %v10515_v2  ;;  %v9593_v42 = vld [vmem:[#allocation2 + $0x98] sm:$0xff]  ;;  %v16248_v35 = vld [vmem:[#allocation29_spill] sm:$0xff]  ;;  %v16250_v44 = vld [vmem:[#allocation59_spill] sm:$0xff] }
 0x25f   :  { %8054 = vmatmul.mubr.msk.f32.gmra.mrb[2].mxu0 %vm1770_vm10, %v1725_v10  ;;  %v1629_v27 = vsel %vm1622_vm6, %v1596_v5, %v10905_v39  ;;  %v1533_v22 = vsel %vm1523_vm3, %v1500_v21, %v10513_v38  ;;  %v1663_v15 = vsel %vm1655_vm7, %v1630_v54, %v11028_v16  ;;  %v1565_v39 = vsel %vm1556_vm4, %v1532_v19, %v10647_v51  ;;  %v16238_v51 = vld [vmem:[#allocation25_spill] sm:$0xff]  ;;  %v16240_v10 = vld [vmem:[#allocation135_spill] sm:$0xff]  ;;  %v16253_v21 = vld [vmem:[#allocation80_spill] sm:$0xff] }
 0x260   :  { %v1406_v30 = vpop.permute.xlu1 %1405  ;;  %v1404_v3 = vpop.permute.xlu0 %1403  ;;  %v1662_v6 = vsel %vm1655_vm7, %v1629_v27, %v11030_v36  ;;  %v1566_v12 = vsel %vm1556_vm4, %v1533_v22, %v10645_v0  ;;  %v1696_v38 = vsel %vm1688_vm8, %v1663_v15, %v11126_v57  ;;  %v1598_v36 = vsel %vm1589_vm5, %v1565_v39, %v10779_v47  ;;  %v9592_v57 = vld [vmem:[#allocation2 + $0x78] sm:$0xff]  ;;  %v16252_v31 = vld [vmem:[#allocation79_spill] sm:$0xff]  ;;  %v16256_v22 = vld [vmem:[#allocation101_spill] sm:$0xff] }
 0x261   :  { %v1727_v33 = vsel %vm1721_vm9, %v1694_v8, %v1406_v30  ;;  %v1726_v62 = vsel %vm1721_vm9, %v1693_v4, %v1404_v3  ;;  %v1695_v2 = vsel %vm1688_vm8, %v1662_v6, %v11128_v58  ;;  %v1599_v16 = vsel %vm1589_vm5, %v1566_v12, %v10777_v48  ;;  %v9594_v4 = vld [vmem:[#allocation2 + $0x90] sm:$0xff]  ;;  %v16249_v30 = vld [vmem:[#allocation30_spill] sm:$0xff] }
 0x262   :  { %8056 = vmatprep.mubr.msk.f32.mxu0 %vm1770_vm10, %v1726_v62  ;;  %v1502_v34 = vsel %vm24_vm0, %v9591_v25, %v16238_v51  ;;  %v1501_v58 = vsel %vm24_vm0, %v9592_v57, %v16239_v41  ;;  %v1632_v60 = vsel %vm1622_vm6, %v1599_v16, %v10909_v11  ;;  %v1631_v48 = vsel %vm1622_vm6, %v1598_v36, %v10911_v32  ;;  %v16242_v11 = vld [vmem:[#allocation99_spill] sm:$0xff]  ;;  %v16243_v32 = vld [vmem:[#allocation100_spill] sm:$0xff]  ;;  %v16255_v54 = vld [vmem:[#allocation138_spill] sm:$0xff] }
 0x263   :  { %8057 = vmatmul.mubr.msk.f32.gmra.mrb[4].mxu0 %vm1770_vm10, %v1727_v33  ;;  %v1535_v47 = vsel %vm1523_vm3, %v1502_v34, %v10521_v1  ;;  %v1534_v29 = vsel %vm1523_vm3, %v1501_v58, %v10523_v37  ;;  %v1665_v52 = vsel %vm1655_vm7, %v1632_v60, %v16240_v10  ;;  %v1664_v61 = vsel %vm1655_vm7, %v1631_v48, %v16241_v24  ;;  %v16251_v33 = vld [vmem:[#allocation60_spill] sm:$0xff]  ;;  %v16257_v15 = vld [vmem:[#allocation102_spill] sm:$0xff]  ;;  %v16258_v12 = vld [vmem:[#allocation161_spill] sm:$0xff] }
 0x264   :  { %v1410_v14 = vpop.permute.xlu1 %1409  ;;  %v1408_v9 = vpop.permute.xlu0 %1407  ;;  %v1568_v26 = vsel %vm1556_vm4, %v1535_v47, %v16242_v11  ;;  %v1567_v43 = vsel %vm1556_vm4, %v1534_v29, %v16243_v32  ;;  %v1698_v1 = vsel %vm1688_vm8, %v1665_v52, %v16244_v45  ;;  %v1697_v37 = vsel %vm1688_vm8, %v1664_v61, %v16245_v40  ;;  %v16260_v16 = vld [vmem:[#allocation13_spill] sm:$0xff]  ;;  %v9596_v58 = vld [vmem:[#allocation2 + $0xa8] sm:$0xff]  ;;  %v16263_v60 = vld [vmem:[#allocation34_spill] sm:$0xff] }
 0x265   :  { %v1729_v23 = vsel %vm1721_vm9, %v1696_v38, %v1410_v14  ;;  %v1728_v0 = vsel %vm1721_vm9, %v1695_v2, %v1408_v9  ;;  %v1601_v28 = vsel %vm1589_vm5, %v1568_v26, %v16246_v20  ;;  %v1600_v55 = vsel %vm1589_vm5, %v1567_v43, %v16247_v7  ;;  %v16259_v38 = vld [vmem:[#allocation162_spill] sm:$0xff]  ;;  %v9595_v34 = vld [vmem:[#allocation2 + $0xb0] sm:$0xff]  ;;  %v16264_v47 = vld [vmem:[#allocation63_spill] sm:$0xff] }
 0x266   :  { %8059 = vmatprep.mubr.msk.f32.mxu0 %vm1770_vm10, %v1728_v0  ;;  %v1504_v8 = vsel %vm24_vm0, %v9593_v42, %v16248_v35  ;;  %v1503_v3 = vsel %vm24_vm0, %v9594_v4, %v16249_v30  ;;  %v1634_v5 = vsel %vm1622_vm6, %v1601_v28, %v16250_v44  ;;  %v1633_v62 = vsel %vm1622_vm6, %v1600_v55, %v16251_v33  ;;  %v16262_v57 = vld [vmem:[#allocation33_spill] sm:$0xff]  ;;  %v16265_v10 = vld [vmem:[#allocation64_spill] sm:$0xff]  ;;  %v16267_v11 = vld [vmem:[#allocation82_spill] sm:$0xff] }
 0x267   :  { %8060 = vmatmul.mubr.msk.f32.gmra.mrb[6].mxu0 %vm1770_vm10, %v1729_v23  ;;  %v1537_v63 = vsel %vm1523_vm3, %v1504_v8, %v16252_v31  ;;  %v1536_v17 = vsel %vm1523_vm3, %v1503_v3, %v16253_v21  ;;  %v1667_v13 = vsel %vm1655_vm7, %v1634_v5, %v16254_v53  ;;  %v1666_v27 = vsel %vm1655_vm7, %v1633_v62, %v16255_v54  ;;  %v16261_v23 = vld [vmem:[#allocation14_spill] sm:$0xff]  ;;  %v16266_v24 = vld [vmem:[#allocation81_spill] sm:$0xff]  ;;  %v16268_v32 = vld [vmem:[#allocation139_spill] sm:$0xff] }
 0x268   :  { %v1414_v59 = vpop.permute.xlu1 %1413  ;;  %v1412_v18 = vpop.permute.xlu0 %1411  ;;  %v1570_v19 = vsel %vm1556_vm4, %v1537_v63, %v16256_v22  ;;  %v1569_v6 = vsel %vm1556_vm4, %v1536_v17, %v16257_v15  ;;  %v1700_v39 = vsel %vm1688_vm8, %v1667_v13, %v16258_v12  ;;  %v1699_v2 = vsel %vm1688_vm8, %v1666_v27, %v16259_v38  ;;  %v16269_v45 = vld [vmem:[#allocation140_spill] sm:$0xff]  ;;  %v16270_v40 = vld [vmem:[#allocation103_spill] sm:$0xff]  ;;  %v16276_v5 = vld [vmem:[#allocation37_spill] sm:$0xff] }
 0x269   :  { %v1731_v50 = vsel %vm1721_vm9, %v1698_v1, %v1414_v59  ;;  %v1730_v56 = vsel %vm1721_vm9, %v1697_v37, %v1412_v18  ;;  %v1603_v36 = vsel %vm1589_vm5, %v1570_v19, %v16260_v16  ;;  %v1602_v0 = vsel %vm1589_vm5, %v1569_v6, %v16261_v23  ;;  %v16271_v59 = vld [vmem:[#allocation104_spill] sm:$0xff]  ;;  %v16272_v20 = vld [vmem:[#allocation163_spill] sm:$0xff]  ;;  %v16277_v31 = vld [vmem:[#allocation38_spill] sm:$0xff] }
 0x26a   :  { %8062 = vmatprep.mubr.msk.f32.mxu0 %vm1770_vm10, %v1730_v56  ;;  %v1506_v41 = vsel %vm24_vm0, %v9595_v34, %v16262_v57  ;;  %v1505_v48 = vsel %vm24_vm0, %v9596_v58, %v16263_v60  ;;  %v1636_v29 = vsel %vm1622_vm6, %v1603_v36, %v16264_v47  ;;  %v1635_v52 = vsel %vm1622_vm6, %v1602_v0, %v16265_v10  ;;  %v16273_v7 = vld [vmem:[#allocation164_spill] sm:$0xff]  ;;  %v16274_v42 = vld [vmem:[#allocation23_spill] sm:$0xff]  ;;  %v16282_v15 = vld [vmem:[#allocation141_spill] sm:$0xff] }
 0x26b   :  { %8063 = vmatmul.mubr.msk.f32.gmra.mrb[8].mxu0 %vm1770_vm10, %v1731_v50  ;;  %v1539_v61 = vsel %vm1523_vm3, %v1506_v41, %v16266_v24  ;;  %v1538_v26 = vsel %vm1523_vm3, %v1505_v48, %v16267_v11  ;;  %v1669_v43 = vsel %vm1655_vm7, %v1636_v29, %v16268_v32  ;;  %v1668_v1 = vsel %vm1655_vm7, %v1635_v52, %v16269_v45  ;;  %v16275_v8 = vld [vmem:[#allocation24_spill] sm:$0xff]  ;;  %v9598_v62 = vld [vmem:[#allocation2 + $0xc0] sm:$0xff]  ;;  %v16283_v12 = vld [vmem:[#allocation142_spill] sm:$0xff] }
 0x26c   :  { %v1418_v14 = vpop.permute.xlu1 %1417  ;;  %v1416_v9 = vpop.permute.xlu0 %1415  ;;  %v1572_v37 = vsel %vm1556_vm4, %v1539_v61, %v16270_v40  ;;  %v1571_v18 = vsel %vm1556_vm4, %v1538_v26, %v16271_v59  ;;  %v1702_v28 = vsel %vm1688_vm8, %v1669_v43, %v16272_v20  ;;  %v1701_v55 = vsel %vm1688_vm8, %v1668_v1, %v16273_v7  ;;  %v9597_v44 = vld [vmem:[#allocation2 + $0xc8] sm:$0xff]  ;;  %v16278_v21 = vld [vmem:[#allocation67_spill] sm:$0xff]  ;;  %v16284_v38 = vld [vmem:[#allocation105_spill] sm:$0xff] }
 0x26d   :  { %v1733_v25 = vsel %vm1721_vm9, %v1700_v39, %v1418_v14  ;;  %v1732_v51 = vsel %vm1721_vm9, %v1699_v2, %v1416_v9  ;;  %v1605_v35 = vsel %vm1589_vm5, %v1572_v37, %v16274_v42  ;;  %v1604_v4 = vsel %vm1589_vm5, %v1571_v18, %v16275_v8  ;;  %v16279_v53 = vld [vmem:[#allocation68_spill] sm:$0xff]  ;;  %v16280_v54 = vld [vmem:[#allocation83_spill] sm:$0xff]  ;;  %v16285_v14 = vld [vmem:[#allocation106_spill] sm:$0xff] }
 0x26e   :  { %8065 = vmatprep.mubr.msk.f32.mxu0 %vm1770_vm10, %v1732_v51  ;;  %v1508_v33 = vsel %vm24_vm0, %v9597_v44, %v16276_v5  ;;  %v1507_v63 = vsel %vm24_vm0, %v9598_v62, %v16277_v31  ;;  %v1638_v17 = vsel %vm1622_vm6, %v1605_v35, %v16278_v21  ;;  %v1637_v13 = vsel %vm1622_vm6, %v1604_v4, %v16279_v53  ;;  %v16281_v22 = vld [vmem:[#allocation84_spill] sm:$0xff]  ;;  %v16286_v16 = vld [vmem:[#allocation165_spill] sm:$0xff]  ;;  %v16287_v23 = vld [vmem:[#allocation166_spill] sm:$0xff] }
 0x26f   :  { %8066 = vmatmul.mubr.msk.f32.gmra.mrb[10].mxu0 %vm1770_vm10, %v1733_v25  ;;  %v1541_v27 = vsel %vm1523_vm3, %v1508_v33, %v16280_v54  ;;  %v1540_v19 = vsel %vm1523_vm3, %v1507_v63, %v16281_v22  ;;  %v1671_v6 = vsel %vm1655_vm7, %v1638_v17, %v16282_v15  ;;  %v1670_v39 = vsel %vm1655_vm7, %v1637_v13, %v16283_v12  ;;  %v16288_v34 = vld [vmem:[#allocation27_spill] sm:$0xff]  ;;  %v16289_v41 = vld [vmem:[#allocation28_spill] sm:$0xff]  ;;  %v16290_v29 = vld [vmem:[#allocation41_spill] sm:$0xff] }
 0x270   :  { %v1422_v50 = vpop.permute.xlu1 %1421  ;;  %v1420_v56 = vpop.permute.xlu0 %1419  ;;  %v1574_v2 = vsel %vm1556_vm4, %v1541_v27, %v16284_v38  ;;  %v1573_v9 = vsel %vm1556_vm4, %v1540_v19, %v16285_v14  ;;  %v1704_v36 = vsel %vm1688_vm8, %v1671_v6, %v16286_v16  ;;  %v1703_v0 = vsel %vm1688_vm8, %v1670_v39, %v16287_v23  ;;  %v9599_v47 = vld [vmem:[#allocation2 + $0xe0] sm:$0xff]  ;;  %v9600_v52 = vld [vmem:[#allocation2 + $0xd8] sm:$0xff]  ;;  %v16293_v32 = vld [vmem:[#allocation72_spill] sm:$0xff] }
 0x271   :  { %v1735_v30 = vsel %vm1721_vm9, %v1702_v28, %v1422_v50  ;;  %v1734_v3 = vsel %vm1721_vm9, %v1701_v55, %v1420_v56  ;;  %v1607_v57 = vsel %vm1589_vm5, %v1574_v2, %v16288_v34  ;;  %v1606_v58 = vsel %vm1589_vm5, %v1573_v9, %v16289_v41  ;;  %v16291_v24 = vld [vmem:[#allocation42_spill] sm:$0xff]  ;;  %v16292_v11 = vld [vmem:[#allocation71_spill] sm:$0xff]  ;;  %v16294_v45 = vld [vmem:[#allocation85_spill] sm:$0xff] }
 0x272   :  { %8068 = vmatprep.mubr.msk.f32.mxu0 %vm1770_vm10, %v1734_v3  ;;  %v1510_v10 = vsel %vm24_vm0, %v9599_v47, %v16290_v29  ;;  %v1509_v61 = vsel %vm24_vm0, %v9600_v52, %v16291_v24  ;;  %v1640_v26 = vsel %vm1622_vm6, %v1607_v57, %v16292_v11  ;;  %v1639_v43 = vsel %vm1622_vm6, %v1606_v58, %v16293_v32  ;;  %v16295_v40 = vld [vmem:[#allocation86_spill] sm:$0xff]  ;;  %v16296_v59 = vld [vmem:[#allocation143_spill] sm:$0xff]  ;;  %v16297_v20 = vld [vmem:[#allocation144_spill] sm:$0xff] }
 0x273   :  { %8069 = vmatmul.mubr.msk.f32.gmra.mrb[12].mxu0 %vm1770_vm10, %v1735_v30  ;;  %v1543_v1 = vsel %vm1523_vm3, %v1510_v10, %v16294_v45  ;;  %v1542_v37 = vsel %vm1523_vm3, %v1509_v61, %v16295_v40  ;;  %v1673_v18 = vsel %vm1655_vm7, %v1640_v26, %v16296_v59  ;;  %v1672_v28 = vsel %vm1655_vm7, %v1639_v43, %v16297_v20  ;;  %v16298_v7 = vld [vmem:[#allocation107_spill] sm:$0xff]  ;;  %v16299_v50 = vld [vmem:[#allocation108_spill] sm:$0xff]  ;;  %v9601_v21 = vld [vmem:[#allocation2 + $0xf8] sm:$0xff] }
 0x274   :  { %v1426_v25 = vpop.permute.xlu1 %1425  ;;  %v1424_v51 = vpop.permute.xlu0 %1423  ;;  %v1576_v55 = vsel %vm1556_vm4, %v1543_v1, %v16298_v7  ;;  %v1575_v56 = vsel %vm1556_vm4, %v1542_v37, %v16299_v50  ;;  %v16300_v42 = vld [vmem:[#allocation167_spill] sm:$0xff]  ;;  %v16301_v8 = vld [vmem:[#allocation168_spill] sm:$0xff]  ;;  %v16304_v17 = vld [vmem:[#allocation45_spill] sm:$0xff] }
 0x275   :  { %v1737_v60 = vsel %vm1721_vm9, %v1704_v36, %v1426_v25  ;;  %v1736_v48 = vsel %vm1721_vm9, %v1703_v0, %v1424_v51  ;;  %v1706_v35 = vsel %vm1688_vm8, %v1673_v18, %v16300_v42  ;;  %v1705_v4 = vsel %vm1688_vm8, %v1672_v28, %v16301_v8  ;;  %v16302_v44 = vld [vmem:[#allocation31_spill] sm:$0xff]  ;;  %v16303_v33 = vld [vmem:[#allocation32_spill] sm:$0xff]  ;;  %v9602_v13 = vld [vmem:[#allocation2 + $0xf0] sm:$0xff] }
 0x276   :  { %8071 = vmatprep.mubr.msk.f32.mxu0 %vm1770_vm10, %v1736_v48  ;;  %v1609_v5 = vsel %vm1589_vm5, %v1576_v55, %v16302_v44  ;;  %v1608_v62 = vsel %vm1589_vm5, %v1575_v56, %v16303_v33  ;;  %v1512_v53 = vsel %vm24_vm0, %v9601_v21, %v16304_v17  ;;  %v16305_v54 = vld [vmem:[#allocation46_spill] sm:$0xff]  ;;  %v16306_v22 = vld [vmem:[#allocation121_spill] sm:$0xff]  ;;  %v16308_v12 = vld [vmem:[#allocation87_spill] sm:$0xff] }
 0x277   :  { %8072 = vmatmul.mubr.msk.f32.gmra.mrb[14].mxu0 %vm1770_vm10, %v1737_v60  ;;  %v1511_v27 = vsel %vm24_vm0, %v9602_v13, %v16305_v54  ;;  %v1642_v19 = vsel %vm1622_vm6, %v1609_v5, %v16306_v22  ;;  %v16307_v15 = vld [vmem:[#allocation122_spill] sm:$0xff]  ;;  %v1545_v39 = vsel %vm1523_vm3, %v1512_v53, %v16308_v12  ;;  %v16309_v38 = vld [vmem:[#allocation88_spill] sm:$0xff]  ;;  %v16310_v14 = vld [vmem:[#allocation145_spill] sm:$0xff] }
 0x278   :  { %v1430_v30 = vpop.permute.xlu1 %1429  ;;  %v1428_v3 = vpop.permute.xlu0 %1427  ;;  %v1641_v6 = vsel %vm1622_vm6, %v1608_v62, %v16307_v15  ;;  %v1544_v2 = vsel %vm1523_vm3, %v1511_v27, %v16309_v38  ;;  %v1675_v9 = vsel %vm1655_vm7, %v1642_v19, %v16310_v14  ;;  %v16311_v16 = vld [vmem:[#allocation146_spill] sm:$0xff]  ;;  %v16312_v23 = vld [vmem:[#allocation109_spill] sm:$0xff]  ;;  %v16316_v47 = vld [vmem:[#allocation35_spill] sm:$0xff] }
 0x279   :  { %v1739_v31 = vsel %vm1721_vm9, %v1706_v35, %v1430_v30  ;;  %v1738_v63 = vsel %vm1721_vm9, %v1705_v4, %v1428_v3  ;;  %v1674_v36 = vsel %vm1655_vm7, %v1641_v6, %v16311_v16  ;;  %v1578_v0 = vsel %vm1556_vm4, %v1545_v39, %v16312_v23  ;;  %v16313_v25 = vld [vmem:[#allocation110_spill] sm:$0xff]  ;;  %v16314_v34 = vld [vmem:[#allocation169_spill] sm:$0xff]  ;;  %v16317_v10 = vld [vmem:[#allocation36_spill] sm:$0xff] }
 0x27a   :  { %8074 = vmatprep.mubr.msk.f32.mxu0 %vm1770_vm10, %v1738_v63  ;;  %v1577_v51 = vsel %vm1556_vm4, %v1544_v2, %v16313_v25  ;;  %v1708_v57 = vsel %vm1688_vm8, %v1675_v9, %v16314_v34  ;;  %v16315_v41 = vld [vmem:[#allocation170_spill] sm:$0xff]  ;;  %v1611_v29 = vsel %vm1589_vm5, %v1578_v0, %v16316_v47  ;;  %v9603_v11 = vld [vmem:[#allocation2 + $0x110] sm:$0xff]  ;;  %v9604_v43 = vld [vmem:[#allocation2 + $0x108] sm:$0xff] }
 0x27b   :  { %8075 = vmatmul.mubr.msk.f32.gmra.mrb[16].mxu0 %vm1770_vm10, %v1739_v31  ;;  %v1707_v58 = vsel %vm1688_vm8, %v1674_v36, %v16315_v41  ;;  %v1610_v52 = vsel %vm1589_vm5, %v1577_v51, %v16317_v10  ;;  %v16318_v26 = vld [vmem:[#allocation49_spill] sm:$0xff]  ;;  %v16319_v45 = vld [vmem:[#allocation50_spill] sm:$0xff]  ;;  %v16320_v40 = vld [vmem:[#allocation123_spill] sm:$0xff] }
 0x27c   :  { %v1434_v60 = vpop.permute.xlu1 %1433  ;;  %v1432_v48 = vpop.permute.xlu0 %1431  ;;  %v1514_v32 = vsel %vm24_vm0, %v9603_v11, %v16318_v26  ;;  %v1513_v1 = vsel %vm24_vm0, %v9604_v43, %v16319_v45  ;;  %v1644_v37 = vsel %vm1622_vm6, %v1611_v29, %v16320_v40  ;;  %v16321_v59 = vld [vmem:[#allocation124_spill] sm:$0xff]  ;;  %v16322_v20 = vld [vmem:[#allocation89_spill] sm:$0xff]  ;;  %v16323_v7 = vld [vmem:[#allocation90_spill] sm:$0xff] }
 0x27d   :  { %v1741_v24 = vsel %vm1721_vm9, %v1708_v57, %v1434_v60  ;;  %v1740_v61 = vsel %vm1721_vm9, %v1707_v58, %v1432_v48  ;;  %v1643_v18 = vsel %vm1622_vm6, %v1610_v52, %v16321_v59  ;;  %v1547_v28 = vsel %vm1523_vm3, %v1514_v32, %v16322_v20  ;;  %v16324_v50 = vld [vmem:[#allocation147_spill] sm:$0xff]  ;;  %v16325_v42 = vld [vmem:[#allocation148_spill] sm:$0xff]  ;;  %v16332_v19 = vld [vmem:[#allocation53_spill] sm:$0xff] }
 0x27e   :  { %8077 = vmatprep.mubr.msk.f32.mxu0 %vm1770_vm10, %v1740_v61  ;;  %v1546_v55 = vsel %vm1523_vm3, %v1513_v1, %v16323_v7  ;;  %v1677_v56 = vsel %vm1655_vm7, %v1644_v37, %v16324_v50  ;;  %v1676_v35 = vsel %vm1655_vm7, %v1643_v18, %v16325_v42  ;;  %v16326_v8 = vld [vmem:[#allocation111_spill] sm:$0xff]  ;;  %v16327_v30 = vld [vmem:[#allocation112_spill] sm:$0xff]  ;;  %v16333_v12 = vld [vmem:[#allocation54_spill] sm:$0xff] }
 0x27f   :  { %8078 = vmatmul.mubr.msk.f32.gmra.mrb[18].mxu0 %vm1770_vm10, %v1741_v24  ;;  %v1580_v4 = vsel %vm1556_vm4, %v1547_v28, %v16326_v8  ;;  %v1579_v3 = vsel %vm1556_vm4, %v1546_v55, %v16327_v30  ;;  %v16328_v44 = vld [vmem:[#allocation171_spill] sm:$0xff]  ;;  %v16329_v33 = vld [vmem:[#allocation172_spill] sm:$0xff]  ;;  %v16334_v38 = vld [vmem:[#allocation125_spill] sm:$0xff] }
 0x280   :  { %v1710_v5 = vsel %vm1688_vm8, %v1677_v56, %v16328_v44  ;;  %v1709_v62 = vsel %vm1688_vm8, %v1676_v35, %v16329_v33  ;;  %v1438_v31 = vpop.permute.xlu1 %1437  ;;  %v1436_v63 = vpop.permute.xlu0 %1435  ;;  %v16330_v21 = vld [vmem:[#allocation39_spill] sm:$0xff]  ;;  %v16331_v53 = vld [vmem:[#allocation40_spill] sm:$0xff]  ;;  %v16335_v14 = vld [vmem:[#allocation126_spill] sm:$0xff] }
 0x281   :  { %v1613_v17 = vsel %vm1589_vm5, %v1580_v4, %v16330_v21  ;;  %v1612_v13 = vsel %vm1589_vm5, %v1579_v3, %v16331_v53  ;;  %v1743_v54 = vsel %vm1721_vm9, %v1710_v5, %v1438_v31  ;;  %v1742_v27 = vsel %vm1721_vm9, %v1709_v62, %v1436_v63  ;;  %v9605_v22 = vld [vmem:[#allocation2 + $0x128] sm:$0xff]  ;;  %v9606_v6 = vld [vmem:[#allocation2 + $0x120] sm:$0xff]  ;;  %v16338_v25 = vld [vmem:[#allocation149_spill] sm:$0xff] }
 0x282   :  { %v1516_v15 = vsel %vm24_vm0, %v9605_v22, %v16332_v19  ;;  %v1515_v39 = vsel %vm24_vm0, %v9606_v6, %v16333_v12  ;;  %v1646_v2 = vsel %vm1622_vm6, %v1613_v17, %v16334_v38  ;;  %v1645_v9 = vsel %vm1622_vm6, %v1612_v13, %v16335_v14  ;;  %8080 = vmatprep.mubr.msk.f32.mxu0 %vm1770_vm10, %v1742_v27  ;;  %v16336_v16 = vld [vmem:[#allocation91_spill] sm:$0xff]  ;;  %v16337_v23 = vld [vmem:[#allocation92_spill] sm:$0xff]  ;;  %v16339_v34 = vld [vmem:[#allocation150_spill] sm:$0xff] }
 0x283   :  { %v1549_v36 = vsel %vm1523_vm3, %v1516_v15, %v16336_v16  ;;  %v1548_v0 = vsel %vm1523_vm3, %v1515_v39, %v16337_v23  ;;  %v1679_v51 = vsel %vm1655_vm7, %v1646_v2, %v16338_v25  ;;  %v1678_v57 = vsel %vm1655_vm7, %v1645_v9, %v16339_v34  ;;  %8081 = vmatmul.mubr.msk.f32.gmra.mrb[20].mxu0 %vm1770_vm10, %v1743_v54  ;;  %v16340_v41 = vld [vmem:[#allocation113_spill] sm:$0xff]  ;;  %v16341_v60 = vld [vmem:[#allocation114_spill] sm:$0xff]  ;;  %v16344_v11 = vld [vmem:[#allocation43_spill] sm:$0xff] }
 0x284   :  { %v1582_v58 = vsel %vm1556_vm4, %v1549_v36, %v16340_v41  ;;  %v1581_v48 = vsel %vm1556_vm4, %v1548_v0, %v16341_v60  ;;  %v16342_v47 = vld [vmem:[#allocation173_spill] sm:$0xff]  ;;  %v16343_v10 = vld [vmem:[#allocation174_spill] sm:$0xff]  ;;  %v1442_v24 = vpop.permute.xlu1 %1441  ;;  %v1440_v61 = vpop.permute.xlu0 %1439  ;;  %v16345_v32 = vld [vmem:[#allocation44_spill] sm:$0xff] }
 0x285   :  { %v1712_v29 = vsel %vm1688_vm8, %v1679_v51, %v16342_v47  ;;  %v1711_v52 = vsel %vm1688_vm8, %v1678_v57, %v16343_v10  ;;  %v1615_v26 = vsel %vm1589_vm5, %v1582_v58, %v16344_v11  ;;  %v1614_v43 = vsel %vm1589_vm5, %v1581_v48, %v16345_v32  ;;  %v9607_v40 = vld [vmem:[#allocation2 + $0x140] sm:$0xff]  ;;  %v16346_v37 = vld [vmem:[#allocation57_spill] sm:$0xff]  ;;  %v9608_v18 = vld [vmem:[#allocation2 + $0x138] sm:$0xff] }
 0x286   :  { %v1745_v45 = vsel %vm1721_vm9, %v1712_v29, %v1442_v24  ;;  %v1744_v1 = vsel %vm1721_vm9, %v1711_v52, %v1440_v61  ;;  %v1518_v59 = vsel %vm24_vm0, %v9607_v40, %v16346_v37  ;;  %v16347_v20 = vld [vmem:[#allocation58_spill] sm:$0xff]  ;;  %v16348_v7 = vld [vmem:[#allocation127_spill] sm:$0xff]  ;;  %v16349_v50 = vld [vmem:[#allocation128_spill] sm:$0xff] }
 0x287   :  { %v1517_v28 = vsel %vm24_vm0, %v9608_v18, %v16347_v20  ;;  %v1648_v55 = vsel %vm1622_vm6, %v1615_v26, %v16348_v7  ;;  %v1647_v56 = vsel %vm1622_vm6, %v1614_v43, %v16349_v50  ;;  %8083 = vmatprep.mubr.msk.f32.mxu0 %vm1770_vm10, %v1744_v1  ;;  %v16350_v42 = vld [vmem:[#allocation93_spill] sm:$0xff]  ;;  %v16351_v8 = vld [vmem:[#allocation94_spill] sm:$0xff]  ;;  %v16352_v30 = vld [vmem:[#allocation151_spill] sm:$0xff] }
 0x288   :  { %v1551_v35 = vsel %vm1523_vm3, %v1518_v59, %v16350_v42  ;;  %v1550_v4 = vsel %vm1523_vm3, %v1517_v28, %v16351_v8  ;;  %v1681_v3 = vsel %vm1655_vm7, %v1648_v55, %v16352_v30  ;;  %v16353_v44 = vld [vmem:[#allocation152_spill] sm:$0xff]  ;;  %8084 = vmatmul.mubr.msk.f32.gmra.mrb[22].mxu0 %vm1770_vm10, %v1745_v45  ;;  %v16354_v33 = vld [vmem:[#allocation115_spill] sm:$0xff]  ;;  %v1446_v54 = vpop.permute.xlu1 %1445  ;;  %v1444_v27 = vpop.permute.xlu0 %1443  ;;  %v9609_v38 = vld [vmem:[#allocation2 + $0x158] sm:$0xff] }
 0x289   :  { %v1680_v5 = vsel %vm1655_vm7, %v1647_v56, %v16353_v44  ;;  %v1584_v62 = vsel %vm1556_vm4, %v1551_v35, %v16354_v33  ;;  %v16355_v31 = vld [vmem:[#allocation116_spill] sm:$0xff]  ;;  %v16356_v21 = vld [vmem:[#allocation175_spill] sm:$0xff]  ;;  %v16360_v2 = vld [vmem:[#allocation61_spill] sm:$0xff] }
 0x28a   :  { %v1583_v63 = vsel %vm1556_vm4, %v1550_v4, %v16355_v31  ;;  %v1714_v17 = vsel %vm1688_vm8, %v1681_v3, %v16356_v21  ;;  %v16357_v53 = vld [vmem:[#allocation176_spill] sm:$0xff]  ;;  %v16358_v22 = vld [vmem:[#allocation47_spill] sm:$0xff]  ;;  %v1520_v14 = vsel %vm24_vm0, %v9609_v38, %v16360_v2  ;;  %v9610_v9 = vld [vmem:[#allocation2 + $0x150] sm:$0xff] }
 0x28b   :  { %v1713_v13 = vsel %vm1688_vm8, %v1680_v5, %v16357_v53  ;;  %v1617_v19 = vsel %vm1589_vm5, %v1584_v62, %v16358_v22  ;;  %v16359_v15 = vld [vmem:[#allocation48_spill] sm:$0xff]  ;;  %v1747_v12 = vsel %vm1721_vm9, %v1714_v17, %v1446_v54  ;;  %v16361_v16 = vld [vmem:[#allocation62_spill] sm:$0xff]  ;;  %v16362_v23 = vld [vmem:[#allocation129_spill] sm:$0xff] }
 0x28c   :  { %v1616_v6 = vsel %vm1589_vm5, %v1583_v63, %v16359_v15  ;;  %v1746_v39 = vsel %vm1721_vm9, %v1713_v13, %v1444_v27  ;;  %v1519_v36 = vsel %vm24_vm0, %v9610_v9, %v16361_v16  ;;  %v1650_v0 = vsel %vm1622_vm6, %v1617_v19, %v16362_v23  ;;  %v16363_v25 = vld [vmem:[#allocation130_spill] sm:$0xff]  ;;  %v16364_v34 = vld [vmem:[#allocation95_spill] sm:$0xff]  ;;  %v16365_v41 = vld [vmem:[#allocation96_spill] sm:$0xff]  ;;  %v1450_v45 = vpop.permute.xlu1 %1449  ;;  %v1448_v1 = vpop.permute.xlu0 %1447 }
 0x28d   :  { %v1649_v51 = vsel %vm1622_vm6, %v1616_v6, %v16363_v25  ;;  %8086 = vmatprep.mubr.msk.f32.mxu0 %vm1770_vm10, %v1746_v39  ;;  %v1553_v57 = vsel %vm1523_vm3, %v1520_v14, %v16364_v34  ;;  %v1552_v58 = vsel %vm1523_vm3, %v1519_v36, %v16365_v41  ;;  %v16366_v60 = vld [vmem:[#allocation153_spill] sm:$0xff]  ;;  %v16367_v47 = vld [vmem:[#allocation154_spill] sm:$0xff]  ;;  %v16372_v40 = vld [vmem:[#allocation51_spill] sm:$0xff] }
 0x28e   :  { %v1683_v48 = vsel %vm1655_vm7, %v1650_v0, %v16366_v60  ;;  %v1682_v29 = vsel %vm1655_vm7, %v1649_v51, %v16367_v47  ;;  %8087 = vmatmul.mubr.msk.f32.gmra.mrb[24].mxu0 %vm1770_vm10, %v1747_v12  ;;  %v16368_v10 = vld [vmem:[#allocation117_spill] sm:$0xff]  ;;  %v16369_v24 = vld [vmem:[#allocation118_spill] sm:$0xff]  ;;  %v16373_v59 = vld [vmem:[#allocation52_spill] sm:$0xff] }
 0x28f   :  { %v1586_v52 = vsel %vm1556_vm4, %v1553_v57, %v16368_v10  ;;  %v1585_v61 = vsel %vm1556_vm4, %v1552_v58, %v16369_v24  ;;  %v16370_v11 = vld [vmem:[#allocation177_spill] sm:$0xff]  ;;  %v16371_v32 = vld [vmem:[#allocation178_spill] sm:$0xff]  ;;  %v9612_v56 = vld [vmem:[#allocation2 + $0x168] sm:$0xff] }
 0x290   :  { %v1716_v26 = vsel %vm1688_vm8, %v1683_v48, %v16370_v11  ;;  %v1715_v43 = vsel %vm1688_vm8, %v1682_v29, %v16371_v32  ;;  %v1619_v37 = vsel %vm1589_vm5, %v1586_v52, %v16372_v40  ;;  %v1618_v18 = vsel %vm1589_vm5, %v1585_v61, %v16373_v59  ;;  %v9611_v7 = vld [vmem:[#allocation2 + $0x170] sm:$0xff]  ;;  %v16375_v42 = vld [vmem:[#allocation66_spill] sm:$0xff]  ;;  %v16376_v8 = vld [vmem:[#allocation131_spill] sm:$0xff]  ;;  %v1454_v12 = vpop.permute.xlu1 %1453  ;;  %v1452_v39 = vpop.permute.xlu0 %1451 }
 0x291   :  { %v1749_v20 = vsel %vm1721_vm9, %v1716_v26, %v1450_v45  ;;  %v1748_v28 = vsel %vm1721_vm9, %v1715_v43, %v1448_v1  ;;  %v16374_v55 = vld [vmem:[#allocation65_spill] sm:$0xff]  ;;  %v1521_v35 = vsel %vm24_vm0, %v9612_v56, %v16375_v42  ;;  %v1652_v4 = vsel %vm1622_vm6, %v1619_v37, %v16376_v8  ;;  %v16377_v30 = vld [vmem:[#allocation132_spill] sm:$0xff]  ;;  %v16379_v33 = vld [vmem:[#allocation98_spill] sm:$0xff] }
 0x292   :  { %v1522_v50 = vsel %vm24_vm0, %v9611_v7, %v16374_v55  ;;  %v1651_v3 = vsel %vm1622_vm6, %v1618_v18, %v16377_v30  ;;  %8089 = vmatprep.mubr.msk.f32.mxu0 %vm1770_vm10, %v1748_v28  ;;  %v16378_v44 = vld [vmem:[#allocation97_spill] sm:$0xff]  ;;  %v1554_v62 = vsel %vm1523_vm3, %v1521_v35, %v16379_v33  ;;  %v16380_v31 = vld [vmem:[#allocation155_spill] sm:$0xff]  ;;  %v16381_v21 = vld [vmem:[#allocation156_spill] sm:$0xff] }
 0x293   :  { %v1555_v5 = vsel %vm1523_vm3, %v1522_v50, %v16378_v44  ;;  %v1685_v63 = vsel %vm1655_vm7, %v1652_v4, %v16380_v31  ;;  %v1684_v17 = vsel %vm1655_vm7, %v1651_v3, %v16381_v21  ;;  %8090 = vmatmul.mubr.msk.f32.gmra.mrb[26].mxu0 %vm1770_vm10, %v1749_v20  ;;  %v16382_v53 = vld [vmem:[#allocation119_spill] sm:$0xff]  ;;  %v16383_v54 = vld [vmem:[#allocation120_spill] sm:$0xff]  ;;  %v16388_v23 = vld [vmem:[#allocation133_spill] sm:$0xff] }
 0x294   :  { %v1588_v13 = vsel %vm1556_vm4, %v1555_v5, %v16382_v53  ;;  %v1587_v27 = vsel %vm1556_vm4, %v1554_v62, %v16383_v54  ;;  %v16384_v22 = vld [vmem:[#allocation179_spill] sm:$0xff]  ;;  %v16385_v15 = vld [vmem:[#allocation180_spill] sm:$0xff]  ;;  %v16389_v25 = vld [vmem:[#allocation134_spill] sm:$0xff]  ;;  %v1458_v47 = vpop.permute.xlu1 %1457  ;;  %v1456_v29 = vpop.permute.xlu0 %1455 }
 0x295   :  { %v1718_v19 = vsel %vm1688_vm8, %v1685_v63, %v16384_v22  ;;  %v1717_v6 = vsel %vm1688_vm8, %v1684_v17, %v16385_v15  ;;  %v16386_v38 = vld [vmem:[#allocation55_spill] sm:$0xff]  ;;  %v16387_v14 = vld [vmem:[#allocation56_spill] sm:$0xff]  ;;  %v16390_v34 = vld [vmem:[#allocation157_spill] sm:$0xff] }
 0x296   :  { %v1621_v2 = vsel %vm1589_vm5, %v1588_v13, %v16386_v38  ;;  %v1620_v9 = vsel %vm1589_vm5, %v1587_v27, %v16387_v14  ;;  %v1751_v16 = vsel %vm1721_vm9, %v1718_v19, %v1454_v12  ;;  %v1750_v36 = vsel %vm1721_vm9, %v1717_v6, %v1452_v39  ;;  %v16391_v41 = vld [vmem:[#allocation158_spill] sm:$0xff] }
 0x297   :  { %v1654_v0 = vsel %vm1622_vm6, %v1621_v2, %v16388_v23  ;;  %v1653_v51 = vsel %vm1622_vm6, %v1620_v9, %v16389_v25  ;;  %8092 = vmatprep.mubr.msk.f32.mxu0 %vm1770_vm10, %v1750_v36  ;;  %v2189_v24 = vld [vmem:[#allocation3 + $0x1] sm:$0xff]  ;;  %v2190_v61 = vld [vmem:[#allocation3 + $0x9] sm:$0xff] }
 0x298   :  { %v1687_v57 = vsel %vm1655_vm7, %v1654_v0, %v16390_v34  ;;  %v1686_v58 = vsel %vm1655_vm7, %v1653_v51, %v16391_v41  ;;  %8093 = vmatmul.mubr.msk.f32.gmra.mrb[28].mxu0 %vm1770_vm10, %v1751_v16  ;;  %v8304_v11 = vpack.i.bf16 %v2190_v61, %v2189_v24 }
 0x299   :  { %v1720_v60 = vsel %vm1688_vm8, %v1687_v57, %v11189_v46  ;;  %v1719_v48 = vsel %vm1688_vm8, %v1686_v58, %v11191_v49  ;;  %v11696_v46 = vld [vmem:[%s15837_s3] ss:$0 sm:$0xff] }
 0x29a   :  { %v1753_v10 = vsel %vm1721_vm9, %v1720_v60, %v1458_v47  ;;  %v1752_v52 = vsel %vm1721_vm9, %v1719_v48, %v1456_v29  ;;  %8305 = vrot.lane.b32.xlu0 %v8304_v11, %s9702_s19 }
 0x29b   :  { %8095 = vmatprep.mubr.msk.f32.mxu0 %vm1770_vm10, %v1752_v52 }
 0x29c   :  { %8096 = vmatmul.mubr.msk.f32.gmra.mrb[30].mxu0 %vm1770_vm10, %v1753_v10 }
 0x32e   :  { %v8052_v49 = vpop.f32.mrb[0].mxu0 }
 0x32f   :  { %v1939_v26 = vadd.f32 %v8052_v49, %v11696_v46  ;;  %v1933_v32 = vpop.f32.mrb[1].mxu0 }
 0x330   :  { %v1934_v43 = vadd.f32 %v11696_v46, %v1933_v32 }
 0x331   :  { %v2093_v45 = vmax.f32 %v1939_v26, 0.0 }
 0x332   :  { %v2092_v1 = vmax.f32 %v1934_v43, 0.0  ;;  %v8055_v40 = vpop.f32.mrb[2].mxu0 }
 0x333   :  { %2126 = vst.msk [vmem:[#allocation3 + $0x21] sm:$0xff] %vm24_vm0, %v2093_v45  ;;  %v1949_v37 = vadd.f32 %v8055_v40, %v11696_v46  ;;  %v1943_v59 = vpop.f32.mrb[3].mxu0 }
 0x334   :  { %2125 = vst.msk [vmem:[#allocation3 + $0x19] sm:$0xff] %vm24_vm0, %v2092_v1  ;;  %v1944_v18 = vadd.f32 %v11696_v46, %v1943_v59 }
 0x335   :  { %v2095_v20 = vmax.f32 %v1949_v37, 0.0 }
 0x336   :  { %v2094_v28 = vmax.f32 %v1944_v18, 0.0  ;;  %v8058_v7 = vpop.f32.mrb[4].mxu0 }
 0x337   :  { %2128 = vst.msk [vmem:[#allocation3 + $0x39] sm:$0xff] %vm24_vm0, %v2095_v20  ;;  %v1959_v55 = vadd.f32 %v8058_v7, %v11696_v46  ;;  %v1953_v50 = vpop.f32.mrb[5].mxu0 }
 0x338   :  { %2127 = vst.msk [vmem:[#allocation3 + $0x31] sm:$0xff] %vm24_vm0, %v2094_v28  ;;  %v1954_v56 = vadd.f32 %v11696_v46, %v1953_v50 }
 0x339   :  { %v2097_v42 = vmax.f32 %v1959_v55, 0.0 }
 0x33a   :  { %v2096_v35 = vmax.f32 %v1954_v56, 0.0  ;;  %v8061_v8 = vpop.f32.mrb[6].mxu0  ;;  %v2192_v4 = vld [vmem:[#allocation3 + $0x21] sm:$0xff] }
 0x33b   :  { %2130 = vst.msk [vmem:[#allocation3 + $0x51] sm:$0xff] %vm24_vm0, %v2097_v42  ;;  %v1969_v30 = vadd.f32 %v8061_v8, %v11696_v46  ;;  %v1963_v3 = vpop.f32.mrb[7].mxu0  ;;  %v2191_v44 = vld [vmem:[#allocation3 + $0x19] sm:$0xff] }
 0x33c   :  { %2129 = vst.msk [vmem:[#allocation3 + $0x49] sm:$0xff] %vm24_vm0, %v2096_v35  ;;  %v1964_v5 = vadd.f32 %v11696_v46, %v1963_v3  ;;  %v11712_v33 = vpack.i.bf16 %v2192_v4, %v2191_v44 }
 0x33d   :  { %v2099_v62 = vmax.f32 %v1969_v30, 0.0 }
 0x33e   :  { %v2098_v31 = vmax.f32 %v1964_v5, 0.0  ;;  %v8064_v63 = vpop.f32.mrb[8].mxu0  ;;  %8310 = vrot.lane.b32.xlu1 %v11712_v33, %s9702_s19  ;;  %v2194_v21 = vld [vmem:[#allocation3 + $0x39] sm:$0xff] }
 0x33f   :  { %2132 = vst.msk [vmem:[#allocation3 + $0x69] sm:$0xff] %vm24_vm0, %v2099_v62  ;;  %v1979_v17 = vadd.f32 %v8064_v63, %v11696_v46  ;;  %v1973_v53 = vpop.f32.mrb[9].mxu0  ;;  %v2193_v13 = vld [vmem:[#allocation3 + $0x31] sm:$0xff] }
 0x340   :  { %2131 = vst.msk [vmem:[#allocation3 + $0x61] sm:$0xff] %vm24_vm0, %v2098_v31  ;;  %v1974_v54 = vadd.f32 %v11696_v46, %v1973_v53  ;;  %v11720_v27 = vpack.i.bf16 %v2194_v21, %v2193_v13 }
 0x341   :  { %v2101_v22 = vmax.f32 %v1979_v17, 0.0 }
 0x342   :  { %v2100_v19 = vmax.f32 %v1974_v54, 0.0  ;;  %v8067_v15 = vpop.f32.mrb[10].mxu0  ;;  %8315 = vrot.lane.b32.xlu0 %v11720_v27, %s9702_s19  ;;  %v2196_v6 = vld [vmem:[#allocation3 + $0x51] sm:$0xff] }
 0x343   :  { %2134 = vst.msk [vmem:[#allocation3 + $0x81] sm:$0xff] %vm24_vm0, %v2101_v22  ;;  %v1989_v12 = vadd.f32 %v8067_v15, %v11696_v46  ;;  %v1983_v39 = vpop.f32.mrb[11].mxu0  ;;  %v2195_v38 = vld [vmem:[#allocation3 + $0x49] sm:$0xff] }
 0x344   :  { %2133 = vst.msk [vmem:[#allocation3 + $0x79] sm:$0xff] %vm24_vm0, %v2100_v19  ;;  %v1984_v2 = vadd.f32 %v11696_v46, %v1983_v39  ;;  %v11728_v14 = vpack.i.bf16 %v2196_v6, %v2195_v38 }
 0x345   :  { %v2103_v9 = vmax.f32 %v1989_v12, 0.0 }
 0x346   :  { %v2102_v16 = vmax.f32 %v1984_v2, 0.0  ;;  %v8070_v36 = vpop.f32.mrb[12].mxu0  ;;  %8320 = vrot.lane.b32.xlu1 %v11728_v14, %s9702_s19  ;;  %v2198_v23 = vld [vmem:[#allocation3 + $0x69] sm:$0xff] }
 0x347   :  { %2136 = vst.msk [vmem:[#allocation3 + $0x99] sm:$0xff] %vm24_vm0, %v2103_v9  ;;  %v1999_v0 = vadd.f32 %v8070_v36, %v11696_v46  ;;  %v1993_v25 = vpop.f32.mrb[13].mxu0  ;;  %v2197_v51 = vld [vmem:[#allocation3 + $0x61] sm:$0xff] }
 0x348   :  { %2135 = vst.msk [vmem:[#allocation3 + $0x91] sm:$0xff] %vm24_vm0, %v2102_v16  ;;  %v1994_v34 = vadd.f32 %v11696_v46, %v1993_v25  ;;  %v11736_v57 = vpack.i.bf16 %v2198_v23, %v2197_v51 }
 0x349   :  { %v2105_v41 = vmax.f32 %v1999_v0, 0.0 }
 0x34a   :  { %v2104_v58 = vmax.f32 %v1994_v34, 0.0  ;;  %v8073_v60 = vpop.f32.mrb[14].mxu0  ;;  %8325 = vrot.lane.b32.xlu0 %v11736_v57, %s9702_s19  ;;  %v2200_v48 = vld [vmem:[#allocation3 + $0x81] sm:$0xff] }
 0x34b   :  { %2138 = vst.msk [vmem:[#allocation3 + $0xb1] sm:$0xff] %vm24_vm0, %v2105_v41  ;;  %v2009_v47 = vadd.f32 %v8073_v60, %v11696_v46  ;;  %v2003_v29 = vpop.f32.mrb[15].mxu0  ;;  %v2199_v10 = vld [vmem:[#allocation3 + $0x79] sm:$0xff] }
 0x34c   :  { %2137 = vst.msk [vmem:[#allocation3 + $0xa9] sm:$0xff] %vm24_vm0, %v2104_v58  ;;  %v2004_v52 = vadd.f32 %v11696_v46, %v2003_v29  ;;  %v11744_v24 = vpack.i.bf16 %v2200_v48, %v2199_v10 }
 0x34d   :  { %v2107_v61 = vmax.f32 %v2009_v47, 0.0 }
 0x34e   :  { %v2106_v11 = vmax.f32 %v2004_v52, 0.0  ;;  %v8076_v49 = vpop.f32.mrb[16].mxu0  ;;  %8330 = vrot.lane.b32.xlu1 %v11744_v24, %s9702_s19  ;;  %v2202_v26 = vld [vmem:[#allocation3 + $0x99] sm:$0xff] }
 0x34f   :  { %2140 = vst.msk [vmem:[#allocation3 + $0xc9] sm:$0xff] %vm24_vm0, %v2107_v61  ;;  %v2019_v32 = vadd.f32 %v8076_v49, %v11696_v46  ;;  %v2013_v43 = vpop.f32.mrb[17].mxu0  ;;  %v2201_v45 = vld [vmem:[#allocation3 + $0x91] sm:$0xff] }
 0x350   :  { %2139 = vst.msk [vmem:[#allocation3 + $0xc1] sm:$0xff] %vm24_vm0, %v2106_v11  ;;  %v2014_v1 = vadd.f32 %v11696_v46, %v2013_v43  ;;  %v11752_v40 = vpack.i.bf16 %v2202_v26, %v2201_v45 }
 0x351   :  { %v2109_v37 = vmax.f32 %v2019_v32, 0.0 }
 0x352   :  { %v2108_v59 = vmax.f32 %v2014_v1, 0.0  ;;  %v8079_v18 = vpop.f32.mrb[18].mxu0  ;;  %8335 = vrot.lane.b32.xlu0 %v11752_v40, %s9702_s19  ;;  %v2204_v20 = vld [vmem:[#allocation3 + $0xb1] sm:$0xff] }
 0x353   :  { %2142 = vst.msk [vmem:[#allocation3 + $0xe1] sm:$0xff] %vm24_vm0, %v2109_v37  ;;  %v2029_v28 = vadd.f32 %v8079_v18, %v11696_v46  ;;  %v2023_v7 = vpop.f32.mrb[19].mxu0  ;;  %v2203_v55 = vld [vmem:[#allocation3 + $0xa9] sm:$0xff] }
 0x354   :  { %2141 = vst.msk [vmem:[#allocation3 + $0xd9] sm:$0xff] %vm24_vm0, %v2108_v59  ;;  %v2024_v50 = vadd.f32 %v11696_v46, %v2023_v7  ;;  %v11760_v56 = vpack.i.bf16 %v2204_v20, %v2203_v55 }
 0x355   :  { %v2111_v42 = vmax.f32 %v2029_v28, 0.0 }
 0x356   :  { %v2110_v35 = vmax.f32 %v2024_v50, 0.0  ;;  %v8082_v8 = vpop.f32.mrb[20].mxu0  ;;  %8340 = vrot.lane.b32.xlu1 %v11760_v56, %s9702_s19  ;;  %v2206_v4 = vld [vmem:[#allocation3 + $0xc9] sm:$0xff] }
 0x357   :  { %2144 = vst.msk [vmem:[#allocation3 + $0xf9] sm:$0xff] %vm24_vm0, %v2111_v42  ;;  %v2039_v30 = vadd.f32 %v8082_v8, %v11696_v46  ;;  %v2033_v3 = vpop.f32.mrb[21].mxu0  ;;  %v2205_v44 = vld [vmem:[#allocation3 + $0xc1] sm:$0xff] }
 0x358   :  { %2143 = vst.msk [vmem:[#allocation3 + $0xf1] sm:$0xff] %vm24_vm0, %v2110_v35  ;;  %v2034_v5 = vadd.f32 %v11696_v46, %v2033_v3  ;;  %v11768_v62 = vpack.i.bf16 %v2206_v4, %v2205_v44  ;;  %v2221_v8 = vld [vmem:[#allocation3 + $0x2] sm:$0xff]  ;;  %v2222_v4 = vld [vmem:[#allocation3 + $0xa] sm:$0xff] }
 0x359   :  { %v2113_v31 = vmax.f32 %v2039_v30, 0.0 }
 0x35a   :  { %v2112_v63 = vmax.f32 %v2034_v5, 0.0  ;;  %8345 = vrot.lane.b32.xlu0 %v11768_v62, %s9702_s19  ;;  %v2208_v17 = vld [vmem:[#allocation3 + $0xe1] sm:$0xff] }
 0x35b   :  { %v8085_v21 = vpop.f32.mrb[22].mxu0  ;;  %2146 = vst.msk [vmem:[#allocation3 + $0x111] sm:$0xff] %vm24_vm0, %v2113_v31  ;;  %v2207_v54 = vld [vmem:[#allocation3 + $0xd9] sm:$0xff]  ;;  %v2224_v31 = vld [vmem:[#allocation3 + $0x22] sm:$0xff] }
 0x35c   :  { %v2049_v53 = vadd.f32 %v8085_v21, %v11696_v46  ;;  %v2043_v13 = vpop.f32.mrb[23].mxu0  ;;  %2145 = vst.msk [vmem:[#allocation3 + $0x109] sm:$0xff] %vm24_vm0, %v2112_v63  ;;  %v11776_v19 = vpack.i.bf16 %v2208_v17, %v2207_v54  ;;  %v2225_v63 = vld [vmem:[#allocation3 + $0x32] sm:$0xff]  ;;  %v2226_v21 = vld [vmem:[#allocation3 + $0x3a] sm:$0xff] }
 0x35d   :  { %v2044_v22 = vadd.f32 %v11696_v46, %v2043_v13  ;;  %v2223_v17 = vld [vmem:[#allocation3 + $0x1a] sm:$0xff]  ;;  %v2228_v54 = vld [vmem:[#allocation3 + $0x52] sm:$0xff] }
 0x35e   :  { %v2115_v15 = vmax.f32 %v2049_v53, 0.0  ;;  %8350 = vrot.lane.b32.xlu1 %v11776_v19, %s9702_s19  ;;  %v2210_v39 = vld [vmem:[#allocation3 + $0xf9] sm:$0xff]  ;;  %v11823_v53 = vpack.i.bf16 %v2226_v21, %v2225_v63  ;;  %v11825_v13 = vpack.i.bf16 %v2224_v31, %v2223_v17  ;;  %v11889_v31 = vld [vmem:[#allocation3 + $0x48] sm:$0xff]  ;;  %v11891_v63 = vld [vmem:[#allocation3 + $0x50] sm:$0xff] }
 0x35f   :  { %v2114_v6 = vmax.f32 %v2044_v22, 0.0  ;;  %v2209_v9 = vld [vmem:[#allocation3 + $0xf1] sm:$0xff]  ;;  %v2229_v22 = vld [vmem:[#allocation3 + $0x62] sm:$0xff]  ;;  %v11900_v17 = vpack.i.bf16 %v11891_v63, %v11889_v31 }
 0x360   :  { %2148 = vst.msk [vmem:[#allocation3 + $0x129] sm:$0xff] %vm24_vm0, %v2115_v15  ;;  %v11784_v36 = vpack.i.bf16 %v2210_v39, %v2209_v9  ;;  %v2230_v15 = vld [vmem:[#allocation3 + $0x6a] sm:$0xff]  ;;  %v2234_v9 = vld [vmem:[#allocation3 + $0x9a] sm:$0xff] }
 0x361   :  { %v8088_v12 = vpop.f32.mrb[24].mxu0  ;;  %2147 = vst.msk [vmem:[#allocation3 + $0x121] sm:$0xff] %vm24_vm0, %v2114_v6  ;;  %v2227_v6 = vld [vmem:[#allocation3 + $0x4a] sm:$0xff]  ;;  %v11893_v21 = vld [vmem:[#allocation3 + $0x38] sm:$0xff] }
 0x362   :  { %v2059_v38 = vadd.f32 %v8088_v12, %v11696_v46  ;;  %v2053_v2 = vpop.f32.mrb[25].mxu0  ;;  %8355 = vrot.lane.b32.xlu0 %v11784_v36, %s9702_s19  ;;  %v2212_v51 = vld [vmem:[#allocation3 + $0x111] sm:$0xff]  ;;  %v11831_v12 = vpack.i.bf16 %v2230_v15, %v2229_v22  ;;  %v11833_v39 = vpack.i.bf16 %v2228_v54, %v2227_v6  ;;  %v11906_v22 = vld [vmem:[#allocation3 + $0x60] sm:$0xff] }
 0x363   :  { %v2054_v16 = vadd.f32 %v11696_v46, %v2053_v2  ;;  %v2211_v58 = vld [vmem:[#allocation3 + $0x109] sm:$0xff]  ;;  %v2233_v2 = vld [vmem:[#allocation3 + $0x92] sm:$0xff]  ;;  %v11910_v6 = vld [vmem:[#allocation3 + $0x80] sm:$0xff] }
 0x364   :  { %v2117_v23 = vmax.f32 %v2059_v38, 0.0  ;;  %v11792_v48 = vpack.i.bf16 %v2212_v51, %v2211_v58  ;;  %v2232_v38 = vld [vmem:[#allocation3 + $0x82] sm:$0xff]  ;;  %v11908_v15 = vld [vmem:[#allocation3 + $0x78] sm:$0xff] }
 0x365   :  { %v2116_v0 = vmax.f32 %v2054_v16, 0.0  ;;  %v2231_v16 = vld [vmem:[#allocation3 + $0x7a] sm:$0xff]  ;;  %v2237_v51 = vld [vmem:[#allocation3 + $0xc2] sm:$0xff] }
 0x366   :  { %v8091_v25 = vpop.f32.mrb[26].mxu0  ;;  %2150 = vst.msk [vmem:[#allocation3 + $0x141] sm:$0xff] %vm24_vm0, %v2117_v23  ;;  %8360 = vrot.lane.b32.xlu1 %v11792_v48, %s9702_s19  ;;  %v11839_v23 = vpack.i.bf16 %v2234_v9, %v2233_v2  ;;  %v11920_v2 = vpack.i.bf16 %v11910_v6, %v11908_v15 }
 0x367   :  { %v2069_v34 = vadd.f32 %v8091_v25, %v11696_v46  ;;  %v2063_v41 = vpop.f32.mrb[27].mxu0  ;;  %2149 = vst.msk [vmem:[#allocation3 + $0x139] sm:$0xff] %vm24_vm0, %v2116_v0  ;;  %v2214_v52 = vld [vmem:[#allocation3 + $0x129] sm:$0xff]  ;;  %v11841_v0 = vpack.i.bf16 %v2232_v38, %v2231_v16  ;;  %v2236_v25 = vld [vmem:[#allocation3 + $0xb2] sm:$0xff] }
 0x368   :  { %v2064_v60 = vadd.f32 %v11696_v46, %v2063_v41  ;;  %v2213_v49 = vld [vmem:[#allocation3 + $0x121] sm:$0xff]  ;;  %v2235_v41 = vld [vmem:[#allocation3 + $0xaa] sm:$0xff] }
 0x369   :  { %v2119_v47 = vmax.f32 %v2069_v34, 0.0  ;;  %v11800_v32 = vpack.i.bf16 %v2214_v52, %v2213_v49  ;;  %v2238_v34 = vld [vmem:[#allocation3 + $0xca] sm:$0xff]  ;;  %v2239_v52 = vld [vmem:[#allocation3 + $0xda] sm:$0xff]  ;;  %v2244_v49 = vld [vmem:[#allocation3 + $0x112] sm:$0xff] }
 0x36a   :  { %v2118_v29 = vmax.f32 %v2064_v60, 0.0  ;;  %v11847_v58 = vpack.i.bf16 %v2238_v34, %v2237_v51  ;;  %v11849_v60 = vpack.i.bf16 %v2236_v25, %v2235_v41  ;;  %v11912_v38 = vld [vmem:[#allocation3 + $0x68] sm:$0xff]  ;;  %v11926_v16 = vld [vmem:[#allocation3 + $0x90] sm:$0xff]  ;;  %v11932_v34 = vld [vmem:[#allocation3 + $0x98] sm:$0xff] }
 0x36b   :  { %v8094_v10 = vpop.f32.mrb[28].mxu0  ;;  %2152 = vst.msk [vmem:[#allocation3 + $0x159] sm:$0xff] %vm24_vm0, %v2119_v47  ;;  %8365 = vrot.lane.b32.xlu0 %v11800_v32, %s9702_s19  ;;  %v2240_v47 = vld [vmem:[#allocation3 + $0xe2] sm:$0xff]  ;;  %v11924_v9 = vpack.i.bf16 %v11912_v38, %v11906_v22  ;;  %v11930_v51 = vld [vmem:[#allocation3 + $0xb0] sm:$0xff] }
 0x36c   :  { %v2079_v61 = vadd.f32 %v8094_v10, %v11696_v46  ;;  %v2073_v11 = vpop.f32.mrb[29].mxu0  ;;  %2151 = vst.msk [vmem:[#allocation3 + $0x151] sm:$0xff] %vm24_vm0, %v2118_v29  ;;  %v2241_v29 = vld [vmem:[#allocation3 + $0xf2] sm:$0xff]  ;;  %v2242_v10 = vld [vmem:[#allocation3 + $0xfa] sm:$0xff]  ;;  %v11928_v25 = vld [vmem:[#allocation3 + $0xa8] sm:$0xff] }
 0x36d   :  { %v2074_v26 = vadd.f32 %v11696_v46, %v2073_v11  ;;  %v2216_v37 = vld [vmem:[#allocation3 + $0x141] sm:$0xff]  ;;  %v11857_v11 = vpack.i.bf16 %v2240_v47, %v2239_v52  ;;  %16392 = vst [vmem:[#allocation8_spill] sm:$0xff] %v11928_v25  ;;  %v11940_v41 = vpack.i.bf16 %v11930_v51, %v11928_v25  ;;  %v11944_v47 = vpack.i.bf16 %v11932_v34, %v11926_v16 }
 0x36e   :  { %v2121_v43 = vmax.f32 %v2079_v61, 0.0  ;;  %v2215_v20 = vld [vmem:[#allocation3 + $0x139] sm:$0xff]  ;;  %v11855_v61 = vpack.i.bf16 %v2242_v10, %v2241_v29 }
 0x36f   :  { %v2120_v45 = vmax.f32 %v2074_v26, 0.0  ;;  %v8097_v1 = vpop.f32.mrb[30].mxu0  ;;  %v11808_v7 = vpack.i.bf16 %v2216_v37, %v2215_v20  ;;  %v2245_v26 = vld [vmem:[#allocation3 + $0x122] sm:$0xff]  ;;  %v11948_v10 = vld [vmem:[#allocation3 + $0xd8] sm:$0xff] }
 0x370   :  { %2154 = vst.msk [vmem:[#allocation3 + $0x171] sm:$0xff] %vm24_vm0, %v2121_v43  ;;  %v2089_v59 = vadd.f32 %v8097_v1, %v11696_v46  ;;  %v2083_v18 = vpop.f32.mrb[31].mxu0  ;;  %v2246_v43 = vld [vmem:[#allocation3 + $0x12a] sm:$0xff]  ;;  %v11946_v29 = vld [vmem:[#allocation3 + $0xc0] sm:$0xff]  ;;  %16394 = vst [vmem:[#allocation69_spill] sm:$0xff] %v11948_v10 }
 0x371   :  { %2153 = vst.msk [vmem:[#allocation3 + $0x169] sm:$0xff] %vm24_vm0, %v2120_v45  ;;  %v2084_v28 = vadd.f32 %v11696_v46, %v2083_v18  ;;  %8370 = vrot.lane.b32.xlu1 %v11808_v7, %s9702_s19  ;;  %v8384_v46 = vpack.i.bf16 %v2222_v4, %v2221_v8  ;;  %v2243_v45 = vld [vmem:[#allocation3 + $0x10a] sm:$0xff]  ;;  %v11863_v1 = vpack.i.bf16 %v2246_v43, %v2245_v26  ;;  %16393 = vst [vmem:[#allocation12_spill] sm:$0xff] %v11946_v29  ;;  %v11950_v52 = vld [vmem:[#allocation3 + $0xe0] sm:$0xff] }
 0x372   :  { %v2123_v55 = vmax.f32 %v2089_v59, 0.0  ;;  %v2218_v42 = vld [vmem:[#allocation3 + $0x159] sm:$0xff]  ;;  %v11865_v37 = vpack.i.bf16 %v2244_v49, %v2243_v45  ;;  %v2248_v59 = vld [vmem:[#allocation3 + $0x142] sm:$0xff]  ;;  %16395 = vst [vmem:[#allocation70_spill] sm:$0xff] %v11950_v52  ;;  %v11960_v26 = vpack.i.bf16 %v11950_v52, %v11948_v10  ;;  %v11966_v45 = vld [vmem:[#allocation3 + $0xf0] sm:$0xff] }
 0x373   :  { %v2122_v50 = vmax.f32 %v2084_v28, 0.0  ;;  %v2217_v35 = vld [vmem:[#allocation3 + $0x151] sm:$0xff]  ;;  %v2250_v20 = vld [vmem:[#allocation3 + $0x15a] sm:$0xff]  ;;  %v11952_v49 = vld [vmem:[#allocation3 + $0xc8] sm:$0xff]  ;;  %16397 = vst [vmem:[#allocation19_spill] sm:$0xff] %v11966_v45 }
 0x374   :  { %2156 = vst.msk [vmem:[#allocation3 + $0x189] sm:$0xff] %vm24_vm0, %v2123_v55  ;;  %v11814_v30 = vpack.i.bf16 %v2218_v42, %v2217_v35  ;;  %v2249_v18 = vld [vmem:[#allocation3 + $0x152] sm:$0xff]  ;;  %v2247_v28 = vld [vmem:[#allocation3 + $0x13a] sm:$0xff]  ;;  %16396 = vst [vmem:[#allocation7_spill] sm:$0xff] %v11952_v49  ;;  %v11964_v43 = vpack.i.bf16 %v11952_v49, %v11946_v29 }
 0x375   :  { %2155 = vst.msk [vmem:[#allocation3 + $0x181] sm:$0xff] %vm24_vm0, %v2122_v50  ;;  %v11871_v55 = vpack.i.bf16 %v2250_v20, %v2249_v18  ;;  %v11873_v50 = vpack.i.bf16 %v2248_v59, %v2247_v28  ;;  %v11875_v42 = vld [vmem:[#allocation3 + $0x18] sm:$0xff]  ;;  %v11877_v35 = vld [vmem:[#allocation3 + $0x20] sm:$0xff]  ;;  %v11968_v59 = vld [vmem:[#allocation3 + $0x108] sm:$0xff] }
 0x376   :  { %8375 = vrot.lane.b32.xlu0 %v11814_v30, %s9702_s19  ;;  %16398 = vst [vmem:[#allocation11_spill] sm:$0xff] %v11968_v59  ;;  %v11970_v18 = vld [vmem:[#allocation3 + $0x110] sm:$0xff]  ;;  %v11972_v20 = vld [vmem:[#allocation3 + $0xf8] sm:$0xff]  ;;  %v11990_v10 = vld [vmem:[#allocation3 + $0x140] sm:$0xff] }
 0x377   :  { %v2220_v3 = vld [vmem:[#allocation3 + $0x171] sm:$0xff]  ;;  %16399 = vst [vmem:[#allocation20_spill] sm:$0xff] %v11970_v18  ;;  %16400 = vst [vmem:[#allocation73_spill] sm:$0xff] %v11972_v20  ;;  %v11980_v28 = vpack.i.bf16 %v11970_v18, %v11968_v59  ;;  %v11992_v52 = vld [vmem:[#allocation3 + $0x128] sm:$0xff] }
 0x378   :  { %v2219_v44 = vld [vmem:[#allocation3 + $0x169] sm:$0xff]  ;;  %v2252_v4 = vld [vmem:[#allocation3 + $0x172] sm:$0xff]  ;;  %16403 = vst [vmem:[#allocation16_spill] sm:$0xff] %v11990_v10  ;;  %16404 = vst [vmem:[#allocation75_spill] sm:$0xff] %v11992_v52 }
 0x379   :  { %v11818_v5 = vpack.i.bf16 %v2220_v3, %v2219_v44  ;;  %v2251_v8 = vld [vmem:[#allocation3 + $0x16a] sm:$0xff]  ;;  %v12012_v49 = vld [vmem:[#allocation3 + $0x158] sm:$0xff] }
 0x37a   :  { %8385 = vrot.lane.b32.xlu0 %v8384_v46, %s9703_s14  ;;  %v8464_v46 = vpack.i.bf16 %v11877_v35, %v11875_v42  ;;  %v11885_v3 = vpack.i.bf16 %v2252_v4, %v2251_v8  ;;  %v11887_v44 = vld [vmem:[#allocation3 + $0x30] sm:$0xff]  ;;  %v11984_v8 = vpack.i.bf16 %v11972_v20, %v11966_v45  ;;  %v11986_v4 = vld [vmem:[#allocation3 + $0x120] sm:$0xff]  ;;  %v12008_v20 = vld [vmem:[#allocation3 + $0x168] sm:$0xff] }
 0x37b   :  { %8380 = vrot.lane.b32.xlu1 %v11818_v5, %s9702_s19  ;;  %v11904_v54 = vpack.i.bf16 %v11893_v21, %v11887_v44  ;;  %16401 = vst [vmem:[#allocation74_spill] sm:$0xff] %v11986_v4  ;;  %v12004_v18 = vpack.i.bf16 %v11992_v52, %v11986_v4  ;;  %v12006_v45 = vld [vmem:[#allocation3 + $0x150] sm:$0xff] }
 0x37c   :  { %v12010_v29 = vld [vmem:[#allocation3 + $0x170] sm:$0xff]  ;;  %v2283_v4 = vld [vmem:[#allocation3 + $0x180] sm:$0xff]  ;;  %v2284_v52 = vld [vmem:[#allocation3 + $0x188] sm:$0xff] }
 0x37d   :  { %v12030_v25 = vpack.i.bf16 %v2284_v52, %v2283_v4  ;;  %v7784_v4 = vld [vmem:[%s15834_s0 + $0x110] sm:$0xff] }
 0x37e   :  { %8395 = vrot.lane.b32.xlu0 %v11823_v53, %s9703_s14  ;;  %3946 = vst.msk [vmem:[#allocation2 + $0x31] sm:$0xff] %vm24_vm0, %v7784_v4  ;;  %v2347_v4 = vld [vmem:[#allocation3 + $0x182] sm:$0xff] }
 0x37f   :  { %8390 = vrot.lane.b32.xlu1 %v11825_v13, %s9703_s14 }
 0x382   :  { %8405 = vrot.lane.b32.xlu0 %v11831_v12, %s9703_s14 }
 0x383   :  { %8400 = vrot.lane.b32.xlu1 %v11833_v39, %s9703_s14 }
 0x386   :  { %8415 = vrot.lane.b32.xlu0 %v11839_v23, %s9703_s14 }
 0x387   :  { %8410 = vrot.lane.b32.xlu1 %v11841_v0, %s9703_s14 }
 0x38a   :  { %8425 = vrot.lane.b32.xlu0 %v11847_v58, %s9703_s14 }
 0x38b   :  { %8420 = vrot.lane.b32.xlu1 %v11849_v60, %s9703_s14 }
 0x38e   :  { %8435 = vrot.lane.b32.xlu0 %v11855_v61, %s9703_s14 }
 0x38f   :  { %8430 = vrot.lane.b32.xlu1 %v11857_v11, %s9703_s14 }
 0x392   :  { %8445 = vrot.lane.b32.xlu0 %v11863_v1, %s9703_s14 }
 0x393   :  { %8440 = vrot.lane.b32.xlu1 %v11865_v37, %s9703_s14 }
 0x396   :  { %8455 = vrot.lane.b32.xlu0 %v11871_v55, %s9703_s14 }
 0x397   :  { %8450 = vrot.lane.b32.xlu1 %v11873_v50, %s9703_s14 }
 0x39a   :  { %8465 = vrot.lane.b32.xlu0 %v8464_v46, %s9704_s15  ;;  %v11988_v46 = vld [vmem:[#allocation3 + $0x138] sm:$0xff] }
 0x39b   :  { %8460 = vrot.lane.b32.xlu1 %v11885_v3, %s9703_s14  ;;  %16402 = vst [vmem:[#allocation15_spill] sm:$0xff] %v11988_v46  ;;  %v12000_v59 = vpack.i.bf16 %v11990_v10, %v11988_v46  ;;  %v12020_v46 = vpack.i.bf16 %v12010_v29, %v12008_v20  ;;  %v12024_v10 = vpack.i.bf16 %v12012_v49, %v12006_v45 }
 0x39e   :  { %8475 = vrot.lane.b32.xlu0 %v11900_v17, %s9704_s15 }
 0x39f   :  { %8470 = vrot.lane.b32.xlu1 %v11904_v54, %s9704_s15 }
 0x3a2   :  { %8485 = vrot.lane.b32.xlu0 %v11920_v2, %s9704_s15 }
 0x3a3   :  { %8480 = vrot.lane.b32.xlu1 %v11924_v9, %s9704_s15 }
 0x3a6   :  { %8495 = vrot.lane.b32.xlu0 %v11940_v41, %s9704_s15 }
 0x3a7   :  { %8490 = vrot.lane.b32.xlu1 %v11944_v47, %s9704_s15 }
 0x3aa   :  { %8505 = vrot.lane.b32.xlu0 %v11960_v26, %s9704_s15 }
 0x3ab   :  { %8500 = vrot.lane.b32.xlu1 %v11964_v43, %s9704_s15 }
 0x3ae   :  { %8515 = vrot.lane.b32.xlu0 %v11980_v28, %s9704_s15 }
 0x3af   :  { %8510 = vrot.lane.b32.xlu1 %v11984_v8, %s9704_s15 }
 0x3b2   :  { %8525 = vrot.lane.b32.xlu0 %v12000_v59, %s9704_s15 }
 0x3b3   :  { %8520 = vrot.lane.b32.xlu1 %v12004_v18, %s9704_s15 }
 0x3b6   :  { %8535 = vrot.lane.b32.xlu0 %v12020_v46, %s9704_s15 }
 0x3b7   :  { %8530 = vrot.lane.b32.xlu1 %v12024_v10, %s9704_s15 }
 0x3ba   :  { %8545 = vrot.lane.b32.xlu0 %v11712_v33, %s9705_s21  ;;  %v12048_v33 = vpop.permute.xlu0 %8305 }
 0x3bb   :  { %8540 = vrot.lane.b32.xlu1 %v12030_v25, %s9704_s15 }
 0x3be   :  { %8555 = vrot.lane.b32.xlu0 %v11728_v14, %s9705_s21  ;;  %v12060_v14 = vpop.permute.xlu0 %8315 }
 0x3bf   :  { %8550 = vrot.lane.b32.xlu1 %v11720_v27, %s9705_s21  ;;  %v12058_v27 = vpop.permute.xlu1 %8310 }
 0x3c2   :  { %8565 = vrot.lane.b32.xlu0 %v11744_v24, %s9705_s21  ;;  %v12068_v24 = vpop.permute.xlu0 %8325 }
 0x3c3   :  { %8560 = vrot.lane.b32.xlu1 %v11736_v57, %s9705_s21  ;;  %v12066_v57 = vpop.permute.xlu1 %8320 }
 0x3c6   :  { %8575 = vrot.lane.b32.xlu0 %v11760_v56, %s9705_s21  ;;  %v2316_v56 = vld [vmem:[#allocation3 + $0x189] sm:$0xff] }
 0x3c7   :  { %8570 = vrot.lane.b32.xlu1 %v11752_v40, %s9705_s21  ;;  %v2315_v40 = vld [vmem:[#allocation3 + $0x181] sm:$0xff] }
 0x3ca   :  { %8585 = vrot.lane.b32.xlu0 %v11776_v19, %s9705_s21  ;;  %v12076_v19 = vpop.permute.xlu0 %8335 }
 0x3cb   :  { %8580 = vrot.lane.b32.xlu1 %v11768_v62, %s9705_s21  ;;  %v12074_v62 = vpop.permute.xlu1 %8330 }
 0x3ce   :  { %8595 = vrot.lane.b32.xlu0 %v11792_v48, %s9705_s21 }
 0x3cf   :  { %8590 = vrot.lane.b32.xlu1 %v11784_v36, %s9705_s21  ;;  %v12078_v36 = vpack.i.bf16 %v2316_v56, %v2315_v40  ;;  %v12084_v48 = vpop.permute.xlu1 %8340  ;;  %v7789_v40 = vld [vmem:[%s15834_s0 + $0x138] sm:$0xff]  ;;  %v7786_v56 = vld [vmem:[%s15834_s0 + $0x120] sm:$0xff] }
 0x3d0   :  { %3951 = vst.msk [vmem:[#allocation2 + $0x69] sm:$0xff] %vm24_vm0, %v7789_v40  ;;  %3948 = vst.msk [vmem:[#allocation2 + $0x49] sm:$0xff] %vm24_vm0, %v7786_v56  ;;  %v2348_v40 = vld [vmem:[#allocation3 + $0x18a] sm:$0xff] }
 0x3d2   :  { %8605 = vrot.lane.b32.xlu0 %v11808_v7, %s9705_s21  ;;  %v9710_v7 = vmov 0  }
 0x3d3   :  { %8600 = vrot.lane.b32.xlu1 %v11800_v32, %s9705_s21  ;;  %v12086_v32 = vpop.permute.xlu0 %8345  ;;  %8944 = vset.pattern.permute.xlu0 %v9710_v7  ;;  %v7791_v7 = vld [vmem:[%s15834_s0 + $0x148] sm:$0xff] }
 0x3d4   :  { %3953 = vst.msk [vmem:[#allocation2 + $0x81] sm:$0xff] %vm24_vm0, %v7791_v7  ;;  %v12180_v7 = vpack.i.bf16 %v2348_v40, %v2347_v4  ;;  %v7797_v4 = vld [vmem:[%s15834_s0 + $0x178] sm:$0xff]  ;;  %v7794_v40 = vld [vmem:[%s15834_s0 + $0x160] sm:$0xff] }
 0x3d5   :  { %3959 = vst.msk [vmem:[#allocation2 + $0xc9] sm:$0xff] %vm24_vm0, %v7797_v4  ;;  %3956 = vst.msk [vmem:[#allocation2 + $0xa9] sm:$0xff] %vm24_vm0, %v7794_v40  ;;  %v7801_v4 = vld [vmem:[%s15834_s0 + $0x198] sm:$0xff]  ;;  %v7798_v40 = vld [vmem:[%s15834_s0 + $0x180] sm:$0xff] }
 0x3d6   :  { %8615 = vrot.lane.b32.xlu0 %v11818_v5, %s9705_s21  ;;  %3963 = vst.msk [vmem:[#allocation2 + $0xf9] sm:$0xff] %vm24_vm0, %v7801_v4  ;;  %3960 = vst.msk [vmem:[#allocation2 + $0xd9] sm:$0xff] %vm24_vm0, %v7798_v40  ;;  %v7805_v4 = vld [vmem:[%s15834_s0 + $0x1b8] sm:$0xff]  ;;  %v7802_v40 = vld [vmem:[%s15834_s0 + $0x1a0] sm:$0xff] }
 0x3d7   :  { %8610 = vrot.lane.b32.xlu1 %v11814_v30, %s9705_s21  ;;  %v12092_v30 = vpop.permute.xlu1 %8350  ;;  %v12094_v5 = vpop.permute.xlu0 %8355  ;;  %3967 = vst.msk [vmem:[#allocation2 + $0x129] sm:$0xff] %vm24_vm0, %v7805_v4  ;;  %3964 = vst.msk [vmem:[#allocation2 + $0x109] sm:$0xff] %vm24_vm0, %v7802_v40 }
 0x3da   :  { %8625 = vrot.lane.b32.xlu0 %v11825_v13, %s9706_s22 }
 0x3db   :  { %8620 = vrot.lane.b32.xlu1 %v12078_v36, %s9705_s21  ;;  %v12100_v13 = vpop.permute.xlu1 %8360 }
 0x3dd   :  { %v12102_v52 = vpop.permute.xlu0 %8365 }
 0x3de   :  { %8635 = vrot.lane.b32.xlu0 %v11833_v39, %s9706_s22  ;;  %v7785_v39 = vld [vmem:[%s15834_s0 + $0x118] sm:$0xff] }
 0x3df   :  { %8630 = vrot.lane.b32.xlu1 %v11823_v53, %s9706_s22  ;;  %3947 = vst.msk [vmem:[#allocation2 + $0x39] sm:$0xff] %vm24_vm0, %v7785_v39  ;;  %v7788_v39 = vld [vmem:[%s15834_s0 + $0x130] sm:$0xff] }
 0x3e0   :  { %3950 = vst.msk [vmem:[#allocation2 + $0x61] sm:$0xff] %vm24_vm0, %v7788_v39  ;;  %v7795_v39 = vld [vmem:[%s15834_s0 + $0x168] sm:$0xff] }
 0x3e1   :  { %3957 = vst.msk [vmem:[#allocation2 + $0xb1] sm:$0xff] %vm24_vm0, %v7795_v39  ;;  %v7799_v39 = vld [vmem:[%s15834_s0 + $0x188] sm:$0xff] }
 0x3e2   :  { %8645 = vrot.lane.b32.xlu0 %v11841_v0, %s9706_s22  ;;  %3961 = vst.msk [vmem:[#allocation2 + $0xe1] sm:$0xff] %vm24_vm0, %v7799_v39  ;;  %v7803_v39 = vld [vmem:[%s15834_s0 + $0x1a8] sm:$0xff] }
 0x3e3   :  { %8640 = vrot.lane.b32.xlu1 %v11831_v12, %s9706_s22  ;;  %v12112_v53 = vpop.permute.xlu1 %8370  ;;  %v7787_v12 = vld [vmem:[%s15834_s0 + $0x128] sm:$0xff]  ;;  %3965 = vst.msk [vmem:[#allocation2 + $0x111] sm:$0xff] %vm24_vm0, %v7803_v39 }
 0x3e4   :  { %3949 = vst.msk [vmem:[#allocation2 + $0x51] sm:$0xff] %vm24_vm0, %v7787_v12  ;;  %v7793_v12 = vld [vmem:[%s15834_s0 + $0x158] sm:$0xff]  ;;  %v7807_v39 = vld [vmem:[%s15834_s0 + $0x1c8] sm:$0xff] }
 0x3e5   :  { %3955 = vst.msk [vmem:[#allocation2 + $0x99] sm:$0xff] %vm24_vm0, %v7793_v12  ;;  %3969 = vst.msk [vmem:[#allocation2 + $0x141] sm:$0xff] %vm24_vm0, %v7807_v39  ;;  %v7809_v39 = vld [vmem:[%s15834_s0 + $0x1d8] sm:$0xff] }
 0x3e6   :  { %8655 = vrot.lane.b32.xlu0 %v11849_v60, %s9706_s22  ;;  %3971 = vst.msk [vmem:[#allocation2 + $0x159] sm:$0xff] %vm24_vm0, %v7809_v39  ;;  %v2385_v39 = vld [vmem:[#allocation3 + $0x51] sm:$0xff] }
 0x3e7   :  { %8650 = vrot.lane.b32.xlu1 %v11839_v23, %s9706_s22 }
 0x3e8   :  { %v12114_v0 = vpop.permute.xlu0 %8375 }
 0x3ea   :  { %8665 = vrot.lane.b32.xlu0 %v11857_v11, %s9706_s22 }
 0x3eb   :  { %8660 = vrot.lane.b32.xlu1 %v11847_v58, %s9706_s22 }
 0x3ec   :  { %v12128_v23 = vpop.permute.xlu0 %8385 }
 0x3ed   :  { %v12130_v60 = vpop.permute.xlu1 %8380 }
 0x3ee   :  { %8675 = vrot.lane.b32.xlu0 %v11865_v37, %s9706_s22 }
 0x3ef   :  { %8670 = vrot.lane.b32.xlu1 %v11855_v61, %s9706_s22 }
 0x3f0   :  { %v12144_v58 = vpop.permute.xlu0 %8395 }
 0x3f1   :  { %v12146_v11 = vpop.permute.xlu1 %8390 }
 0x3f2   :  { %8685 = vrot.lane.b32.xlu0 %v11873_v50, %s9706_s22  ;;  %v7790_v50 = vld [vmem:[%s15834_s0 + $0x140] sm:$0xff] }
 0x3f3   :  { %8680 = vrot.lane.b32.xlu1 %v11863_v1, %s9706_s22  ;;  %3952 = vst.msk [vmem:[#allocation2 + $0x79] sm:$0xff] %vm24_vm0, %v7790_v50 }
 0x3f4   :  { %v12160_v61 = vpop.permute.xlu0 %8405 }
 0x3f5   :  { %v12162_v37 = vpop.permute.xlu1 %8400 }
 0x3f6   :  { %8695 = vrot.lane.b32.xlu0 %v11885_v3, %s9706_s22  ;;  %v7792_v3 = vld [vmem:[%s15834_s0 + $0x150] sm:$0xff] }
 0x3f7   :  { %8690 = vrot.lane.b32.xlu1 %v11871_v55, %s9706_s22  ;;  %3954 = vst.msk [vmem:[#allocation2 + $0x91] sm:$0xff] %vm24_vm0, %v7792_v3  ;;  %v7796_v3 = vld [vmem:[%s15834_s0 + $0x170] sm:$0xff] }
 0x3f8   :  { %v12176_v1 = vpop.permute.xlu0 %8415  ;;  %3958 = vst.msk [vmem:[#allocation2 + $0xc1] sm:$0xff] %vm24_vm0, %v7796_v3  ;;  %v7800_v3 = vld [vmem:[%s15834_s0 + $0x190] sm:$0xff] }
 0x3f9   :  { %v12178_v56 = vpop.permute.xlu1 %8410  ;;  %3962 = vst.msk [vmem:[#allocation2 + $0xf1] sm:$0xff] %vm24_vm0, %v7800_v3  ;;  %v7804_v3 = vld [vmem:[%s15834_s0 + $0x1b0] sm:$0xff] }
 0x3fa   :  { %8705 = vrot.lane.b32.xlu0 %v11904_v54, %s9707_s23  ;;  %3966 = vst.msk [vmem:[#allocation2 + $0x121] sm:$0xff] %vm24_vm0, %v7804_v3 }
 0x3fb   :  { %8700 = vrot.lane.b32.xlu1 %v12180_v7, %s9706_s22 }
 0x3fc   :  { %v12194_v55 = vpop.permute.xlu0 %8425 }
 0x3fd   :  { %v12196_v12 = vpop.permute.xlu1 %8420 }
 0x3fe   :  { %8715 = vrot.lane.b32.xlu0 %v11924_v9, %s9707_s23 }
 0x3ff   :  { %8710 = vrot.lane.b32.xlu1 %v11900_v17, %s9707_s23 }
 0x400   :  { %v12210_v54 = vpop.permute.xlu0 %8435 }
 0x401   :  { %v12212_v50 = vpop.permute.xlu1 %8430 }
 0x402   :  { %8725 = vrot.lane.b32.xlu0 %v11944_v47, %s9707_s23 }
 0x403   :  { %8720 = vrot.lane.b32.xlu1 %v11920_v2, %s9707_s23 }
 0x404   :  { %v12226_v17 = vpop.permute.xlu0 %8445 }
 0x405   :  { %16405 = vst [vmem:[#allocation76_spill] sm:$0xff] %v12226_v17  ;;  %v12228_v9 = vpop.permute.xlu1 %8440  ;;  %v2399_v17 = vld [vmem:[#allocation3 + $0xf9] sm:$0xff] }
 0x406   :  { %16406 = vst [vmem:[#allocation17_spill] sm:$0xff] %v12228_v9  ;;  %8735 = vrot.lane.b32.xlu0 %v11964_v43, %s9707_s23  ;;  %v2397_v9 = vld [vmem:[#allocation3 + $0xe1] sm:$0xff] }
 0x407   :  { %8730 = vrot.lane.b32.xlu1 %v11940_v41, %s9707_s23 }
 0x408   :  { %v12242_v2 = vpop.permute.xlu0 %8455 }
 0x409   :  { %16407 = vst [vmem:[#allocation18_spill] sm:$0xff] %v12242_v2  ;;  %v12244_v47 = vpop.permute.xlu1 %8450  ;;  %v2387_v2 = vld [vmem:[#allocation3 + $0x69] sm:$0xff] }
 0x40a   :  { %16408 = vst [vmem:[#allocation77_spill] sm:$0xff] %v12244_v47  ;;  %8745 = vrot.lane.b32.xlu0 %v11984_v8, %s9707_s23  ;;  %v2386_v47 = vld [vmem:[#allocation3 + $0x61] sm:$0xff] }
 0x40b   :  { %8740 = vrot.lane.b32.xlu1 %v11960_v26, %s9707_s23 }
 0x40c   :  { %v12258_v41 = vpop.permute.xlu0 %8465 }
 0x40d   :  { %16409 = vst [vmem:[#allocation78_spill] sm:$0xff] %v12258_v41  ;;  %v12260_v43 = vpop.permute.xlu1 %8460  ;;  %v7811_v41 = vld [vmem:[%s15834_s0 + $0x1e8] sm:$0xff] }
 0x40e   :  { %16410 = vst [vmem:[#allocation21_spill] sm:$0xff] %v12260_v43  ;;  %8755 = vrot.lane.b32.xlu0 %v12004_v18, %s9707_s23  ;;  %v2380_v18 = vld [vmem:[#allocation3 + $0x198] sm:$0xff]  ;;  %v2384_v43 = vld [vmem:[#allocation3 + $0x49] sm:$0xff]  ;;  %3973 = vst.msk [vmem:[#allocation2 + $0x171] sm:$0xff] %vm24_vm0, %v7811_v41 }
 0x40f   :  { %8750 = vrot.lane.b32.xlu1 %v11980_v28, %s9707_s23  ;;  %v2381_v28 = vld [vmem:[#allocation3 + $0x1a0] sm:$0xff] }
 0x410   :  { %v12274_v26 = vpop.permute.xlu0 %8475  ;;  %v2391_v41 = vld [vmem:[#allocation3 + $0x99] sm:$0xff] }
 0x411   :  { %16411 = vst [vmem:[#allocation22_spill] sm:$0xff] %v12274_v26  ;;  %v12276_v8 = vpop.permute.xlu1 %8470  ;;  %v2383_v26 = vld [vmem:[#allocation3 + $0x39] sm:$0xff] }
 0x412   :  { %16412 = vst [vmem:[#allocation25_spill] sm:$0xff] %v12276_v8  ;;  %8765 = vrot.lane.b32.xlu0 %v12024_v10, %s9707_s23  ;;  %v2382_v8 = vld [vmem:[#allocation3 + $0x31] sm:$0xff] }
 0x413   :  { %8760 = vrot.lane.b32.xlu1 %v12000_v59, %s9707_s23  ;;  %v7806_v10 = vld [vmem:[%s15834_s0 + $0x1c0] sm:$0xff]  ;;  %v8779_v59 = vpack.i.bf16 %v2381_v28, %v2380_v18  ;;  %v8789_v18 = vpack.i.bf16 %v2385_v39, %v2384_v43  ;;  %v2388_v28 = vld [vmem:[#allocation3 + $0x79] sm:$0xff]  ;;  %v2394_v39 = vld [vmem:[#allocation3 + $0xc1] sm:$0xff] }
 0x414   :  { %v12290_v4 = vpop.permute.xlu0 %8485  ;;  %3968 = vst.msk [vmem:[#allocation2 + $0x139] sm:$0xff] %vm24_vm0, %v7806_v10  ;;  %v2389_v10 = vld [vmem:[#allocation3 + $0x81] sm:$0xff]  ;;  %v2393_v43 = vld [vmem:[#allocation3 + $0xb1] sm:$0xff] }
 0x415   :  { %16413 = vst [vmem:[#allocation26_spill] sm:$0xff] %v12290_v4  ;;  %v12292_v40 = vpop.permute.xlu1 %8480  ;;  %v8784_v4 = vpack.i.bf16 %v2383_v26, %v2382_v8  ;;  %v8794_v8 = vpack.i.bf16 %v2387_v2, %v2386_v47  ;;  %v8799_v47 = vpack.i.bf16 %v2389_v10, %v2388_v28 }
 0x416   :  { %16414 = vst [vmem:[#allocation135_spill] sm:$0xff] %v12292_v40  ;;  %8775 = vrot.lane.b32.xlu0 %v12030_v25, %s9707_s23  ;;  %v7808_v25 = vld [vmem:[%s15834_s0 + $0x1d0] sm:$0xff] }
 0x417   :  { %8770 = vrot.lane.b32.xlu1 %v12020_v46, %s9707_s23  ;;  %3970 = vst.msk [vmem:[#allocation2 + $0x151] sm:$0xff] %vm24_vm0, %v7808_v25  ;;  %v2395_v25 = vld [vmem:[#allocation3 + $0xc9] sm:$0xff] }
 0x418   :  { %v12306_v3 = vpop.permute.xlu0 %8495 }
 0x419   :  { %16415 = vst [vmem:[#allocation136_spill] sm:$0xff] %v12306_v3  ;;  %v12308_v40 = vpop.permute.xlu1 %8490  ;;  %v7810_v3 = vld [vmem:[%s15834_s0 + $0x1e0] sm:$0xff] }
 0x41a   :  { %16416 = vst [vmem:[#allocation99_spill] sm:$0xff] %v12308_v40  ;;  %8785 = vrot.lane.b32.xlu0 %v8784_v4, %s9708_s28  ;;  %v2390_v40 = vld [vmem:[#allocation3 + $0x91] sm:$0xff]  ;;  %3972 = vst.msk [vmem:[#allocation2 + $0x169] sm:$0xff] %vm24_vm0, %v7810_v3 }
 0x41b   :  { %8780 = vrot.lane.b32.xlu1 %v8779_v59, %s9707_s23  ;;  %v8804_v2 = vpack.i.bf16 %v2391_v41, %v2390_v40 }
 0x41c   :  { %v12320_v46 = vpop.permute.xlu0 %8505 }
 0x41d   :  { %16417 = vst [vmem:[#allocation100_spill] sm:$0xff] %v12320_v46  ;;  %v12322_v26 = vpop.permute.xlu1 %8500 }
 0x41e   :  { %16418 = vst [vmem:[#allocation159_spill] sm:$0xff] %v12322_v26  ;;  %8795 = vrot.lane.b32.xlu0 %v8794_v8, %s9708_s28  ;;  %v2392_v26 = vld [vmem:[#allocation3 + $0xa9] sm:$0xff] }
 0x41f   :  { %8790 = vrot.lane.b32.xlu1 %v8789_v18, %s9708_s28  ;;  %v8814_v18 = vpack.i.bf16 %v2395_v25, %v2394_v39  ;;  %v8809_v3 = vpack.i.bf16 %v2393_v43, %v2392_v26 }
 0x420   :  { %v12330_v4 = vpop.permute.xlu0 %8515 }
 0x421   :  { %16419 = vst [vmem:[#allocation160_spill] sm:$0xff] %v12330_v4  ;;  %v12332_v59 = vpop.permute.xlu1 %8510  ;;  %v2398_v4 = vld [vmem:[#allocation3 + $0xf1] sm:$0xff] }
 0x422   :  { %16420 = vst [vmem:[#allocation9_spill] sm:$0xff] %v12332_v59  ;;  %8805 = vrot.lane.b32.xlu0 %v8804_v2, %s9708_s28  ;;  %v2396_v59 = vld [vmem:[#allocation3 + $0xd9] sm:$0xff]  ;;  %v8824_v10 = vpack.i.bf16 %v2399_v17, %v2398_v4  ;;  %v2401_v2 = vld [vmem:[#allocation3 + $0x111] sm:$0xff] }
 0x423   :  { %8800 = vrot.lane.b32.xlu1 %v8799_v47, %s9708_s28  ;;  %v8819_v41 = vpack.i.bf16 %v2397_v9, %v2396_v59  ;;  %v2402_v47 = vld [vmem:[#allocation3 + $0x121] sm:$0xff] }
 0x424   :  { %v12336_v46 = vpop.permute.xlu0 %8525 }
 0x425   :  { %16421 = vst [vmem:[#allocation10_spill] sm:$0xff] %v12336_v46  ;;  %v12338_v8 = vpop.permute.xlu1 %8520  ;;  %v2403_v46 = vld [vmem:[#allocation3 + $0x129] sm:$0xff] }
 0x426   :  { %16422 = vst [vmem:[#allocation29_spill] sm:$0xff] %v12338_v8  ;;  %8815 = vrot.lane.b32.xlu0 %v8814_v18, %s9708_s28  ;;  %v2400_v8 = vld [vmem:[#allocation3 + $0x109] sm:$0xff]  ;;  %v8834_v39 = vpack.i.bf16 %v2403_v46, %v2402_v47  ;;  %v2405_v18 = vld [vmem:[#allocation3 + $0x141] sm:$0xff]  ;;  %v2412_v46 = vld [vmem:[#allocation3 + $0x199] sm:$0xff] }
 0x427   :  { %8810 = vrot.lane.b32.xlu1 %v8809_v3, %s9708_s28  ;;  %v8829_v25 = vpack.i.bf16 %v2401_v2, %v2400_v8  ;;  %v2406_v3 = vld [vmem:[#allocation3 + $0x151] sm:$0xff]  ;;  %v2413_v8 = vld [vmem:[#allocation3 + $0x1a1] sm:$0xff] }
 0x428   :  { %v12342_v40 = vpop.permute.xlu0 %8535 }
 0x429   :  { %16423 = vst [vmem:[#allocation30_spill] sm:$0xff] %v12342_v40  ;;  %v12344_v28 = vpop.permute.xlu1 %8530  ;;  %v2407_v40 = vld [vmem:[#allocation3 + $0x159] sm:$0xff] }
 0x42a   :  { %16424 = vst [vmem:[#allocation59_spill] sm:$0xff] %v12344_v28  ;;  %8825 = vrot.lane.b32.xlu0 %v8824_v10, %s9708_s28  ;;  %v2404_v28 = vld [vmem:[#allocation3 + $0x139] sm:$0xff]  ;;  %v8844_v4 = vpack.i.bf16 %v2407_v40, %v2406_v3  ;;  %v2408_v10 = vld [vmem:[#allocation3 + $0x169] sm:$0xff]  ;;  %v8859_v40 = vpack.i.bf16 %v2413_v8, %v2412_v46 }
 0x42b   :  { %8820 = vrot.lane.b32.xlu1 %v8819_v41, %s9708_s28  ;;  %v8839_v59 = vpack.i.bf16 %v2405_v18, %v2404_v28  ;;  %v2409_v41 = vld [vmem:[#allocation3 + $0x171] sm:$0xff]  ;;  %v2420_v46 = vld [vmem:[#allocation3 + $0x7a] sm:$0xff] }
 0x42c   :  { %v12348_v26 = vpop.permute.xlu0 %8545  ;;  %v2422_v8 = vld [vmem:[#allocation3 + $0x92] sm:$0xff] }
 0x42d   :  { %v12350_v43 = vpop.permute.xlu1 %8540 }
 0x42e   :  { %16425 = vst [vmem:[#allocation60_spill] sm:$0xff] %v12350_v43  ;;  %8835 = vrot.lane.b32.xlu0 %v8834_v39, %s9708_s28  ;;  %v8849_v39 = vpack.i.bf16 %v2409_v41, %v2408_v10  ;;  %v2415_v43 = vld [vmem:[#allocation3 + $0x3a] sm:$0xff] }
 0x42f   :  { %8830 = vrot.lane.b32.xlu1 %v8829_v25, %s9708_s28  ;;  %v2414_v25 = vld [vmem:[#allocation3 + $0x32] sm:$0xff] }
 0x430   :  { %v12354_v17 = vpop.permute.xlu0 %8555  ;;  %v8864_v3 = vpack.i.bf16 %v2415_v43, %v2414_v25 }
 0x431   :  { %16426 = vst [vmem:[#allocation79_spill] sm:$0xff] %v12354_v17  ;;  %v12356_v9 = vpop.permute.xlu1 %8550  ;;  %v2427_v17 = vld [vmem:[#allocation3 + $0xca] sm:$0xff] }
 0x432   :  { %16427 = vst [vmem:[#allocation80_spill] sm:$0xff] %v12356_v9  ;;  %8845 = vrot.lane.b32.xlu0 %v8844_v4, %s9708_s28  ;;  %v2416_v4 = vld [vmem:[#allocation3 + $0x4a] sm:$0xff] }
 0x433   :  { %8840 = vrot.lane.b32.xlu1 %v8839_v59, %s9708_s28  ;;  %v2418_v59 = vld [vmem:[#allocation3 + $0x62] sm:$0xff]  ;;  %v2419_v9 = vld [vmem:[#allocation3 + $0x6a] sm:$0xff] }
 0x434   :  { %v12360_v2 = vpop.permute.xlu0 %8565 }
 0x435   :  { %16428 = vst [vmem:[#allocation137_spill] sm:$0xff] %v12360_v2  ;;  %v12362_v47 = vpop.permute.xlu1 %8560  ;;  %v2417_v2 = vld [vmem:[#allocation3 + $0x52] sm:$0xff] }
 0x436   :  { %16429 = vst [vmem:[#allocation138_spill] sm:$0xff] %v12362_v47  ;;  %8855 = vrot.lane.b32.xlu0 %v12078_v36, %s9708_s28  ;;  %v8874_v36 = vpack.i.bf16 %v2419_v9, %v2418_v59  ;;  %v2421_v47 = vld [vmem:[#allocation3 + $0x82] sm:$0xff] }
 0x437   :  { %8850 = vrot.lane.b32.xlu1 %v8849_v39, %s9708_s28  ;;  %v8869_v39 = vpack.i.bf16 %v2417_v2, %v2416_v4 }
 0x438   :  { %v12367_v28 = vpop.permute.xlu0 %8575 }
 0x439   :  { %16430 = vst [vmem:[#allocation101_spill] sm:$0xff] %v12367_v28  ;;  %v12369_v18 = vpop.permute.xlu1 %8570  ;;  %v2423_v28 = vld [vmem:[#allocation3 + $0x9a] sm:$0xff] }
 0x43a   :  { %16431 = vst [vmem:[#allocation102_spill] sm:$0xff] %v12369_v18  ;;  %8865 = vrot.lane.b32.xlu0 %v8864_v3, %s9709_s30  ;;  %v8884_v3 = vpack.i.bf16 %v2423_v28, %v2422_v8  ;;  %v2424_v18 = vld [vmem:[#allocation3 + $0xaa] sm:$0xff] }
 0x43b   :  { %8860 = vrot.lane.b32.xlu1 %v8859_v40, %s9708_s28  ;;  %v8879_v40 = vpack.i.bf16 %v2421_v47, %v2420_v46 }
 0x43c   :  { %v12373_v10 = vpop.permute.xlu0 %8585 }
 0x43d   :  { %16432 = vst [vmem:[#allocation161_spill] sm:$0xff] %v12373_v10  ;;  %v12375_v41 = vpop.permute.xlu1 %8580  ;;  %v2426_v10 = vld [vmem:[#allocation3 + $0xc2] sm:$0xff] }
 0x43e   :  { %16433 = vst [vmem:[#allocation162_spill] sm:$0xff] %v12375_v41  ;;  %8875 = vrot.lane.b32.xlu0 %v8874_v36, %s9709_s30  ;;  %v2425_v41 = vld [vmem:[#allocation3 + $0xb2] sm:$0xff]  ;;  %v8894_v4 = vpack.i.bf16 %v2427_v17, %v2426_v10  ;;  %v2428_v36 = vld [vmem:[#allocation3 + $0xda] sm:$0xff] }
 0x43f   :  { %8870 = vrot.lane.b32.xlu1 %v8869_v39, %s9709_s30  ;;  %v8889_v59 = vpack.i.bf16 %v2425_v41, %v2424_v18  ;;  %v2430_v39 = vld [vmem:[#allocation3 + $0xf2] sm:$0xff] }
 0x440   :  { %v12379_v43 = vpop.permute.xlu0 %8595 }
 0x441   :  { %16434 = vst [vmem:[#allocation13_spill] sm:$0xff] %v12379_v43  ;;  %v12381_v25 = vpop.permute.xlu1 %8590  ;;  %v2431_v43 = vld [vmem:[#allocation3 + $0xfa] sm:$0xff] }
 0x442   :  { %16435 = vst [vmem:[#allocation14_spill] sm:$0xff] %v12381_v25  ;;  %8885 = vrot.lane.b32.xlu0 %v8884_v3, %s9709_s30  ;;  %v2429_v25 = vld [vmem:[#allocation3 + $0xe2] sm:$0xff]  ;;  %v8904_v46 = vpack.i.bf16 %v2431_v43, %v2430_v39  ;;  %v2432_v3 = vld [vmem:[#allocation3 + $0x10a] sm:$0xff] }
 0x443   :  { %8880 = vrot.lane.b32.xlu1 %v8879_v40, %s9709_s30  ;;  %v8899_v8 = vpack.i.bf16 %v2429_v25, %v2428_v36  ;;  %v2434_v40 = vld [vmem:[#allocation3 + $0x122] sm:$0xff] }
 0x444   :  { %v12385_v9 = vpop.permute.xlu0 %8605 }
 0x445   :  { %16436 = vst [vmem:[#allocation33_spill] sm:$0xff] %v12385_v9  ;;  %v12387_v2 = vpop.permute.xlu1 %8600  ;;  %v2435_v9 = vld [vmem:[#allocation3 + $0x12a] sm:$0xff] }
 0x446   :  { %16437 = vst [vmem:[#allocation34_spill] sm:$0xff] %v12387_v2  ;;  %8895 = vrot.lane.b32.xlu0 %v8894_v4, %s9709_s30  ;;  %v2433_v2 = vld [vmem:[#allocation3 + $0x112] sm:$0xff]  ;;  %v8914_v10 = vpack.i.bf16 %v2435_v9, %v2434_v40  ;;  %v2436_v4 = vld [vmem:[#allocation3 + $0x13a] sm:$0xff] }
 0x447   :  { %8890 = vrot.lane.b32.xlu1 %v8889_v59, %s9709_s30  ;;  %v8909_v41 = vpack.i.bf16 %v2433_v2, %v2432_v3  ;;  %v2438_v59 = vld [vmem:[#allocation3 + $0x152] sm:$0xff]  ;;  %v2444_v9 = vld [vmem:[#allocation3 + $0x19a] sm:$0xff]  ;;  %v2445_v2 = vld [vmem:[#allocation3 + $0x1a2] sm:$0xff] }
 0x448   :  { %v12391_v47 = vpop.permute.xlu0 %8615 }
 0x449   :  { %16438 = vst [vmem:[#allocation63_spill] sm:$0xff] %v12391_v47  ;;  %v12393_v28 = vpop.permute.xlu1 %8610  ;;  %v2439_v47 = vld [vmem:[#allocation3 + $0x15a] sm:$0xff] }
 0x44a   :  { %16439 = vst [vmem:[#allocation64_spill] sm:$0xff] %v12393_v28  ;;  %8905 = vrot.lane.b32.xlu0 %v8904_v46, %s9709_s30  ;;  %v2437_v28 = vld [vmem:[#allocation3 + $0x142] sm:$0xff]  ;;  %v8924_v36 = vpack.i.bf16 %v2439_v47, %v2438_v59  ;;  %v2440_v46 = vld [vmem:[#allocation3 + $0x16a] sm:$0xff]  ;;  %v8939_v47 = vpack.i.bf16 %v2445_v2, %v2444_v9 }
 0x44b   :  { %8900 = vrot.lane.b32.xlu1 %v8899_v8, %s9709_s30  ;;  %v8919_v39 = vpack.i.bf16 %v2437_v28, %v2436_v4  ;;  %v2441_v8 = vld [vmem:[#allocation3 + $0x172] sm:$0xff] }
 0x44c   :  { %v12397_v17 = vpop.permute.xlu0 %8625  ;;  %v3727_v28 = vld [vmem:[%s15839_s5] sm:$0xff] }
 0x44d   :  { %v12399_v18 = vpop.permute.xlu1 %8620  ;;  %v4008_v59 = vld [vmem:[#allocation2 + $0x1] sm:$0xff] }
 0x44e   :  { %8915 = vrot.lane.b32.xlu0 %v8914_v10, %s9709_s30  ;;  %v8929_v10 = vpack.i.bf16 %v2441_v8, %v2440_v46  ;;  %v4012_v8 = vld [vmem:[#allocation2 + $0x31] sm:$0xff] }
 0x44f   :  { %8910 = vrot.lane.b32.xlu1 %v8909_v41, %s9709_s30 }
 0x450   :  { %v12403_v43 = vpop.permute.xlu0 %8635 }
 0x451   :  { %16440 = vst [vmem:[#allocation81_spill] sm:$0xff] %v12403_v43  ;;  %v12405_v25 = vpop.permute.xlu1 %8630 }
 0x452   :  { %16441 = vst [vmem:[#allocation82_spill] sm:$0xff] %v12405_v25  ;;  %8925 = vrot.lane.b32.xlu0 %v8924_v36, %s9709_s30  ;;  %v4010_v36 = vld [vmem:[#allocation2 + $0x19] sm:$0xff]  ;;  %v4022_v25 = vld [vmem:[#allocation2 + $0xa9] sm:$0xff] }
 0x453   :  { %8920 = vrot.lane.b32.xlu1 %v8919_v39, %s9709_s30 }
 0x454   :  { %v12409_v3 = vpop.permute.xlu0 %8645 }
 0x455   :  { %16442 = vst [vmem:[#allocation139_spill] sm:$0xff] %v12409_v3  ;;  %v12411_v40 = vpop.permute.xlu1 %8640  ;;  %v8328_v3 = vunpack.i.h.bf16 %v12068_v24 }
 0x456   :  { %16443 = vst [vmem:[#allocation140_spill] sm:$0xff] %v12411_v40  ;;  %8935 = vrot.lane.b32.xlu0 %v12180_v7, %s9709_s30  ;;  %v4009_v7 = vld [vmem:[#allocation2 + $0x9] sm:$0xff]  ;;  %v8322_v40 = vunpack.i.l.bf16 %v12066_v57 }
 0x457   :  { %8930 = vrot.lane.b32.xlu1 %v8929_v10, %s9709_s30  ;;  %v4011_v10 = vld [vmem:[#allocation2 + $0x21] sm:$0xff] }
 0x458   :  { %v12419_v41 = vpop.permute.xlu0 %8655 }
 0x459   :  { %16444 = vst [vmem:[#allocation103_spill] sm:$0xff] %v12419_v41  ;;  %v12421_v4 = vpop.permute.xlu1 %8650 }
 0x45a   :  { %16445 = vst [vmem:[#allocation104_spill] sm:$0xff] %v12421_v4  ;;  %3730 = vperm.xlu0 %8944, %v3727_v28  }
 0x45b   :  { %8940 = vrot.lane.b32.xlu1 %v8939_v47, %s9709_s30  ;;  %v4014_v47 = vld [vmem:[#allocation2 + $0x49] sm:$0xff] }
 0x45c   :  { %v12424_v39 = vpop.permute.xlu0 %8665 }
 0x45d   :  { %16446 = vst [vmem:[#allocation163_spill] sm:$0xff] %v12424_v39  ;;  %v12426_v46 = vpop.permute.xlu1 %8660  ;;  %v8323_v39 = vunpack.i.h.bf16 %v12066_v57 }
 0x45e   :  { %16447 = vst [vmem:[#allocation164_spill] sm:$0xff] %v12426_v46  ;;  %4300 = vrot.lane.b32.xlu0 %v4010_v36, %s9702_s19  ;;  %v4016_v36 = vld [vmem:[#allocation2 + $0x61] sm:$0xff] }
 0x45f   :  { %4296 = vrot.lane.b32.xlu1 %v4008_v59, %s9702_s19  ;;  %v4013_v59 = vld [vmem:[#allocation2 + $0x39] sm:$0xff] }
 0x460   :  { %v12430_v9 = vpop.permute.xlu0 %8675 }
 0x461   :  { %16448 = vst [vmem:[#allocation23_spill] sm:$0xff] %v12430_v9  ;;  %v12432_v2 = vpop.permute.xlu1 %8670 }
 0x462   :  { %16449 = vst [vmem:[#allocation24_spill] sm:$0xff] %v12432_v2  ;;  %4304 = vrot.lane.b32.xlu0 %v4012_v8, %s9702_s19  ;;  %v4018_v8 = vld [vmem:[#allocation2 + $0x79] sm:$0xff] }
 0x463   :  { %4298 = vrot.lane.b32.xlu1 %v4009_v7, %s9702_s19  ;;  %v4015_v7 = vld [vmem:[#allocation2 + $0x51] sm:$0xff] }
 0x464   :  { %v12436_v28 = vpop.permute.xlu0 %8685 }
 0x465   :  { %16450 = vst [vmem:[#allocation37_spill] sm:$0xff] %v12436_v28  ;;  %v12438_v4 = vpop.permute.xlu1 %8680 }
 0x466   :  { %16451 = vst [vmem:[#allocation38_spill] sm:$0xff] %v12438_v4  ;;  %4308 = vrot.lane.b32.xlu0 %v4014_v47, %s9702_s19  ;;  %v4017_v47 = vld [vmem:[#allocation2 + $0x69] sm:$0xff]  ;;  %v2158_v4 = vld [vmem:[#allocation3 + $0x8] sm:$0xff] }
 0x467   :  { %4302 = vrot.lane.b32.xlu1 %v4011_v10, %s9702_s19  ;;  %v8308_v10 = vunpack.i.h.bf16 %v12048_v33 }
 0x468   :  { %v12442_v46 = vpop.permute.xlu0 %8695 }
 0x469   :  { %16452 = vst [vmem:[#allocation67_spill] sm:$0xff] %v12442_v46  ;;  %v12444_v41 = vpop.permute.xlu1 %8690  ;;  %v4020_v46 = vld [vmem:[#allocation2 + $0x91] sm:$0xff] }
 0x46a   :  { %16453 = vst [vmem:[#allocation68_spill] sm:$0xff] %v12444_v41  ;;  %4312 = vrot.lane.b32.xlu0 %v4016_v36, %s9702_s19  ;;  %v8307_v41 = vunpack.i.l.bf16 %v12048_v33  ;;  %v12470_v33 = vsel %vm24_vm0, %v2158_v4, %v8308_v10  ;;  %v12506_v10 = vsel %vm24_vm0, %v11889_v31, %v8322_v40  ;;  %v8342_v31 = vunpack.i.l.bf16 %v12084_v48 }
 0x46b   :  { %4306 = vrot.lane.b32.xlu1 %v4013_v59, %s9702_s19  ;;  %v8312_v59 = vunpack.i.l.bf16 %v12058_v27 }
 0x46c   :  { %v12448_v2 = vpop.permute.xlu0 %8705 }
 0x46d   :  { %16454 = vst [vmem:[#allocation83_spill] sm:$0xff] %v12448_v2  ;;  %v12450_v28 = vpop.permute.xlu1 %8700  ;;  %v2157_v2 = vld [vmem:[#allocation3] sm:$0xff]  ;;  %v12479_v57 = vsel %vm24_vm0, %v11875_v42, %v8312_v59  ;;  %v8357_v59 = vunpack.i.l.bf16 %v12094_v5 }
 0x46e   :  { %16455 = vst [vmem:[#allocation84_spill] sm:$0xff] %v12450_v28  ;;  %4316 = vrot.lane.b32.xlu0 %v4018_v8, %s9702_s19  ;;  %v8313_v28 = vunpack.i.h.bf16 %v12058_v27  ;;  %v8317_v8 = vunpack.i.l.bf16 %v12060_v14  ;;  %v8333_v27 = vunpack.i.h.bf16 %v12074_v62 }
 0x46f   :  { %4310 = vrot.lane.b32.xlu1 %v4015_v7, %s9702_s19  ;;  %v8318_v7 = vunpack.i.h.bf16 %v12060_v14  ;;  %v12475_v14 = vsel %vm24_vm0, %v2157_v2, %v8307_v41  ;;  %v12502_v2 = vsel %vm24_vm0, %v11891_v63, %v8323_v39  ;;  %v8353_v39 = vunpack.i.h.bf16 %v12092_v30 }
 0x470   :  { %v12457_v36 = vpop.permute.xlu0 %8715  ;;  %v12493_v41 = vsel %vm24_vm0, %v11887_v44, %v8317_v8  ;;  %v8343_v44 = vunpack.i.h.bf16 %v12084_v48  ;;  %v12521_v63 = vsel %vm24_vm0, %v11910_v6, %v8333_v27  ;;  %v16463_v8 = vld [vmem:[#allocation7_spill] sm:$0xff]  ;;  %v8373_v27 = vunpack.i.h.bf16 %v12112_v53 }
 0x471   :  { %16456 = vst [vmem:[#allocation141_spill] sm:$0xff] %v12457_v36  ;;  %v12459_v9 = vpop.permute.xlu1 %8710  ;;  %v8327_v36 = vunpack.i.l.bf16 %v12068_v24  ;;  %v12489_v24 = vsel %vm24_vm0, %v11877_v35, %v8313_v28  ;;  %v12497_v42 = vsel %vm24_vm0, %v11893_v21, %v8318_v7  ;;  %v12510_v35 = vsel %vm24_vm0, %v11912_v38, %v8328_v3  ;;  %v4021_v38 = vld [vmem:[#allocation2 + $0x99] sm:$0xff]  ;;  %v4024_v3 = vld [vmem:[#allocation2 + $0xc1] sm:$0xff] }
 0x472   :  { %16457 = vst [vmem:[#allocation142_spill] sm:$0xff] %v12459_v9  ;;  %4320 = vrot.lane.b32.xlu0 %v4020_v46, %s9702_s19  ;;  %v4019_v9 = vld [vmem:[#allocation2 + $0x81] sm:$0xff]  ;;  %v8338_v46 = vunpack.i.h.bf16 %v12076_v19  ;;  %v8352_v28 = vunpack.i.l.bf16 %v12092_v30  ;;  %v8368_v7 = vunpack.i.h.bf16 %v12102_v52 }
 0x473   :  { %4314 = vrot.lane.b32.xlu1 %v4017_v47, %s9702_s19  ;;  %v8332_v47 = vunpack.i.l.bf16 %v12074_v62  ;;  %v8337_v62 = vunpack.i.l.bf16 %v12076_v19  ;;  %v12517_v21 = vsel %vm24_vm0, %v11906_v22, %v8327_v36  ;;  %v8348_v19 = vunpack.i.h.bf16 %v12086_v32 }
 0x474   :  { %v12483_v43 = vpop.permute.xlu0 %8725  ;;  %v8347_v22 = vunpack.i.l.bf16 %v12086_v32  ;;  %v8363_v32 = vunpack.i.h.bf16 %v12100_v13  ;;  %v8362_v36 = vunpack.i.l.bf16 %v12100_v13  ;;  %v4026_v13 = vld [vmem:[#allocation2 + $0xd9] sm:$0xff] }
 0x475   :  { %16458 = vst [vmem:[#allocation105_spill] sm:$0xff] %v12483_v43  ;;  %v12485_v4 = vpop.permute.xlu1 %8720  ;;  %v12527_v40 = vsel %vm24_vm0, %v11908_v15, %v8332_v47  ;;  %v12541_v48 = vsel %vm24_vm0, %v11926_v16, %v8337_v62  ;;  %v8358_v15 = vunpack.i.h.bf16 %v12094_v5  ;;  %v16462_v16 = vld [vmem:[#allocation8_spill] sm:$0xff]  ;;  %v12561_v5 = vsel %vm24_vm0, %v16463_v8, %v8348_v19  ;;  %v4023_v47 = vld [vmem:[#allocation2 + $0xb1] sm:$0xff]  ;;  %v16471_v43 = vld [vmem:[#allocation11_spill] sm:$0xff] }
 0x476   :  { %16459 = vst [vmem:[#allocation106_spill] sm:$0xff] %v12485_v4  ;;  %4324 = vrot.lane.b32.xlu0 %v4022_v25, %s9702_s19  ;;  %v12531_v25 = vsel %vm24_vm0, %v11932_v34, %v8338_v46  ;;  %v12548_v34 = vsel %vm24_vm0, %v11930_v51, %v8343_v44  ;;  %v12557_v30 = vsel %vm24_vm0, %v16462_v16, %v8342_v31  ;;  %v8367_v51 = vunpack.i.l.bf16 %v12102_v52  ;;  %v16464_v46 = vld [vmem:[#allocation12_spill] sm:$0xff]  ;;  %v16465_v44 = vld [vmem:[#allocation70_spill] sm:$0xff]  ;;  %v16467_v52 = vld [vmem:[#allocation69_spill] sm:$0xff] }
 0x477   :  { %4318 = vrot.lane.b32.xlu1 %v4019_v9, %s9702_s19  ;;  %v12567_v62 = vsel %vm24_vm0, %v16464_v46, %v8347_v22  ;;  %v8372_v31 = vunpack.i.l.bf16 %v12112_v53  ;;  %v12581_v8 = vsel %vm24_vm0, %v16467_v52, %v8352_v28  ;;  %v16469_v46 = vld [vmem:[#allocation19_spill] sm:$0xff]  ;;  %v8377_v53 = vunpack.i.l.bf16 %v12114_v0 }
 0x478   :  { %v12535_v6 = vpop.permute.xlu0 %8735  ;;  %v16472_v28 = vld [vmem:[#allocation75_spill] sm:$0xff]  ;;  %v8407_v4 = vunpack.i.l.bf16 %v12160_v61 }
 0x479   :  { %16460 = vst [vmem:[#allocation165_spill] sm:$0xff] %v12535_v6  ;;  %v12537_v9 = vpop.permute.xlu1 %8730  ;;  %v16468_v6 = vld [vmem:[#allocation73_spill] sm:$0xff]  ;;  %v12602_v52 = vsel %vm24_vm0, %v16472_v28, %v8368_v7 }
 0x47a   :  { %16461 = vst [vmem:[#allocation166_spill] sm:$0xff] %v12537_v9  ;;  %4328 = vrot.lane.b32.xlu0 %v4024_v3, %s9702_s19  ;;  %v8378_v3 = vunpack.i.h.bf16 %v12114_v0  ;;  %v12585_v22 = vsel %vm24_vm0, %v16468_v6, %v8358_v15  ;;  %v8388_v6 = vunpack.i.h.bf16 %v12128_v23  ;;  %v16473_v15 = vld [vmem:[#allocation74_spill] sm:$0xff]  ;;  %v4025_v7 = vld [vmem:[#allocation2 + $0xc9] sm:$0xff] }
 0x47b   :  { %4322 = vrot.lane.b32.xlu1 %v4021_v38, %s9702_s19  ;;  %v12571_v38 = vsel %vm24_vm0, %v16465_v44, %v8353_v39  ;;  %v12589_v39 = vsel %vm24_vm0, %v16469_v46, %v8357_v59  ;;  %v16470_v44 = vld [vmem:[#allocation20_spill] sm:$0xff]  ;;  %v12609_v0 = vsel %vm24_vm0, %v16473_v15, %v8367_v51  ;;  %v4028_v46 = vld [vmem:[#allocation2 + $0xf1] sm:$0xff]  ;;  %v8382_v51 = vunpack.i.l.bf16 %v12130_v60 }
 0x47c   :  { %v12575_v19 = vpop.permute.xlu0 %8745  ;;  %v12594_v9 = vsel %vm24_vm0, %v16470_v44, %v8363_v32  ;;  %v16474_v59 = vld [vmem:[#allocation16_spill] sm:$0xff]  ;;  %v16475_v44 = vld [vmem:[#allocation15_spill] sm:$0xff] }
 0x47d   :  { %v12577_v16 = vpop.permute.xlu1 %8740  ;;  %v12613_v32 = vsel %vm24_vm0, %v16474_v59, %v8373_v27  ;;  %v12619_v28 = vsel %vm24_vm0, %v16475_v44, %v8372_v31  ;;  %v8398_v59 = vunpack.i.h.bf16 %v12144_v58  ;;  %v8393_v31 = vunpack.i.h.bf16 %v12146_v11 }
 0x47e   :  { %16466 = vst [vmem:[#allocation27_spill] sm:$0xff] %v12577_v16  ;;  %v12598_v16 = vsel %vm24_vm0, %v16471_v43, %v8362_v36  ;;  %4332 = vrot.lane.b32.xlu0 %v4026_v13, %s9702_s19  ;;  %v8387_v43 = vunpack.i.l.bf16 %v12128_v23  ;;  %v8383_v36 = vunpack.i.h.bf16 %v12130_v60  ;;  %v8397_v13 = vunpack.i.l.bf16 %v12144_v58 }
 0x47f   :  { %4326 = vrot.lane.b32.xlu1 %v4023_v47, %s9702_s19  ;;  %v12623_v47 = vsel %vm24_vm0, %v12012_v49, %v8378_v3  ;;  %v12633_v23 = vsel %vm24_vm0, %v12006_v45, %v8377_v53  ;;  %v8392_v44 = vunpack.i.l.bf16 %v12146_v11  ;;  %v3726_v49 = vld [vmem:[%s15838_s4] sm:$0xff]  ;;  %v12643_v60 = vsel %vm1523_vm3, %v12470_v33, %v8388_v6 }
 0x480   :  { %v12627_v27 = vpop.permute.xlu0 %8755  ;;  %v8408_v3 = vunpack.i.h.bf16 %v12160_v61  ;;  %v8402_v45 = vunpack.i.l.bf16 %v12162_v37  ;;  %v12652_v58 = vsel %vm1523_vm3, %v12475_v14, %v8387_v43  ;;  %v12656_v11 = vsel %vm24_vm0, %v12010_v29, %v8383_v36  ;;  %v4027_v6 = vld [vmem:[#allocation2 + $0xe1] sm:$0xff]  ;;  %v4030_v61 = vld [vmem:[#allocation2 + $0x109] sm:$0xff]  ;;  %7955 = vmatprep.mubr.msk.f32.mxu1 %vm1770_vm10, %v3726_v49 }
 0x481   :  { %v12629_v15 = vpop.permute.xlu1 %8750  ;;  %v8403_v33 = vunpack.i.h.bf16 %v12162_v37  ;;  %v8417_v53 = vunpack.i.l.bf16 %v12176_v1  ;;  %v12667_v14 = vsel %vm1523_vm3, %v12493_v41, %v8397_v13  ;;  %v8418_v43 = vunpack.i.h.bf16 %v12176_v1 }
 0x482   :  { %4336 = vrot.lane.b32.xlu0 %v4028_v46, %s9702_s19  ;;  %v8412_v29 = vunpack.i.l.bf16 %v12178_v56  ;;  %v12677_v46 = vsel %vm1523_vm3, %v12497_v42, %v8398_v59  ;;  %v12685_v41 = vsel %vm1523_vm3, %v12489_v24, %v8393_v31  ;;  %v8413_v1 = vunpack.i.h.bf16 %v12178_v56 }
 0x483   :  { %4330 = vrot.lane.b32.xlu1 %v4025_v7, %s9702_s19  ;;  %v12663_v7 = vsel %vm24_vm0, %v12008_v20, %v8382_v51  ;;  %v12681_v20 = vsel %vm1523_vm3, %v12479_v57, %v8392_v44  ;;  %v12690_v51 = vsel %vm1523_vm3, %v12517_v21, %v8407_v4  ;;  %v12694_v13 = vsel %vm1523_vm3, %v12510_v35, %v8408_v3  ;;  %v4032_v21 = vld [vmem:[#allocation2 + $0x121] sm:$0xff] }
 0x484   :  { %v12671_v36 = vpop.permute.xlu0 %8765  ;;  %v12698_v42 = vsel %vm1523_vm3, %v12506_v10, %v8402_v45  ;;  %v8427_v57 = vunpack.i.l.bf16 %v12194_v55  ;;  %v12705_v56 = vsel %vm1523_vm3, %v12502_v2, %v8403_v33  ;;  %v12709_v4 = vsel %vm1523_vm3, %v12541_v48, %v8417_v53  ;;  %v4029_v10 = vld [vmem:[#allocation2 + $0xf9] sm:$0xff] }
 0x485   :  { %v12673_v37 = vpop.permute.xlu1 %8760  ;;  %v8428_v24 = vunpack.i.h.bf16 %v12194_v55  ;;  %v8422_v35 = vunpack.i.l.bf16 %v12196_v12  ;;  %v12715_v59 = vsel %vm1523_vm3, %v12531_v25, %v8418_v43  ;;  %v12719_v31 = vsel %vm1523_vm3, %v12527_v40, %v8412_v29  ;;  %v4031_v29 = vld [vmem:[#allocation2 + $0x111] sm:$0xff] }
 0x486   :  { %4340 = vrot.lane.b32.xlu0 %v4030_v61, %s9702_s19  ;;  %v8423_v2 = vunpack.i.h.bf16 %v12196_v12  ;;  %v8437_v44 = vunpack.i.l.bf16 %v12210_v54  ;;  %v12729_v55 = vsel %vm1523_vm3, %v12521_v63, %v8413_v1  ;;  %v8438_v3 = vunpack.i.h.bf16 %v12210_v54  ;;  %v16478_v12 = vld [vmem:[#allocation76_spill] sm:$0xff]  ;;  %v4034_v1 = vld [vmem:[#allocation2 + $0x139] sm:$0xff] }
 0x487   :  { %4334 = vrot.lane.b32.xlu1 %v4027_v6, %s9702_s19  ;;  %v8433_v25 = vunpack.i.h.bf16 %v12212_v50  ;;  %v8432_v45 = vunpack.i.l.bf16 %v12212_v50  ;;  %v12736_v40 = vsel %vm1523_vm3, %v12567_v62, %v8427_v57  ;;  %v8448_v33 = vunpack.i.h.bf16 %v16478_v12  ;;  %v16479_v6 = vld [vmem:[#allocation17_spill] sm:$0xff]  ;;  %v16481_v62 = vld [vmem:[#allocation18_spill] sm:$0xff] }
 0x488   :  { %v12723_v48 = vpop.permute.xlu0 %8775  ;;  %v8447_v53 = vunpack.i.l.bf16 %v16478_v12  ;;  %v8442_v61 = vunpack.i.l.bf16 %v16479_v6  ;;  %v12745_v54 = vsel %vm1523_vm3, %v12561_v5, %v8428_v24  ;;  %v12749_v50 = vsel %vm1523_vm3, %v12557_v30, %v8422_v35  ;;  %v16483_v24 = vld [vmem:[#allocation77_spill] sm:$0xff] }
 0x489   :  { %16476 = vst [vmem:[#allocation28_spill] sm:$0xff] %v12723_v48  ;;  %v12725_v49 = vpop.permute.xlu1 %8770  ;;  %16480 = vst [vmem:[#allocation42_spill] sm:$0xff] %v12749_v50  ;;  %v8443_v63 = vunpack.i.h.bf16 %v16479_v6  ;;  %v8457_v43 = vunpack.i.l.bf16 %v16481_v62  ;;  %v12755_v57 = vsel %vm1523_vm3, %v12548_v34, %v8423_v2  ;;  %v8458_v5 = vunpack.i.h.bf16 %v16481_v62  ;;  %v16501_v48 = vld [vmem:[#allocation29_spill] sm:$0xff] }
 0x48a   :  { %16477 = vst [vmem:[#allocation41_spill] sm:$0xff] %v12725_v49  ;;  %4344 = vrot.lane.b32.xlu0 %v4032_v21, %s9702_s19  ;;  %16482 = vst [vmem:[#allocation71_spill] sm:$0xff] %v12755_v57  ;;  %v8452_v21 = vunpack.i.l.bf16 %v16483_v24  ;;  %v12769_v12 = vsel %vm1523_vm3, %v12585_v22, %v8438_v3  ;;  %v12773_v34 = vsel %vm1523_vm3, %v12581_v8, %v8432_v45  ;;  %v8453_v2 = vunpack.i.h.bf16 %v16483_v24  ;;  %v16485_v8 = vld [vmem:[#allocation78_spill] sm:$0xff]  ;;  %v16490_v57 = vld [vmem:[#allocation135_spill] sm:$0xff] }
 0x48b   :  { %4338 = vrot.lane.b32.xlu1 %v4029_v10, %s9702_s19  ;;  %v12759_v10 = vsel %vm1523_vm3, %v12589_v39, %v8437_v44  ;;  %v12777_v39 = vsel %vm1523_vm3, %v12571_v38, %v8433_v25  ;;  %v12782_v44 = vsel %vm1523_vm3, %v12609_v0, %v8447_v53  ;;  %v12786_v6 = vsel %vm1523_vm3, %v12602_v52, %v8448_v33  ;;  %v16486_v25 = vld [vmem:[#allocation21_spill] sm:$0xff] }
 0x48c   :  { %v12763_v30 = vpop.permute.xlu0 %8785  ;;  %v12790_v22 = vsel %vm1523_vm3, %v12598_v16, %v8442_v61  ;;  %v8468_v3 = vunpack.i.h.bf16 %v16485_v8  ;;  %v12797_v38 = vsel %vm1523_vm3, %v12594_v9, %v8443_v63  ;;  %v12801_v0 = vsel %vm1523_vm3, %v12633_v23, %v8457_v43  ;;  %v4033_v16 = vld [vmem:[#allocation2 + $0x129] sm:$0xff]  ;;  %v4036_v33 = vld [vmem:[#allocation2 + $0x151] sm:$0xff] }
 0x48d   :  { %v12765_v35 = vpop.permute.xlu1 %8780  ;;  %v8467_v52 = vunpack.i.l.bf16 %v16485_v8  ;;  %v8462_v45 = vunpack.i.l.bf16 %v16486_v25  ;;  %v12807_v53 = vsel %vm1523_vm3, %v12623_v47, %v8458_v5  ;;  %v12811_v61 = vsel %vm1523_vm3, %v12619_v28, %v8452_v21  ;;  %v16487_v63 = vld [vmem:[#allocation22_spill] sm:$0xff]  ;;  %v16488_v47 = vld [vmem:[#allocation25_spill] sm:$0xff] }
 0x48e   :  { %16484 = vst [vmem:[#allocation72_spill] sm:$0xff] %v12765_v35  ;;  %4348 = vrot.lane.b32.xlu0 %v4034_v1, %s9702_s19  ;;  %v8463_v9 = vunpack.i.h.bf16 %v16486_v25  ;;  %v8478_v62 = vunpack.i.h.bf16 %v16487_v63  ;;  %v8477_v1 = vunpack.i.l.bf16 %v16487_v63  ;;  %v8473_v5 = vunpack.i.h.bf16 %v16488_v47  ;;  %v16489_v21 = vld [vmem:[#allocation26_spill] sm:$0xff] }
 0x48f   :  { %4342 = vrot.lane.b32.xlu1 %v4031_v29, %s9702_s19  ;;  %v12821_v29 = vsel %vm1523_vm3, %v12613_v32, %v8453_v2  ;;  %v8472_v24 = vunpack.i.l.bf16 %v16488_v47  ;;  %v12828_v28 = vsel %vm1556_vm4, %v12643_v60, %v8468_v3  ;;  %v8488_v8 = vunpack.i.h.bf16 %v16489_v21  ;;  %v16491_v3 = vld [vmem:[#allocation136_spill] sm:$0xff] }
 0x490   :  { %v12815_v23 = vpop.permute.xlu0 %8795  ;;  %v8487_v25 = vunpack.i.l.bf16 %v16489_v21  ;;  %v8482_v50 = vunpack.i.l.bf16 %v16490_v57  ;;  %v12837_v32 = vsel %vm1556_vm4, %v12652_v58, %v8467_v52  ;;  %v12841_v2 = vsel %vm1523_vm3, %v12663_v7, %v8462_v45  ;;  %v4035_v47 = vld [vmem:[#allocation2 + $0x141] sm:$0xff]  ;;  %v4038_v21 = vld [vmem:[#allocation2 + $0x169] sm:$0xff] }
 0x491   :  { %v12817_v43 = vpop.permute.xlu1 %8790  ;;  %v8483_v60 = vunpack.i.h.bf16 %v16490_v57  ;;  %v8498_v63 = vunpack.i.h.bf16 %v16491_v3  ;;  %v12847_v35 = vsel %vm1523_vm3, %v12656_v11, %v8463_v9  ;;  %v8497_v58 = vunpack.i.l.bf16 %v16491_v3  ;;  %v16492_v52 = vld [vmem:[#allocation99_spill] sm:$0xff] }
 0x492   :  { %4352 = vrot.lane.b32.xlu0 %v4036_v33, %s9702_s19  ;;  %v8492_v33 = vunpack.i.l.bf16 %v16492_v52  ;;  %v12861_v57 = vsel %vm1556_vm4, %v12667_v14, %v8477_v1  ;;  %v12865_v11 = vsel %vm1556_vm4, %v12681_v20, %v8472_v24  ;;  %v8493_v9 = vunpack.i.h.bf16 %v16492_v52  ;;  %v4040_v24 = vld [vmem:[#allocation2 + $0x2] sm:$0xff] }
 0x493   :  { %4346 = vrot.lane.b32.xlu1 %v4033_v16, %s9702_s19  ;;  %v12851_v16 = vsel %vm1556_vm4, %v12677_v46, %v8478_v62  ;;  %v12869_v46 = vsel %vm1556_vm4, %v12685_v41, %v8473_v5  ;;  %v12874_v62 = vsel %vm1556_vm4, %v12694_v13, %v8488_v8  ;;  %v12878_v3 = vsel %vm1556_vm4, %v12690_v51, %v8487_v25  ;;  %v16494_v13 = vld [vmem:[#allocation100_spill] sm:$0xff]  ;;  %v4037_v5 = vld [vmem:[#allocation2 + $0x159] sm:$0xff] }
 0x494   :  { %v12855_v7 = vpop.permute.xlu0 %8805  ;;  %v12882_v14 = vsel %vm1556_vm4, %v12698_v42, %v8482_v50  ;;  %v12888_v20 = vsel %vm1556_vm4, %v12705_v56, %v8483_v60  ;;  %v12892_v41 = vsel %vm1556_vm4, %v12715_v59, %v8498_v63  ;;  %v8508_v1 = vunpack.i.h.bf16 %v16494_v13  ;;  %v16495_v56 = vld [vmem:[#allocation160_spill] sm:$0xff] }
 0x495   :  { %16493 = vst [vmem:[#allocation85_spill] sm:$0xff] %v12855_v7  ;;  %v12857_v45 = vpop.permute.xlu1 %8800  ;;  %v8507_v51 = vunpack.i.l.bf16 %v16494_v13  ;;  %v12898_v42 = vsel %vm1556_vm4, %v12709_v4, %v8497_v58  ;;  %v12902_v50 = vsel %vm1556_vm4, %v12719_v31, %v8492_v33  ;;  %v8518_v8 = vunpack.i.h.bf16 %v16495_v56  ;;  %v16499_v4 = vld [vmem:[#allocation9_spill] sm:$0xff]  ;;  %v16500_v33 = vld [vmem:[#allocation10_spill] sm:$0xff] }
 0x496   :  { %4356 = vrot.lane.b32.xlu0 %v4038_v21, %s9702_s19  ;;  %v8517_v25 = vunpack.i.l.bf16 %v16495_v56  ;;  %v12912_v63 = vsel %vm1556_vm4, %v12729_v55, %v8493_v9  ;;  %v8513_v58 = vunpack.i.h.bf16 %v16499_v4  ;;  %v8512_v52 = vunpack.i.l.bf16 %v16499_v4  ;;  %v16502_v21 = vld [vmem:[#allocation30_spill] sm:$0xff] }
 0x497   :  { %4350 = vrot.lane.b32.xlu1 %v4035_v47, %s9702_s19  ;;  %v8528_v13 = vunpack.i.h.bf16 %v16500_v33  ;;  %v8527_v56 = vunpack.i.l.bf16 %v16500_v33  ;;  %v12925_v55 = vsel %vm1556_vm4, %v12745_v54, %v8508_v1  ;;  %v12929_v9 = vsel %vm1556_vm4, %v12736_v40, %v8507_v51  ;;  %v4039_v47 = vld [vmem:[#allocation2 + $0x171] sm:$0xff]  ;;  %v4042_v33 = vld [vmem:[#allocation2 + $0x1a] sm:$0xff] }
 0x498   :  { %v12906_v59 = vpop.permute.xlu0 %8815  ;;  %v8523_v4 = vunpack.i.h.bf16 %v16501_v48  ;;  %v8538_v31 = vunpack.i.h.bf16 %v16502_v21  ;;  %v8537_v54 = vunpack.i.l.bf16 %v16502_v21  ;;  %v16503_v1 = vld [vmem:[#allocation59_spill] sm:$0xff]  ;;  %v16509_v7 = vld [vmem:[#allocation138_spill] sm:$0xff] }
 0x499   :  { %16496 = vst [vmem:[#allocation86_spill] sm:$0xff] %v12906_v59  ;;  %v12908_v60 = vpop.permute.xlu1 %8810  ;;  %v8522_v59 = vunpack.i.l.bf16 %v16501_v48  ;;  %v12949_v48 = vsel %vm1556_vm4, %v12773_v34, %v8512_v52  ;;  %v12963_v21 = vsel %vm1556_vm4, %v12782_v44, %v8527_v56  ;;  %v8548_v52 = vunpack.i.h.bf16 %v12348_v26  ;;  %v16505_v44 = vld [vmem:[#allocation60_spill] sm:$0xff] }
 0x49a   :  { %16497 = vst [vmem:[#allocation143_spill] sm:$0xff] %v12908_v60  ;;  %4424 = vrot.lane.b32.xlu0 %v4040_v24, %s9703_s14  ;;  %v12935_v60 = vsel %vm1556_vm4, %v12769_v12, %v8518_v8  ;;  %v8532_v24 = vunpack.i.l.bf16 %v16503_v1  ;;  %v12953_v12 = vsel %vm1556_vm4, %v12777_v39, %v8513_v58  ;;  %v8533_v8 = vunpack.i.h.bf16 %v16503_v1 }
 0x49b   :  { %4354 = vrot.lane.b32.xlu1 %v4037_v5, %s9702_s19  ;;  %v12939_v5 = vsel %vm1556_vm4, %v12759_v10, %v8517_v25  ;;  %v8547_v10 = vunpack.i.l.bf16 %v12348_v26  ;;  %v12959_v25 = vsel %vm1556_vm4, %v12786_v6, %v8528_v13  ;;  %v12967_v34 = vsel %vm1556_vm4, %v12790_v22, %v8522_v59  ;;  %v4041_v22 = vld [vmem:[#allocation2 + $0xa] sm:$0xff]  ;;  %v4044_v59 = vld [vmem:[#allocation2 + $0x32] sm:$0xff] }
 0x49c   :  { %v12943_v40 = vpop.permute.xlu0 %8825  ;;  %v12974_v39 = vsel %vm1556_vm4, %v12797_v38, %v8523_v4  ;;  %v12978_v6 = vsel %vm1556_vm4, %v12807_v53, %v8538_v31  ;;  %v8543_v58 = vunpack.i.h.bf16 %v16505_v44  ;;  %v8542_v13 = vunpack.i.l.bf16 %v16505_v44  ;;  %v16506_v38 = vld [vmem:[#allocation79_spill] sm:$0xff]  ;;  %v16508_v44 = vld [vmem:[#allocation137_spill] sm:$0xff] }
 0x49d   :  { %v12945_v51 = vpop.permute.xlu1 %8820  ;;  %v12984_v26 = vsel %vm1556_vm4, %v12801_v0, %v8537_v54  ;;  %v8558_v56 = vunpack.i.h.bf16 %v16506_v38  ;;  %v8557_v4 = vunpack.i.l.bf16 %v16506_v38  ;;  %v13002_v0 = vsel %vm1589_vm5, %v12837_v32, %v8547_v10  ;;  %v16507_v54 = vld [vmem:[#allocation80_spill] sm:$0xff] }
 0x49e   :  { %16504 = vst [vmem:[#allocation144_spill] sm:$0xff] %v12945_v51  ;;  %4428 = vrot.lane.b32.xlu0 %v4042_v33, %s9703_s14  ;;  %v12998_v33 = vsel %vm1556_vm4, %v12821_v29, %v8533_v8  ;;  %v8553_v1 = vunpack.i.h.bf16 %v16507_v54  ;;  %v8568_v38 = vunpack.i.h.bf16 %v16508_v44  ;;  %v8567_v51 = vunpack.i.l.bf16 %v16508_v44  ;;  %v16510_v8 = vld [vmem:[#allocation101_spill] sm:$0xff] }
 0x49f   :  { %4358 = vrot.lane.b32.xlu1 %v4039_v47, %s9702_s19  ;;  %v12988_v47 = vsel %vm1556_vm4, %v12811_v61, %v8532_v24  ;;  %v8552_v61 = vunpack.i.l.bf16 %v16507_v54  ;;  %v13008_v24 = vsel %vm1589_vm5, %v12828_v28, %v8548_v52  ;;  %v8562_v49 = vunpack.i.l.bf16 %v16509_v7  ;;  %v4043_v52 = vld [vmem:[#allocation2 + $0x22] sm:$0xff]  ;;  %v4046_v54 = vld [vmem:[#allocation2 + $0x4a] sm:$0xff] }
 0x4a0   :  { %v12992_v53 = vpop.permute.xlu0 %8835  ;;  %v13017_v29 = vsel %vm1556_vm4, %v12841_v2, %v8542_v13  ;;  %v13021_v32 = vsel %vm1556_vm4, %v12847_v35, %v8543_v58  ;;  %v8563_v28 = vunpack.i.h.bf16 %v16509_v7  ;;  %v8577_v10 = vunpack.i.l.bf16 %v16510_v8  ;;  %v16511_v13 = vld [vmem:[#allocation102_spill] sm:$0xff] }
 0x4a1   :  { %v12994_v31 = vpop.permute.xlu1 %8830  ;;  %v13027_v44 = vsel %vm1589_vm5, %v12861_v57, %v8557_v4  ;;  %v8578_v2 = vunpack.i.h.bf16 %v16510_v8  ;;  %v13041_v7 = vsel %vm1589_vm5, %v12865_v11, %v8552_v61  ;;  %v13045_v57 = vsel %vm1589_vm5, %v12869_v46, %v8553_v1 }
 0x4a2   :  { %4432 = vrot.lane.b32.xlu0 %v4044_v59, %s9703_s14  ;;  %v8572_v59 = vunpack.i.l.bf16 %v16511_v13  ;;  %v8573_v4 = vunpack.i.h.bf16 %v16511_v13  ;;  %v13051_v8 = vsel %vm1589_vm5, %v12878_v3, %v8567_v51  ;;  %v13059_v11 = vsel %vm1589_vm5, %v12882_v14, %v8562_v49  ;;  %v4045_v49 = vld [vmem:[#allocation2 + $0x3a] sm:$0xff]  ;;  %v4048_v14 = vld [vmem:[#allocation2 + $0x62] sm:$0xff] }
 0x4a3   :  { %4426 = vrot.lane.b32.xlu1 %v4041_v22, %s9703_s14  ;;  %v13031_v22 = vsel %vm1589_vm5, %v12851_v16, %v8558_v56  ;;  %v16513_v16 = vld [vmem:[#allocation161_spill] sm:$0xff]  ;;  %v13066_v46 = vsel %vm1589_vm5, %v12888_v20, %v8563_v28  ;;  %v13070_v3 = vsel %vm1589_vm5, %v12898_v42, %v8577_v10  ;;  %v16517_v20 = vld [vmem:[#allocation14_spill] sm:$0xff] }
 0x4a4   :  { %v13035_v35 = vpop.permute.xlu0 %8845  ;;  %v8587_v56 = vunpack.i.l.bf16 %v16513_v16  ;;  %v8588_v61 = vunpack.i.h.bf16 %v16513_v16  ;;  %v8593_v28 = vunpack.i.h.bf16 %v16517_v20  ;;  %v13090_v13 = vsel %vm1589_vm5, %v12912_v63, %v8573_v4  ;;  %v16523_v4 = vld [vmem:[#allocation64_spill] sm:$0xff] }
 0x4a5   :  { %16512 = vst [vmem:[#allocation107_spill] sm:$0xff] %v13035_v35  ;;  %v13037_v58 = vpop.permute.xlu1 %8840  ;;  %v13055_v35 = vsel %vm1589_vm5, %v12874_v62, %v8568_v38  ;;  %v16514_v62 = vld [vmem:[#allocation13_spill] sm:$0xff]  ;;  %v13076_v38 = vsel %vm1589_vm5, %v12892_v41, %v8578_v2  ;;  %16519 = vst [vmem:[#allocation31_spill] sm:$0xff] %v13090_v13 }
 0x4a6   :  { %4436 = vrot.lane.b32.xlu0 %v4046_v54, %s9703_s14  ;;  %v8598_v51 = vunpack.i.h.bf16 %v16514_v62  ;;  %v8597_v1 = vunpack.i.l.bf16 %v16514_v62  ;;  %16515 = vst [vmem:[#allocation108_spill] sm:$0xff] %v13076_v38  ;;  %v8592_v54 = vunpack.i.l.bf16 %v16517_v20  ;;  %v13094_v41 = vsel %vm1589_vm5, %v12929_v9, %v8587_v56  ;;  %v16520_v2 = vld [vmem:[#allocation33_spill] sm:$0xff]  ;;  %v16521_v62 = vld [vmem:[#allocation34_spill] sm:$0xff] }
 0x4a7   :  { %4430 = vrot.lane.b32.xlu1 %v4043_v52, %s9703_s14  ;;  %v13080_v52 = vsel %vm1589_vm5, %v12902_v50, %v8572_v59  ;;  %v8608_v16 = vunpack.i.h.bf16 %v16520_v2  ;;  %v8607_v50 = vunpack.i.l.bf16 %v16520_v2  ;;  %v13100_v59 = vsel %vm1589_vm5, %v12925_v55, %v8588_v61  ;;  %v4047_v61 = vld [vmem:[#allocation2 + $0x52] sm:$0xff]  ;;  %v4050_v2 = vld [vmem:[#allocation2 + $0x7a] sm:$0xff] }
 0x4a8   :  { %16516 = vst [vmem:[#allocation167_spill] sm:$0xff] %v13080_v52  ;;  %v13084_v42 = vpop.permute.xlu0 %8855  ;;  %v8603_v20 = vunpack.i.h.bf16 %v16521_v62  ;;  %v8602_v38 = vunpack.i.l.bf16 %v16521_v62  ;;  %v13109_v63 = vsel %vm1589_vm5, %v12939_v5, %v8597_v1  ;;  %v13113_v9 = vsel %vm1589_vm5, %v12935_v60, %v8598_v51 }
 0x4a9   :  { %16518 = vst [vmem:[#allocation168_spill] sm:$0xff] %v13084_v42  ;;  %v13086_v10 = vpop.permute.xlu1 %8850  ;;  %v16522_v42 = vld [vmem:[#allocation63_spill] sm:$0xff]  ;;  %v8612_v56 = vunpack.i.l.bf16 %v16523_v4  ;;  %v13119_v62 = vsel %vm1589_vm5, %v12949_v48, %v8592_v54  ;;  %v8613_v5 = vunpack.i.h.bf16 %v16523_v4  ;;  %v8627_v1 = vunpack.i.l.bf16 %v12397_v17 }
 0x4aa   :  { %v8617_v52 = vunpack.i.l.bf16 %v16522_v42  ;;  %4440 = vrot.lane.b32.xlu0 %v4048_v14, %s9703_s14  ;;  %v8618_v55 = vunpack.i.h.bf16 %v16522_v42  ;;  %v13133_v14 = vsel %vm1589_vm5, %v12963_v21, %v8607_v50  ;;  %v13137_v48 = vsel %vm1589_vm5, %v12959_v25, %v8608_v16 }
 0x4ab   :  { %4434 = vrot.lane.b32.xlu1 %v4045_v49, %s9703_s14  ;;  %v13123_v49 = vsel %vm1589_vm5, %v12953_v12, %v8593_v28  ;;  %v8628_v54 = vunpack.i.h.bf16 %v12397_v17  ;;  %v8622_v12 = vunpack.i.l.bf16 %v12399_v18  ;;  %v13143_v28 = vsel %vm1589_vm5, %v12967_v34, %v8602_v38  ;;  %v16527_v34 = vld [vmem:[#allocation81_spill] sm:$0xff] }
 0x4ac   :  { %v13127_v60 = vpop.permute.xlu0 %8865  ;;  %v13147_v42 = vsel %vm1589_vm5, %v12974_v39, %v8603_v20  ;;  %v13151_v21 = vsel %vm1589_vm5, %v12984_v26, %v8617_v52  ;;  %v8623_v50 = vunpack.i.h.bf16 %v12399_v18  ;;  %v13158_v17 = vsel %vm1589_vm5, %v12978_v6, %v8618_v55  ;;  %v4049_v26 = vld [vmem:[#allocation2 + $0x6a] sm:$0xff]  ;;  %v4052_v52 = vld [vmem:[#allocation2 + $0x92] sm:$0xff] }
 0x4ad   :  { %v13129_v51 = vpop.permute.xlu1 %8860  ;;  %16525 = vst [vmem:[#allocation45_spill] sm:$0xff] %v13151_v21  ;;  %16526 = vst [vmem:[#allocation46_spill] sm:$0xff] %v13158_v17  ;;  %v13162_v25 = vsel %vm1589_vm5, %v12988_v47, %v8612_v56  ;;  %v8638_v39 = vunpack.i.h.bf16 %v16527_v34  ;;  %v8637_v38 = vunpack.i.l.bf16 %v16527_v34  ;;  %v13168_v18 = vsel %vm1589_vm5, %v12998_v33, %v8613_v5  ;;  %v16528_v20 = vld [vmem:[#allocation82_spill] sm:$0xff]  ;;  %v16530_v33 = vld [vmem:[#allocation139_spill] sm:$0xff] }
 0x4ae   :  { %16524 = vst [vmem:[#allocation32_spill] sm:$0xff] %v13129_v51  ;;  %4444 = vrot.lane.b32.xlu0 %v4050_v2, %s9703_s14  ;;  %v3598_v16 = vsel %vm1622_vm6, %v13002_v0, %v8627_v1  ;;  %v8633_v6 = vunpack.i.h.bf16 %v16528_v20  ;;  %v8632_v55 = vunpack.i.l.bf16 %v16528_v20  ;;  %v3599_v56 = vsel %vm1622_vm6, %v13008_v24, %v8628_v54  ;;  %v16532_v1 = vld [vmem:[#allocation140_spill] sm:$0xff]  ;;  %v16533_v20 = vld [vmem:[#allocation163_spill] sm:$0xff] }
 0x4af   :  { %4438 = vrot.lane.b32.xlu1 %v4047_v61, %s9703_s14  ;;  %v13182_v61 = vsel %vm1589_vm5, %v13017_v29, %v8622_v12  ;;  %v8648_v2 = vunpack.i.h.bf16 %v16530_v33  ;;  %v8647_v5 = vunpack.i.l.bf16 %v16530_v33  ;;  %v13188_v0 = vsel %vm1589_vm5, %v13021_v32, %v8623_v50  ;;  %v16534_v32 = vld [vmem:[#allocation23_spill] sm:$0xff]  ;;  %v4054_v33 = vld [vmem:[#allocation2 + $0xaa] sm:$0xff] }
 0x4b0   :  { %v13174_v4 = vpop.permute.xlu0 %8875  ;;  %16529 = vst [vmem:[#allocation121_spill] sm:$0xff] %v13182_v61  ;;  %16531 = vst [vmem:[#allocation122_spill] sm:$0xff] %v13188_v0  ;;  %v8642_v34 = vunpack.i.l.bf16 %v16532_v1  ;;  %v8668_v51 = vunpack.i.h.bf16 %v16533_v20  ;;  %v8667_v17 = vunpack.i.l.bf16 %v16533_v20  ;;  %v13197_v24 = vsel %vm1622_vm6, %v13027_v44, %v8637_v38  ;;  %v4051_v50 = vld [vmem:[#allocation2 + $0x82] sm:$0xff] }
 0x4b1   :  { %v13176_v47 = vpop.permute.xlu1 %8870  ;;  %v13201_v29 = vsel %vm1622_vm6, %v13031_v22, %v8638_v39  ;;  %v8678_v54 = vunpack.i.h.bf16 %v16534_v32  ;;  %v8677_v12 = vunpack.i.l.bf16 %v16534_v32  ;;  %v13207_v20 = vsel %vm1622_vm6, %v13041_v7, %v8632_v55  ;;  %v16535_v44 = vld [vmem:[#allocation24_spill] sm:$0xff]  ;;  %v16536_v55 = vld [vmem:[#allocation83_spill] sm:$0xff] }
 0x4b2   :  { %4448 = vrot.lane.b32.xlu0 %v4052_v52, %s9703_s14  ;;  %v8673_v38 = vunpack.i.h.bf16 %v16535_v44  ;;  %v8672_v52 = vunpack.i.l.bf16 %v16535_v44  ;;  %v13221_v32 = vsel %vm1622_vm6, %v13051_v8, %v8647_v5  ;;  %v13225_v7 = vsel %vm1622_vm6, %v13055_v35, %v8648_v2 }
 0x4b3   :  { %4442 = vrot.lane.b32.xlu1 %v4049_v26, %s9703_s14  ;;  %v13211_v26 = vsel %vm1622_vm6, %v13045_v57, %v8633_v6  ;;  %v8708_v0 = vunpack.i.h.bf16 %v16536_v55  ;;  %v8707_v57 = vunpack.i.l.bf16 %v16536_v55  ;;  %v13232_v44 = vsel %vm1622_vm6, %v13059_v11, %v8642_v34 }
 0x4b4   :  { %v13215_v22 = vpop.permute.xlu0 %8885  ;;  %v3614_v21 = vsel %vm1622_vm6, %v13094_v41, %v8667_v17  ;;  %v3615_v8 = vsel %vm1622_vm6, %v13100_v59, %v8668_v51  ;;  %v13242_v35 = vsel %vm1622_vm6, %v13109_v63, %v8677_v12  ;;  %v13246_v2 = vsel %vm1622_vm6, %v13113_v9, %v8678_v54  ;;  %v4053_v41 = vld [vmem:[#allocation2 + $0x9a] sm:$0xff]  ;;  %v4056_v17 = vld [vmem:[#allocation2 + $0xc2] sm:$0xff] }
 0x4b5   :  { %v13217_v39 = vpop.permute.xlu1 %8880  ;;  %v8748_v11 = vunpack.i.h.bf16 %v12575_v19  ;;  %v8747_v5 = vunpack.i.l.bf16 %v12575_v19  ;;  %v3616_v59 = vsel %vm1622_vm6, %v13119_v62, %v8672_v52  ;;  %v3617_v51 = vsel %vm1622_vm6, %v13123_v49, %v8673_v38  ;;  %v16539_v62 = vld [vmem:[#allocation142_spill] sm:$0xff] }
 0x4b6   :  { %4452 = vrot.lane.b32.xlu0 %v4054_v33, %s9703_s14  ;;  %v8788_v34 = vunpack.i.h.bf16 %v12763_v30  ;;  %v8787_v63 = vunpack.i.l.bf16 %v12763_v30  ;;  %v3630_v54 = vsel %vm1655_vm7, %v3598_v16, %v8707_v57  ;;  %v3631_v19 = vsel %vm1655_vm7, %v3599_v56, %v8708_v0  ;;  %v4055_v0 = vld [vmem:[#allocation2 + $0xb2] sm:$0xff]  ;;  %v4058_v57 = vld [vmem:[#allocation2 + $0xda] sm:$0xff] }
 0x4b7   :  { %4446 = vrot.lane.b32.xlu1 %v4051_v50, %s9703_s14  ;;  %v8828_v50 = vunpack.i.h.bf16 %v12943_v40  ;;  %v8827_v33 = vunpack.i.l.bf16 %v12943_v40  ;;  %v8713_v52 = vunpack.i.h.bf16 %v16539_v62  ;;  %v8712_v49 = vunpack.i.l.bf16 %v16539_v62 }
 0x4b8   :  { %v13256_v12 = vpop.permute.xlu0 %8895  ;;  %v8868_v38 = vunpack.i.h.bf16 %v13127_v60  ;;  %v8867_v30 = vunpack.i.l.bf16 %v13127_v60  ;;  %v8753_v16 = vunpack.i.h.bf16 %v12629_v15  ;;  %v8752_v56 = vunpack.i.l.bf16 %v12629_v15 }
 0x4b9   :  { %16538 = vst [vmem:[#allocation87_spill] sm:$0xff] %v13256_v12  ;;  %v13258_v9 = vpop.permute.xlu1 %8890  ;;  %v3646_v55 = vsel %vm1655_vm7, %v3614_v21, %v8747_v5  ;;  %v3647_v40 = vsel %vm1655_vm7, %v3615_v8, %v8748_v11  ;;  %v8758_v62 = vunpack.i.h.bf16 %v12627_v27  ;;  %v8757_v61 = vunpack.i.l.bf16 %v12627_v27 }
 0x4ba   :  { %4456 = vrot.lane.b32.xlu0 %v4056_v17, %s9703_s14  ;;  %v3663_v17 = vsel %vm1688_vm8, %v3631_v19, %v8788_v34  ;;  %v3678_v15 = vsel %vm1688_vm8, %v3646_v55, %v8827_v33  ;;  %v3679_v21 = vsel %vm1688_vm8, %v3647_v40, %v8828_v50  ;;  %v8833_v8 = vunpack.i.h.bf16 %v12994_v31  ;;  %v13298_v19 = vld [vmem:[#allocation2 + $0xca] sm:$0xff] }
 0x4bb   :  { %4450 = vrot.lane.b32.xlu1 %v4053_v41, %s9703_s14  ;;  %v3662_v41 = vsel %vm1688_vm8, %v3630_v54, %v8787_v63  ;;  %v8832_v11 = vunpack.i.l.bf16 %v12994_v31  ;;  %v3695_v5 = vsel %vm1721_vm9, %v3663_v17, %v8868_v38  ;;  %v3648_v34 = vsel %vm1655_vm7, %v3616_v59, %v8752_v56 }
 0x4bc   :  { %v8906_v6 = vpop.permute.xlu0 %8905  ;;  %v3694_v27 = vsel %vm1721_vm9, %v3662_v41, %v8867_v30  ;;  %v16540_v31 = vmov 0  ;;  %v8793_v50 = vunpack.i.h.bf16 %v12817_v43  ;;  %v8792_v33 = vunpack.i.l.bf16 %v12817_v43 }
 0x4bd   :  { %v13276_v60 = vpop.permute.xlu1 %8900  ;;  %v8908_v12 = vunpack.i.h.bf16 %v8906_v6  ;;  %v8907_v13 = vunpack.i.l.bf16 %v8906_v6  ;;  %v3649_v6 = vsel %vm1655_vm7, %v3617_v51, %v8753_v16  ;;  %v16541_v31 = vsel %vm13294_vm11, 4294967295, %v16540_v31 }
 0x4be   :  { %4460 = vrot.lane.b32.xlu0 %v4058_v57, %s9703_s14  ;;  %16542 = vst [vmem:[#allocation88_spill] sm:$0xff] %v16541_v31  ;;  %v8838_v59 = vunpack.i.h.bf16 %v12992_v53  ;;  %v8183_v56 = vpack.c.bf16 %v3695_v5, %v3694_v27  ;;  %v3680_v55 = vsel %vm1688_vm8, %v3648_v34, %v8832_v11  ;;  %v3681_v40 = vsel %vm1688_vm8, %v3649_v6, %v8833_v8  ;;  %v4002_v31 = vld [vmem:[#allocation2 + $0x138] sm:$0xff] }
 0x4bf   :  { %4454 = vrot.lane.b32.xlu1 %v4055_v0, %s9703_s14  ;;  %v3710_v63 = vsel %vm1721_vm9, %v3678_v15, %v8907_v13  ;;  %v3711_v54 = vsel %vm1721_vm9, %v3679_v21, %v8908_v12  ;;  %v8837_v13 = vunpack.i.l.bf16 %v12992_v53  ;;  %v13304_v0 = vld [vmem:[#allocation2 + $0xf2] sm:$0xff]  ;;  %v8873_v57 = vunpack.i.h.bf16 %v13176_v47  ;;  %v13318_v21 = vld [vmem:[#allocation2 + $0xe2] sm:$0xff] }
 0x4c0   :  { %v8916_v38 = vpop.permute.xlu0 %8915  ;;  %v8180_v30 = vpack.c.bf16 %v3711_v54, %v3710_v63  ;;  %v8872_v43 = vunpack.i.l.bf16 %v13176_v47  ;;  %v3632_v47 = vsel %vm1655_vm7, %v13207_v20, %v8712_v49  ;;  %v3633_v8 = vsel %vm1655_vm7, %v13211_v26, %v8713_v52  ;;  %v13335_v49 = vld [vmem:[#allocation2 + $0x10a] sm:$0xff] }
 0x4c1   :  { %v8911_v51 = vpop.permute.xlu1 %8910  ;;  %v8918_v53 = vunpack.i.h.bf16 %v8916_v38  ;;  %v8917_v41 = vunpack.i.l.bf16 %v8916_v38  ;;  %v3650_v11 = vsel %vm1655_vm7, %v13242_v35, %v8757_v61  ;;  %v3651_v34 = vsel %vm1655_vm7, %v13246_v2, %v8758_v62  ;;  %v16543_v2 = vld [vmem:[#allocation38_spill] sm:$0xff] }
 0x4c2   :  { %v8913_v12 = vunpack.i.h.bf16 %v8911_v51  ;;  %v8912_v16 = vunpack.i.l.bf16 %v8911_v51  ;;  %8182 = vmatprep.subr.msk.bf16.mxu1 %vm13294_vm11, %v8180_v30  ;;  %4464 = vrot.lane.b32.xlu0 %v13304_v0, %s9703_s14  ;;  %v3664_v6 = vsel %vm1688_vm8, %v3632_v47, %v8792_v33  ;;  %v3665_v63 = vsel %vm1688_vm8, %v3633_v8, %v8793_v50  ;;  %v13349_v33 = vld [vmem:[#allocation2 + $0xfa] sm:$0xff] }
 0x4c3   :  { %4458 = vrot.lane.b32.xlu1 %v13298_v19, %s9703_s14  ;;  %8185 = vmatpush3.bf16.xpose.msk.msra.mxu1 %vm13294_vm11, %v8183_v56  ;;  %v3682_v20 = vsel %vm1688_vm8, %v3650_v11, %v8837_v13  ;;  %v8643_v26 = vunpack.i.h.bf16 %v16532_v1  ;;  %v3683_v61 = vsel %vm1688_vm8, %v3651_v34, %v8838_v59  ;;  %v3696_v35 = vsel %vm1721_vm9, %v3664_v6, %v8872_v43  ;;  %v16544_v59 = vld [vmem:[#allocation141_spill] sm:$0xff] }
 0x4c4   :  { %v3712_v17 = vsel %vm1721_vm9, %v3680_v55, %v8912_v16  ;;  %v3713_v15 = vsel %vm1721_vm9, %v3681_v40, %v8913_v12  ;;  %v3697_v52 = vsel %vm1721_vm9, %v3665_v63, %v8873_v57  ;;  %v8683_v62 = vunpack.i.h.bf16 %v16543_v2  ;;  %v13362_v57 = vld [vmem:[#allocation2 + $0x122] sm:$0xff] }
 0x4c5   :  { %v13326_v27 = vpop.permute.xlu1 %8920  ;;  %v8186_v5 = vpack.c.bf16 %v3713_v15, %v3712_v17  ;;  %v8682_v54 = vunpack.i.l.bf16 %v16543_v2  ;;  %v3714_v50 = vsel %vm1721_vm9, %v3682_v20, %v8917_v41  ;;  %v3715_v1 = vsel %vm1721_vm9, %v3683_v61, %v8918_v53  ;;  %v16546_v61 = vld [vmem:[#allocation37_spill] sm:$0xff]  ;;  %v8926_v2 = vpop.permute.xlu0 %8925 }
 0x4c6   :  { %v8718_v38 = vunpack.i.h.bf16 %v16544_v59  ;;  %v8717_v51 = vunpack.i.l.bf16 %v16544_v59  ;;  %v8763_v30 = vunpack.i.h.bf16 %v12673_v37  ;;  %v8762_v13 = vunpack.i.l.bf16 %v12673_v37  ;;  %4468 = vrot.lane.b32.xlu0 %v13335_v49, %s9703_s14 }
 0x4c7   :  { %4462 = vrot.lane.b32.xlu1 %v13318_v21, %s9703_s14  ;;  %8188 = vmatprep.subr.msk.bf16.mxu1 %vm13294_vm11, %v8186_v5  ;;  %v8798_v16 = vunpack.i.h.bf16 %v12815_v23  ;;  %v8797_v56 = vunpack.i.l.bf16 %v12815_v23  ;;  %v8843_v55 = vunpack.i.h.bf16 %v13037_v58  ;;  %v8189_v40 = vpack.c.bf16 %v3697_v52, %v3696_v35 }
 0x4c8   :  { %v8842_v43 = vunpack.i.l.bf16 %v13037_v58  ;;  %v8878_v53 = vunpack.i.h.bf16 %v13174_v4  ;;  %v8877_v37 = vunpack.i.l.bf16 %v13174_v4  ;;  %v8192_v41 = vpack.c.bf16 %v3715_v1, %v3714_v50  ;;  %v13377_v58 = vld [vmem:[#allocation2 + $0x112] sm:$0xff]  ;;  %v16545_v4 = vld [vmem:[#allocation103_spill] sm:$0xff]  ;;  %v13408_v50 = vld [vmem:[#allocation2 + $0x12a] sm:$0xff] }
 0x4c9   :  { %v13355_v12 = vpop.permute.xlu1 %8930  ;;  %v3605_v17 = vsel %vm1622_vm6, %v13066_v46, %v8643_v26  ;;  %v3620_v23 = vsel %vm1622_vm6, %v13143_v28, %v8682_v54  ;;  %v8923_v15 = vunpack.i.h.bf16 %v13326_v27  ;;  %v8922_v47 = vunpack.i.l.bf16 %v13326_v27  ;;  %v16547_v1 = vld [vmem:[#allocation106_spill] sm:$0xff] }
 0x4ca   :  { %v8657_v8 = vunpack.i.l.bf16 %v16545_v4  ;;  %v3621_v11 = vsel %vm1622_vm6, %v13147_v42, %v8683_v62  ;;  %v3634_v46 = vsel %vm1655_vm7, %v13197_v24, %v8717_v51  ;;  %v3635_v28 = vsel %vm1655_vm7, %v13201_v29, %v8718_v38  ;;  %4472 = vrot.lane.b32.xlu0 %v13362_v57, %s9703_s14  ;;  %v13396_v24 = vld [vmem:[#allocation2 + $0x13a] sm:$0xff] }
 0x4cb   :  { %4466 = vrot.lane.b32.xlu1 %v13349_v33, %s9703_s14  ;;  %8191 = vmatpush3.bf16.xpose.msk.msra.mxu1 %vm13294_vm11, %v8189_v40  ;;  %v3652_v27 = vsel %vm1655_vm7, %v3620_v23, %v8762_v13  ;;  %v3653_v34 = vsel %vm1655_vm7, %v3621_v11, %v8763_v30  ;;  %v3666_v42 = vsel %vm1688_vm8, %v3634_v46, %v8797_v56  ;;  %v8688_v35 = vunpack.i.h.bf16 %v16546_v61  ;;  %v13436_v46 = vld [vmem:[#allocation2 + $0x142] sm:$0xff] }
 0x4cc   :  { %8194 = vmatprep.subr.msk.bf16.mxu1 %vm13294_vm11, %v8192_v41  ;;  %v3667_v6 = vsel %vm1688_vm8, %v3635_v28, %v8798_v16  ;;  %v3684_v29 = vsel %vm1688_vm8, %v3652_v27, %v8842_v43  ;;  %v3685_v63 = vsel %vm1688_vm8, %v3653_v34, %v8843_v55  ;;  %v3698_v20 = vsel %vm1721_vm9, %v3666_v42, %v8877_v37  ;;  %v16549_v55 = vld [vmem:[#allocation107_spill] sm:$0xff]  ;;  %v16550_v28 = vld [vmem:[#allocation104_spill] sm:$0xff] }
 0x4cd   :  { %v13386_v5 = vpop.permute.xlu1 %8940  ;;  %v3699_v26 = vsel %vm1721_vm9, %v3667_v6, %v8878_v53  ;;  %v8687_v52 = vunpack.i.l.bf16 %v16546_v61  ;;  %v3716_v62 = vsel %vm1721_vm9, %v3684_v29, %v8922_v47  ;;  %v3717_v54 = vsel %vm1721_vm9, %v3685_v63, %v8923_v15  ;;  %v13421_v53 = vld [vmem:[#allocation2 + $0x152] sm:$0xff]  ;;  %v13454_v29 = vpop.permute.xlu0 %8935  ;;  %v16552_v61 = vld [vmem:[#allocation68_spill] sm:$0xff] }
 0x4ce   :  { %v8723_v59 = vunpack.i.h.bf16 %v16547_v1  ;;  %v8722_v38 = vunpack.i.l.bf16 %v16547_v1  ;;  %v8768_v51 = vunpack.i.h.bf16 %v12671_v36  ;;  %v8767_v30 = vunpack.i.l.bf16 %v12671_v36  ;;  %4476 = vrot.lane.b32.xlu0 %v13396_v24, %s9703_s14  ;;  %v16553_v1 = vld [vmem:[#allocation105_spill] sm:$0xff] }
 0x4cf   :  { %4470 = vrot.lane.b32.xlu1 %v13377_v58, %s9703_s14  ;;  %v8803_v16 = vunpack.i.h.bf16 %v12857_v45  ;;  %v8802_v56 = vunpack.i.l.bf16 %v12857_v45  ;;  %v8848_v40 = vunpack.i.h.bf16 %v16549_v55  ;;  %v8195_v43 = vpack.c.bf16 %v3699_v26, %v3698_v20 }
 0x4d0   :  { %v8847_v37 = vunpack.i.l.bf16 %v16549_v55  ;;  %v8883_v41 = vunpack.i.h.bf16 %v13217_v39  ;;  %v8882_v36 = vunpack.i.l.bf16 %v13217_v39  ;;  %v8198_v23 = vpack.c.bf16 %v3717_v54, %v3716_v62  ;;  %v13468_v54 = vld [vmem:[#allocation2 + $0x15a] sm:$0xff]  ;;  %v16556_v55 = vld [vmem:[#allocation85_spill] sm:$0xff] }
 0x4d1   :  { %v13414_v13 = vpop.permute.xlu1 %4296  ;;  %v13430_v15 = vsel %vm1622_vm6, %v13070_v3, %v8657_v8  ;;  %v3622_v45 = vsel %vm1622_vm6, %v13133_v14, %v8687_v52  ;;  %v8928_v47 = vunpack.i.h.bf16 %v8926_v2  ;;  %v8927_v11 = vunpack.i.l.bf16 %v8926_v2 }
 0x4d2   :  { %16548 = vst [vmem:[#allocation145_spill] sm:$0xff] %v13414_v13  ;;  %v8652_v39 = vunpack.i.l.bf16 %v16550_v28  ;;  %v3623_v27 = vsel %vm1622_vm6, %v13137_v48, %v8688_v35  ;;  %v3636_v34 = vsel %vm1655_vm7, %v13232_v44, %v8722_v38  ;;  %v3637_v3 = vsel %vm1655_vm7, %v3605_v17, %v8723_v59  ;;  %4480 = vrot.lane.b32.xlu0 %v13421_v53, %s9703_s14  ;;  %v13456_v44 = vld [vmem:[#allocation2 + $0x16a] sm:$0xff] }
 0x4d3   :  { %4474 = vrot.lane.b32.xlu1 %v13408_v50, %s9703_s14  ;;  %8197 = vmatpush3.bf16.xpose.msk.msra.mxu1 %vm13294_vm11, %v8195_v43  ;;  %v3654_v14 = vsel %vm1655_vm7, %v3622_v45, %v8767_v30  ;;  %v3655_v42 = vsel %vm1655_vm7, %v3623_v27, %v8768_v51  ;;  %v3668_v6 = vsel %vm1688_vm8, %v3636_v34, %v8802_v56  ;;  %v8693_v35 = vunpack.i.h.bf16 %v16552_v61  ;;  %v16554_v51 = vld [vmem:[#allocation41_spill] sm:$0xff]  ;;  %v16557_v27 = vld [vmem:[#allocation167_spill] sm:$0xff] }
 0x4d4   :  { %8200 = vmatprep.subr.msk.bf16.mxu1 %vm13294_vm11, %v8198_v23  ;;  %v3669_v48 = vsel %vm1688_vm8, %v3637_v3, %v8803_v16  ;;  %v3686_v17 = vsel %vm1688_vm8, %v3654_v14, %v8847_v37  ;;  %v3687_v63 = vsel %vm1688_vm8, %v3655_v42, %v8848_v40  ;;  %v3700_v20 = vsel %vm1721_vm9, %v3668_v6, %v8882_v36  ;;  %v13496_v6 = vld [vmem:[#allocation2 + $0x172] sm:$0xff] }
 0x4d5   :  { %v13444_v8 = vpop.permute.xlu1 %4298  ;;  %v3701_v26 = vsel %vm1721_vm9, %v3669_v48, %v8883_v41  ;;  %v8692_v52 = vunpack.i.l.bf16 %v16552_v61  ;;  %v3718_v2 = vsel %vm1721_vm9, %v3686_v17, %v8927_v11  ;;  %v3719_v62 = vsel %vm1721_vm9, %v3687_v63, %v8928_v47 }
 0x4d6   :  { %16551 = vst [vmem:[#allocation146_spill] sm:$0xff] %v13444_v8  ;;  %v8728_v59 = vunpack.i.h.bf16 %v16553_v1  ;;  %v8727_v38 = vunpack.i.l.bf16 %v16553_v1  ;;  %v8773_v30 = vunpack.i.h.bf16 %v16554_v51  ;;  %v8772_v16 = vunpack.i.l.bf16 %v16554_v51  ;;  %4484 = vrot.lane.b32.xlu0 %v13456_v44, %s9703_s14 }
 0x4d7   :  { %4478 = vrot.lane.b32.xlu1 %v13436_v46, %s9703_s14  ;;  %v8808_v40 = vunpack.i.h.bf16 %v16556_v55  ;;  %v8807_v43 = vunpack.i.l.bf16 %v16556_v55  ;;  %v8853_v37 = vunpack.i.h.bf16 %v13086_v10  ;;  %v8201_v36 = vpack.c.bf16 %v3701_v26, %v3700_v20 }
 0x4d8   :  { %v8852_v23 = vunpack.i.l.bf16 %v13086_v10  ;;  %v8888_v45 = vunpack.i.h.bf16 %v13215_v22  ;;  %v8887_v47 = vunpack.i.l.bf16 %v13215_v22  ;;  %v8204_v11 = vpack.c.bf16 %v3719_v62, %v3718_v2  ;;  %v3978_v10 = vld [vmem:[#allocation2 + $0x18] sm:$0xff] }
 0x4d9   :  { %v13474_v56 = vpop.permute.xlu1 %4302  ;;  %v13481_v41 = vpop.permute.xlu0 %3730  ;;  %v3608_v34 = vsel %vm1622_vm6, %v16557_v27, %v8652_v39  ;;  %v3624_v3 = vsel %vm1622_vm6, %v13162_v25, %v8692_v52  ;;  %v8933_v14 = vunpack.i.h.bf16 %v13355_v12  ;;  %v8932_v42 = vunpack.i.l.bf16 %v13355_v12 }
 0x4da   :  { %16555 = vst [vmem:[#allocation109_spill] sm:$0xff] %v13474_v56  ;;  %v8653_v22 = vunpack.i.h.bf16 %v16550_v28  ;;  %v3625_v48 = vsel %vm1622_vm6, %v13168_v18, %v8693_v35  ;;  %v3638_v39 = vsel %vm1655_vm7, %v13221_v32, %v8727_v38  ;;  %v3639_v25 = vsel %vm1655_vm7, %v13225_v7, %v8728_v59  ;;  %4552 = vrot.lane.b32.xlu0 %v3978_v10, %s9704_s15  ;;  %v16560_v35 = vld [vmem:[#allocation67_spill] sm:$0xff]  ;;  %v13526_v59 = vld [vmem:[#allocation2 + $0x30] sm:$0xff]  ;;  %v16561_v38 = vld [vmem:[#allocation166_spill] sm:$0xff] }
 0x4db   :  { %4482 = vrot.lane.b32.xlu1 %v13468_v54, %s9703_s14  ;;  %8203 = vmatpush3.bf16.xpose.msk.msra.mxu1 %vm13294_vm11, %v8201_v36  ;;  %v3656_v12 = vsel %vm1655_vm7, %v3624_v3, %v8772_v16  ;;  %v3657_v28 = vsel %vm1655_vm7, %v3625_v48, %v8773_v30  ;;  %v3670_v63 = vsel %vm1688_vm8, %v3638_v39, %v8807_v43  ;;  %v8698_v52 = vunpack.i.h.bf16 %v16560_v35  ;;  %v16562_v16 = vld [vmem:[#allocation28_spill] sm:$0xff]  ;;  %v16567_v39 = vld [vmem:[#allocation31_spill] sm:$0xff] }
 0x4dc   :  { %8206 = vmatprep.subr.msk.bf16.mxu1 %vm13294_vm11, %v8204_v11  ;;  %v3671_v18 = vsel %vm1688_vm8, %v3639_v25, %v8808_v40  ;;  %v3688_v32 = vsel %vm1688_vm8, %v3656_v12, %v8852_v23  ;;  %v3689_v7 = vsel %vm1688_vm8, %v3657_v28, %v8853_v37  ;;  %v3702_v26 = vsel %vm1721_vm9, %v3670_v63, %v8887_v47  ;;  %v16564_v37 = vld [vmem:[#allocation143_spill] sm:$0xff]  ;;  %v16568_v12 = vld [vmem:[#allocation45_spill] sm:$0xff] }
 0x4dd   :  { %v13505_v17 = vpop.permute.xlu1 %4306  ;;  %v13514_v20 = vpop.permute.xlu0 %4300  ;;  %v3703_v61 = vsel %vm1721_vm9, %v3671_v18, %v8888_v45  ;;  %v8697_v2 = vunpack.i.l.bf16 %v16560_v35  ;;  %v3720_v62 = vsel %vm1721_vm9, %v3688_v32, %v8932_v42  ;;  %v3721_v1 = vsel %vm1721_vm9, %v3689_v7, %v8933_v14  ;;  %v16565_v45 = vld [vmem:[#allocation168_spill] sm:$0xff]  ;;  %v3979_v11 = vld [vmem:[#allocation2 + $0x20] sm:$0xff]  ;;  %v16569_v7 = vld [vmem:[#allocation46_spill] sm:$0xff] }
 0x4de   :  { %16558 = vst [vmem:[#allocation110_spill] sm:$0xff] %v13505_v17  ;;  %16559 = vst [vmem:[#allocation169_spill] sm:$0xff] %v13514_v20  ;;  %v8733_v51 = vunpack.i.h.bf16 %v16561_v38  ;;  %v8732_v30 = vunpack.i.l.bf16 %v16561_v38  ;;  %v8778_v55 = vunpack.i.h.bf16 %v16562_v16  ;;  %v8777_v40 = vunpack.i.l.bf16 %v16562_v16  ;;  %4556 = vrot.lane.b32.xlu0 %v13526_v59, %s9704_s15  ;;  %v13553_v32 = vld [vmem:[#allocation2 + $0x48] sm:$0xff] }
 0x4df   :  { %4486 = vrot.lane.b32.xlu1 %v13496_v6, %s9703_s14  ;;  %v8813_v36 = vunpack.i.h.bf16 %v16564_v37  ;;  %v8812_v23 = vunpack.i.l.bf16 %v16564_v37  ;;  %v8858_v47 = vunpack.i.h.bf16 %v16565_v45  ;;  %v8207_v3 = vpack.c.bf16 %v3703_v61, %v3702_v26  ;;  %v16572_v16 = vld [vmem:[#allocation84_spill] sm:$0xff] }
 0x4e0   :  { %v8857_v14 = vunpack.i.l.bf16 %v16565_v45  ;;  %v8893_v42 = vunpack.i.h.bf16 %v13258_v9  ;;  %v8892_v10 = vunpack.i.l.bf16 %v13258_v9  ;;  %v8210_v48 = vpack.c.bf16 %v3721_v1, %v3720_v62  ;;  %v13570_v62 = vld [vmem:[#allocation2 + $0x38] sm:$0xff]  ;;  %v16573_v45 = vld [vmem:[#allocation165_spill] sm:$0xff] }
 0x4e1   :  { %v13532_v43 = vpop.permute.xlu1 %4310  ;;  %v13539_v27 = vpop.permute.xlu0 %4304  ;;  %v3609_v25 = vsel %vm1622_vm6, %v16567_v39, %v8653_v22  ;;  %v3626_v28 = vsel %vm1622_vm6, %v16568_v12, %v8697_v2  ;;  %v8938_v63 = vunpack.i.h.bf16 %v13454_v29  ;;  %v8937_v18 = vunpack.i.l.bf16 %v13454_v29  ;;  %v16577_v12 = vld [vmem:[#allocation32_spill] sm:$0xff] }
 0x4e2   :  { %16563 = vst [vmem:[#allocation170_spill] sm:$0xff] %v13532_v43  ;;  %16566 = vst [vmem:[#allocation35_spill] sm:$0xff] %v13539_v27  ;;  %v8658_v9 = vunpack.i.h.bf16 %v16545_v4  ;;  %v3627_v26 = vsel %vm1622_vm6, %v16569_v7, %v8698_v52  ;;  %v3640_v61 = vsel %vm1655_vm7, %v3608_v34, %v8732_v30  ;;  %v3641_v22 = vsel %vm1655_vm7, %v3609_v25, %v8733_v51 }
 0x4e3   :  { %4554 = vrot.lane.b32.xlu1 %v3979_v11, %s9704_s15  ;;  %8209 = vmatpush3.bf16.xpose.msk.msra.mxu1 %vm13294_vm11, %v8207_v3  ;;  %v3658_v29 = vsel %vm1655_vm7, %v3626_v28, %v8777_v40  ;;  %v3659_v2 = vsel %vm1655_vm7, %v3627_v26, %v8778_v55  ;;  %v3672_v4 = vsel %vm1688_vm8, %v3640_v61, %v8812_v23  ;;  %v8703_v55 = vunpack.i.h.bf16 %v16572_v16  ;;  %v13584_v23 = vld [vmem:[#allocation2 + $0x60] sm:$0xff]  ;;  %v16574_v3 = vld [vmem:[#allocation72_spill] sm:$0xff] }
 0x4e4   :  { %8212 = vmatprep.subr.msk.bf16.mxu1 %vm13294_vm11, %v8210_v48  ;;  %4560 = vrot.lane.b32.xlu0 %v13553_v32, %s9704_s15  ;;  %v3673_v52 = vsel %vm1688_vm8, %v3641_v22, %v8813_v36  ;;  %v3690_v1 = vsel %vm1688_vm8, %v3658_v29, %v8857_v14  ;;  %v3691_v38 = vsel %vm1688_vm8, %v3659_v2, %v8858_v47  ;;  %v8702_v40 = vunpack.i.l.bf16 %v16572_v16  ;;  %v16576_v48 = vld [vmem:[#allocation86_spill] sm:$0xff]  ;;  %v16579_v61 = vld [vmem:[#allocation87_spill] sm:$0xff] }
 0x4e5   :  { %v13560_v35 = vpop.permute.xlu1 %4314  ;;  %v13572_v34 = vpop.permute.xlu0 %4308  ;;  %v3704_v51 = vsel %vm1721_vm9, %v3672_v4, %v8892_v10  ;;  %v3705_v30 = vsel %vm1721_vm9, %v3673_v52, %v8893_v42  ;;  %v3722_v37 = vsel %vm1721_vm9, %v3690_v1, %v8937_v18  ;;  %v3723_v36 = vsel %vm1721_vm9, %v3691_v38, %v8938_v63  ;;  %v13597_v63 = vld [vmem:[#allocation2 + $0x50] sm:$0xff]  ;;  %v16580_v4 = vld [vmem:[#allocation108_spill] sm:$0xff] }
 0x4e6   :  { %16570 = vst [vmem:[#allocation36_spill] sm:$0xff] %v13560_v35  ;;  %16571 = vst [vmem:[#allocation49_spill] sm:$0xff] %v13572_v34  ;;  %v8738_v11 = vunpack.i.h.bf16 %v16573_v45  ;;  %v8737_v47 = vunpack.i.l.bf16 %v16573_v45  ;;  %v8783_v14 = vunpack.i.h.bf16 %v16574_v3  ;;  %v8782_v42 = vunpack.i.l.bf16 %v16574_v3  ;;  %v16581_v1 = vld [vmem:[#allocation121_spill] sm:$0xff]  ;;  %v16582_v45 = vld [vmem:[#allocation162_spill] sm:$0xff] }
 0x4e7   :  { %4558 = vrot.lane.b32.xlu1 %v13570_v62, %s9704_s15  ;;  %v8818_v39 = vunpack.i.h.bf16 %v16576_v48  ;;  %v8817_v25 = vunpack.i.l.bf16 %v16576_v48  ;;  %v8863_v28 = vunpack.i.h.bf16 %v16577_v12  ;;  %v8213_v7 = vpack.c.bf16 %v3705_v30, %v3704_v51  ;;  %v13614_v30 = vld [vmem:[#allocation2 + $0x78] sm:$0xff] }
 0x4e8   :  { %4564 = vrot.lane.b32.xlu0 %v13584_v23, %s9704_s15  ;;  %v8862_v26 = vunpack.i.l.bf16 %v16577_v12  ;;  %v8898_v22 = vunpack.i.h.bf16 %v16579_v61  ;;  %v8897_v29 = vunpack.i.l.bf16 %v16579_v61  ;;  %v8216_v2 = vpack.c.bf16 %v3723_v36, %v3722_v37  ;;  %v16583_v48 = vld [vmem:[#allocation122_spill] sm:$0xff]  ;;  %v13632_v61 = vld [vmem:[#allocation2 + $0x68] sm:$0xff] }
 0x4e9   :  { %v13590_v10 = vpop.permute.xlu1 %4318  ;;  %v13599_v18 = vpop.permute.xlu0 %4312  ;;  %v3611_v52 = vsel %vm1622_vm6, %v16580_v4, %v8658_v9  ;;  %v3628_v38 = vsel %vm1622_vm6, %v16581_v1, %v8702_v40  ;;  %v8943_v16 = vunpack.i.h.bf16 %v13386_v5  ;;  %v8942_v51 = vunpack.i.l.bf16 %v13386_v5  ;;  %v13646_v1 = vld [vmem:[#allocation2 + $0x90] sm:$0xff] }
 0x4ea   :  { %16575 = vst [vmem:[#allocation50_spill] sm:$0xff] %v13590_v10  ;;  %16578 = vst [vmem:[#allocation123_spill] sm:$0xff] %v13599_v18  ;;  %v8582_v3 = vunpack.i.l.bf16 %v16582_v45  ;;  %v3629_v37 = vsel %vm1622_vm6, %v16583_v48, %v8703_v55  ;;  %v3642_v9 = vsel %vm1655_vm7, %v13430_v15, %v8737_v47  ;;  %v3643_v36 = vsel %vm1655_vm7, %v3611_v52, %v8738_v11  ;;  %v16591_v48 = vld [vmem:[#allocation71_spill] sm:$0xff]  ;;  %v13828_v10 = vld [vmem:[#allocation2 + $0x69] sm:$0xff] }
 0x4eb   :  { %4562 = vrot.lane.b32.xlu1 %v13597_v63, %s9704_s15  ;;  %8215 = vmatpush3.bf16.xpose.msk.msra.mxu1 %vm13294_vm11, %v8213_v7  ;;  %v3660_v5 = vsel %vm1655_vm7, %v3628_v38, %v8782_v42  ;;  %v3661_v12 = vsel %vm1655_vm7, %v3629_v37, %v8783_v14  ;;  %v3674_v7 = vsel %vm1688_vm8, %v3642_v9, %v8817_v25  ;;  %v16586_v14 = vld [vmem:[#allocation164_spill] sm:$0xff]  ;;  %v16592_v9 = vld [vmem:[#allocation27_spill] sm:$0xff] }
 0x4ec   :  { %8218 = vmatprep.subr.msk.bf16.mxu1 %vm13294_vm11, %v8216_v2  ;;  %4568 = vrot.lane.b32.xlu0 %v13614_v30, %s9704_s15  ;;  %v3675_v55 = vsel %vm1688_vm8, %v3643_v36, %v8818_v39  ;;  %v3692_v11 = vsel %vm1688_vm8, %v3660_v5, %v8862_v26  ;;  %v3693_v47 = vsel %vm1688_vm8, %v3661_v12, %v8863_v28  ;;  %v8663_v42 = vunpack.i.h.bf16 %v16586_v14  ;;  %v16587_v26 = vld [vmem:[#allocation159_spill] sm:$0xff]  ;;  %v16589_v28 = vld [vmem:[#allocation42_spill] sm:$0xff] }
 0x4ed   :  { %v13622_v40 = vpop.permute.xlu1 %4322  ;;  %v13634_v15 = vpop.permute.xlu0 %4316  ;;  %v3706_v2 = vsel %vm1721_vm9, %v3674_v7, %v8897_v29  ;;  %v3707_v4 = vsel %vm1721_vm9, %v3675_v55, %v8898_v22  ;;  %v8662_v25 = vunpack.i.l.bf16 %v16586_v14  ;;  %v3724_v39 = vsel %vm1721_vm9, %v3692_v11, %v8942_v51  ;;  %v16594_v51 = vld [vmem:[#allocation144_spill] sm:$0xff]  ;;  %v13665_v11 = vld [vmem:[#allocation2 + $0x80] sm:$0xff] }
 0x4ee   :  { %16584 = vst [vmem:[#allocation124_spill] sm:$0xff] %v13622_v40  ;;  %16585 = vst [vmem:[#allocation89_spill] sm:$0xff] %v13634_v15  ;;  %v3725_v52 = vsel %vm1721_vm9, %v3693_v47, %v8943_v16  ;;  %v16588_v38 = vunpack.i.l.bf16 %v16587_v26  ;;  %v16590_v22 = vunpack.i.h.bf16 %v16587_v26  ;;  %v8743_v36 = vunpack.i.h.bf16 %v16592_v9 }
 0x4ef   :  { %4566 = vrot.lane.b32.xlu1 %v13632_v61, %s9704_s15  ;;  %v8742_v5 = vunpack.i.l.bf16 %v16592_v9  ;;  %v8823_v7 = vunpack.i.h.bf16 %v16594_v51  ;;  %v8822_v55 = vunpack.i.l.bf16 %v16594_v51  ;;  %v8219_v14 = vpack.c.bf16 %v3707_v4, %v3706_v2  ;;  %v13680_v2 = vld [vmem:[#allocation2 + $0xa8] sm:$0xff] }
 0x4f0   :  { %v3548_v29 = vsel %vm1556_vm4, %v16589_v28, %v16588_v38  ;;  %v3549_v37 = vsel %vm1556_vm4, %v16591_v48, %v16590_v22  ;;  %4572 = vrot.lane.b32.xlu0 %v13646_v1, %s9704_s15  ;;  %v16596_v26 = vunpack.i.h.bf16 %v16582_v45  ;;  %v8903_v28 = vunpack.i.h.bf16 %v13276_v60 }
 0x4f1   :  { %v13658_v12 = vpop.permute.xlu1 %4326  ;;  %v3580_v16 = vsel %vm1589_vm5, %v3548_v29, %v8582_v3  ;;  %v13667_v47 = vpop.permute.xlu0 %4320  ;;  %v8902_v22 = vunpack.i.l.bf16 %v13276_v60  ;;  %v8222_v3 = vpack.c.bf16 %v3725_v52, %v3724_v39 }
 0x4f2   :  { %16593 = vst [vmem:[#allocation90_spill] sm:$0xff] %v13658_v12  ;;  %16595 = vst [vmem:[#allocation147_spill] sm:$0xff] %v13667_v47  ;;  %v3581_v38 = vsel %vm1589_vm5, %v3549_v37, %v16596_v26  ;;  %v3612_v29 = vsel %vm1622_vm6, %v3580_v16, %v8662_v25  ;;  %v13692_v25 = vld [vmem:[#allocation2 + $0x98] sm:$0xff]  ;;  %v13706_v16 = vld [vmem:[#allocation2 + $0xb0] sm:$0xff] }
 0x4f3   :  { %4570 = vrot.lane.b32.xlu1 %v13665_v11, %s9704_s15  ;;  %v3613_v48 = vsel %vm1622_vm6, %v3581_v38, %v8663_v42  ;;  %8221 = vmatpush3.bf16.xpose.msk.msra.mxu1 %vm13294_vm11, %v8219_v14  ;;  %v3644_v45 = vsel %vm1655_vm7, %v3612_v29, %v8742_v5  ;;  %v13720_v26 = vld [vmem:[#allocation2 + $0xc8] sm:$0xff]  ;;  %v13824_v47 = vld [vmem:[#allocation2 + $0x79] sm:$0xff] }
 0x4f4   :  { %v3645_v4 = vsel %vm1655_vm7, %v3613_v48, %v8743_v36  ;;  %8224 = vmatprep.subr.msk.bf16.mxu1 %vm13294_vm11, %v8222_v3  ;;  %4576 = vrot.lane.b32.xlu0 %v13680_v2, %s9704_s15  ;;  %v3676_v60 = vsel %vm1688_vm8, %v3644_v45, %v8822_v55  ;;  %v13700_v36 = vld [vmem:[#allocation2 + $0xc0] sm:$0xff]  ;;  %v13714_v55 = vld [vmem:[#allocation2 + $0xd8] sm:$0xff]  ;;  %v13742_v45 = vld [vmem:[#allocation2 + $0x108] sm:$0xff] }
 0x4f5   :  { %v13684_v37 = vpop.permute.xlu1 %4330  ;;  %v3677_v42 = vsel %vm1688_vm8, %v3645_v4, %v8823_v7  ;;  %v13694_v39 = vpop.permute.xlu0 %4324  ;;  %v3708_v52 = vsel %vm1721_vm9, %v3676_v60, %v8902_v22  ;;  %v13732_v3 = vld [vmem:[#allocation2 + $0xe0] sm:$0xff]  ;;  %v13748_v60 = vld [vmem:[#allocation2 + $0xf8] sm:$0xff] }
 0x4f6   :  { %16597 = vst [vmem:[#allocation148_spill] sm:$0xff] %v13684_v37  ;;  %16598 = vst [vmem:[#allocation111_spill] sm:$0xff] %v13694_v39  ;;  %v3709_v9 = vsel %vm1721_vm9, %v3677_v42, %v8903_v28  ;;  %v13726_v28 = vld [vmem:[#allocation2 + $0xf0] sm:$0xff]  ;;  %v9613_v48 = vld [vmem:[%s15838_s4] sm:$0xff] }
 0x4f7   :  { %4574 = vrot.lane.b32.xlu1 %v13692_v25, %s9704_s15  ;;  %v8225_v7 = vpack.c.bf16 %v3709_v9, %v3708_v52  ;;  %v4000_v52 = vld [vmem:[#allocation2 + $0x120] sm:$0xff]  ;;  %v13816_v39 = vld [vmem:[#allocation2 + $0x51] sm:$0xff] }
 0x4f8   :  { %4580 = vrot.lane.b32.xlu0 %v13700_v36, %s9704_s15  ;;  %v13812_v12 = vld [vmem:[#allocation2 + $0x61] sm:$0xff] }
 0x4f9   :  { %v13702_v5 = vpop.permute.xlu1 %4334  ;;  %v13708_v51 = vpop.permute.xlu0 %4328 }
 0x4fa   :  { %16599 = vst [vmem:[#allocation112_spill] sm:$0xff] %v13702_v5  ;;  %16600 = vst [vmem:[#allocation171_spill] sm:$0xff] %v13708_v51  ;;  %v13804_v51 = vld [vmem:[#allocation2 + $0x39] sm:$0xff] }
 0x4fb   :  { %4578 = vrot.lane.b32.xlu1 %v13706_v16, %s9704_s15  ;;  %8227 = vmatpush3.bf16.xpose.msk.msra.mxu1 %vm13294_vm11, %v8225_v7  ;;  %v13757_v7 = vld [vmem:[#allocation2 + $0x110] sm:$0xff] }
 0x4fc   :  { %4584 = vrot.lane.b32.xlu0 %v13714_v55, %s9704_s15 }
 0x4fd   :  { %v13716_v14 = vpop.permute.xlu1 %4338  ;;  %v13722_v38 = vpop.permute.xlu0 %4332 }
 0x4fe   :  { %16601 = vst [vmem:[#allocation172_spill] sm:$0xff] %v13716_v14  ;;  %16602 = vst [vmem:[#allocation39_spill] sm:$0xff] %v13722_v38 }
 0x4ff   :  { %4582 = vrot.lane.b32.xlu1 %v13720_v26, %s9704_s15 }
 0x500   :  { %4588 = vrot.lane.b32.xlu0 %v13726_v28, %s9704_s15 }
 0x501   :  { %v13728_v22 = vpop.permute.xlu1 %4342  ;;  %v13734_v29 = vpop.permute.xlu0 %4336 }
 0x502   :  { %16603 = vst [vmem:[#allocation40_spill] sm:$0xff] %v13728_v22  ;;  %16604 = vst [vmem:[#allocation53_spill] sm:$0xff] %v13734_v29  ;;  %7956 = vmatmul.mubr.msk.f32.vlgmr.msra.gmra.mrb[0].mxu1 %vm1770_vm10, %v9613_v48  ;;  %v4001_v22 = vld [vmem:[#allocation2 + $0x128] sm:$0xff] }
 0x503   :  { %4586 = vrot.lane.b32.xlu1 %v13732_v3, %s9704_s15  ;;  %v4006_v29 = vld [vmem:[#allocation2 + $0x168] sm:$0xff] }
 0x504   :  { %4592 = vrot.lane.b32.xlu0 %v13742_v45, %s9704_s15 }
 0x505   :  { %v13744_v4 = vpop.permute.xlu1 %4346  ;;  %v13750_v42 = vpop.permute.xlu0 %4340 }
 0x506   :  { %16605 = vst [vmem:[#allocation54_spill] sm:$0xff] %v13744_v4  ;;  %16606 = vst [vmem:[#allocation125_spill] sm:$0xff] %v13750_v42 }
 0x507   :  { %4590 = vrot.lane.b32.xlu1 %v13748_v60, %s9704_s15 }
 0x508   :  { %4596 = vrot.lane.b32.xlu0 %v4000_v52, %s9704_s15  ;;  %v4003_v52 = vld [vmem:[#allocation2 + $0x140] sm:$0xff] }
 0x509   :  { %v13754_v9 = vpop.permute.xlu1 %4350  ;;  %v13759_v48 = vpop.permute.xlu0 %4344 }
 0x50a   :  { %16607 = vst [vmem:[#allocation126_spill] sm:$0xff] %v13754_v9  ;;  %16608 = vst [vmem:[#allocation91_spill] sm:$0xff] %v13759_v48  ;;  %v4004_v9 = vld [vmem:[#allocation2 + $0x150] sm:$0xff] }
 0x50b   :  { %4594 = vrot.lane.b32.xlu1 %v13757_v7, %s9704_s15 }
 0x50c   :  { %4600 = vrot.lane.b32.xlu0 %v4002_v31, %s9704_s15  ;;  %v4005_v31 = vld [vmem:[#allocation2 + $0x158] sm:$0xff] }
 0x50d   :  { %v13763_v4 = vpop.permute.xlu1 %4354  ;;  %v13766_v42 = vpop.permute.xlu0 %4348 }
 0x50e   :  { %16609 = vst [vmem:[#allocation92_spill] sm:$0xff] %v13763_v4  ;;  %16610 = vst [vmem:[#allocation149_spill] sm:$0xff] %v13766_v42  ;;  %v4102_v42 = vld [vmem:[#allocation2 + $0x180] sm:$0xff] }
 0x50f   :  { %4598 = vrot.lane.b32.xlu1 %v4001_v22, %s9704_s15 }
 0x510   :  { %4604 = vrot.lane.b32.xlu0 %v4004_v9, %s9704_s15  ;;  %v4007_v9 = vld [vmem:[#allocation2 + $0x170] sm:$0xff] }
 0x511   :  { %v13769_v14 = vpop.permute.xlu1 %4358  ;;  %v13772_v48 = vpop.permute.xlu0 %4352 }
 0x512   :  { %16611 = vst [vmem:[#allocation150_spill] sm:$0xff] %v13769_v14  ;;  %16612 = vst [vmem:[#allocation113_spill] sm:$0xff] %v13772_v48  ;;  %v4104_v48 = vld [vmem:[#allocation2 + $0x19] sm:$0xff] }
 0x513   :  { %4602 = vrot.lane.b32.xlu1 %v4003_v52, %s9704_s15  ;;  %v4103_v52 = vld [vmem:[#allocation2 + $0x188] sm:$0xff] }
 0x514   :  { %4608 = vrot.lane.b32.xlu0 %v4006_v29, %s9704_s15 }
 0x515   :  { %v13775_v5 = vpop.permute.xlu1 %4426  ;;  %v13778_v4 = vpop.permute.xlu0 %4356 }
 0x516   :  { %16613 = vst [vmem:[#allocation114_spill] sm:$0xff] %v13775_v5  ;;  %16614 = vst [vmem:[#allocation173_spill] sm:$0xff] %v13778_v4  ;;  %v13792_v4 = vld [vmem:[#allocation2 + $0x31] sm:$0xff] }
 0x517   :  { %4606 = vrot.lane.b32.xlu1 %v4005_v31, %s9704_s15  ;;  %v4105_v31 = vld [vmem:[#allocation2 + $0x21] sm:$0xff] }
 0x518   :  { %4612 = vrot.lane.b32.xlu0 %v4102_v42, %s9704_s15 }
 0x519   :  { %v13781_v22 = vpop.permute.xlu1 %4430  ;;  %v13784_v14 = vpop.permute.xlu0 %4424 }
 0x51a   :  { %16615 = vst [vmem:[#allocation174_spill] sm:$0xff] %v13781_v22  ;;  %16616 = vst [vmem:[#allocation43_spill] sm:$0xff] %v13784_v14 }
 0x51b   :  { %4610 = vrot.lane.b32.xlu1 %v4007_v9, %s9704_s15  ;;  %v13801_v9 = vld [vmem:[#allocation2 + $0x49] sm:$0xff] }
 0x51c   :  { %4680 = vrot.lane.b32.xlu0 %v4104_v48, %s9705_s21 }
 0x51d   :  { %v13787_v38 = vpop.permute.xlu1 %4434  ;;  %v13790_v29 = vpop.permute.xlu0 %4428 }
 0x51e   :  { %16617 = vst [vmem:[#allocation44_spill] sm:$0xff] %v13787_v38  ;;  %16618 = vst [vmem:[#allocation57_spill] sm:$0xff] %v13790_v29 }
 0x51f   :  { %4614 = vrot.lane.b32.xlu1 %v4103_v52, %s9704_s15 }
 0x520   :  { %4684 = vrot.lane.b32.xlu0 %v13792_v4, %s9705_s21 }
 0x521   :  { %v13795_v37 = vpop.permute.xlu1 %4438  ;;  %v13799_v42 = vpop.permute.xlu0 %4432 }
 0x522   :  { %16619 = vst [vmem:[#allocation58_spill] sm:$0xff] %v13795_v37  ;;  %16620 = vst [vmem:[#allocation127_spill] sm:$0xff] %v13799_v42 }
 0x523   :  { %4682 = vrot.lane.b32.xlu1 %v4105_v31, %s9705_s21 }
 0x524   :  { %4688 = vrot.lane.b32.xlu0 %v13801_v9, %s9705_s21 }
 0x525   :  { %v13806_v48 = vpop.permute.xlu1 %4442  ;;  %v13810_v52 = vpop.permute.xlu0 %4436 }
 0x526   :  { %16621 = vst [vmem:[#allocation128_spill] sm:$0xff] %v13806_v48  ;;  %16622 = vst [vmem:[#allocation93_spill] sm:$0xff] %v13810_v52 }
 0x527   :  { %4686 = vrot.lane.b32.xlu1 %v13804_v51, %s9705_s21 }
 0x528   :  { %4692 = vrot.lane.b32.xlu0 %v13812_v12, %s9705_s21 }
 0x529   :  { %v13818_v40 = vpop.permute.xlu1 %4446  ;;  %v13822_v31 = vpop.permute.xlu0 %4440 }
 0x52a   :  { %16623 = vst [vmem:[#allocation94_spill] sm:$0xff] %v13818_v40  ;;  %16624 = vst [vmem:[#allocation151_spill] sm:$0xff] %v13822_v31  ;;  %v13836_v40 = vld [vmem:[#allocation2 + $0x91] sm:$0xff]  ;;  %v13840_v31 = vld [vmem:[#allocation2 + $0x81] sm:$0xff] }
 0x52b   :  { %4690 = vrot.lane.b32.xlu1 %v13816_v39, %s9705_s21 }
 0x52c   :  { %4696 = vrot.lane.b32.xlu0 %v13824_v47, %s9705_s21 }
 0x52d   :  { %v13830_v15 = vpop.permute.xlu1 %4450  ;;  %v13834_v48 = vpop.permute.xlu0 %4444 }
 0x52e   :  { %16625 = vst [vmem:[#allocation152_spill] sm:$0xff] %v13830_v15  ;;  %16626 = vst [vmem:[#allocation115_spill] sm:$0xff] %v13834_v48  ;;  %v13848_v15 = vld [vmem:[#allocation2 + $0xa9] sm:$0xff]  ;;  %v13852_v48 = vld [vmem:[#allocation2 + $0x99] sm:$0xff] }
 0x52f   :  { %4694 = vrot.lane.b32.xlu1 %v13828_v10, %s9705_s21 }
 0x530   :  { %4700 = vrot.lane.b32.xlu0 %v13836_v40, %s9705_s21 }
 0x531   :  { %v13842_v35 = vpop.permute.xlu1 %4454  ;;  %v13846_v18 = vpop.permute.xlu0 %4448 }
 0x532   :  { %16627 = vst [vmem:[#allocation116_spill] sm:$0xff] %v13842_v35  ;;  %16628 = vst [vmem:[#allocation175_spill] sm:$0xff] %v13846_v18  ;;  %v13860_v35 = vld [vmem:[#allocation2 + $0xc1] sm:$0xff]  ;;  %v13864_v18 = vld [vmem:[#allocation2 + $0xb1] sm:$0xff] }
 0x533   :  { %4698 = vrot.lane.b32.xlu1 %v13840_v31, %s9705_s21 }
 0x534   :  { %4704 = vrot.lane.b32.xlu0 %v13848_v15, %s9705_s21 }
 0x535   :  { %v13854_v37 = vpop.permute.xlu1 %4458  ;;  %v13858_v52 = vpop.permute.xlu0 %4452 }
 0x536   :  { %16629 = vst [vmem:[#allocation176_spill] sm:$0xff] %v13854_v37  ;;  %16630 = vst [vmem:[#allocation47_spill] sm:$0xff] %v13858_v52  ;;  %v13872_v37 = vld [vmem:[#allocation2 + $0xd9] sm:$0xff]  ;;  %v13876_v52 = vld [vmem:[#allocation2 + $0xc9] sm:$0xff] }
 0x537   :  { %4702 = vrot.lane.b32.xlu1 %v13852_v48, %s9705_s21 }
 0x538   :  { %4708 = vrot.lane.b32.xlu0 %v13860_v35, %s9705_s21 }
 0x539   :  { %v13866_v43 = vpop.permute.xlu1 %4462  ;;  %v13870_v34 = vpop.permute.xlu0 %4456 }
 0x53a   :  { %16631 = vst [vmem:[#allocation48_spill] sm:$0xff] %v13866_v43  ;;  %16632 = vst [vmem:[#allocation61_spill] sm:$0xff] %v13870_v34  ;;  %v13884_v43 = vld [vmem:[#allocation2 + $0xf1] sm:$0xff]  ;;  %v13888_v34 = vld [vmem:[#allocation2 + $0xe1] sm:$0xff] }
 0x53b   :  { %4706 = vrot.lane.b32.xlu1 %v13864_v18, %s9705_s21 }
 0x53c   :  { %4712 = vrot.lane.b32.xlu0 %v13872_v37, %s9705_s21 }
 0x53d   :  { %v13878_v38 = vpop.permute.xlu1 %4466  ;;  %v13882_v42 = vpop.permute.xlu0 %4460 }
 0x53e   :  { %16633 = vst [vmem:[#allocation62_spill] sm:$0xff] %v13878_v38  ;;  %16634 = vst [vmem:[#allocation129_spill] sm:$0xff] %v13882_v42  ;;  %v13896_v38 = vld [vmem:[#allocation2 + $0x109] sm:$0xff]  ;;  %v13900_v42 = vld [vmem:[#allocation2 + $0xf9] sm:$0xff] }
 0x53f   :  { %4710 = vrot.lane.b32.xlu1 %v13876_v52, %s9705_s21 }
 0x540   :  { %4716 = vrot.lane.b32.xlu0 %v13884_v43, %s9705_s21 }
 0x541   :  { %v13890_v17 = vpop.permute.xlu1 %4470  ;;  %v13894_v27 = vpop.permute.xlu0 %4464 }
 0x542   :  { %16635 = vst [vmem:[#allocation130_spill] sm:$0xff] %v13890_v17  ;;  %16636 = vst [vmem:[#allocation95_spill] sm:$0xff] %v13894_v27  ;;  %v13908_v17 = vld [vmem:[#allocation2 + $0x121] sm:$0xff]  ;;  %v13912_v27 = vld [vmem:[#allocation2 + $0x111] sm:$0xff] }
 0x543   :  { %4714 = vrot.lane.b32.xlu1 %v13888_v34, %s9705_s21  ;;  %16639 = vst [vmem:[#allocation154_spill] sm:$0xff] %v13908_v17 }
 0x544   :  { %4720 = vrot.lane.b32.xlu0 %v13896_v38, %s9705_s21 }
 0x545   :  { %v13902_v22 = vpop.permute.xlu1 %4474  ;;  %v13906_v29 = vpop.permute.xlu0 %4468 }
 0x546   :  { %16637 = vst [vmem:[#allocation96_spill] sm:$0xff] %v13902_v22  ;;  %16638 = vst [vmem:[#allocation153_spill] sm:$0xff] %v13906_v29  ;;  %v13920_v22 = vld [vmem:[#allocation2 + $0x139] sm:$0xff]  ;;  %v13924_v29 = vld [vmem:[#allocation2 + $0x129] sm:$0xff] }
 0x547   :  { %4718 = vrot.lane.b32.xlu1 %v13900_v42, %s9705_s21  ;;  %16642 = vst [vmem:[#allocation177_spill] sm:$0xff] %v13920_v22  ;;  %16643 = vst [vmem:[#allocation178_spill] sm:$0xff] %v13924_v29 }
 0x548   :  { %4724 = vrot.lane.b32.xlu0 %v13908_v17, %s9705_s21  ;;  %v4134_v17 = vld [vmem:[#allocation2 + $0x181] sm:$0xff] }
 0x549   :  { %v13914_v56 = vpop.permute.xlu1 %4478  ;;  %v13918_v20 = vpop.permute.xlu0 %4472 }
 0x54a   :  { %16640 = vst [vmem:[#allocation117_spill] sm:$0xff] %v13914_v56  ;;  %16641 = vst [vmem:[#allocation118_spill] sm:$0xff] %v13918_v20  ;;  %v13932_v56 = vld [vmem:[#allocation2 + $0x151] sm:$0xff]  ;;  %v13936_v20 = vld [vmem:[#allocation2 + $0x141] sm:$0xff] }
 0x54b   :  { %4722 = vrot.lane.b32.xlu1 %v13912_v27, %s9705_s21  ;;  %16646 = vst [vmem:[#allocation65_spill] sm:$0xff] %v13932_v56  ;;  %16647 = vst [vmem:[#allocation66_spill] sm:$0xff] %v13936_v20 }
 0x54c   :  { %4728 = vrot.lane.b32.xlu0 %v13920_v22, %s9705_s21  ;;  %v9614_v22 = vld [vmem:[#allocation2 + $0x169] sm:$0xff] }
 0x54d   :  { %v13926_v5 = vpop.permute.xlu1 %4482  ;;  %v13930_v14 = vpop.permute.xlu0 %4476 }
 0x54e   :  { %16644 = vst [vmem:[#allocation51_spill] sm:$0xff] %v13926_v5  ;;  %16645 = vst [vmem:[#allocation52_spill] sm:$0xff] %v13930_v14  ;;  %v13946_v5 = vld [vmem:[#allocation2 + $0x159] sm:$0xff] }
 0x54f   :  { %4726 = vrot.lane.b32.xlu1 %v13924_v29, %s9705_s21  ;;  %16650 = vst [vmem:[#allocation97_spill] sm:$0xff] %v13946_v5 }
 0x550   :  { %4732 = vrot.lane.b32.xlu0 %v13932_v56, %s9705_s21 }
 0x551   :  { %v13938_v8 = vpop.permute.xlu1 %4486  ;;  %v13942_v13 = vpop.permute.xlu0 %4480 }
 0x552   :  { %16648 = vst [vmem:[#allocation131_spill] sm:$0xff] %v13938_v8  ;;  %16649 = vst [vmem:[#allocation132_spill] sm:$0xff] %v13942_v13  ;;  %v13955_v8 = vld [vmem:[#allocation2 + $0x171] sm:$0xff] }
 0x553   :  { %4730 = vrot.lane.b32.xlu1 %v13936_v20, %s9705_s21  ;;  %16653 = vst [vmem:[#allocation156_spill] sm:$0xff] %v13955_v8 }
 0x554   :  { %4736 = vrot.lane.b32.xlu0 %v9614_v22, %s9705_s21  ;;  %v9615_v22 = vld [vmem:[#allocation2 + $0x1a] sm:$0xff] }
 0x555   :  { %v13948_v14 = vpop.permute.xlu1 %4554  ;;  %v13951_v29 = vpop.permute.xlu0 %4484 }
 0x556   :  { %16651 = vst [vmem:[#allocation98_spill] sm:$0xff] %v13948_v14  ;;  %16652 = vst [vmem:[#allocation155_spill] sm:$0xff] %v13951_v29  ;;  %v4135_v14 = vld [vmem:[#allocation2 + $0x189] sm:$0xff] }
 0x557   :  { %4734 = vrot.lane.b32.xlu1 %v13946_v5, %s9705_s21 }
 0x558   :  { %4740 = vrot.lane.b32.xlu0 %v4134_v17, %s9705_s21 }
 0x559   :  { %v13957_v56 = vpop.permute.xlu1 %4558  ;;  %v13960_v13 = vpop.permute.xlu0 %4552 }
 0x55a   :  { %16654 = vst [vmem:[#allocation119_spill] sm:$0xff] %v13957_v56  ;;  %16655 = vst [vmem:[#allocation120_spill] sm:$0xff] %v13960_v13  ;;  %v9616_v56 = vld [vmem:[#allocation2 + $0x32] sm:$0xff]  ;;  %v9617_v13 = vld [vmem:[#allocation2 + $0x22] sm:$0xff] }
 0x55b   :  { %4738 = vrot.lane.b32.xlu1 %v13955_v8, %s9705_s21 }
 0x55c   :  { %4808 = vrot.lane.b32.xlu0 %v9615_v22, %s9706_s22 }
 0x55d   :  { %v13964_v20 = vpop.permute.xlu1 %4562  ;;  %v13967_v29 = vpop.permute.xlu0 %4556 }
 0x55e   :  { %16656 = vst [vmem:[#allocation179_spill] sm:$0xff] %v13964_v20  ;;  %16657 = vst [vmem:[#allocation180_spill] sm:$0xff] %v13967_v29  ;;  %v9618_v20 = vld [vmem:[#allocation2 + $0x4a] sm:$0xff]  ;;  %v9619_v29 = vld [vmem:[#allocation2 + $0x3a] sm:$0xff] }
 0x55f   :  { %4742 = vrot.lane.b32.xlu1 %v4135_v14, %s9705_s21 }
 0x560   :  { %4812 = vrot.lane.b32.xlu0 %v9616_v56, %s9706_s22 }
 0x561   :  { %v13970_v5 = vpop.permute.xlu1 %4566  ;;  %v13973_v17 = vpop.permute.xlu0 %4560 }
 0x562   :  { %16658 = vst [vmem:[#allocation55_spill] sm:$0xff] %v13970_v5  ;;  %16659 = vst [vmem:[#allocation56_spill] sm:$0xff] %v13973_v17  ;;  %v9620_v5 = vld [vmem:[#allocation2 + $0x62] sm:$0xff]  ;;  %v9621_v17 = vld [vmem:[#allocation2 + $0x52] sm:$0xff] }
 0x563   :  { %4810 = vrot.lane.b32.xlu1 %v9617_v13, %s9706_s22 }
 0x564   :  { %4816 = vrot.lane.b32.xlu0 %v9618_v20, %s9706_s22 }
 0x565   :  { %v13976_v8 = vpop.permute.xlu1 %4570  ;;  %v13979_v22 = vpop.permute.xlu0 %4564 }
 0x566   :  { %16660 = vst [vmem:[#allocation133_spill] sm:$0xff] %v13976_v8  ;;  %16661 = vst [vmem:[#allocation134_spill] sm:$0xff] %v13979_v22  ;;  %v9622_v8 = vld [vmem:[#allocation2 + $0x7a] sm:$0xff]  ;;  %v9623_v22 = vld [vmem:[#allocation2 + $0x6a] sm:$0xff] }
 0x567   :  { %4814 = vrot.lane.b32.xlu1 %v9619_v29, %s9706_s22 }
 0x568   :  { %4820 = vrot.lane.b32.xlu0 %v9620_v5, %s9706_s22 }
 0x569   :  { %v13982_v14 = vpop.permute.xlu1 %4574  ;;  %v13985_v56 = vpop.permute.xlu0 %4568 }
 0x56a   :  { %16662 = vst [vmem:[#allocation157_spill] sm:$0xff] %v13982_v14  ;;  %16663 = vst [vmem:[#allocation158_spill] sm:$0xff] %v13985_v56  ;;  %v9624_v14 = vld [vmem:[#allocation2 + $0x92] sm:$0xff]  ;;  %v9625_v56 = vld [vmem:[#allocation2 + $0x82] sm:$0xff] }
 0x56b   :  { %4818 = vrot.lane.b32.xlu1 %v9621_v17, %s9706_s22 }
 0x56c   :  { %4824 = vrot.lane.b32.xlu0 %v9622_v8, %s9706_s22 }
 0x56d   :  { %v13988_v13 = vpop.permute.xlu1 %4578  ;;  %v13991_v20 = vpop.permute.xlu0 %4572 }
 0x56e   :  { %16664 = vst [vmem:[#allocation8_spill] sm:$0xff] %v13988_v13  ;;  %16665 = vst [vmem:[#allocation7_spill] sm:$0xff] %v13991_v20  ;;  %v9626_v13 = vld [vmem:[#allocation2 + $0xaa] sm:$0xff]  ;;  %v9627_v20 = vld [vmem:[#allocation2 + $0x9a] sm:$0xff] }
 0x56f   :  { %4822 = vrot.lane.b32.xlu1 %v9623_v22, %s9706_s22 }
 0x570   :  { %4828 = vrot.lane.b32.xlu0 %v9624_v14, %s9706_s22 }
 0x571   :  { %v13994_v29 = vpop.permute.xlu1 %4582  ;;  %v13997_v5 = vpop.permute.xlu0 %4576 }
 0x572   :  { %16666 = vst [vmem:[#allocation12_spill] sm:$0xff] %v13994_v29  ;;  %16667 = vst [vmem:[#allocation70_spill] sm:$0xff] %v13997_v5  ;;  %v9628_v29 = vld [vmem:[#allocation2 + $0xc2] sm:$0xff]  ;;  %v9629_v5 = vld [vmem:[#allocation2 + $0xb2] sm:$0xff] }
 0x573   :  { %4826 = vrot.lane.b32.xlu1 %v9625_v56, %s9706_s22 }
 0x574   :  { %4832 = vrot.lane.b32.xlu0 %v9626_v13, %s9706_s22 }
 0x575   :  { %v14000_v17 = vpop.permute.xlu1 %4586  ;;  %v14003_v8 = vpop.permute.xlu0 %4580 }
 0x576   :  { %16668 = vst [vmem:[#allocation69_spill] sm:$0xff] %v14000_v17  ;;  %v9630_v17 = vld [vmem:[#allocation2 + $0xda] sm:$0xff] }
 0x577   :  { %4830 = vrot.lane.b32.xlu1 %v9627_v20, %s9706_s22 }
 0x578   :  { %4836 = vrot.lane.b32.xlu0 %v9628_v29, %s9706_s22 }
 0x579   :  { %v14006_v22 = vpop.permute.xlu1 %4590  ;;  %v14009_v14 = vpop.permute.xlu0 %4584 }
 0x57a   :  { %16669 = vst [vmem:[#allocation73_spill] sm:$0xff] %v14006_v22  ;;  %16670 = vst [vmem:[#allocation19_spill] sm:$0xff] %v14009_v14  ;;  %v4257_v22 = vld [vmem:[#allocation2 + $0x15a] sm:$0xff] }
 0x57b   :  { %4834 = vrot.lane.b32.xlu1 %v9629_v5, %s9706_s22  ;;  %v16733_v14 = vld [vmem:[#allocation43_spill] sm:$0xff] }
 0x57c   :  { %4840 = vrot.lane.b32.xlu0 %v9630_v17, %s9706_s22 }
 0x57d   :  { %v14012_v56 = vpop.permute.xlu1 %4594  ;;  %v14015_v13 = vpop.permute.xlu0 %4588 }
 0x57e   :  { %16671 = vst [vmem:[#allocation20_spill] sm:$0xff] %v14012_v56  ;;  %16672 = vst [vmem:[#allocation11_spill] sm:$0xff] %v14015_v13  ;;  %v4255_v56 = vld [vmem:[#allocation2 + $0x142] sm:$0xff] }
 0x57f   :  { %4838 = vrot.lane.b32.xlu1 %v13298_v19, %s9706_s22 }
 0x580   :  { %4844 = vrot.lane.b32.xlu0 %v13304_v0, %s9706_s22 }
 0x581   :  { %v14019_v20 = vpop.permute.xlu1 %4598  ;;  %v14023_v29 = vpop.permute.xlu0 %4592 }
 0x582   :  { %16673 = vst [vmem:[#allocation75_spill] sm:$0xff] %v14019_v20  ;;  %16674 = vst [vmem:[#allocation74_spill] sm:$0xff] %v14023_v29 }
 0x583   :  { %4842 = vrot.lane.b32.xlu1 %v13318_v21, %s9706_s22 }
 0x584   :  { %4848 = vrot.lane.b32.xlu0 %v13335_v49, %s9706_s22 }
 0x585   :  { %v14027_v5 = vpop.permute.xlu1 %4602  ;;  %v14031_v17 = vpop.permute.xlu0 %4596 }
 0x586   :  { %16675 = vst [vmem:[#allocation16_spill] sm:$0xff] %v14027_v5  ;;  %16676 = vst [vmem:[#allocation15_spill] sm:$0xff] %v14031_v17  ;;  %v4232_v5 = vld [vmem:[#allocation2 + $0x32] sm:$0xff] }
 0x587   :  { %4846 = vrot.lane.b32.xlu1 %v13349_v33, %s9706_s22  ;;  %v4248_v17 = vld [vmem:[#allocation2 + $0xf2] sm:$0xff] }
 0x588   :  { %4852 = vrot.lane.b32.xlu0 %v13362_v57, %s9706_s22 }
 0x589   :  { %v14035_v19 = vpop.permute.xlu1 %4606  ;;  %v14039_v0 = vpop.permute.xlu0 %4600 }
 0x58a   :  { %16677 = vst [vmem:[#allocation76_spill] sm:$0xff] %v14035_v19  ;;  %16678 = vst [vmem:[#allocation17_spill] sm:$0xff] %v14039_v0 }
 0x58b   :  { %4850 = vrot.lane.b32.xlu1 %v13377_v58, %s9706_s22 }
 0x58c   :  { %4856 = vrot.lane.b32.xlu0 %v13396_v24, %s9706_s22 }
 0x58d   :  { %v14043_v21 = vpop.permute.xlu1 %4610  ;;  %v14047_v49 = vpop.permute.xlu0 %4604 }
 0x58e   :  { %16679 = vst [vmem:[#allocation18_spill] sm:$0xff] %v14043_v21  ;;  %16680 = vst [vmem:[#allocation77_spill] sm:$0xff] %v14047_v49  ;;  %v14065_v21 = vld [vmem:[#allocation2 + $0x182] sm:$0xff] }
 0x58f   :  { %4854 = vrot.lane.b32.xlu1 %v13408_v50, %s9706_s22 }
 0x590   :  { %4860 = vrot.lane.b32.xlu0 %v13421_v53, %s9706_s22 }
 0x591   :  { %v14051_v33 = vpop.permute.xlu1 %4614  ;;  %v14055_v57 = vpop.permute.xlu0 %4608 }
 0x592   :  { %16681 = vst [vmem:[#allocation78_spill] sm:$0xff] %v14051_v33  ;;  %16682 = vst [vmem:[#allocation21_spill] sm:$0xff] %v14055_v57 }
 0x593   :  { %4858 = vrot.lane.b32.xlu1 %v13436_v46, %s9706_s22  ;;  %v14077_v46 = vld [vmem:[#allocation2 + $0x18a] sm:$0xff] }
 0x594   :  { %4864 = vrot.lane.b32.xlu0 %v13456_v44, %s9706_s22 }
 0x595   :  { %v14059_v58 = vpop.permute.xlu1 %4682  ;;  %v14063_v24 = vpop.permute.xlu0 %4612 }
 0x596   :  { %16683 = vst [vmem:[#allocation22_spill] sm:$0xff] %v14063_v24 }
 0x597   :  { %4862 = vrot.lane.b32.xlu1 %v13468_v54, %s9706_s22 }
 0x598   :  { %4868 = vrot.lane.b32.xlu0 %v14065_v21, %s9706_s22 }
 0x599   :  { %v14069_v50 = vpop.permute.xlu1 %4686  ;;  %v14073_v53 = vpop.permute.xlu0 %4680 }
 0x59b   :  { %4866 = vrot.lane.b32.xlu1 %v13496_v6, %s9706_s22 }
 0x59c   :  { %4936 = vrot.lane.b32.xlu0 %v13526_v59, %s9707_s23 }
 0x59d   :  { %v14079_v44 = vpop.permute.xlu1 %4690  ;;  %v14083_v33 = vpop.permute.xlu0 %4684 }
 0x59f   :  { %4870 = vrot.lane.b32.xlu1 %v14077_v46, %s9706_s22 }
 0x5a0   :  { %4940 = vrot.lane.b32.xlu0 %v13553_v32, %s9707_s23 }
 0x5a1   :  { %v14087_v54 = vpop.permute.xlu1 %4694  ;;  %v14091_v24 = vpop.permute.xlu0 %4688 }
 0x5a3   :  { %4938 = vrot.lane.b32.xlu1 %v13570_v62, %s9707_s23 }
 0x5a4   :  { %4944 = vrot.lane.b32.xlu0 %v13584_v23, %s9707_s23 }
 0x5a5   :  { %v14095_v6 = vpop.permute.xlu1 %4698  ;;  %v14099_v59 = vpop.permute.xlu0 %4692 }
 0x5a7   :  { %4942 = vrot.lane.b32.xlu1 %v13597_v63, %s9707_s23 }
 0x5a8   :  { %4948 = vrot.lane.b32.xlu0 %v13614_v30, %s9707_s23 }
 0x5a9   :  { %v14103_v57 = vpop.permute.xlu1 %4702  ;;  %v14107_v32 = vpop.permute.xlu0 %4696 }
 0x5ab   :  { %4946 = vrot.lane.b32.xlu1 %v13632_v61, %s9707_s23 }
 0x5ac   :  { %4952 = vrot.lane.b32.xlu0 %v13646_v1, %s9707_s23 }
 0x5ad   :  { %v14111_v62 = vpop.permute.xlu1 %4706  ;;  %v14115_v23 = vpop.permute.xlu0 %4700 }
 0x5af   :  { %4950 = vrot.lane.b32.xlu1 %v13665_v11, %s9707_s23  ;;  %v5544_v11 = vld [vmem:[%s15836_s2] sm:$0xff] }
 0x5b0   :  { %4956 = vrot.lane.b32.xlu0 %v13680_v2, %s9707_s23  ;;  %v5545_v2 = vld [vmem:[%s15836_s2 + $0x8] sm:$0xff] }
 0x5b1   :  { %v14119_v63 = vpop.permute.xlu1 %4710  ;;  %v14123_v30 = vpop.permute.xlu0 %4704  ;;  %v8228_v19 = vpack.c.bf16 %v5545_v2, %v5544_v11  ;;  %v5547_v11 = vld [vmem:[%s15836_s2 + $0x18] sm:$0xff] }
 0x5b2   :  { %16684 = vst [vmem:[#allocation25_spill] sm:$0xff] %v14119_v63  ;;  %v16736_v63 = vld [vmem:[#allocation98_spill] sm:$0xff] }
 0x5b3   :  { %4954 = vrot.lane.b32.xlu1 %v13692_v25, %s9707_s23  ;;  %8229 = vmatprep.subr.bf16.mxu0 %v8228_v19 }
 0x5b4   :  { %4960 = vrot.lane.b32.xlu0 %v13700_v36, %s9707_s23  ;;  %8231 = vmatpush3.bf16.msra.mxu0 %v8228_v19  ;;  %v5549_v19 = vld [vmem:[%s15836_s2 + $0x28] sm:$0xff] }
 0x5b5   :  { %v14127_v61 = vpop.permute.xlu1 %4714  ;;  %v14131_v1 = vpop.permute.xlu0 %4708 }
 0x5b6   :  { %16685 = vst [vmem:[#allocation26_spill] sm:$0xff] %v14127_v61 }
 0x5b7   :  { %4958 = vrot.lane.b32.xlu1 %v13706_v16, %s9707_s23  ;;  %v5546_v16 = vld [vmem:[%s15836_s2 + $0x10] sm:$0xff] }
 0x5b8   :  { %4964 = vrot.lane.b32.xlu0 %v13714_v55, %s9707_s23  ;;  %v8232_v2 = vpack.c.bf16 %v5547_v11, %v5546_v16 }
 0x5b9   :  { %v14141_v25 = vpop.permute.xlu1 %4718  ;;  %v14145_v36 = vpop.permute.xlu0 %4712 }
 0x5ba   :  { %16686 = vst [vmem:[#allocation135_spill] sm:$0xff] %v14141_v25  ;;  %16687 = vst [vmem:[#allocation136_spill] sm:$0xff] %v14145_v36  ;;  %8233 = vmatprep.subr.bf16.mxu0 %v8232_v2  ;;  %v4256_v25 = vld [vmem:[#allocation2 + $0x152] sm:$0xff]  ;;  %v4258_v36 = vld [vmem:[#allocation2 + $0x16a] sm:$0xff] }
 0x5bb   :  { %4962 = vrot.lane.b32.xlu1 %v13720_v26, %s9707_s23  ;;  %8235 = vmatpush3.bf16.msra.mxu0 %v8232_v2  ;;  %v5548_v26 = vld [vmem:[%s15836_s2 + $0x20] sm:$0xff]  ;;  %v5551_v2 = vld [vmem:[%s15836_s2 + $0x38] sm:$0xff] }
 0x5bc   :  { %4968 = vrot.lane.b32.xlu0 %v13726_v28, %s9707_s23  ;;  %v8236_v16 = vpack.c.bf16 %v5549_v19, %v5548_v26 }
 0x5bd   :  { %v14155_v49 = vpop.permute.xlu1 %4722  ;;  %v14159_v55 = vpop.permute.xlu0 %4716 }
 0x5be   :  { %16688 = vst [vmem:[#allocation99_spill] sm:$0xff] %v14155_v49  ;;  %16689 = vst [vmem:[#allocation100_spill] sm:$0xff] %v14159_v55  ;;  %8237 = vmatprep.subr.bf16.mxu0 %v8236_v16  ;;  %v4254_v49 = vld [vmem:[#allocation2 + $0x13a] sm:$0xff]  ;;  %v4194_v55 = vld [vmem:[#allocation2 + $0x168] sm:$0xff] }
 0x5bf   :  { %4966 = vrot.lane.b32.xlu1 %v13732_v3, %s9707_s23  ;;  %8239 = vmatpush3.bf16.msra.mxu0 %v8236_v16  ;;  %v5550_v3 = vld [vmem:[%s15836_s2 + $0x30] sm:$0xff] }
 0x5c0   :  { %4972 = vrot.lane.b32.xlu0 %v13742_v45, %s9707_s23  ;;  %v8240_v26 = vpack.c.bf16 %v5551_v2, %v5550_v3 }
 0x5c1   :  { %v14169_v11 = vpop.permute.xlu1 %4726  ;;  %v14173_v28 = vpop.permute.xlu0 %4720 }
 0x5c2   :  { %16690 = vst [vmem:[#allocation160_spill] sm:$0xff] %v14169_v11  ;;  %16691 = vst [vmem:[#allocation9_spill] sm:$0xff] %v14173_v28  ;;  %8241 = vmatprep.subr.bf16.mxu0 %v8240_v26  ;;  %v4192_v28 = vld [vmem:[#allocation2 + $0x150] sm:$0xff] }
 0x5c3   :  { %4970 = vrot.lane.b32.xlu1 %v13748_v60, %s9707_s23  ;;  %8243 = vmatpush3.bf16.msra.mxu0 %v8240_v26  ;;  %v5552_v60 = vld [vmem:[%s15836_s2 + $0x40] sm:$0xff]  ;;  %v4234_v26 = vld [vmem:[#allocation2 + $0x4a] sm:$0xff] }
 0x5c4   :  { %5064 = vrot.lane.b32.xlu0 %v13792_v4, %s9708_s28  ;;  %8114 = vmatprep.subr.mxu0 %v5552_v60  ;;  %v4233_v4 = vld [vmem:[#allocation2 + $0x3a] sm:$0xff] }
 0x5c5   :  { %v14183_v19 = vpop.permute.xlu1 %4730  ;;  %v14187_v45 = vpop.permute.xlu0 %4724 }
 0x5c6   :  { %16692 = vst [vmem:[#allocation10_spill] sm:$0xff] %v14183_v19  ;;  %16693 = vst [vmem:[#allocation29_spill] sm:$0xff] %v14187_v45  ;;  %v4246_v45 = vld [vmem:[#allocation2 + $0xda] sm:$0xff] }
 0x5c7   :  { %4974 = vrot.lane.b32.xlu1 %v13757_v7, %s9707_s23  ;;  %8115 = vmatpush3.msra.mxu0 %v5552_v60 }
 0x5c8   :  { %5192 = vrot.lane.b32.xlu0 %v4232_v5, %s9709_s30 }
 0x5c9   :  { %v14194_v16 = vpop.permute.xlu1 %4734  ;;  %v14197_v3 = vpop.permute.xlu0 %4728 }
 0x5ca   :  { %16694 = vst [vmem:[#allocation30_spill] sm:$0xff] %v14194_v16  ;;  %16695 = vst [vmem:[#allocation59_spill] sm:$0xff] %v14197_v3 }
 0x5cb   :  { %5066 = vrot.lane.b32.xlu1 %v13804_v51, %s9708_s28  ;;  %v4235_v51 = vld [vmem:[#allocation2 + $0x52] sm:$0xff] }
 0x5cc   :  { %5068 = vrot.lane.b32.xlu0 %v13801_v9, %s9708_s28 }
 0x5cd   :  { %v14201_v2 = vpop.permute.xlu1 %4738  ;;  %v14205_v7 = vpop.permute.xlu0 %4732 }
 0x5ce   :  { %16696 = vst [vmem:[#allocation60_spill] sm:$0xff] %v14201_v2  ;;  %16697 = vst [vmem:[#allocation79_spill] sm:$0xff] %v14205_v7 }
 0x5cf   :  { %5194 = vrot.lane.b32.xlu1 %v4233_v4, %s9709_s30  ;;  %v3903_v4 = vld [vmem:[%s15835_s1] sm:$0xff] }
 0x5d0   :  { %5196 = vrot.lane.b32.xlu0 %v4234_v26, %s9709_s30 }
 0x5d1   :  { %v14208_v16 = vpop.permute.xlu1 %4742  ;;  %v14211_v5 = vpop.permute.xlu0 %4736 }
 0x5d2   :  { %16698 = vst [vmem:[#allocation80_spill] sm:$0xff] %v14208_v16  ;;  %16699 = vst [vmem:[#allocation137_spill] sm:$0xff] %v14211_v5  ;;  %v4236_v16 = vld [vmem:[#allocation2 + $0x62] sm:$0xff] }
 0x5d3   :  { %5070 = vrot.lane.b32.xlu1 %v13816_v39, %s9708_s28  ;;  %v3904_v39 = vld [vmem:[%s15835_s1 + $0x8] sm:$0xff] }
 0x5d4   :  { %5072 = vrot.lane.b32.xlu0 %v13812_v12, %s9708_s28 }
 0x5d5   :  { %v14215_v60 = vpop.permute.xlu1 %4810  ;;  %v14219_v9 = vpop.permute.xlu0 %4740 }
 0x5d6   :  { %16700 = vst [vmem:[#allocation138_spill] sm:$0xff] %v14219_v9  ;;  %v3898_v2 = vpop.f32.mrb[0].mxu1 }
 0x5d7   :  { %v3899_v26 = vadd.f32 %v3898_v2, %v13481_v41  ;;  %5198 = vrot.lane.b32.xlu1 %v4235_v51, %s9709_s30  ;;  %v3900_v5 = vpop.f32.mrb[1].mxu1  ;;  %v4237_v51 = vld [vmem:[#allocation2 + $0x6a] sm:$0xff] }
 0x5d8   :  { %v3901_v7 = vadd.f32 %v3900_v5, %v13481_v41  ;;  %5200 = vrot.lane.b32.xlu0 %v4236_v16, %s9709_s30  ;;  %v4238_v5 = vld [vmem:[#allocation2 + $0x7a] sm:$0xff] }
 0x5d9   :  { %v3905_v12 = vadd.f32 %v3903_v4, %v3899_v26  ;;  %v14230_v19 = vpop.permute.xlu1 %4814  ;;  %v14233_v3 = vpop.permute.xlu0 %4808 }
 0x5da   :  { %v3906_v9 = vadd.f32 %v3904_v39, %v3901_v7 }
 0x5db   :  { %v3907_v0 = vmax.f32 %v3905_v12, 0.0  ;;  %5074 = vrot.lane.b32.xlu1 %v13828_v10, %s9708_s28  ;;  %v4239_v10 = vld [vmem:[#allocation2 + $0x82] sm:$0xff]  ;;  %v4242_v12 = vld [vmem:[#allocation2 + $0xaa] sm:$0xff] }
 0x5dc   :  { %v3908_v2 = vmax.f32 %v3906_v9, 0.0  ;;  %5076 = vrot.lane.b32.xlu0 %v13824_v47, %s9708_s28  ;;  %v4240_v9 = vld [vmem:[#allocation2 + $0x92] sm:$0xff] }
 0x5dd   :  { %3909 = vst [vmem:[#allocation4] sm:$0xff] %v3907_v0  ;;  %v14237_v11 = vpop.permute.xlu1 %4818  ;;  %v14241_v41 = vpop.permute.xlu0 %4812 }
 0x5de   :  { %3910 = vst [vmem:[#allocation4 + $0x8] sm:$0xff] %v3908_v2 }
 0x5df   :  { %5202 = vrot.lane.b32.xlu1 %v4237_v51, %s9709_s30 }
 0x5e0   :  { %5204 = vrot.lane.b32.xlu0 %v4238_v5, %s9709_s30 }
 0x5e1   :  { %v14244_v16 = vpop.permute.xlu1 %4822  ;;  %v14247_v7 = vpop.permute.xlu0 %4816 }
 0x5e3   :  { %5078 = vrot.lane.b32.xlu1 %v13840_v31, %s9708_s28  ;;  %v4241_v31 = vld [vmem:[#allocation2 + $0x9a] sm:$0xff] }
 0x5e4   :  { %5080 = vrot.lane.b32.xlu0 %v13836_v40, %s9708_s28 }
 0x5e5   :  { %v14251_v0 = vpop.permute.xlu1 %4826  ;;  %v14255_v47 = vpop.permute.xlu0 %4820 }
 0x5e7   :  { %5206 = vrot.lane.b32.xlu1 %v4239_v10, %s9709_s30  ;;  %v4244_v10 = vld [vmem:[#allocation2 + $0xc2] sm:$0xff] }
 0x5e8   :  { %5208 = vrot.lane.b32.xlu0 %v4240_v9, %s9709_s30 }
 0x5e9   :  { %v14258_v4 = vpop.permute.xlu1 %4830  ;;  %v14261_v26 = vpop.permute.xlu0 %4824 }
 0x5eb   :  { %5082 = vrot.lane.b32.xlu1 %v13852_v48, %s9708_s28  ;;  %v4243_v48 = vld [vmem:[#allocation2 + $0xb2] sm:$0xff] }
 0x5ec   :  { %5084 = vrot.lane.b32.xlu0 %v13848_v15, %s9708_s28 }
 0x5ed   :  { %v14265_v39 = vpop.permute.xlu1 %4834  ;;  %v14269_v40 = vpop.permute.xlu0 %4828 }
 0x5ef   :  { %5210 = vrot.lane.b32.xlu1 %v4241_v31, %s9709_s30 }
 0x5f0   :  { %5212 = vrot.lane.b32.xlu0 %v4242_v12, %s9709_s30 }
 0x5f1   :  { %v14272_v2 = vpop.permute.xlu1 %4838  ;;  %v14275_v51 = vpop.permute.xlu0 %4832 }
 0x5f2   :  { %16701 = vst [vmem:[#allocation101_spill] sm:$0xff] %v14272_v2  ;;  %v16735_v2 = vld [vmem:[#allocation120_spill] sm:$0xff] }
 0x5f3   :  { %5086 = vrot.lane.b32.xlu1 %v13864_v18, %s9708_s28  ;;  %v4245_v18 = vld [vmem:[#allocation2 + $0xca] sm:$0xff] }
 0x5f4   :  { %5088 = vrot.lane.b32.xlu0 %v13860_v35, %s9708_s28 }
 0x5f5   :  { %v14279_v5 = vpop.permute.xlu1 %4842  ;;  %v14283_v15 = vpop.permute.xlu0 %4836 }
 0x5f6   :  { %16702 = vst [vmem:[#allocation102_spill] sm:$0xff] %v14279_v5  ;;  %16703 = vst [vmem:[#allocation161_spill] sm:$0xff] %v14283_v15  ;;  %v4226_v5 = vld [vmem:[#allocation2 + $0x169] sm:$0xff] }
 0x5f7   :  { %5214 = vrot.lane.b32.xlu1 %v4243_v48, %s9709_s30 }
 0x5f8   :  { %5216 = vrot.lane.b32.xlu0 %v4244_v10, %s9709_s30 }
 0x5f9   :  { %v14286_v9 = vpop.permute.xlu1 %4846  ;;  %v14289_v31 = vpop.permute.xlu0 %4840 }
 0x5fa   :  { %16704 = vst [vmem:[#allocation13_spill] sm:$0xff] %v14286_v9  ;;  %16705 = vst [vmem:[#allocation14_spill] sm:$0xff] %v14289_v31 }
 0x5fb   :  { %5090 = vrot.lane.b32.xlu1 %v13876_v52, %s9708_s28  ;;  %v4247_v52 = vld [vmem:[#allocation2 + $0xe2] sm:$0xff] }
 0x5fc   :  { %5092 = vrot.lane.b32.xlu0 %v13872_v37, %s9708_s28 }
 0x5fd   :  { %v14293_v12 = vpop.permute.xlu1 %4850  ;;  %v14297_v35 = vpop.permute.xlu0 %4844 }
 0x5fe   :  { %16706 = vst [vmem:[#allocation33_spill] sm:$0xff] %v14293_v12  ;;  %16707 = vst [vmem:[#allocation34_spill] sm:$0xff] %v14297_v35 }
 0x5ff   :  { %5218 = vrot.lane.b32.xlu1 %v4245_v18, %s9709_s30 }
 0x600   :  { %5220 = vrot.lane.b32.xlu0 %v4246_v45, %s9709_s30 }
 0x601   :  { %v14300_v48 = vpop.permute.xlu1 %4854  ;;  %v14303_v10 = vpop.permute.xlu0 %4848 }
 0x602   :  { %16708 = vst [vmem:[#allocation63_spill] sm:$0xff] %v14300_v48  ;;  %16709 = vst [vmem:[#allocation64_spill] sm:$0xff] %v14303_v10 }
 0x603   :  { %5094 = vrot.lane.b32.xlu1 %v13888_v34, %s9708_s28  ;;  %v4249_v34 = vld [vmem:[#allocation2 + $0xfa] sm:$0xff] }
 0x604   :  { %5096 = vrot.lane.b32.xlu0 %v13884_v43, %s9708_s28 }
 0x605   :  { %v14307_v20 = vpop.permute.xlu1 %4858  ;;  %v14311_v37 = vpop.permute.xlu0 %4852 }
 0x606   :  { %16710 = vst [vmem:[#allocation81_spill] sm:$0xff] %v14307_v20  ;;  %16711 = vst [vmem:[#allocation82_spill] sm:$0xff] %v14311_v37  ;;  %v4250_v20 = vld [vmem:[#allocation2 + $0x10a] sm:$0xff] }
 0x607   :  { %5222 = vrot.lane.b32.xlu1 %v4247_v52, %s9709_s30 }
 0x608   :  { %5224 = vrot.lane.b32.xlu0 %v4248_v17, %s9709_s30 }
 0x609   :  { %v14314_v18 = vpop.permute.xlu1 %4862  ;;  %v14317_v45 = vpop.permute.xlu0 %4856 }
 0x60a   :  { %16712 = vst [vmem:[#allocation139_spill] sm:$0xff] %v14314_v18  ;;  %16713 = vst [vmem:[#allocation140_spill] sm:$0xff] %v14317_v45  ;;  %v4188_v18 = vld [vmem:[#allocation2 + $0x120] sm:$0xff]  ;;  %v4253_v45 = vld [vmem:[#allocation2 + $0x12a] sm:$0xff] }
 0x60b   :  { %5098 = vrot.lane.b32.xlu1 %v13900_v42, %s9708_s28  ;;  %v4251_v42 = vld [vmem:[#allocation2 + $0x112] sm:$0xff] }
 0x60c   :  { %5100 = vrot.lane.b32.xlu0 %v13896_v38, %s9708_s28 }
 0x60d   :  { %v14321_v48 = vpop.permute.xlu1 %4866  ;;  %v14325_v43 = vpop.permute.xlu0 %4860 }
 0x60e   :  { %16714 = vst [vmem:[#allocation163_spill] sm:$0xff] %v14321_v48  ;;  %16715 = vst [vmem:[#allocation23_spill] sm:$0xff] %v14325_v43 }
 0x60f   :  { %5226 = vrot.lane.b32.xlu1 %v4249_v34, %s9709_s30  ;;  %v4189_v34 = vld [vmem:[#allocation2 + $0x128] sm:$0xff] }
 0x610   :  { %5228 = vrot.lane.b32.xlu0 %v4250_v20, %s9709_s30  ;;  %v16719_v20 = vld [vmem:[#allocation154_spill] sm:$0xff] }
 0x611   :  { %v14328_v52 = vpop.permute.xlu1 %4870  ;;  %v14331_v17 = vpop.permute.xlu0 %4864 }
 0x612   :  { %16716 = vst [vmem:[#allocation24_spill] sm:$0xff] %v14328_v52  ;;  %16717 = vst [vmem:[#allocation83_spill] sm:$0xff] %v14331_v17  ;;  %v4252_v17 = vld [vmem:[#allocation2 + $0x122] sm:$0xff] }
 0x613   :  { %5102 = vrot.lane.b32.xlu1 %v13912_v27, %s9708_s28 }
 0x614   :  { %4976 = vrot.lane.b32.xlu0 %v4188_v18, %s9707_s23 }
 0x615   :  { %v14335_v48 = vpop.permute.xlu1 %4938  ;;  %v14338_v38 = vpop.permute.xlu0 %4868 }
 0x616   :  { %16718 = vst [vmem:[#allocation142_spill] sm:$0xff] %v14338_v38  ;;  %v4190_v38 = vld [vmem:[#allocation2 + $0x138] sm:$0xff] }
 0x617   :  { %5230 = vrot.lane.b32.xlu1 %v4251_v42, %s9709_s30  ;;  %v16720_v42 = vld [vmem:[#allocation178_spill] sm:$0xff] }
 0x618   :  { %5104 = vrot.lane.b32.xlu0 %v16719_v20, %s9708_s28 }
 0x619   :  { %v14341_v43 = vpop.permute.xlu1 %4942  ;;  %v14345_v52 = vpop.permute.xlu0 %4936 }
 0x61b   :  { %4978 = vrot.lane.b32.xlu1 %v4189_v34, %s9707_s23  ;;  %v4191_v34 = vld [vmem:[#allocation2 + $0x140] sm:$0xff] }
 0x61c   :  { %5232 = vrot.lane.b32.xlu0 %v4252_v17, %s9709_s30  ;;  %v16721_v17 = vld [vmem:[#allocation177_spill] sm:$0xff] }
 0x61d   :  { %v14348_v27 = vpop.permute.xlu1 %4946  ;;  %v14351_v18 = vpop.permute.xlu0 %4940 }
 0x61f   :  { %5106 = vrot.lane.b32.xlu1 %v16720_v42, %s9708_s28 }
 0x620   :  { %4980 = vrot.lane.b32.xlu0 %v4190_v38, %s9707_s23 }
 0x621   :  { %v14355_v37 = vpop.permute.xlu1 %4950  ;;  %v14358_v20 = vpop.permute.xlu0 %4944 }
 0x623   :  { %5234 = vrot.lane.b32.xlu1 %v4253_v45, %s9709_s30  ;;  %v16722_v45 = vld [vmem:[#allocation66_spill] sm:$0xff] }
 0x624   :  { %5108 = vrot.lane.b32.xlu0 %v16721_v17, %s9708_s28 }
 0x625   :  { %v14361_v12 = vpop.permute.xlu1 %4954  ;;  %v14365_v10 = vpop.permute.xlu0 %4948 }
 0x627   :  { %4982 = vrot.lane.b32.xlu1 %v4191_v34, %s9707_s23  ;;  %v4193_v34 = vld [vmem:[#allocation2 + $0x158] sm:$0xff] }
 0x628   :  { %5236 = vrot.lane.b32.xlu0 %v4254_v49, %s9709_s30  ;;  %v16724_v49 = vld [vmem:[#allocation65_spill] sm:$0xff] }
 0x629   :  { %v14368_v42 = vpop.permute.xlu1 %4958  ;;  %v14371_v38 = vpop.permute.xlu0 %4952 }
 0x62b   :  { %5110 = vrot.lane.b32.xlu1 %v16722_v45, %s9708_s28 }
 0x62c   :  { %4984 = vrot.lane.b32.xlu0 %v4192_v28, %s9707_s23 }
 0x62d   :  { %v14375_v29 = vpop.permute.xlu1 %4962  ;;  %v14378_v17 = vpop.permute.xlu0 %4956 }
 0x62f   :  { %5238 = vrot.lane.b32.xlu1 %v4255_v56, %s9709_s30  ;;  %v16727_v56 = vld [vmem:[#allocation97_spill] sm:$0xff] }
 0x630   :  { %5112 = vrot.lane.b32.xlu0 %v16724_v49, %s9708_s28 }
 0x631   :  { %v14381_v9 = vpop.permute.xlu1 %4966  ;;  %v14385_v35 = vpop.permute.xlu0 %4960 }
 0x632   :  { %16723 = vst [vmem:[#allocation38_spill] sm:$0xff] %v14381_v9 }
 0x633   :  { %4986 = vrot.lane.b32.xlu1 %v4193_v34, %s9707_s23  ;;  %v4195_v34 = vld [vmem:[#allocation2 + $0x170] sm:$0xff] }
 0x634   :  { %5240 = vrot.lane.b32.xlu0 %v4256_v25, %s9709_s30  ;;  %v3977_v25 = vld [vmem:[#allocation2 + $0x8] sm:$0xff] }
 0x635   :  { %v14388_v45 = vpop.permute.xlu1 %4970  ;;  %v14391_v28 = vpop.permute.xlu0 %4964 }
 0x636   :  { %16725 = vst [vmem:[#allocation141_spill] sm:$0xff] %v14388_v45  ;;  %16726 = vst [vmem:[#allocation103_spill] sm:$0xff] %v14391_v28  ;;  %v3976_v45 = vld [vmem:[#allocation2] sm:$0xff]  ;;  %v16734_v28 = vld [vmem:[#allocation114_spill] sm:$0xff] }
 0x637   :  { %5114 = vrot.lane.b32.xlu1 %v16727_v56, %s9708_s28  ;;  %v16731_v56 = vld [vmem:[#allocation145_spill] sm:$0xff] }
 0x638   :  { %4988 = vrot.lane.b32.xlu0 %v4194_v55, %s9707_s23  ;;  %v16732_v55 = vld [vmem:[#allocation146_spill] sm:$0xff] }
 0x639   :  { %v14395_v13 = vpop.permute.xlu1 %4974  ;;  %v14398_v49 = vpop.permute.xlu0 %4968 }
 0x63a   :  { %16728 = vst [vmem:[#allocation37_spill] sm:$0xff] %v14395_v13  ;;  %16729 = vst [vmem:[#allocation106_spill] sm:$0xff] %v14398_v49  ;;  %v5288_v13 = vsel %vm24_vm0, %v3976_v45, %v16731_v56  ;;  %v5289_v49 = vsel %vm24_vm0, %v3977_v25, %v16732_v55  ;;  %v16737_v56 = vld [vmem:[#allocation156_spill] sm:$0xff] }
 0x63b   :  { %5242 = vrot.lane.b32.xlu1 %v4257_v22, %s9709_s30  ;;  %v5320_v22 = vsel %vm1523_vm3, %v5288_v13, %v16733_v14 }
 0x63c   :  { %5116 = vrot.lane.b32.xlu0 %v4226_v5, %s9708_s28  ;;  %v5321_v5 = vsel %vm1523_vm3, %v5289_v49, %v16734_v28 }
 0x63d   :  { %v5067_v31 = vpop.permute.xlu1 %5066  ;;  %v14402_v61 = vpop.permute.xlu0 %4972  ;;  %v5353_v45 = vsel %vm1556_vm4, %v5321_v5, %v16736_v63 }
 0x63e   :  { %16730 = vst [vmem:[#allocation107_spill] sm:$0xff] %v14402_v61  ;;  %v5352_v61 = vsel %vm1556_vm4, %v5320_v22, %v16735_v2  ;;  %v5385_v14 = vsel %vm1589_vm5, %v5353_v45, %v14059_v58  ;;  %v4228_v58 = vld [vmem:[#allocation2 + $0x181] sm:$0xff]  ;;  %v16738_v22 = vld [vmem:[#allocation169_spill] sm:$0xff] }
 0x63f   :  { %4990 = vrot.lane.b32.xlu1 %v4195_v34, %s9707_s23  ;;  %v4196_v34 = vld [vmem:[#allocation2 + $0x180] sm:$0xff]  ;;  %v5384_v25 = vsel %vm1589_vm5, %v5352_v61, %v14073_v53  ;;  %v5417_v2 = vsel %vm1622_vm6, %v5385_v14, %v14215_v60  ;;  %v9631_v60 = vld [vmem:[#allocation2 + $0x18] sm:$0xff]  ;;  %v16739_v45 = vld [vmem:[#allocation109_spill] sm:$0xff] }
 0x640   :  { %5244 = vrot.lane.b32.xlu0 %v4258_v36, %s9709_s30  ;;  %v5416_v13 = vsel %vm1622_vm6, %v5384_v25, %v14233_v3  ;;  %v4259_v36 = vld [vmem:[#allocation2 + $0x172] sm:$0xff]  ;;  %v5449_v53 = vsel %vm1655_vm7, %v5417_v2, %v14335_v48  ;;  %v9632_v48 = vld [vmem:[#allocation2 + $0x20] sm:$0xff] }
 0x641   :  { %v5195_v9 = vpop.permute.xlu1 %5194  ;;  %v5065_v15 = vpop.permute.xlu0 %5064  ;;  %v5448_v28 = vsel %vm1655_vm7, %v5416_v13, %v14345_v52  ;;  %v5481_v55 = vsel %vm1688_vm8, %v5449_v53, %v5067_v31  ;;  %v5290_v52 = vsel %vm24_vm0, %v9631_v60, %v16738_v22  ;;  %v16740_v25 = vld [vmem:[#allocation57_spill] sm:$0xff]  ;;  %v16741_v14 = vld [vmem:[#allocation174_spill] sm:$0xff] }
 0x642   :  { %v5480_v61 = vsel %vm1688_vm8, %v5448_v28, %v5065_v15  ;;  %v5513_v5 = vsel %vm1721_vm9, %v5481_v55, %v5195_v9  ;;  %v5291_v15 = vsel %vm24_vm0, %v9632_v48, %v16739_v45  ;;  %v5322_v31 = vsel %vm1523_vm3, %v5290_v52, %v16740_v25  ;;  %v16743_v28 = vld [vmem:[#allocation119_spill] sm:$0xff]  ;;  %v4229_v55 = vld [vmem:[#allocation2 + $0x189] sm:$0xff] }
 0x643   :  { %5118 = vrot.lane.b32.xlu1 %v16737_v56, %s9708_s28  ;;  %v5323_v13 = vsel %vm1523_vm3, %v5291_v15, %v16741_v14  ;;  %v16744_v48 = vld [vmem:[#allocation35_spill] sm:$0xff]  ;;  %v16747_v14 = vld [vmem:[#allocation44_spill] sm:$0xff] }
 0x644   :  { %4992 = vrot.lane.b32.xlu0 %v4196_v34, %s9707_s23  ;;  %v4197_v34 = vld [vmem:[#allocation2 + $0x188] sm:$0xff]  ;;  %v5355_v53 = vsel %vm1556_vm4, %v5323_v13, %v16743_v28  ;;  %v16746_v25 = vld [vmem:[#allocation127_spill] sm:$0xff] }
 0x645   :  { %v5071_v63 = vpop.permute.xlu1 %5070  ;;  %v5193_v49 = vpop.permute.xlu0 %5192  ;;  %v16749_v28 = vld [vmem:[#allocation179_spill] sm:$0xff] }
 0x646   :  { %v5512_v3 = vsel %vm1721_vm9, %v5480_v61, %v5193_v49  ;;  %v5387_v49 = vsel %vm1589_vm5, %v5355_v53, %v14069_v50 }
 0x647   :  { %5246 = vrot.lane.b32.xlu1 %v4259_v36, %s9709_s30  ;;  %8116 = vmatprep.mubr.msk.f32.mxu0 %vm1770_vm10, %v5512_v3  ;;  %v16742_v36 = vld [vmem:[#allocation180_spill] sm:$0xff]  ;;  %v5419_v3 = vsel %vm1622_vm6, %v5387_v49, %v14230_v19  ;;  %v9633_v19 = vld [vmem:[#allocation2 + $0x30] sm:$0xff] }
 0x648   :  { %8117 = vmatmul.mubr.msk.f32.vlgmr.msra.gmra.mrb[32].mxu0 %vm1770_vm10, %v5513_v5  ;;  %5120 = vrot.lane.b32.xlu0 %v4228_v58, %s9708_s28  ;;  %v5354_v9 = vsel %vm1556_vm4, %v5322_v31, %v16742_v36  ;;  %v4198_v5 = vld [vmem:[#allocation2 + $0x198] sm:$0xff]  ;;  %v16748_v36 = vld [vmem:[#allocation56_spill] sm:$0xff] }
 0x649   :  { %v5199_v56 = vpop.permute.xlu1 %5198  ;;  %v5069_v2 = vpop.permute.xlu0 %5068  ;;  %v5386_v61 = vsel %vm1589_vm5, %v5354_v9, %v14083_v33  ;;  %v5451_v33 = vsel %vm1655_vm7, %v5419_v3, %v14341_v43  ;;  %v16745_v43 = vld [vmem:[#allocation110_spill] sm:$0xff] }
 0x64a   :  { %v5418_v58 = vsel %vm1622_vm6, %v5386_v61, %v14241_v41  ;;  %v5483_v41 = vsel %vm1688_vm8, %v5451_v33, %v5071_v63 }
 0x64b   :  { %4994 = vrot.lane.b32.xlu1 %v4197_v34, %s9707_s23  ;;  %v5450_v60 = vsel %vm1655_vm7, %v5418_v58, %v14351_v18  ;;  %v5292_v18 = vsel %vm24_vm0, %v9633_v19, %v16744_v48  ;;  %v5515_v45 = vsel %vm1721_vm9, %v5483_v41, %v5199_v56  ;;  %v16751_v19 = vld [vmem:[#allocation170_spill] sm:$0xff] }
 0x64c   :  { %5248 = vrot.lane.b32.xlu0 %v14065_v21, %s9709_s30  ;;  %v5482_v52 = vsel %vm1688_vm8, %v5450_v60, %v5069_v2  ;;  %v9634_v21 = vld [vmem:[#allocation2 + $0x38] sm:$0xff]  ;;  %v5324_v31 = vsel %vm1523_vm3, %v5292_v18, %v16746_v25  ;;  %v16752_v18 = vld [vmem:[#allocation93_spill] sm:$0xff] }
 0x64d   :  { %v5075_v22 = vpop.permute.xlu1 %5074  ;;  %v5197_v50 = vpop.permute.xlu0 %5196  ;;  %v5293_v15 = vsel %vm24_vm0, %v9634_v21, %v16745_v43  ;;  %v5356_v56 = vsel %vm1556_vm4, %v5324_v31, %v16748_v36  ;;  %v4230_v2 = vld [vmem:[#allocation2 + $0x199] sm:$0xff] }
 0x64e   :  { %v5514_v34 = vsel %vm1721_vm9, %v5482_v52, %v5197_v50  ;;  %v5325_v13 = vsel %vm1523_vm3, %v5293_v15, %v16747_v14  ;;  %v5388_v61 = vsel %vm1589_vm5, %v5356_v56, %v14091_v24  ;;  %v16753_v21 = vld [vmem:[#allocation58_spill] sm:$0xff] }
 0x64f   :  { %5122 = vrot.lane.b32.xlu1 %v4229_v55, %s9708_s28  ;;  %8119 = vmatprep.mubr.msk.f32.mxu0 %vm1770_vm10, %v5514_v34  ;;  %v5357_v53 = vsel %vm1556_vm4, %v5325_v13, %v16749_v28  ;;  %v5420_v58 = vsel %vm1622_vm6, %v5388_v61, %v14247_v7  ;;  %v4199_v55 = vld [vmem:[#allocation2 + $0x1a0] sm:$0xff]  ;;  %v16754_v15 = vld [vmem:[#allocation134_spill] sm:$0xff] }
 0x650   :  { %8120 = vmatmul.mubr.msk.f32.gmra.mrb[34].mxu0 %vm1770_vm10, %v5515_v45  ;;  %4996 = vrot.lane.b32.xlu0 %v4198_v5, %s9707_s23  ;;  %v5389_v49 = vsel %vm1589_vm5, %v5357_v53, %v14079_v44  ;;  %v5452_v60 = vsel %vm1655_vm7, %v5420_v58, %v14358_v20  ;;  %v4262_v44 = vld [vmem:[#allocation2 + $0x19a] sm:$0xff]  ;;  %v16750_v5 = vld [vmem:[#allocation49_spill] sm:$0xff] }
 0x651   :  { %v5203_v63 = vpop.permute.xlu1 %5202  ;;  %v5073_v9 = vpop.permute.xlu0 %5072  ;;  %v5421_v3 = vsel %vm1622_vm6, %v5389_v49, %v14237_v11  ;;  %v9635_v11 = vld [vmem:[#allocation2 + $0x48] sm:$0xff] }
 0x652   :  { %v5453_v24 = vsel %vm1655_vm7, %v5421_v3, %v14348_v27  ;;  %v5294_v20 = vsel %vm24_vm0, %v9635_v11, %v16750_v5  ;;  %v4231_v34 = vld [vmem:[#allocation2 + $0x1a1] sm:$0xff]  ;;  %v9636_v27 = vld [vmem:[#allocation2 + $0x50] sm:$0xff] }
 0x653   :  { %5250 = vrot.lane.b32.xlu1 %v14077_v46, %s9709_s30  ;;  %v5484_v46 = vsel %vm1688_vm8, %v5452_v60, %v5073_v9  ;;  %v5485_v50 = vsel %vm1688_vm8, %v5453_v24, %v5075_v22  ;;  %v5295_v48 = vsel %vm24_vm0, %v9636_v27, %v16751_v19  ;;  %v5326_v22 = vsel %vm1523_vm3, %v5294_v20, %v16752_v18  ;;  %v4263_v9 = vld [vmem:[#allocation2 + $0x1a2] sm:$0xff]  ;;  %v16761_v5 = vld [vmem:[#allocation133_spill] sm:$0xff] }
 0x654   :  { %5124 = vrot.lane.b32.xlu0 %v4230_v2, %s9708_s28  ;;  %v5517_v41 = vsel %vm1721_vm9, %v5485_v50, %v5203_v63  ;;  %v5327_v43 = vsel %vm1523_vm3, %v5295_v48, %v16753_v21  ;;  %v5358_v25 = vsel %vm1556_vm4, %v5326_v22, %v16754_v15  ;;  %v16755_v63 = vld [vmem:[#allocation55_spill] sm:$0xff]  ;;  %v16757_v60 = vld [vmem:[#allocation36_spill] sm:$0xff]  ;;  %v16760_v50 = vld [vmem:[#allocation158_spill] sm:$0xff] }
 0x655   :  { %v5079_v33 = vpop.permute.xlu1 %5078  ;;  %v5201_v52 = vpop.permute.xlu0 %5200  ;;  %v5359_v14 = vsel %vm1556_vm4, %v5327_v43, %v16755_v63  ;;  %v5390_v13 = vsel %vm1589_vm5, %v5358_v25, %v14099_v59  ;;  %v16758_v24 = vld [vmem:[#allocation151_spill] sm:$0xff]  ;;  %v9639_v43 = vld [vmem:[#allocation2 + $0x78] sm:$0xff]  ;;  %v16762_v15 = vld [vmem:[#allocation89_spill] sm:$0xff] }
 0x656   :  { %v5516_v7 = vsel %vm1721_vm9, %v5484_v46, %v5201_v52  ;;  %v5391_v36 = vsel %vm1589_vm5, %v5359_v14, %v14087_v54  ;;  %v5422_v56 = vsel %vm1622_vm6, %v5390_v13, %v14255_v47  ;;  %v9637_v47 = vld [vmem:[#allocation2 + $0x60] sm:$0xff]  ;;  %v16759_v52 = vld [vmem:[#allocation128_spill] sm:$0xff]  ;;  %v16763_v25 = vld [vmem:[#allocation50_spill] sm:$0xff] }
 0x657   :  { %4998 = vrot.lane.b32.xlu1 %v4199_v55, %s9707_s23  ;;  %8122 = vmatprep.mubr.msk.f32.mxu0 %vm1770_vm10, %v5516_v7  ;;  %v5423_v2 = vsel %vm1622_vm6, %v5391_v36, %v14244_v16  ;;  %v5454_v28 = vsel %vm1655_vm7, %v5422_v56, %v14365_v10  ;;  %v16756_v55 = vld [vmem:[#allocation123_spill] sm:$0xff]  ;;  %v9638_v10 = vld [vmem:[#allocation2 + $0x68] sm:$0xff]  ;;  %v16765_v13 = vld [vmem:[#allocation94_spill] sm:$0xff] }
 0x658   :  { %8123 = vmatmul.mubr.msk.f32.gmra.mrb[36].mxu0 %vm1770_vm10, %v5517_v41  ;;  %5252 = vrot.lane.b32.xlu0 %v4262_v44, %s9709_s30  ;;  %v5455_v61 = vsel %vm1655_vm7, %v5423_v2, %v14355_v37  ;;  %v5296_v16 = vsel %vm24_vm0, %v9637_v47, %v16756_v55  ;;  %v5297_v37 = vsel %vm24_vm0, %v9638_v10, %v16757_v60  ;;  %v16766_v56 = vld [vmem:[#allocation7_spill] sm:$0xff]  ;;  %v9641_v10 = vld [vmem:[#allocation2 + $0x90] sm:$0xff] }
 0x659   :  { %v5207_v45 = vpop.permute.xlu1 %5206  ;;  %v5077_v31 = vpop.permute.xlu0 %5076  ;;  %v5487_v58 = vsel %vm1688_vm8, %v5455_v61, %v5079_v33  ;;  %v5328_v46 = vsel %vm1523_vm3, %v5296_v16, %v16758_v24  ;;  %v5329_v44 = vsel %vm1523_vm3, %v5297_v37, %v16759_v52  ;;  %v16768_v60 = vld [vmem:[#allocation147_spill] sm:$0xff]  ;;  %v16769_v37 = vld [vmem:[#allocation124_spill] sm:$0xff] }
 0x65a   :  { %v5486_v59 = vsel %vm1688_vm8, %v5454_v28, %v5077_v31  ;;  %v5519_v3 = vsel %vm1721_vm9, %v5487_v58, %v5207_v45  ;;  %v5360_v7 = vsel %vm1556_vm4, %v5328_v46, %v16760_v50  ;;  %v5361_v20 = vsel %vm1556_vm4, %v5329_v44, %v16761_v5  ;;  %v16767_v28 = vld [vmem:[#allocation157_spill] sm:$0xff]  ;;  %v16771_v52 = vld [vmem:[#allocation152_spill] sm:$0xff]  ;;  %v16772_v50 = vld [vmem:[#allocation70_spill] sm:$0xff] }
 0x65b   :  { %5126 = vrot.lane.b32.xlu1 %v4231_v34, %s9708_s28  ;;  %v5392_v41 = vsel %vm1589_vm5, %v5360_v7, %v14107_v32  ;;  %v5393_v34 = vsel %vm1589_vm5, %v5361_v20, %v14095_v6  ;;  %v16773_v5 = vld [vmem:[#allocation8_spill] sm:$0xff] }
 0x65c   :  { %v5424_v27 = vsel %vm1622_vm6, %v5392_v41, %v14261_v26  ;;  %v5425_v19 = vsel %vm1622_vm6, %v5393_v34, %v14251_v0  ;;  %v5298_v26 = vsel %vm24_vm0, %v9639_v43, %v16762_v15  ;;  %v16775_v43 = vld [vmem:[#allocation90_spill] sm:$0xff] }
 0x65d   :  { %v5083_v53 = vpop.permute.xlu1 %5082  ;;  %v5205_v49 = vpop.permute.xlu0 %5204  ;;  %v5456_v48 = vsel %vm1655_vm7, %v5424_v27, %v14371_v38  ;;  %v5457_v22 = vsel %vm1655_vm7, %v5425_v19, %v14361_v12  ;;  %v9640_v38 = vld [vmem:[#allocation2 + $0x80] sm:$0xff] }
 0x65e   :  { %v5518_v54 = vsel %vm1721_vm9, %v5486_v59, %v5205_v49  ;;  %v5489_v32 = vsel %vm1688_vm8, %v5457_v22, %v5083_v53  ;;  %v5299_v31 = vsel %vm24_vm0, %v9640_v38, %v16763_v25  ;;  %v16764_v12 = vld [vmem:[#allocation115_spill] sm:$0xff]  ;;  %v16777_v38 = vld [vmem:[#allocation116_spill] sm:$0xff] }
 0x65f   :  { %5254 = vrot.lane.b32.xlu1 %v4263_v9, %s9709_s30  ;;  %8125 = vmatprep.mubr.msk.f32.mxu0 %vm1770_vm10, %v5518_v54  ;;  %v5330_v63 = vsel %vm1523_vm3, %v5298_v26, %v16764_v12  ;;  %v5331_v36 = vsel %vm1523_vm3, %v5299_v31, %v16765_v13 }
 0x660   :  { %8126 = vmatmul.mubr.msk.f32.gmra.mrb[38].mxu0 %vm1770_vm10, %v5519_v3  ;;  %v5362_v9 = vsel %vm1556_vm4, %v5330_v63, %v16766_v56  ;;  %v5363_v53 = vsel %vm1556_vm4, %v5331_v36, %v16767_v28  ;;  %v16778_v63 = vld [vmem:[#allocation12_spill] sm:$0xff]  ;;  %v16779_v36 = vld [vmem:[#allocation25_spill] sm:$0xff] }
 0x661   :  { %v5211_v33 = vpop.permute.xlu1 %5210  ;;  %v5081_v11 = vpop.permute.xlu0 %5080  ;;  %v5394_v61 = vsel %vm1589_vm5, %v5362_v9, %v14115_v23  ;;  %v5395_v59 = vsel %vm1589_vm5, %v5363_v53, %v14103_v57  ;;  %v16780_v9 = vld [vmem:[#allocation161_spill] sm:$0xff] }
 0x662   :  { %v5488_v45 = vsel %vm1688_vm8, %v5456_v48, %v5081_v11  ;;  %v5521_v0 = vsel %vm1721_vm9, %v5489_v32, %v5211_v33  ;;  %v5426_v49 = vsel %vm1622_vm6, %v5394_v61, %v14269_v40  ;;  %v5427_v58 = vsel %vm1622_vm6, %v5395_v59, %v14258_v4  ;;  %v9643_v32 = vld [vmem:[#allocation2 + $0xa8] sm:$0xff]  ;;  %v16781_v28 = vld [vmem:[#allocation101_spill] sm:$0xff]  ;;  %v16782_v61 = vld [vmem:[#allocation103_spill] sm:$0xff] }
 0x663   :  { %v5458_v54 = vsel %vm1655_vm7, %v5426_v49, %v14378_v17  ;;  %v5459_v55 = vsel %vm1655_vm7, %v5427_v58, %v14368_v42  ;;  %v5300_v40 = vsel %vm24_vm0, %v9641_v10, %v16768_v60  ;;  %v9642_v17 = vld [vmem:[#allocation2 + $0x98] sm:$0xff]  ;;  %v16770_v42 = vld [vmem:[#allocation175_spill] sm:$0xff]  ;;  %v9646_v10 = vld [vmem:[#allocation2 + $0xc8] sm:$0xff] }
 0x664   :  { %v5301_v24 = vsel %vm24_vm0, %v9642_v17, %v16769_v37  ;;  %v5332_v46 = vsel %vm1523_vm3, %v5300_v40, %v16770_v42  ;;  %v16783_v49 = vld [vmem:[#allocation38_spill] sm:$0xff]  ;;  %v16785_v60 = vld [vmem:[#allocation148_spill] sm:$0xff] }
 0x665   :  { %v5087_v18 = vpop.permute.xlu1 %5086  ;;  %v5209_v21 = vpop.permute.xlu0 %5208  ;;  %v5333_v44 = vsel %vm1523_vm3, %v5301_v24, %v16771_v52  ;;  %v5364_v7 = vsel %vm1556_vm4, %v5332_v46, %v16772_v50  ;;  %v5305_v40 = vsel %vm24_vm0, %v9646_v10, %v16785_v60  ;;  %v16787_v24 = vld [vmem:[#allocation176_spill] sm:$0xff]  ;;  %v16788_v46 = vld [vmem:[#allocation19_spill] sm:$0xff] }
 0x666   :  { %v5520_v6 = vsel %vm1721_vm9, %v5488_v45, %v5209_v21  ;;  %v5491_v23 = vsel %vm1688_vm8, %v5459_v55, %v5087_v18  ;;  %v5365_v20 = vsel %vm1556_vm4, %v5333_v44, %v16773_v5  ;;  %v5396_v41 = vsel %vm1589_vm5, %v5364_v7, %v14123_v30  ;;  %v16789_v44 = vld [vmem:[#allocation69_spill] sm:$0xff]  ;;  %v16790_v7 = vld [vmem:[#allocation136_spill] sm:$0xff]  ;;  %v16791_v5 = vld [vmem:[#allocation26_spill] sm:$0xff] }
 0x667   :  { %8128 = vmatprep.mubr.msk.f32.mxu0 %vm1770_vm10, %v5520_v6  ;;  %v5397_v34 = vsel %vm1589_vm5, %v5365_v20, %v14111_v62  ;;  %v5428_v27 = vsel %vm1622_vm6, %v5396_v41, %v14275_v51  ;;  %v16774_v6 = vld [vmem:[#allocation111_spill] sm:$0xff]  ;;  %v5337_v42 = vsel %vm1523_vm3, %v5305_v40, %v16787_v24  ;;  %v16792_v41 = vld [vmem:[#allocation14_spill] sm:$0xff] }
 0x668   :  { %8129 = vmatmul.mubr.msk.f32.gmra.mrb[40].mxu0 %vm1770_vm10, %v5521_v0  ;;  %v5429_v19 = vsel %vm1622_vm6, %v5397_v34, %v14265_v39  ;;  %v5460_v48 = vsel %vm1655_vm7, %v5428_v27, %v14385_v35  ;;  %v5302_v51 = vsel %vm24_vm0, %v9643_v32, %v16774_v6  ;;  %v9644_v35 = vld [vmem:[#allocation2 + $0xb0] sm:$0xff]  ;;  %v5369_v50 = vsel %vm1556_vm4, %v5337_v42, %v16789_v44  ;;  %v16793_v27 = vld [vmem:[#allocation102_spill] sm:$0xff]  ;;  %v16809_v42 = vld [vmem:[#allocation172_spill] sm:$0xff] }
 0x669   :  { %v5215_v14 = vpop.permute.xlu1 %5214  ;;  %v5085_v2 = vpop.permute.xlu0 %5084  ;;  %v5461_v22 = vsel %vm1655_vm7, %v5429_v19, %v14375_v29  ;;  %v5303_v15 = vsel %vm24_vm0, %v9644_v35, %v16775_v43  ;;  %v16776_v29 = vld [vmem:[#allocation47_spill] sm:$0xff]  ;;  %v5401_v20 = vsel %vm1589_vm5, %v5369_v50, %v16791_v5  ;;  %v9650_v24 = vld [vmem:[#allocation2 + $0xf8] sm:$0xff] }
 0x66a   :  { %v5490_v16 = vsel %vm1688_vm8, %v5458_v54, %v5085_v2  ;;  %v5523_v4 = vsel %vm1721_vm9, %v5491_v23, %v5215_v14  ;;  %v5334_v26 = vsel %vm1523_vm3, %v5302_v51, %v16776_v29  ;;  %v5335_v25 = vsel %vm1523_vm3, %v5303_v15, %v16777_v38  ;;  %v9647_v51 = vld [vmem:[#allocation2 + $0xd8] sm:$0xff]  ;;  %v9648_v15 = vld [vmem:[#allocation2 + $0xe0] sm:$0xff]  ;;  %v16797_v29 = vld [vmem:[#allocation112_spill] sm:$0xff] }
 0x66b   :  { %v5366_v31 = vsel %vm1556_vm4, %v5334_v26, %v14003_v8  ;;  %v5367_v14 = vsel %vm1556_vm4, %v5335_v25, %v16778_v63  ;;  %v5433_v19 = vsel %vm1622_vm6, %v5401_v20, %v16793_v27  ;;  %v5307_v26 = vsel %vm24_vm0, %v9648_v15, %v16797_v29  ;;  %v16800_v63 = vld [vmem:[#allocation11_spill] sm:$0xff]  ;;  %v16811_v50 = vld [vmem:[#allocation62_spill] sm:$0xff]  ;;  %v16814_v27 = vld [vmem:[#allocation9_spill] sm:$0xff] }
 0x66c   :  { %v5398_v13 = vsel %vm1589_vm5, %v5366_v31, %v14131_v1  ;;  %v5399_v56 = vsel %vm1589_vm5, %v5367_v14, %v16779_v36  ;;  %v16799_v31 = vld [vmem:[#allocation48_spill] sm:$0xff]  ;;  %v16801_v36 = vld [vmem:[#allocation73_spill] sm:$0xff] }
 0x66d   :  { %v5091_v47 = vpop.permute.xlu1 %5090  ;;  %v5213_v3 = vpop.permute.xlu0 %5212  ;;  %v5430_v2 = vsel %vm1622_vm6, %v5398_v13, %v16780_v9  ;;  %v5431_v53 = vsel %vm1622_vm6, %v5399_v56, %v16781_v28  ;;  %v16802_v9 = vld [vmem:[#allocation100_spill] sm:$0xff]  ;;  %v16803_v28 = vld [vmem:[#allocation135_spill] sm:$0xff] }
 0x66e   :  { %v5522_v57 = vsel %vm1721_vm9, %v5490_v16, %v5213_v3  ;;  %v5493_v30 = vsel %vm1688_vm8, %v5461_v22, %v5091_v47  ;;  %v5462_v59 = vsel %vm1655_vm7, %v5430_v2, %v16782_v61  ;;  %v5463_v58 = vsel %vm1655_vm7, %v5431_v53, %v16783_v49  ;;  %v9645_v16 = vld [vmem:[#allocation2 + $0xc0] sm:$0xff]  ;;  %v16804_v61 = vld [vmem:[#allocation34_spill] sm:$0xff] }
 0x66f   :  { %8131 = vmatprep.mubr.msk.f32.mxu0 %vm1770_vm10, %v5522_v57  ;;  %v16784_v3 = vld [vmem:[#allocation171_spill] sm:$0xff] }
 0x670   :  { %8132 = vmatmul.mubr.msk.f32.gmra.mrb[42].mxu0 %vm1770_vm10, %v5523_v4  ;;  %v5304_v23 = vsel %vm24_vm0, %v9645_v16, %v16784_v3  ;;  %v16786_v4 = vld [vmem:[#allocation61_spill] sm:$0xff] }
 0x671   :  { %v5219_v33 = vpop.permute.xlu1 %5218  ;;  %v5089_v11 = vpop.permute.xlu0 %5088  ;;  %v5336_v17 = vsel %vm1523_vm3, %v5304_v23, %v16786_v4  ;;  %v9649_v4 = vld [vmem:[#allocation2 + $0xf0] sm:$0xff] }
 0x672   :  { %v5492_v45 = vsel %vm1688_vm8, %v5460_v48, %v5089_v11  ;;  %v5525_v39 = vsel %vm1721_vm9, %v5493_v30, %v5219_v33  ;;  %v5368_v33 = vsel %vm1556_vm4, %v5336_v17, %v16788_v46  ;;  %v16794_v48 = vld [vmem:[#allocation106_spill] sm:$0xff]  ;;  %v16808_v17 = vld [vmem:[#allocation53_spill] sm:$0xff]  ;;  %v5309_v46 = vsel %vm24_vm0, %v9650_v24, %v16809_v42  ;;  %v9653_v42 = vld [vmem:[#allocation2 + $0x120] sm:$0xff] }
 0x673   :  { %v5400_v11 = vsel %vm1589_vm5, %v5368_v33, %v16790_v7  ;;  %v16810_v33 = vld [vmem:[#allocation95_spill] sm:$0xff]  ;;  %v5341_v7 = vsel %vm1523_vm3, %v5309_v46, %v16811_v50 }
 0x674   :  { %v5432_v34 = vsel %vm1622_vm6, %v5400_v11, %v16792_v41  ;;  %v16812_v11 = vld [vmem:[#allocation74_spill] sm:$0xff]  ;;  %v16813_v41 = vld [vmem:[#allocation20_spill] sm:$0xff]  ;;  %v16828_v46 = vld [vmem:[#allocation91_spill] sm:$0xff] }
 0x675   :  { %v5095_v18 = vpop.permute.xlu1 %5094  ;;  %v5217_v21 = vpop.permute.xlu0 %5216 }
 0x676   :  { %v5524_v62 = vsel %vm1721_vm9, %v5492_v45, %v5217_v21  ;;  %v5495_v1 = vsel %vm1688_vm8, %v5463_v58, %v5095_v18  ;;  %v5464_v18 = vsel %vm1655_vm7, %v5432_v34, %v16794_v48  ;;  %v16795_v45 = vld [vmem:[#allocation141_spill] sm:$0xff]  ;;  %v16806_v58 = vld [vmem:[#allocation107_spill] sm:$0xff]  ;;  %v5373_v34 = vsel %vm1556_vm4, %v5341_v7, %v16813_v41  ;;  %v16830_v7 = vld [vmem:[#allocation118_spill] sm:$0xff] }
 0x677   :  { %8134 = vmatprep.mubr.msk.f32.mxu0 %vm1770_vm10, %v5524_v62  ;;  %v5465_v21 = vsel %vm1655_vm7, %v5433_v19, %v16795_v45  ;;  %v16815_v48 = vld [vmem:[#allocation99_spill] sm:$0xff] }
 0x678   :  { %8135 = vmatmul.mubr.msk.f32.gmra.mrb[44].mxu0 %vm1770_vm10, %v5525_v39  ;;  %v16796_v39 = vld [vmem:[#allocation39_spill] sm:$0xff] }
 0x679   :  { %v5223_v0 = vpop.permute.xlu1 %5222  ;;  %v5093_v12 = vpop.permute.xlu0 %5092  ;;  %v5306_v35 = vsel %vm24_vm0, %v9647_v51, %v16796_v39 }
 0x67a   :  { %v5494_v54 = vsel %vm1688_vm8, %v5462_v59, %v5093_v12  ;;  %v5527_v57 = vsel %vm1721_vm9, %v5495_v1, %v5223_v0  ;;  %v16798_v0 = vld [vmem:[#allocation129_spill] sm:$0xff]  ;;  %v5339_v12 = vsel %vm1523_vm3, %v5307_v26, %v16799_v31 }
 0x67b   :  { %v5338_v38 = vsel %vm1523_vm3, %v5306_v35, %v16798_v0  ;;  %v5371_v56 = vsel %vm1556_vm4, %v5339_v12, %v16801_v36  ;;  %v16807_v1 = vld [vmem:[#allocation37_spill] sm:$0xff]  ;;  %v9651_v0 = vld [vmem:[#allocation2 + $0x108] sm:$0xff] }
 0x67c   :  { %v5370_v14 = vsel %vm1556_vm4, %v5338_v38, %v16800_v63  ;;  %v5403_v53 = vsel %vm1589_vm5, %v5371_v56, %v16803_v28  ;;  %v16818_v38 = vld [vmem:[#allocation125_spill] sm:$0xff]  ;;  %v16819_v12 = vld [vmem:[#allocation40_spill] sm:$0xff]  ;;  %v16821_v56 = vld [vmem:[#allocation130_spill] sm:$0xff] }
 0x67d   :  { %v5099_v8 = vpop.permute.xlu1 %5098  ;;  %v5221_v47 = vpop.permute.xlu0 %5220  ;;  %v5402_v2 = vsel %vm1589_vm5, %v5370_v14, %v16802_v9  ;;  %v9652_v31 = vld [vmem:[#allocation2 + $0x110] sm:$0xff] }
 0x67e   :  { %v5526_v55 = vsel %vm1721_vm9, %v5494_v54, %v5221_v47  ;;  %v5497_v32 = vsel %vm1688_vm8, %v5465_v21, %v5099_v8  ;;  %v5434_v59 = vsel %vm1622_vm6, %v5402_v2, %v16804_v61  ;;  %v16805_v8 = vld [vmem:[#allocation13_spill] sm:$0xff]  ;;  %v5311_v63 = vsel %vm24_vm0, %v9652_v31, %v16819_v12  ;;  %v16822_v2 = vld [vmem:[#allocation15_spill] sm:$0xff] }
 0x67f   :  { %8137 = vmatprep.mubr.msk.f32.mxu0 %vm1770_vm10, %v5526_v55  ;;  %v5435_v49 = vsel %vm1622_vm6, %v5403_v53, %v16805_v8  ;;  %v5466_v54 = vsel %vm1655_vm7, %v5434_v59, %v16806_v58  ;;  %v16817_v21 = vld [vmem:[#allocation33_spill] sm:$0xff]  ;;  %v5343_v9 = vsel %vm1523_vm3, %v5311_v63, %v16821_v56  ;;  %v16823_v61 = vld [vmem:[#allocation75_spill] sm:$0xff]  ;;  %v16825_v58 = vld [vmem:[#allocation160_spill] sm:$0xff] }
 0x680   :  { %8138 = vmatmul.mubr.msk.f32.gmra.mrb[46].mxu0 %vm1770_vm10, %v5527_v57  ;;  %v5467_v55 = vsel %vm1655_vm7, %v5435_v49, %v16807_v1  ;;  %v16820_v14 = vld [vmem:[#allocation153_spill] sm:$0xff]  ;;  %v5375_v59 = vsel %vm1556_vm4, %v5343_v9, %v16823_v61  ;;  %v9656_v9 = vld [vmem:[#allocation2 + $0x140] sm:$0xff] }
 0x681   :  { %v5227_v37 = vpop.permute.xlu1 %5226  ;;  %v5097_v52 = vpop.permute.xlu0 %5096  ;;  %v16824_v8 = vld [vmem:[#allocation29_spill] sm:$0xff] }
 0x682   :  { %v5496_v30 = vsel %vm1688_vm8, %v5464_v18, %v5097_v52  ;;  %v5529_v43 = vsel %vm1721_vm9, %v5497_v32, %v5227_v37  ;;  %v5308_v37 = vsel %vm24_vm0, %v9649_v4, %v16808_v17  ;;  %v5405_v18 = vsel %vm1589_vm5, %v5373_v34, %v16815_v48  ;;  %v16832_v34 = vld [vmem:[#allocation17_spill] sm:$0xff]  ;;  %v16833_v48 = vld [vmem:[#allocation16_spill] sm:$0xff] }
 0x683   :  { %v5340_v52 = vsel %vm1523_vm3, %v5308_v37, %v16810_v33  ;;  %v5312_v33 = vsel %vm24_vm0, %v9653_v42, %v16828_v46 }
 0x684   :  { %v5372_v5 = vsel %vm1556_vm4, %v5340_v52, %v16812_v11  ;;  %v9654_v52 = vld [vmem:[#allocation2 + $0x128] sm:$0xff]  ;;  %v5344_v11 = vsel %vm1523_vm3, %v5312_v33, %v16830_v7 }
 0x685   :  { %v5103_v22 = vpop.permute.xlu1 %5102  ;;  %v5225_v62 = vpop.permute.xlu0 %5224  ;;  %v5404_v19 = vsel %vm1589_vm5, %v5372_v5, %v16814_v27  ;;  %v5376_v27 = vsel %vm1556_vm4, %v5344_v11, %v16832_v34  ;;  %v9657_v11 = vld [vmem:[#allocation2 + $0x150] sm:$0xff]  ;;  %v16849_v34 = vld [vmem:[#allocation92_spill] sm:$0xff] }
 0x686   :  { %v5528_v6 = vsel %vm1721_vm9, %v5496_v30, %v5225_v62  ;;  %v5499_v23 = vsel %vm1688_vm8, %v5467_v55, %v5103_v22  ;;  %v16816_v22 = vld [vmem:[#allocation64_spill] sm:$0xff]  ;;  %v5437_v30 = vsel %vm1622_vm6, %v5405_v18, %v16817_v21  ;;  %v16827_v55 = vld [vmem:[#allocation63_spill] sm:$0xff]  ;;  %v16835_v21 = vld [vmem:[#allocation10_spill] sm:$0xff] }
 0x687   :  { %8140 = vmatprep.mubr.msk.f32.mxu0 %vm1770_vm10, %v5528_v6  ;;  %v5436_v45 = vsel %vm1622_vm6, %v5404_v19, %v16816_v22  ;;  %v16834_v22 = vld [vmem:[#allocation59_spill] sm:$0xff] }
 0x688   :  { %8141 = vmatmul.mubr.msk.f32.gmra.mrb[48].mxu0 %vm1770_vm10, %v5529_v43 }
 0x689   :  { %v5231_v25 = vpop.permute.xlu1 %5230  ;;  %v5101_v13 = vpop.permute.xlu0 %5100 }
 0x68a   :  { %v5498_v16 = vsel %vm1688_vm8, %v5466_v54, %v5101_v13  ;;  %v5531_v10 = vsel %vm1721_vm9, %v5499_v23, %v5231_v25  ;;  %v5310_v25 = vsel %vm24_vm0, %v9651_v0, %v16818_v38  ;;  %v5407_v54 = vsel %vm1589_vm5, %v5375_v59, %v16825_v58  ;;  %v16842_v58 = vld [vmem:[#allocation77_spill] sm:$0xff] }
 0x68b   :  { %v5342_v13 = vsel %vm1523_vm3, %v5310_v25, %v16820_v14 }
 0x68c   :  { %v5374_v28 = vsel %vm1556_vm4, %v5342_v13, %v16822_v2  ;;  %v9655_v13 = vld [vmem:[#allocation2 + $0x138] sm:$0xff] }
 0x68d   :  { %v4979_v47 = vpop.permute.xlu1 %4978  ;;  %v5229_v3 = vpop.permute.xlu0 %5228  ;;  %v5406_v49 = vsel %vm1589_vm5, %v5374_v28, %v16824_v8  ;;  %v16839_v2 = vld [vmem:[#allocation126_spill] sm:$0xff]  ;;  %v16841_v8 = vld [vmem:[#allocation117_spill] sm:$0xff] }
 0x68e   :  { %v5530_v57 = vsel %vm1721_vm9, %v5498_v16, %v5229_v3  ;;  %v5469_v6 = vsel %vm1655_vm7, %v5437_v30, %v4979_v47  ;;  %v16826_v47 = vld [vmem:[#allocation82_spill] sm:$0xff]  ;;  %v5439_v16 = vsel %vm1622_vm6, %v5407_v54, %v16827_v55  ;;  %v5315_v28 = vsel %vm24_vm0, %v9656_v9, %v16839_v2  ;;  %v9659_v2 = vld [vmem:[#allocation2 + $0x168] sm:$0xff] }
 0x68f   :  { %8143 = vmatprep.mubr.msk.f32.mxu0 %vm1770_vm10, %v5530_v57  ;;  %v5438_v1 = vsel %vm1622_vm6, %v5406_v49, %v16826_v47  ;;  %v5347_v49 = vsel %vm1523_vm3, %v5315_v28, %v16841_v8  ;;  %v16858_v28 = vld [vmem:[#allocation173_spill] sm:$0xff] }
 0x690   :  { %8144 = vmatmul.mubr.msk.f32.gmra.mrb[50].mxu0 %vm1770_vm10, %v5531_v10 }
 0x691   :  { %v5107_v60 = vpop.permute.xlu1 %5106  ;;  %v4977_v40 = vpop.permute.xlu0 %4976 }
 0x692   :  { %v5468_v62 = vsel %vm1655_vm7, %v5436_v45, %v4977_v40  ;;  %v5501_v35 = vsel %vm1688_vm8, %v5469_v6, %v5107_v60  ;;  %v5408_v45 = vsel %vm1589_vm5, %v5376_v27, %v16834_v22  ;;  %v5977_v6 = vld [vmem:[#allocation3 + $0x1] sm:$0xff]  ;;  %v16851_v22 = vld [vmem:[#allocation51_spill] sm:$0xff] }
 0x695   :  { %v5235_v44 = vpop.permute.xlu1 %5234  ;;  %v5105_v20 = vpop.permute.xlu0 %5104 }
 0x696   :  { %v5500_v51 = vsel %vm1688_vm8, %v5468_v62, %v5105_v20  ;;  %v5533_v15 = vsel %vm1721_vm9, %v5501_v35, %v5235_v44  ;;  %v16829_v44 = vld [vmem:[#allocation54_spill] sm:$0xff]  ;;  %v16831_v20 = vld [vmem:[#allocation96_spill] sm:$0xff] }
 0x697   :  { %v5313_v50 = vsel %vm24_vm0, %v9654_v52, %v16829_v44  ;;  %v16836_v62 = vld [vmem:[#allocation140_spill] sm:$0xff] }
 0x698   :  { %v5345_v41 = vsel %vm1523_vm3, %v5313_v50, %v16831_v20 }
 0x699   :  { %v4983_v32 = vpop.permute.xlu1 %4982  ;;  %v5233_v39 = vpop.permute.xlu0 %5232  ;;  %v5377_v18 = vsel %vm1556_vm4, %v5345_v41, %v16833_v48  ;;  %v9658_v41 = vld [vmem:[#allocation2 + $0x158] sm:$0xff] }
 0x69a   :  { %v5532_v43 = vsel %vm1721_vm9, %v5500_v51, %v5233_v39  ;;  %v5471_v57 = vsel %vm1655_vm7, %v5439_v16, %v4983_v32  ;;  %v5409_v30 = vsel %vm1589_vm5, %v5377_v18, %v16835_v21  ;;  %v5440_v32 = vsel %vm1622_vm6, %v5408_v45, %v16836_v62  ;;  %v5978_v51 = vld [vmem:[#allocation3 + $0x9] sm:$0xff]  ;;  %v16837_v39 = vld [vmem:[#allocation81_spill] sm:$0xff] }
 0x69b   :  { %8146 = vmatprep.mubr.msk.f32.mxu0 %vm1770_vm10, %v5532_v43  ;;  %v5441_v35 = vsel %vm1622_vm6, %v5409_v30, %v16837_v39  ;;  %v16844_v16 = vld [vmem:[#allocation79_spill] sm:$0xff]  ;;  %v5317_v27 = vsel %vm24_vm0, %v9658_v41, %v16849_v34  ;;  %v16852_v21 = vld [vmem:[#allocation21_spill] sm:$0xff] }
 0x69c   :  { %8147 = vmatmul.mubr.msk.f32.gmra.mrb[52].mxu0 %vm1770_vm10, %v5533_v15  ;;  %v5349_v45 = vsel %vm1523_vm3, %v5317_v27, %v16851_v22 }
 0x69d   :  { %v5111_v29 = vpop.permute.xlu1 %5110  ;;  %v4981_v26 = vpop.permute.xlu0 %4980 }
 0x69e   :  { %v5470_v3 = vsel %vm1655_vm7, %v5438_v1, %v4981_v26  ;;  %v5503_v40 = vsel %vm1688_vm8, %v5471_v57, %v5111_v29  ;;  %v8945_v29 = vpack.i.bf16 %v5978_v51, %v5977_v6  ;;  %v16843_v1 = vld [vmem:[#allocation76_spill] sm:$0xff]  ;;  %v16854_v51 = vld [vmem:[#allocation137_spill] sm:$0xff] }
 0x69f   :  { %v5379_v55 = vsel %vm1556_vm4, %v5347_v49, %v16843_v1  ;;  %v16860_v49 = vld [vmem:[#allocation155_spill] sm:$0xff]  ;;  %v16862_v1 = vld [vmem:[#allocation22_spill] sm:$0xff] }
 0x6a0   :  { %8946 = vrot.lane.b32.xlu0 %v8945_v29, %s9702_s19 }
 0x6a1   :  { %v5239_v36 = vpop.permute.xlu1 %5238  ;;  %v5109_v53 = vpop.permute.xlu0 %5108 }
 0x6a2   :  { %v5502_v10 = vsel %vm1688_vm8, %v5470_v3, %v5109_v53  ;;  %v5535_v17 = vsel %vm1721_vm9, %v5503_v40, %v5239_v36  ;;  %v16838_v36 = vld [vmem:[#allocation149_spill] sm:$0xff]  ;;  %v16840_v53 = vld [vmem:[#allocation52_spill] sm:$0xff]  ;;  %v16847_v40 = vld [vmem:[#allocation139_spill] sm:$0xff] }
 0x6a3   :  { %v5314_v56 = vsel %vm24_vm0, %v9655_v13, %v16838_v36 }
 0x6a4   :  { %v5346_v61 = vsel %vm1523_vm3, %v5314_v56, %v16840_v53  ;;  %v5318_v53 = vsel %vm24_vm0, %v9659_v2, %v16858_v28 }
 0x6a5   :  { %v4987_v23 = vpop.permute.xlu1 %4986  ;;  %v5237_v60 = vpop.permute.xlu0 %5236  ;;  %v5378_v54 = vsel %vm1556_vm4, %v5346_v61, %v16842_v58  ;;  %v9660_v61 = vld [vmem:[#allocation2 + $0x170] sm:$0xff]  ;;  %v5350_v58 = vsel %vm1523_vm3, %v5318_v53, %v16860_v49 }
 0x6a6   :  { %v5534_v4 = vsel %vm1721_vm9, %v5502_v10, %v5237_v60  ;;  %v5473_v26 = vsel %vm1655_vm7, %v5441_v35, %v4987_v23  ;;  %v5410_v3 = vsel %vm1589_vm5, %v5378_v54, %v16844_v16  ;;  %v16845_v23 = vld [vmem:[#allocation30_spill] sm:$0xff]  ;;  %v16846_v10 = vld [vmem:[#allocation23_spill] sm:$0xff]  ;;  %v16855_v35 = vld [vmem:[#allocation60_spill] sm:$0xff] }
 0x6a7   :  { %8149 = vmatprep.mubr.msk.f32.mxu0 %vm1770_vm10, %v5534_v4  ;;  %v5411_v57 = vsel %vm1589_vm5, %v5379_v55, %v16845_v23  ;;  %v5442_v60 = vsel %vm1622_vm6, %v5410_v3, %v16846_v10  ;;  %v16861_v54 = vld [vmem:[#allocation131_spill] sm:$0xff]  ;;  %v5382_v55 = vsel %vm1556_vm4, %v5350_v58, %v16862_v1  ;;  %v16863_v3 = vld [vmem:[#allocation78_spill] sm:$0xff] }
 0x6a8   :  { %8150 = vmatmul.mubr.msk.f32.gmra.mrb[54].mxu0 %vm1770_vm10, %v5535_v17  ;;  %v5443_v4 = vsel %vm1622_vm6, %v5411_v57, %v16847_v40  ;;  %v16864_v57 = vld [vmem:[#allocation138_spill] sm:$0xff] }
 0x6a9   :  { %v5115_v37 = vpop.permute.xlu1 %5114  ;;  %v4985_v24 = vpop.permute.xlu0 %4984  ;;  %v5414_v10 = vsel %vm1589_vm5, %v5382_v55, %v16864_v57 }
 0x6aa   :  { %v5472_v43 = vsel %vm1655_vm7, %v5440_v32, %v4985_v24  ;;  %v5505_v25 = vsel %vm1688_vm8, %v5473_v26, %v5115_v37  ;;  %v16853_v32 = vld [vmem:[#allocation18_spill] sm:$0xff]  ;;  %v16857_v26 = vld [vmem:[#allocation163_spill] sm:$0xff] }
 0x6ab   :  { %v5381_v6 = vsel %vm1556_vm4, %v5349_v45, %v16853_v32 }
 0x6ad   :  { %v5243_v5 = vpop.permute.xlu1 %5242  ;;  %v5113_v19 = vpop.permute.xlu0 %5112 }
 0x6ae   :  { %v5504_v0 = vsel %vm1688_vm8, %v5472_v43, %v5113_v19  ;;  %v5537_v12 = vsel %vm1721_vm9, %v5505_v25, %v5243_v5  ;;  %v16848_v5 = vld [vmem:[#allocation113_spill] sm:$0xff]  ;;  %v16850_v19 = vld [vmem:[#allocation132_spill] sm:$0xff]  ;;  %v5413_v43 = vsel %vm1589_vm5, %v5381_v6, %v16855_v35 }
 0x6af   :  { %v5316_v20 = vsel %vm24_vm0, %v9657_v11, %v16848_v5  ;;  %v14895_v5 = vld [vmem:[%s15837_s3] ss:$0 sm:$0xff] }
 0x6b0   :  { %v5348_v48 = vsel %vm1523_vm3, %v5316_v20, %v16850_v19 }
 0x6b1   :  { %v4991_v15 = vpop.permute.xlu1 %4990  ;;  %v5241_v38 = vpop.permute.xlu0 %5240  ;;  %v5380_v30 = vsel %vm1556_vm4, %v5348_v48, %v16852_v21 }
 0x6b2   :  { %v5536_v31 = vsel %vm1721_vm9, %v5504_v0, %v5241_v38  ;;  %v5475_v24 = vsel %vm1655_vm7, %v5443_v4, %v4991_v15  ;;  %v5412_v39 = vsel %vm1589_vm5, %v5380_v30, %v16854_v51  ;;  %v16856_v15 = vld [vmem:[#allocation83_spill] sm:$0xff]  ;;  %v5445_v0 = vsel %vm1622_vm6, %v5413_v43, %v16857_v26  ;;  %v16866_v4 = vld [vmem:[#allocation142_spill] sm:$0xff] }
 0x6b3   :  { %8152 = vmatprep.mubr.msk.f32.mxu0 %vm1770_vm10, %v5536_v31  ;;  %v5444_v29 = vsel %vm1622_vm6, %v5412_v39, %v16856_v15 }
 0x6b4   :  { %8153 = vmatmul.mubr.msk.f32.gmra.mrb[56].mxu0 %vm1770_vm10, %v5537_v12 }
 0x6b5   :  { %v5119_v63 = vpop.permute.xlu1 %5118  ;;  %v4989_v14 = vpop.permute.xlu0 %4988 }
 0x6b6   :  { %v5474_v17 = vsel %vm1655_vm7, %v5442_v60, %v4989_v14  ;;  %v5507_v33 = vsel %vm1688_vm8, %v5475_v24, %v5119_v63  ;;  %v16865_v60 = vld [vmem:[#allocation80_spill] sm:$0xff] }
 0x6b9   :  { %v5247_v59 = vpop.permute.xlu1 %5246  ;;  %v5117_v47 = vpop.permute.xlu0 %5116 }
 0x6ba   :  { %v5506_v42 = vsel %vm1688_vm8, %v5474_v17, %v5117_v47  ;;  %v5539_v44 = vsel %vm1721_vm9, %v5507_v33, %v5247_v59  ;;  %v16859_v59 = vld [vmem:[#allocation150_spill] sm:$0xff]  ;;  %v5446_v17 = vsel %vm1622_vm6, %v5414_v10, %v16866_v4 }
 0x6bb   :  { %v5319_v8 = vsel %vm24_vm0, %v9660_v61, %v16859_v59 }
 0x6bc   :  { %v5351_v47 = vsel %vm1523_vm3, %v5319_v8, %v16861_v54 }
 0x6bd   :  { %v4995_v37 = vpop.permute.xlu1 %4994  ;;  %v5245_v46 = vpop.permute.xlu0 %5244  ;;  %v5383_v23 = vsel %vm1556_vm4, %v5351_v47, %v16863_v3 }
 0x6be   :  { %v5538_v52 = vsel %vm1721_vm9, %v5506_v42, %v5245_v46  ;;  %v5477_v31 = vsel %vm1655_vm7, %v5445_v0, %v4995_v37  ;;  %v5415_v40 = vsel %vm1589_vm5, %v5383_v23, %v16865_v60  ;;  %v16867_v37 = vld [vmem:[#allocation24_spill] sm:$0xff] }
 0x6bf   :  { %8155 = vmatprep.mubr.msk.f32.mxu0 %vm1770_vm10, %v5538_v52  ;;  %v5447_v24 = vsel %vm1622_vm6, %v5415_v40, %v16867_v37 }
 0x6c0   :  { %8156 = vmatmul.mubr.msk.f32.gmra.mrb[58].mxu0 %vm1770_vm10, %v5539_v44 }
 0x6c1   :  { %v5123_v50 = vpop.permute.xlu1 %5122  ;;  %v4993_v7 = vpop.permute.xlu0 %4992 }
 0x6c2   :  { %v5476_v38 = vsel %vm1655_vm7, %v5444_v29, %v4993_v7  ;;  %v5509_v14 = vsel %vm1688_vm8, %v5477_v31, %v5123_v50 }
 0x6c5   :  { %v5251_v18 = vpop.permute.xlu1 %5250  ;;  %v5121_v62 = vpop.permute.xlu0 %5120 }
 0x6c6   :  { %v5508_v12 = vsel %vm1688_vm8, %v5476_v38, %v5121_v62  ;;  %v5541_v36 = vsel %vm1721_vm9, %v5509_v14, %v5251_v18 }
 0x6c9   :  { %v4999_v25 = vpop.permute.xlu1 %4998  ;;  %v5249_v63 = vpop.permute.xlu0 %5248 }
 0x6ca   :  { %v5540_v13 = vsel %vm1721_vm9, %v5508_v12, %v5249_v63  ;;  %v5479_v33 = vsel %vm1655_vm7, %v5447_v24, %v4999_v25 }
 0x6cb   :  { %8158 = vmatprep.mubr.msk.f32.mxu0 %vm1770_vm10, %v5540_v13 }
 0x6cc   :  { %8159 = vmatmul.mubr.msk.f32.gmra.mrb[60].mxu0 %vm1770_vm10, %v5541_v36 }
 0x6cd   :  { %v4997_v56 = vpop.permute.xlu0 %4996  ;;  %v5127_v9 = vpop.permute.xlu1 %5126 }
 0x6ce   :  { %v5478_v42 = vsel %vm1655_vm7, %v5446_v17, %v4997_v56  ;;  %v5511_v50 = vsel %vm1688_vm8, %v5479_v33, %v5127_v9 }
 0x6d1   :  { %v5125_v16 = vpop.permute.xlu0 %5124  ;;  %v5255_v46 = vpop.permute.xlu1 %5254 }
 0x6d2   :  { %v5510_v52 = vsel %vm1688_vm8, %v5478_v42, %v5125_v16  ;;  %v5543_v11 = vsel %vm1721_vm9, %v5511_v50, %v5255_v46 }
 0x6d5   :  { %v5253_v44 = vpop.permute.xlu0 %5252 }
 0x6d6   :  { %v5542_v7 = vsel %vm1721_vm9, %v5510_v52, %v5253_v44 }
 0x6d7   :  { %8161 = vmatprep.mubr.msk.f32.mxu0 %vm1770_vm10, %v5542_v7 }
 0x6d8   :  { %8162 = vmatmul.mubr.msk.f32.gmra.mrb[62].mxu0 %vm1770_vm10, %v5543_v11 }
 0x71b   :  { %v8118_v20 = vpop.f32.mrb[32].mxu0 }
 0x71c   :  { %v5728_v41 = vadd.f32 %v8118_v20, %v14895_v5  ;;  %v5722_v34 = vpop.f32.mrb[33].mxu0 }
 0x71d   :  { %v5723_v27 = vadd.f32 %v14895_v5, %v5722_v34 }
 0x71e   :  { %v5882_v19 = vmax.f32 %v5728_v41, 0.0 }
 0x71f   :  { %v5881_v48 = vmax.f32 %v5723_v27, 0.0 }
 0x720   :  { %5914 = vst.msk [vmem:[#allocation3 + $0x21] sm:$0xff] %vm24_vm0, %v5882_v19 }
 0x721   :  { %5913 = vst.msk [vmem:[#allocation3 + $0x19] sm:$0xff] %vm24_vm0, %v5881_v48 }
 0x723   :  { %v8121_v18 = vpop.f32.mrb[34].mxu0 }
 0x724   :  { %v5738_v22 = vadd.f32 %v8121_v18, %v14895_v5  ;;  %v5732_v45 = vpop.f32.mrb[35].mxu0 }
 0x725   :  { %v5733_v21 = vadd.f32 %v14895_v5, %v5732_v45 }
 0x726   :  { %v5884_v30 = vmax.f32 %v5738_v22, 0.0 }
 0x727   :  { %v5883_v62 = vmax.f32 %v5733_v21, 0.0  ;;  %v5980_v32 = vld [vmem:[#allocation3 + $0x21] sm:$0xff] }
 0x728   :  { %5916 = vst.msk [vmem:[#allocation3 + $0x39] sm:$0xff] %vm24_vm0, %v5884_v30  ;;  %v5979_v6 = vld [vmem:[#allocation3 + $0x19] sm:$0xff] }
 0x729   :  { %5915 = vst.msk [vmem:[#allocation3 + $0x31] sm:$0xff] %vm24_vm0, %v5883_v62  ;;  %v14905_v51 = vpack.i.bf16 %v5980_v32, %v5979_v6 }
 0x72b   :  { %v8124_v39 = vpop.f32.mrb[36].mxu0  ;;  %8951 = vrot.lane.b32.xlu1 %v14905_v51, %s9702_s19 }
 0x72c   :  { %v5748_v35 = vadd.f32 %v8124_v39, %v14895_v5  ;;  %v5742_v43 = vpop.f32.mrb[37].mxu0 }
 0x72d   :  { %v5743_v15 = vadd.f32 %v14895_v5, %v5742_v43 }
 0x72e   :  { %v5886_v29 = vmax.f32 %v5748_v35, 0.0 }
 0x72f   :  { %v5885_v26 = vmax.f32 %v5743_v15, 0.0  ;;  %v5982_v0 = vld [vmem:[#allocation3 + $0x39] sm:$0xff] }
 0x730   :  { %5918 = vst.msk [vmem:[#allocation3 + $0x51] sm:$0xff] %vm24_vm0, %v5886_v29  ;;  %v5981_v38 = vld [vmem:[#allocation3 + $0x31] sm:$0xff] }
 0x731   :  { %5917 = vst.msk [vmem:[#allocation3 + $0x49] sm:$0xff] %vm24_vm0, %v5885_v26  ;;  %v14913_v25 = vpack.i.bf16 %v5982_v0, %v5981_v38 }
 0x733   :  { %8956 = vrot.lane.b32.xlu0 %v14913_v25, %s9702_s19  ;;  %v8127_v31 = vpop.f32.mrb[38].mxu0 }
 0x734   :  { %v5758_v12 = vadd.f32 %v8127_v31, %v14895_v5  ;;  %v5752_v63 = vpop.f32.mrb[39].mxu0 }
 0x735   :  { %v5753_v14 = vadd.f32 %v14895_v5, %v5752_v63 }
 0x736   :  { %v5888_v13 = vmax.f32 %v5758_v12, 0.0 }
 0x737   :  { %v5887_v36 = vmax.f32 %v5753_v14, 0.0  ;;  %v5984_v56 = vld [vmem:[#allocation3 + $0x51] sm:$0xff] }
 0x738   :  { %5920 = vst.msk [vmem:[#allocation3 + $0x69] sm:$0xff] %vm24_vm0, %v5888_v13  ;;  %v5983_v9 = vld [vmem:[#allocation3 + $0x49] sm:$0xff] }
 0x739   :  { %5919 = vst.msk [vmem:[#allocation3 + $0x61] sm:$0xff] %vm24_vm0, %v5887_v36  ;;  %v14921_v2 = vpack.i.bf16 %v5984_v56, %v5983_v9 }
 0x73b   :  { %v8130_v28 = vpop.f32.mrb[40].mxu0  ;;  %8961 = vrot.lane.b32.xlu1 %v14921_v2, %s9702_s19 }
 0x73c   :  { %v5768_v53 = vadd.f32 %v8130_v28, %v14895_v5  ;;  %v5762_v61 = vpop.f32.mrb[41].mxu0 }
 0x73d   :  { %v5763_v59 = vadd.f32 %v14895_v5, %v5762_v61 }
 0x73e   :  { %v5890_v8 = vmax.f32 %v5768_v53, 0.0 }
 0x73f   :  { %v5889_v49 = vmax.f32 %v5763_v59, 0.0  ;;  %v5986_v58 = vld [vmem:[#allocation3 + $0x69] sm:$0xff] }
 0x740   :  { %5922 = vst.msk [vmem:[#allocation3 + $0x81] sm:$0xff] %vm24_vm0, %v5890_v8  ;;  %v5985_v54 = vld [vmem:[#allocation3 + $0x61] sm:$0xff] }
 0x741   :  { %5921 = vst.msk [vmem:[#allocation3 + $0x79] sm:$0xff] %vm24_vm0, %v5889_v49  ;;  %v14929_v47 = vpack.i.bf16 %v5986_v58, %v5985_v54 }
 0x743   :  { %8966 = vrot.lane.b32.xlu0 %v14929_v47, %s9702_s19  ;;  %v8133_v1 = vpop.f32.mrb[42].mxu0 }
 0x744   :  { %v5778_v55 = vadd.f32 %v8133_v1, %v14895_v5  ;;  %v5772_v16 = vpop.f32.mrb[43].mxu0 }
 0x745   :  { %v5773_v3 = vadd.f32 %v14895_v5, %v5772_v16 }
 0x746   :  { %v5892_v23 = vmax.f32 %v5778_v55, 0.0 }
 0x747   :  { %v5891_v57 = vmax.f32 %v5773_v3, 0.0  ;;  %v5988_v10 = vld [vmem:[#allocation3 + $0x81] sm:$0xff] }
 0x748   :  { %5924 = vst.msk [vmem:[#allocation3 + $0x99] sm:$0xff] %vm24_vm0, %v5892_v23  ;;  %v5987_v60 = vld [vmem:[#allocation3 + $0x79] sm:$0xff] }
 0x749   :  { %5923 = vst.msk [vmem:[#allocation3 + $0x91] sm:$0xff] %vm24_vm0, %v5891_v57  ;;  %v8970_v40 = vpack.i.bf16 %v5988_v10, %v5987_v60 }
 0x74b   :  { %v8136_v4 = vpop.f32.mrb[44].mxu0  ;;  %8971 = vrot.lane.b32.xlu1 %v8970_v40, %s9702_s19 }
 0x74c   :  { %v5788_v17 = vadd.f32 %v8136_v4, %v14895_v5  ;;  %v5782_v37 = vpop.f32.mrb[45].mxu0 }
 0x74d   :  { %v5783_v24 = vadd.f32 %v14895_v5, %v5782_v37 }
 0x74e   :  { %v5894_v42 = vmax.f32 %v5788_v17, 0.0 }
 0x74f   :  { %v5893_v46 = vmax.f32 %v5783_v24, 0.0  ;;  %v5990_v33 = vld [vmem:[#allocation3 + $0x99] sm:$0xff] }
 0x750   :  { %5926 = vst.msk [vmem:[#allocation3 + $0xb1] sm:$0xff] %vm24_vm0, %v5894_v42  ;;  %v5989_v52 = vld [vmem:[#allocation3 + $0x91] sm:$0xff] }
 0x751   :  { %5925 = vst.msk [vmem:[#allocation3 + $0xa9] sm:$0xff] %vm24_vm0, %v5893_v46  ;;  %v8975_v44 = vpack.i.bf16 %v5990_v33, %v5989_v52 }
 0x753   :  { %8976 = vrot.lane.b32.xlu0 %v8975_v44, %s9702_s19  ;;  %v8139_v50 = vpop.f32.mrb[46].mxu0 }
 0x754   :  { %v5798_v7 = vadd.f32 %v8139_v50, %v14895_v5  ;;  %v5792_v11 = vpop.f32.mrb[47].mxu0 }
 0x755   :  { %v5793_v20 = vadd.f32 %v14895_v5, %v5792_v11 }
 0x756   :  { %v5896_v41 = vmax.f32 %v5798_v7, 0.0 }
 0x757   :  { %v5895_v34 = vmax.f32 %v5793_v20, 0.0  ;;  %v5992_v27 = vld [vmem:[#allocation3 + $0xb1] sm:$0xff] }
 0x758   :  { %5928 = vst.msk [vmem:[#allocation3 + $0xc9] sm:$0xff] %vm24_vm0, %v5896_v41  ;;  %v5991_v19 = vld [vmem:[#allocation3 + $0xa9] sm:$0xff] }
 0x759   :  { %5927 = vst.msk [vmem:[#allocation3 + $0xc1] sm:$0xff] %vm24_vm0, %v5895_v34  ;;  %v8980_v48 = vpack.i.bf16 %v5992_v27, %v5991_v19 }
 0x75b   :  { %v8142_v18 = vpop.f32.mrb[48].mxu0  ;;  %8981 = vrot.lane.b32.xlu1 %v8980_v48, %s9702_s19 }
 0x75c   :  { %v5808_v22 = vadd.f32 %v8142_v18, %v14895_v5  ;;  %v5802_v45 = vpop.f32.mrb[49].mxu0  ;;  %v6009_v18 = vld [vmem:[#allocation3 + $0x2] sm:$0xff] }
 0x75d   :  { %v5803_v21 = vadd.f32 %v14895_v5, %v5802_v45 }
 0x75e   :  { %v5898_v30 = vmax.f32 %v5808_v22, 0.0  ;;  %v6010_v22 = vld [vmem:[#allocation3 + $0xa] sm:$0xff] }
 0x75f   :  { %v5897_v62 = vmax.f32 %v5803_v21, 0.0  ;;  %v5994_v32 = vld [vmem:[#allocation3 + $0xc9] sm:$0xff] }
 0x760   :  { %5930 = vst.msk [vmem:[#allocation3 + $0xe1] sm:$0xff] %vm24_vm0, %v5898_v30  ;;  %v5993_v6 = vld [vmem:[#allocation3 + $0xc1] sm:$0xff] }
 0x761   :  { %5929 = vst.msk [vmem:[#allocation3 + $0xd9] sm:$0xff] %vm24_vm0, %v5897_v62  ;;  %v8985_v39 = vpack.i.bf16 %v5994_v32, %v5993_v6  ;;  %v9025_v32 = vpack.i.bf16 %v6010_v22, %v6009_v18  ;;  %v6013_v6 = vld [vmem:[#allocation3 + $0x32] sm:$0xff]  ;;  %v5951_v22 = vld [vmem:[#allocation3 + $0x48] sm:$0xff] }
 0x763   :  { %8986 = vrot.lane.b32.xlu0 %v8985_v39, %s9702_s19  ;;  %v8145_v35 = vpop.f32.mrb[50].mxu0  ;;  %v6014_v39 = vld [vmem:[#allocation3 + $0x3a] sm:$0xff] }
 0x764   :  { %v5818_v43 = vadd.f32 %v8145_v35, %v14895_v5  ;;  %v5812_v15 = vpop.f32.mrb[51].mxu0  ;;  %v14999_v35 = vpack.i.bf16 %v6014_v39, %v6013_v6  ;;  %v5955_v6 = vld [vmem:[#allocation3 + $0x78] sm:$0xff] }
 0x765   :  { %v5813_v29 = vadd.f32 %v14895_v5, %v5812_v15  ;;  %v6018_v15 = vld [vmem:[#allocation3 + $0x6a] sm:$0xff] }
 0x766   :  { %v5900_v26 = vmax.f32 %v5818_v43, 0.0  ;;  %v6017_v43 = vld [vmem:[#allocation3 + $0x62] sm:$0xff] }
 0x767   :  { %v5899_v0 = vmax.f32 %v5813_v29, 0.0  ;;  %v5996_v38 = vld [vmem:[#allocation3 + $0xe1] sm:$0xff] }
 0x768   :  { %5932 = vst.msk [vmem:[#allocation3 + $0xf9] sm:$0xff] %vm24_vm0, %v5900_v26  ;;  %v5995_v31 = vld [vmem:[#allocation3 + $0xd9] sm:$0xff] }
 0x769   :  { %5931 = vst.msk [vmem:[#allocation3 + $0xf1] sm:$0xff] %vm24_vm0, %v5899_v0  ;;  %v14957_v12 = vpack.i.bf16 %v5996_v38, %v5995_v31 }
 0x76b   :  { %8991 = vrot.lane.b32.xlu1 %v14957_v12, %s9702_s19 }
 0x76f   :  { %v8148_v63 = vpop.f32.mrb[52].mxu0  ;;  %v5998_v14 = vld [vmem:[#allocation3 + $0xf9] sm:$0xff] }
 0x770   :  { %v5828_v13 = vadd.f32 %v8148_v63, %v14895_v5  ;;  %v5822_v36 = vpop.f32.mrb[53].mxu0  ;;  %v5997_v56 = vld [vmem:[#allocation3 + $0xf1] sm:$0xff] }
 0x771   :  { %v5823_v9 = vadd.f32 %v14895_v5, %v5822_v36  ;;  %v14963_v28 = vpack.i.bf16 %v5998_v14, %v5997_v56  ;;  %v15005_v14 = vpack.i.bf16 %v6018_v15, %v6017_v43  ;;  %v6011_v36 = vld [vmem:[#allocation3 + $0x1a] sm:$0xff] }
 0x772   :  { %v5902_v53 = vmax.f32 %v5828_v13, 0.0  ;;  %v5956_v15 = vld [vmem:[#allocation3 + $0x80] sm:$0xff] }
 0x773   :  { %v5901_v61 = vmax.f32 %v5823_v9, 0.0  ;;  %8996 = vrot.lane.b32.xlu0 %v14963_v28, %s9702_s19  ;;  %v6021_v9 = vld [vmem:[#allocation3 + $0x92] sm:$0xff] }
 0x774   :  { %5934 = vst.msk [vmem:[#allocation3 + $0x111] sm:$0xff] %vm24_vm0, %v5902_v53  ;;  %v6022_v53 = vld [vmem:[#allocation3 + $0x9a] sm:$0xff] }
 0x775   :  { %5933 = vst.msk [vmem:[#allocation3 + $0x109] sm:$0xff] %vm24_vm0, %v5901_v61  ;;  %v6012_v61 = vld [vmem:[#allocation3 + $0x22] sm:$0xff] }
 0x77b   :  { %v8151_v59 = vpop.f32.mrb[54].mxu0  ;;  %v6000_v8 = vld [vmem:[#allocation3 + $0x111] sm:$0xff] }
 0x77c   :  { %v5838_v49 = vadd.f32 %v8151_v59, %v14895_v5  ;;  %v5832_v58 = vpop.f32.mrb[55].mxu0  ;;  %v5999_v54 = vld [vmem:[#allocation3 + $0x109] sm:$0xff]  ;;  %v6032_v18 = vld [vmem:[#allocation3 + $0x112] sm:$0xff] }
 0x77d   :  { %v5833_v1 = vadd.f32 %v14895_v5, %v5832_v58  ;;  %v14971_v55 = vpack.i.bf16 %v6000_v8, %v5999_v54  ;;  %v15012_v8 = vpack.i.bf16 %v6022_v53, %v6021_v9  ;;  %v6025_v58 = vld [vmem:[#allocation3 + $0xc2] sm:$0xff]  ;;  %v6026_v54 = vld [vmem:[#allocation3 + $0xca] sm:$0xff] }
 0x77e   :  { %v5904_v16 = vmax.f32 %v5838_v49, 0.0  ;;  %v6016_v49 = vld [vmem:[#allocation3 + $0x52] sm:$0xff] }
 0x77f   :  { %v5903_v3 = vmax.f32 %v5833_v1, 0.0  ;;  %9001 = vrot.lane.b32.xlu1 %v14971_v55, %s9702_s19  ;;  %v6015_v1 = vld [vmem:[#allocation3 + $0x4a] sm:$0xff] }
 0x780   :  { %5936 = vst.msk [vmem:[#allocation3 + $0x129] sm:$0xff] %vm24_vm0, %v5904_v16  ;;  %v9065_v16 = vpack.i.bf16 %v6026_v54, %v6025_v58 }
 0x781   :  { %5935 = vst.msk [vmem:[#allocation3 + $0x121] sm:$0xff] %vm24_vm0, %v5903_v3  ;;  %v15020_v3 = vpack.i.bf16 %v6016_v49, %v6015_v1  ;;  %v15077_v49 = vld [vmem:[#allocation3 + $0xe0] sm:$0xff]  ;;  %v5957_v1 = vld [vmem:[#allocation3 + $0x90] sm:$0xff] }
 0x787   :  { %v8154_v23 = vpop.f32.mrb[56].mxu0  ;;  %v6002_v57 = vld [vmem:[#allocation3 + $0x129] sm:$0xff] }
 0x788   :  { %v5848_v10 = vadd.f32 %v8154_v23, %v14895_v5  ;;  %v5842_v60 = vpop.f32.mrb[57].mxu0  ;;  %v6001_v40 = vld [vmem:[#allocation3 + $0x121] sm:$0xff] }
 0x789   :  { %v5843_v4 = vadd.f32 %v14895_v5, %v5842_v60  ;;  %v14979_v17 = vpack.i.bf16 %v6002_v57, %v6001_v40  ;;  %v6020_v23 = vld [vmem:[#allocation3 + $0x82] sm:$0xff]  ;;  %v6029_v57 = vld [vmem:[#allocation3 + $0xf2] sm:$0xff]  ;;  %v6019_v60 = vld [vmem:[#allocation3 + $0x7a] sm:$0xff] }
 0x78a   :  { %v5906_v37 = vmax.f32 %v5848_v10, 0.0  ;;  %v6030_v10 = vld [vmem:[#allocation3 + $0xfa] sm:$0xff] }
 0x78b   :  { %v5905_v24 = vmax.f32 %v5843_v4, 0.0  ;;  %9006 = vrot.lane.b32.xlu0 %v14979_v17, %s9702_s19  ;;  %v15025_v40 = vpack.i.bf16 %v6030_v10, %v6029_v57  ;;  %v15027_v4 = vpack.i.bf16 %v6020_v23, %v6019_v60  ;;  %v15088_v57 = vld [vmem:[#allocation3 + $0xc0] sm:$0xff]  ;;  %v15090_v10 = vld [vmem:[#allocation3 + $0xc8] sm:$0xff] }
 0x78c   :  { %5938 = vst.msk [vmem:[#allocation3 + $0x141] sm:$0xff] %vm24_vm0, %v5906_v37  ;;  %v6024_v37 = vld [vmem:[#allocation3 + $0xb2] sm:$0xff]  ;;  %v9140_v60 = vpack.i.bf16 %v15090_v10, %v15088_v57 }
 0x78d   :  { %5937 = vst.msk [vmem:[#allocation3 + $0x139] sm:$0xff] %vm24_vm0, %v5905_v24  ;;  %v6033_v24 = vld [vmem:[#allocation3 + $0x122] sm:$0xff] }
 0x793   :  { %v8157_v42 = vpop.f32.mrb[58].mxu0  ;;  %v6004_v46 = vld [vmem:[#allocation3 + $0x141] sm:$0xff] }
 0x794   :  { %v5858_v33 = vadd.f32 %v8157_v42, %v14895_v5  ;;  %v5852_v52 = vpop.f32.mrb[59].mxu0  ;;  %v6003_v44 = vld [vmem:[#allocation3 + $0x139] sm:$0xff]  ;;  %v6034_v42 = vld [vmem:[#allocation3 + $0x12a] sm:$0xff] }
 0x795   :  { %v5853_v50 = vadd.f32 %v14895_v5, %v5852_v52  ;;  %v14987_v7 = vpack.i.bf16 %v6004_v46, %v6003_v44  ;;  %v6023_v46 = vld [vmem:[#allocation3 + $0xaa] sm:$0xff]  ;;  %v6028_v44 = vld [vmem:[#allocation3 + $0xe2] sm:$0xff] }
 0x796   :  { %v5908_v11 = vmax.f32 %v5858_v33, 0.0  ;;  %v15033_v33 = vpack.i.bf16 %v6034_v42, %v6033_v24  ;;  %v9060_v52 = vpack.i.bf16 %v6024_v37, %v6023_v46  ;;  %v15098_v37 = vld [vmem:[#allocation3 + $0xf0] sm:$0xff]  ;;  %v15100_v24 = vld [vmem:[#allocation3 + $0xf8] sm:$0xff] }
 0x797   :  { %v5907_v20 = vmax.f32 %v5853_v50, 0.0  ;;  %9011 = vrot.lane.b32.xlu1 %v14987_v7, %s9702_s19  ;;  %v9175_v42 = vpack.i.bf16 %v15100_v24, %v15098_v37  ;;  %v15121_v46 = vld [vmem:[#allocation3 + $0x110] sm:$0xff] }
 0x798   :  { %5940 = vst.msk [vmem:[#allocation3 + $0x159] sm:$0xff] %vm24_vm0, %v5908_v11 }
 0x799   :  { %5939 = vst.msk [vmem:[#allocation3 + $0x151] sm:$0xff] %vm24_vm0, %v5907_v20  ;;  %v6027_v20 = vld [vmem:[#allocation3 + $0xda] sm:$0xff] }
 0x79f   :  { %v8160_v41 = vpop.f32.mrb[60].mxu0  ;;  %v6006_v34 = vld [vmem:[#allocation3 + $0x159] sm:$0xff] }
 0x7a0   :  { %v5868_v27 = vadd.f32 %v8160_v41, %v14895_v5  ;;  %v5862_v19 = vpop.f32.mrb[61].mxu0  ;;  %v6005_v48 = vld [vmem:[#allocation3 + $0x151] sm:$0xff]  ;;  %v6038_v11 = vld [vmem:[#allocation3 + $0x15a] sm:$0xff] }
 0x7a1   :  { %v5863_v45 = vadd.f32 %v14895_v5, %v5862_v19  ;;  %v9015_v21 = vpack.i.bf16 %v6006_v34, %v6005_v48  ;;  %v6037_v50 = vld [vmem:[#allocation3 + $0x152] sm:$0xff]  ;;  %v15042_v19 = vld [vmem:[#allocation3 + $0x20] sm:$0xff]  ;;  %v6031_v48 = vld [vmem:[#allocation3 + $0x10a] sm:$0xff] }
 0x7a2   :  { %v5910_v30 = vmax.f32 %v5868_v27, 0.0  ;;  %v15038_v41 = vld [vmem:[#allocation3 + $0x18] sm:$0xff]  ;;  %v15040_v34 = vpack.i.bf16 %v6038_v11, %v6037_v50  ;;  %v9070_v27 = vpack.i.bf16 %v6028_v44, %v6027_v20 }
 0x7a3   :  { %v5909_v62 = vmax.f32 %v5863_v45, 0.0  ;;  %9016 = vrot.lane.b32.xlu0 %v9015_v21, %s9702_s19  ;;  %v9105_v45 = vpack.i.bf16 %v15042_v19, %v15038_v41  ;;  %v15049_v21 = vpack.i.bf16 %v6032_v18, %v6031_v48  ;;  %v15177_v48 = vld [vmem:[#allocation3 + $0x128] sm:$0xff] }
 0x7a4   :  { %5942 = vst.msk [vmem:[#allocation3 + $0x171] sm:$0xff] %vm24_vm0, %v5910_v30  ;;  %v5952_v30 = vld [vmem:[#allocation3 + $0x50] sm:$0xff]  ;;  %16872 = vst [vmem:[#allocation85_spill] sm:$0xff] %v15177_v48 }
 0x7a5   :  { %5941 = vst.msk [vmem:[#allocation3 + $0x169] sm:$0xff] %vm24_vm0, %v5909_v62  ;;  %v6035_v62 = vld [vmem:[#allocation3 + $0x13a] sm:$0xff]  ;;  %v9115_v39 = vpack.i.bf16 %v5952_v30, %v5951_v22 }
 0x7a6   :  { %v5971_v30 = vld [vmem:[#allocation3 + $0x138] sm:$0xff] }
 0x7a7   :  { %9026 = vrot.lane.b32.xlu0 %v9025_v32, %s9703_s14  ;;  %v6036_v32 = vld [vmem:[#allocation3 + $0x142] sm:$0xff] }
 0x7a8   :  { %v15054_v43 = vpack.i.bf16 %v6036_v32, %v6035_v62  ;;  %v5972_v62 = vld [vmem:[#allocation3 + $0x140] sm:$0xff] }
 0x7ab   :  { %9036 = vrot.lane.b32.xlu0 %v14999_v35, %s9703_s14  ;;  %v8163_v29 = vpop.f32.mrb[62].mxu0  ;;  %v6008_v26 = vld [vmem:[#allocation3 + $0x171] sm:$0xff] }
 0x7ac   :  { %v5878_v0 = vadd.f32 %v8163_v29, %v14895_v5  ;;  %v5872_v38 = vpop.f32.mrb[63].mxu0  ;;  %v6007_v31 = vld [vmem:[#allocation3 + $0x169] sm:$0xff] }
 0x7ad   :  { %v5873_v63 = vadd.f32 %v14895_v5, %v5872_v38  ;;  %v9020_v13 = vpack.i.bf16 %v6008_v26, %v6007_v31  ;;  %v15014_v5 = vpack.i.bf16 %v6012_v61, %v6011_v36  ;;  %v6039_v29 = vld [vmem:[#allocation3 + $0x16a] sm:$0xff]  ;;  %v6040_v26 = vld [vmem:[#allocation3 + $0x172] sm:$0xff]  ;;  %v15061_v38 = vpack.i.bf16 %v5956_v15, %v5955_v6  ;;  %v6079_v15 = vld [vmem:[#allocation3 + $0x61] sm:$0xff] }
 0x7ae   :  { %v5912_v56 = vmax.f32 %v5878_v0, 0.0  ;;  %v15059_v0 = vld [vmem:[#allocation3 + $0x30] sm:$0xff]  ;;  %v15063_v31 = vpack.i.bf16 %v6040_v26, %v6039_v29  ;;  %v5954_v61 = vld [vmem:[#allocation3 + $0x68] sm:$0xff] }
 0x7af   :  { %v5911_v59 = vmax.f32 %v5873_v63, 0.0  ;;  %9046 = vrot.lane.b32.xlu0 %v15005_v14, %s9703_s14  ;;  %9021 = vrot.lane.b32.xlu1 %v9020_v13, %s9702_s19  ;;  %v15065_v63 = vld [vmem:[#allocation3 + $0x38] sm:$0xff]  ;;  %v5959_v13 = vld [vmem:[#allocation3 + $0xa8] sm:$0xff]  ;;  %v5960_v36 = vld [vmem:[#allocation3 + $0xb0] sm:$0xff] }
 0x7b0   :  { %5944 = vst.msk [vmem:[#allocation3 + $0x189] sm:$0xff] %vm24_vm0, %v5912_v56  ;;  %v5953_v56 = vld [vmem:[#allocation3 + $0x60] sm:$0xff]  ;;  %v15071_v9 = vpack.i.bf16 %v5960_v36, %v5959_v13  ;;  %v9110_v53 = vpack.i.bf16 %v15065_v63, %v15059_v0  ;;  %v6080_v29 = vld [vmem:[#allocation3 + $0x69] sm:$0xff] }
 0x7b1   :  { %5943 = vst.msk [vmem:[#allocation3 + $0x181] sm:$0xff] %vm24_vm0, %v5911_v59  ;;  %v15075_v59 = vld [vmem:[#allocation3 + $0xd8] sm:$0xff]  ;;  %v9120_v54 = vpack.i.bf16 %v5954_v61, %v5953_v56  ;;  %v9320_v13 = vpack.i.bf16 %v6080_v29, %v6079_v15  ;;  %v5973_v15 = vld [vmem:[#allocation3 + $0x150] sm:$0xff] }
 0x7b2   :  { %v9145_v58 = vpack.i.bf16 %v15077_v49, %v15075_v59  ;;  %v6081_v61 = vld [vmem:[#allocation3 + $0x79] sm:$0xff] }
 0x7b3   :  { %9056 = vrot.lane.b32.xlu0 %v15012_v8, %s9703_s14  ;;  %9031 = vrot.lane.b32.xlu1 %v15014_v5, %s9703_s14  ;;  %v5974_v29 = vld [vmem:[#allocation3 + $0x158] sm:$0xff] }
 0x7b7   :  { %9066 = vrot.lane.b32.xlu0 %v9065_v16, %s9703_s14  ;;  %9041 = vrot.lane.b32.xlu1 %v15020_v3, %s9703_s14  ;;  %v5958_v16 = vld [vmem:[#allocation3 + $0x98] sm:$0xff] }
 0x7b8   :  { %v15086_v23 = vpack.i.bf16 %v5958_v16, %v5957_v1 }
 0x7bb   :  { %9076 = vrot.lane.b32.xlu0 %v15025_v40, %s9703_s14  ;;  %9051 = vrot.lane.b32.xlu1 %v15027_v4, %s9703_s14 }
 0x7bf   :  { %9086 = vrot.lane.b32.xlu0 %v15033_v33, %s9703_s14  ;;  %9061 = vrot.lane.b32.xlu1 %v9060_v52, %s9703_s14  ;;  %v15129_v52 = vpop.permute.xlu0 %8946 }
 0x7c3   :  { %9096 = vrot.lane.b32.xlu0 %v15040_v34, %s9703_s14  ;;  %9071 = vrot.lane.b32.xlu1 %v9070_v27, %s9703_s14 }
 0x7c7   :  { %9106 = vrot.lane.b32.xlu0 %v9105_v45, %s9704_s15  ;;  %9081 = vrot.lane.b32.xlu1 %v15049_v21, %s9703_s14 }
 0x7cb   :  { %9116 = vrot.lane.b32.xlu0 %v9115_v39, %s9704_s15  ;;  %9091 = vrot.lane.b32.xlu1 %v15054_v43, %s9703_s14 }
 0x7cf   :  { %9126 = vrot.lane.b32.xlu0 %v15061_v38, %s9704_s15  ;;  %9101 = vrot.lane.b32.xlu1 %v15063_v31, %s9703_s14 }
 0x7d3   :  { %9136 = vrot.lane.b32.xlu0 %v15071_v9, %s9704_s15  ;;  %9111 = vrot.lane.b32.xlu1 %v9110_v53, %s9704_s15 }
 0x7d7   :  { %9146 = vrot.lane.b32.xlu0 %v9145_v58, %s9704_s15  ;;  %9121 = vrot.lane.b32.xlu1 %v9120_v54, %s9704_s15  ;;  %v6082_v58 = vld [vmem:[#allocation3 + $0x81] sm:$0xff] }
 0x7d8   :  { %v9375_v16 = vpack.i.bf16 %v6082_v58, %v6081_v61  ;;  %v6099_v61 = vld [vmem:[#allocation3 + $0x151] sm:$0xff]  ;;  %v6100_v58 = vld [vmem:[#allocation3 + $0x159] sm:$0xff] }
 0x7db   :  { %9156 = vrot.lane.b32.xlu0 %v14957_v12, %s9705_s21  ;;  %9131 = vrot.lane.b32.xlu1 %v15086_v23, %s9704_s15  ;;  %v15119_v12 = vld [vmem:[#allocation3 + $0x108] sm:$0xff] }
 0x7df   :  { %9166 = vrot.lane.b32.xlu0 %v9070_v27, %s9706_s22  ;;  %9141 = vrot.lane.b32.xlu1 %v9140_v60, %s9704_s15  ;;  %v15175_v27 = vld [vmem:[#allocation3 + $0x120] sm:$0xff] }
 0x7e0   :  { %16871 = vst [vmem:[#allocation41_spill] sm:$0xff] %v15175_v27 }
 0x7e3   :  { %9176 = vrot.lane.b32.xlu0 %v9175_v42, %s9707_s23  ;;  %9151 = vrot.lane.b32.xlu1 %v9175_v42, %s9704_s15 }
 0x7e7   :  { %9186 = vrot.lane.b32.xlu0 %v14963_v28, %s9708_s28  ;;  %9161 = vrot.lane.b32.xlu1 %v14905_v51, %s9705_s21  ;;  %v9225_v51 = vpack.i.bf16 %v15121_v46, %v15119_v12 }
 0x7eb   :  { %9196 = vrot.lane.b32.xlu0 %v15025_v40, %s9709_s30  ;;  %9171 = vrot.lane.b32.xlu1 %v15014_v5, %s9706_s22 }
 0x7ef   :  { %9206 = vrot.lane.b32.xlu0 %v14963_v28, %s9705_s21  ;;  %9181 = vrot.lane.b32.xlu1 %v9110_v53, %s9707_s23  ;;  %v15138_v28 = vpop.permute.xlu0 %8956 }
 0x7f3   :  { %9216 = vrot.lane.b32.xlu0 %v15025_v40, %s9706_s22  ;;  %9191 = vrot.lane.b32.xlu1 %v14913_v25, %s9708_s28  ;;  %v15144_v5 = vpop.permute.xlu0 %8966  ;;  %v15148_v40 = vpop.permute.xlu1 %8951 }
 0x7f7   :  { %9226 = vrot.lane.b32.xlu0 %v9225_v51, %s9707_s23  ;;  %9201 = vrot.lane.b32.xlu1 %v14999_v35, %s9709_s30  ;;  %v15150_v44 = vpop.permute.xlu0 %8976 }
 0x7f8   :  { %16868 = vst [vmem:[#allocation104_spill] sm:$0xff] %v15150_v44 }
 0x7fb   :  { %9236 = vrot.lane.b32.xlu0 %v14971_v55, %s9708_s28  ;;  %9211 = vrot.lane.b32.xlu1 %v14913_v25, %s9705_s21  ;;  %v15156_v25 = vpop.permute.xlu1 %8961  ;;  %v15158_v50 = vpop.permute.xlu0 %8986 }
 0x7ff   :  { %9246 = vrot.lane.b32.xlu0 %v15049_v21, %s9709_s30  ;;  %9221 = vrot.lane.b32.xlu1 %v14999_v35, %s9706_s22  ;;  %v15164_v35 = vpop.permute.xlu1 %8971  ;;  %v15166_v11 = vpop.permute.xlu0 %8996 }
 0x800   :  { %16869 = vst [vmem:[#allocation68_spill] sm:$0xff] %v15164_v35 }
 0x803   :  { %9256 = vrot.lane.b32.xlu0 %v9225_v51, %s9704_s15  ;;  %9231 = vrot.lane.b32.xlu1 %v9115_v39, %s9707_s23  ;;  %v15173_v20 = vpop.permute.xlu0 %9006  ;;  %v9335_v39 = vpack.i.bf16 %v5972_v62, %v5971_v30  ;;  %v6177_v51 = vld [vmem:[#allocation3 + $0x91] sm:$0xff] }
 0x807   :  { %9266 = vrot.lane.b32.xlu0 %v14921_v2, %s9705_s21  ;;  %9241 = vrot.lane.b32.xlu1 %v14921_v2, %s9708_s28  ;;  %v15171_v2 = vpop.permute.xlu1 %8981 }
 0x808   :  { %16870 = vst [vmem:[#allocation105_spill] sm:$0xff] %v15171_v2 }
 0x80b   :  { %9276 = vrot.lane.b32.xlu0 %v15020_v3, %s9706_s22  ;;  %9251 = vrot.lane.b32.xlu1 %v15020_v3, %s9709_s30  ;;  %v15183_v3 = vpop.permute.xlu1 %8991 }
 0x80f   :  { %9286 = vrot.lane.b32.xlu0 %v9120_v54, %s9707_s23  ;;  %9261 = vrot.lane.b32.xlu1 %v14971_v55, %s9705_s21  ;;  %v9280_v55 = vpack.i.bf16 %v15177_v48, %v15175_v27  ;;  %v15192_v22 = vpop.permute.xlu1 %9001 }
 0x813   :  { %9296 = vrot.lane.b32.xlu0 %v14929_v47, %s9708_s28  ;;  %9271 = vrot.lane.b32.xlu1 %v15049_v21, %s9706_s22  ;;  %v15200_v47 = vpop.permute.xlu1 %9011 }
 0x814   :  { %16874 = vst [vmem:[#allocation67_spill] sm:$0xff] %v15200_v47  ;;  %v6086_v47 = vld [vmem:[#allocation3 + $0xb1] sm:$0xff] }
 0x815   :  { %v15185_v18 = vpop.permute.xlu0 %9016 }
 0x816   :  { %16873 = vst [vmem:[#allocation167_spill] sm:$0xff] %v15185_v18 }
 0x817   :  { %9306 = vrot.lane.b32.xlu0 %v15005_v14, %s9709_s30  ;;  %9281 = vrot.lane.b32.xlu1 %v9280_v55, %s9707_s23 }
 0x819   :  { %v15194_v45 = vpop.permute.xlu0 %9026 }
 0x81b   :  { %9316 = vrot.lane.b32.xlu0 %v14979_v17, %s9705_s21  ;;  %9291 = vrot.lane.b32.xlu1 %v14979_v17, %s9708_s28 }
 0x81d   :  { %v15202_v21 = vpop.permute.xlu0 %9036 }
 0x81f   :  { %9326 = vrot.lane.b32.xlu0 %v15033_v33, %s9706_s22  ;;  %9301 = vrot.lane.b32.xlu1 %v15033_v33, %s9709_s30 }
 0x821   :  { %v15208_v32 = vpop.permute.xlu0 %9046  ;;  %v15210_v6 = vpop.permute.xlu1 %9021 }
 0x822   :  { %16875 = vst [vmem:[#allocation166_spill] sm:$0xff] %v15210_v6 }
 0x823   :  { %9336 = vrot.lane.b32.xlu0 %v9335_v39, %s9707_s23  ;;  %9311 = vrot.lane.b32.xlu1 %v9280_v55, %s9704_s15  ;;  %v6178_v55 = vld [vmem:[#allocation3 + $0x99] sm:$0xff] }
 0x825   :  { %v15214_v17 = vpop.permute.xlu0 %9056  ;;  %v15216_v26 = vpop.permute.xlu1 %9031 }
 0x826   :  { %16876 = vst [vmem:[#allocation28_spill] sm:$0xff] %v15214_v17 }
 0x827   :  { %9346 = vrot.lane.b32.xlu0 %v14987_v7, %s9708_s28  ;;  %9321 = vrot.lane.b32.xlu1 %v9320_v13, %s9705_s21 }
 0x829   :  { %v15221_v33 = vpop.permute.xlu0 %9066  ;;  %v15223_v36 = vpop.permute.xlu1 %9041 }
 0x82a   :  { %v9069_v18 = vunpack.i.h.bf16 %v15221_v33 }
 0x82b   :  { %9356 = vrot.lane.b32.xlu0 %v15054_v43, %s9709_s30  ;;  %9331 = vrot.lane.b32.xlu1 %v15005_v14, %s9706_s22 }
 0x82d   :  { %v15229_v56 = vpop.permute.xlu0 %9076  ;;  %v15231_v53 = vpop.permute.xlu1 %9051 }
 0x82e   :  { %16877 = vst [vmem:[#allocation143_spill] sm:$0xff] %v15231_v53 }
 0x82f   :  { %9366 = vrot.lane.b32.xlu0 %v9335_v39, %s9704_s15  ;;  %9341 = vrot.lane.b32.xlu1 %v15061_v38, %s9707_s23  ;;  %v9405_v39 = vpack.i.bf16 %v6178_v55, %v6177_v51  ;;  %v9425_v51 = vpack.i.bf16 %v6100_v58, %v6099_v61  ;;  %v6195_v61 = vld [vmem:[#allocation3 + $0x169] sm:$0xff]  ;;  %v6196_v58 = vld [vmem:[#allocation3 + $0x171] sm:$0xff] }
 0x830   :  { %v15290_v6 = vpack.i.bf16 %v6196_v58, %v6195_v61  ;;  %v9068_v61 = vunpack.i.l.bf16 %v15221_v33 }
 0x831   :  { %v15236_v54 = vpop.permute.xlu0 %9086  ;;  %v15238_v1 = vpop.permute.xlu1 %9061 }
 0x832   :  { %16878 = vst [vmem:[#allocation168_spill] sm:$0xff] %v15236_v54  ;;  %16879 = vst [vmem:[#allocation31_spill] sm:$0xff] %v15238_v1 }
 0x833   :  { %9376 = vrot.lane.b32.xlu0 %v9375_v16, %s9705_s21  ;;  %9351 = vrot.lane.b32.xlu1 %v9375_v16, %s9708_s28 }
 0x835   :  { %v15242_v14 = vpop.permute.xlu0 %9096  ;;  %v15244_v60 = vpop.permute.xlu1 %9071 }
 0x836   :  { %16880 = vst [vmem:[#allocation45_spill] sm:$0xff] %v15242_v14  ;;  %v6116_v14 = vld [vmem:[#allocation3 + $0x9a] sm:$0xff] }
 0x837   :  { %9386 = vrot.lane.b32.xlu0 %v15027_v4, %s9706_s22  ;;  %9361 = vrot.lane.b32.xlu1 %v15027_v4, %s9709_s30 }
 0x839   :  { %v15250_v38 = vpop.permute.xlu0 %9106  ;;  %v15252_v42 = vpop.permute.xlu1 %9081 }
 0x83b   :  { %9396 = vrot.lane.b32.xlu0 %v15086_v23, %s9707_s23  ;;  %9371 = vrot.lane.b32.xlu1 %v14987_v7, %s9705_s21  ;;  %v9390_v23 = vpack.i.bf16 %v5974_v29, %v5973_v15  ;;  %v5975_v15 = vld [vmem:[#allocation3 + $0x168] sm:$0xff]  ;;  %v5976_v29 = vld [vmem:[#allocation3 + $0x170] sm:$0xff] }
 0x83c   :  { %v9445_v2 = vpack.i.bf16 %v5976_v29, %v5975_v15  ;;  %v8988_v15 = vunpack.i.l.bf16 %v15158_v50 }
 0x83d   :  { %v15258_v30 = vpop.permute.xlu0 %9116  ;;  %v15260_v62 = vpop.permute.xlu1 %9091 }
 0x83e   :  { %16881 = vst [vmem:[#allocation46_spill] sm:$0xff] %v15260_v62 }
 0x83f   :  { %9406 = vrot.lane.b32.xlu0 %v9405_v39, %s9708_s28  ;;  %9381 = vrot.lane.b32.xlu1 %v15054_v43, %s9706_s22 }
 0x841   :  { %v15265_v4 = vpop.permute.xlu0 %9126  ;;  %v15267_v13 = vpop.permute.xlu1 %9101 }
 0x842   :  { %16882 = vst [vmem:[#allocation84_spill] sm:$0xff] %v15265_v4  ;;  %16883 = vst [vmem:[#allocation165_spill] sm:$0xff] %v15267_v13 }
 0x843   :  { %9416 = vrot.lane.b32.xlu0 %v15012_v8, %s9709_s30  ;;  %9391 = vrot.lane.b32.xlu1 %v9390_v23, %s9707_s23 }
 0x845   :  { %v15272_v7 = vpop.permute.xlu0 %9136  ;;  %v15274_v16 = vpop.permute.xlu1 %9111 }
 0x846   :  { %16884 = vst [vmem:[#allocation72_spill] sm:$0xff] %v15272_v7  ;;  %v6115_v7 = vld [vmem:[#allocation3 + $0x92] sm:$0xff] }
 0x847   :  { %9426 = vrot.lane.b32.xlu0 %v9425_v51, %s9705_s21  ;;  %9401 = vrot.lane.b32.xlu1 %v9425_v51, %s9708_s28 }
 0x849   :  { %v9147_v43 = vpop.permute.xlu0 %9146  ;;  %v15278_v55 = vpop.permute.xlu1 %9121 }
 0x84a   :  { %v9149_v58 = vunpack.i.h.bf16 %v9147_v43 }
 0x84b   :  { %9436 = vrot.lane.b32.xlu0 %v15040_v34, %s9706_s22  ;;  %9411 = vrot.lane.b32.xlu1 %v15040_v34, %s9709_s30  ;;  %v8989_v34 = vunpack.i.h.bf16 %v15158_v50  ;;  %v7273_v50 = vsel %vm24_vm0, %v15088_v57, %v8988_v15 }
 0x84d   :  { %v9157_v8 = vpop.permute.xlu0 %9156  ;;  %v15284_v1 = vpop.permute.xlu1 %9131 }
 0x84e   :  { %16885 = vst [vmem:[#allocation86_spill] sm:$0xff] %v15284_v1  ;;  %v9158_v44 = vunpack.i.l.bf16 %v9157_v8  ;;  %v7274_v1 = vsel %vm24_vm0, %v15090_v10, %v8989_v34  ;;  %v8949_v10 = vunpack.i.h.bf16 %v15129_v52 }
 0x84f   :  { %9446 = vrot.lane.b32.xlu0 %v9445_v2, %s9707_s23  ;;  %9421 = vrot.lane.b32.xlu1 %v9390_v23, %s9704_s15  ;;  %v9440_v23 = vpack.i.bf16 %v6116_v14, %v6115_v7  ;;  %v7306_v33 = vsel %vm1523_vm3, %v7274_v1, %v9069_v18 }
 0x851   :  { %v9167_v51 = vpop.permute.xlu0 %9166  ;;  %v15288_v13 = vpop.permute.xlu1 %9141 }
 0x852   :  { %16886 = vst [vmem:[#allocation32_spill] sm:$0xff] %v15288_v13  ;;  %v9148_v13 = vunpack.i.l.bf16 %v9147_v43  ;;  %v9169_v14 = vunpack.i.h.bf16 %v9167_v51  ;;  %v9168_v7 = vunpack.i.l.bf16 %v9167_v51  ;;  %v7305_v43 = vsel %vm1523_vm3, %v7273_v50, %v9068_v61 }
 0x853   :  { %9456 = vrot.lane.b32.xlu0 %v15290_v6, %s9708_s28  ;;  %9431 = vrot.lane.b32.xlu1 %v9405_v39, %s9705_s21  ;;  %v9159_v39 = vunpack.i.h.bf16 %v9157_v8  ;;  %v7338_v8 = vsel %vm1556_vm4, %v7306_v33, %v9149_v58  ;;  %v8948_v51 = vunpack.i.l.bf16 %v15129_v52  ;;  %v6117_v33 = vld [vmem:[#allocation3 + $0xaa] sm:$0xff] }
 0x854   :  { %v7337_v57 = vsel %vm1556_vm4, %v7305_v43, %v9148_v13  ;;  %v5945_v43 = vld [vmem:[#allocation3] sm:$0xff] }
 0x855   :  { %v9177_v29 = vpop.permute.xlu0 %9176  ;;  %v15297_v17 = vpop.permute.xlu1 %9151  ;;  %v7369_v18 = vsel %vm1589_vm5, %v7337_v57, %v9158_v44  ;;  %v7370_v1 = vsel %vm1589_vm5, %v7338_v8, %v9159_v39  ;;  %v6118_v44 = vld [vmem:[#allocation3 + $0xb2] sm:$0xff]  ;;  %v5946_v39 = vld [vmem:[#allocation3 + $0x8] sm:$0xff] }
 0x856   :  { %v9178_v62 = vunpack.i.l.bf16 %v9177_v29  ;;  %v7401_v34 = vsel %vm1622_vm6, %v7369_v18, %v9168_v7  ;;  %v6181_v8 = vld [vmem:[#allocation3 + $0xc1] sm:$0xff] }
 0x857   :  { %9466 = vrot.lane.b32.xlu0 %v15063_v31, %s9709_s30  ;;  %9441 = vrot.lane.b32.xlu1 %v9440_v23, %s9706_s22  ;;  %v9179_v31 = vunpack.i.h.bf16 %v9177_v29  ;;  %v6085_v23 = vld [vmem:[#allocation3 + $0xa9] sm:$0xff]  ;;  %v7402_v29 = vsel %vm1622_vm6, %v7370_v1, %v9169_v14 }
 0x858   :  { %v6182_v14 = vld [vmem:[#allocation3 + $0xc9] sm:$0xff] }
 0x859   :  { %v9187_v53 = vpop.permute.xlu0 %9186  ;;  %v15308_v35 = vpop.permute.xlu1 %9161 }
 0x85a   :  { %v9189_v15 = vunpack.i.h.bf16 %v9187_v53  ;;  %v9188_v4 = vunpack.i.l.bf16 %v9187_v53  ;;  %v9485_v53 = vpack.i.bf16 %v6086_v47, %v6085_v23  ;;  %v6150_v23 = vld [vmem:[#allocation3 + $0xc8] sm:$0xff] }
 0x85b   :  { %9476 = vrot.lane.b32.xlu0 %v9445_v2, %s9704_s15  ;;  %9451 = vrot.lane.b32.xlu1 %v15071_v9, %s9707_s23  ;;  %v7433_v2 = vsel %vm1655_vm7, %v7401_v34, %v9178_v62  ;;  %v7434_v9 = vsel %vm1655_vm7, %v7402_v29, %v9179_v31  ;;  %v6149_v31 = vld [vmem:[#allocation3 + $0xc0] sm:$0xff]  ;;  %v9495_v34 = vpack.i.bf16 %v6118_v44, %v6117_v33 }
 0x85c   :  { %v7465_v52 = vsel %vm1688_vm8, %v7433_v2, %v9188_v4  ;;  %v7466_v7 = vsel %vm1688_vm8, %v7434_v9, %v9189_v15  ;;  %v6133_v4 = vld [vmem:[#allocation3 + $0x16a] sm:$0xff]  ;;  %v6213_v29 = vld [vmem:[#allocation3 + $0xc2] sm:$0xff]  ;;  %v9029_v2 = vunpack.i.h.bf16 %v15194_v45  ;;  %v9028_v9 = vunpack.i.l.bf16 %v15194_v45 }
 0x85d   :  { %v9197_v13 = vpop.permute.xlu0 %9196  ;;  %v15323_v61 = vpop.permute.xlu1 %9171  ;;  %v6214_v15 = vld [vmem:[#allocation3 + $0xca] sm:$0xff]  ;;  %v9505_v33 = vpack.i.bf16 %v6150_v23, %v6149_v31  ;;  %v15343_v44 = vpack.i.bf16 %v6182_v14, %v6181_v8  ;;  %v9163_v45 = vunpack.i.l.bf16 %v15308_v35 }
 0x85e   :  { %v9199_v58 = vunpack.i.h.bf16 %v9197_v13  ;;  %v9198_v50 = vunpack.i.l.bf16 %v9197_v13  ;;  %v7258_v13 = vsel %vm24_vm0, %v5946_v39, %v8949_v10  ;;  %v8994_v10 = vunpack.i.h.bf16 %v15183_v3 }
 0x85f   :  { %9486 = vrot.lane.b32.xlu0 %v9485_v53, %s9705_s21  ;;  %9461 = vrot.lane.b32.xlu1 %v9485_v53, %s9708_s28  ;;  %v7257_v53 = vsel %vm24_vm0, %v5945_v43, %v8948_v51  ;;  %v9164_v51 = vunpack.i.h.bf16 %v15308_v35  ;;  %v15350_v39 = vpack.i.bf16 %v6214_v15, %v6213_v29  ;;  %v7290_v23 = vsel %vm1523_vm3, %v7258_v13, %v9029_v2 }
 0x860   :  { %v7497_v47 = vsel %vm1721_vm9, %v7465_v52, %v9198_v50  ;;  %v7498_v62 = vsel %vm1721_vm9, %v7466_v7, %v9199_v58  ;;  %v6134_v58 = vld [vmem:[#allocation3 + $0x172] sm:$0xff]  ;;  %v6165_v50 = vld [vmem:[#allocation3 + $0x180] sm:$0xff]  ;;  %v6166_v52 = vld [vmem:[#allocation3 + $0x188] sm:$0xff]  ;;  %v9109_v7 = vunpack.i.h.bf16 %v15250_v38  ;;  %v7289_v8 = vsel %vm1523_vm3, %v7257_v53, %v9028_v9 }
 0x861   :  { %v8244_v57 = vpack.c.bf16 %v7498_v62, %v7497_v47  ;;  %v15333_v18 = vpop.permute.xlu0 %9206  ;;  %v9182_v1 = vpop.permute.xlu1 %9181  ;;  %v9108_v47 = vunpack.i.l.bf16 %v15250_v38  ;;  %v9174_v38 = vunpack.i.h.bf16 %v15323_v61  ;;  %v9173_v62 = vunpack.i.l.bf16 %v15323_v61 }
 0x862   :  { %v9490_v31 = vpack.i.bf16 %v6134_v58, %v6133_v4  ;;  %v15354_v14 = vpack.i.bf16 %v6166_v52, %v6165_v50  ;;  %v9184_v27 = vunpack.i.h.bf16 %v9182_v1  ;;  %v9183_v35 = vunpack.i.l.bf16 %v9182_v1 }
 0x863   :  { %9496 = vrot.lane.b32.xlu0 %v9495_v34, %s9706_s22  ;;  %9471 = vrot.lane.b32.xlu1 %v9495_v34, %s9709_s30  ;;  %v7322_v54 = vsel %vm1556_vm4, %v7290_v23, %v9109_v7  ;;  %v7276_v61 = vsel %vm24_vm0, %v15077_v49, %v8994_v10  ;;  %v8993_v4 = vunpack.i.l.bf16 %v15183_v3  ;;  %v9074_v53 = vunpack.i.h.bf16 %v15244_v60 }
 0x864   :  { %8246 = vmatprep.subr.msk.bf16.mxu1 %vm13294_vm11, %v8244_v57  ;;  %v7321_v57 = vsel %vm1556_vm4, %v7289_v8, %v9108_v47  ;;  %v7354_v13 = vsel %vm1589_vm5, %v7322_v54, %v9164_v51  ;;  %v9073_v2 = vunpack.i.l.bf16 %v15244_v60  ;;  %v9154_v54 = vunpack.i.h.bf16 %v15297_v17 }
 0x865   :  { %v9217_v48 = vpop.permute.xlu0 %9216  ;;  %v9192_v34 = vpop.permute.xlu1 %9191  ;;  %v7353_v1 = vsel %vm1589_vm5, %v7321_v57, %v9163_v45  ;;  %v7386_v58 = vsel %vm1622_vm6, %v7354_v13, %v9174_v38  ;;  %v9153_v47 = vunpack.i.l.bf16 %v15297_v17  ;;  %v9209_v10 = vunpack.i.h.bf16 %v15333_v18 }
 0x866   :  { %v9194_v29 = vunpack.i.h.bf16 %v9192_v34  ;;  %v9193_v15 = vunpack.i.l.bf16 %v9192_v34  ;;  %v7385_v9 = vsel %vm1622_vm6, %v7353_v1, %v9173_v62  ;;  %v7418_v49 = vsel %vm1655_vm7, %v7386_v58, %v9184_v27 }
 0x867   :  { %9506 = vrot.lane.b32.xlu0 %v9505_v33, %s9707_s23  ;;  %9481 = vrot.lane.b32.xlu1 %v15290_v6, %s9705_s21  ;;  %v7417_v6 = vsel %vm1655_vm7, %v7385_v9, %v9183_v35  ;;  %v9208_v51 = vunpack.i.l.bf16 %v15333_v18  ;;  %v7275_v17 = vsel %vm24_vm0, %v15075_v59, %v8993_v4  ;;  %v9219_v38 = vunpack.i.h.bf16 %v9217_v48  ;;  %v6103_v18 = vld [vmem:[#allocation3 + $0x181] sm:$0xff] }
 0x868   :  { %v7449_v33 = vsel %vm1688_vm8, %v7417_v6, %v9193_v15  ;;  %v7450_v60 = vsel %vm1688_vm8, %v7418_v49, %v9194_v29  ;;  %v9218_v62 = vunpack.i.l.bf16 %v9217_v48  ;;  %v7307_v35 = vsel %vm1523_vm3, %v7275_v17, %v9073_v2  ;;  %v6104_v15 = vld [vmem:[#allocation3 + $0x189] sm:$0xff] }
 0x869   :  { %v9227_v50 = vpop.permute.xlu0 %9226  ;;  %v9202_v52 = vpop.permute.xlu1 %9201  ;;  %v7339_v13 = vsel %vm1556_vm4, %v7307_v35, %v9153_v47  ;;  %v8954_v17 = vunpack.i.h.bf16 %v15148_v40  ;;  %v9034_v35 = vunpack.i.h.bf16 %v15216_v26 }
 0x86a   :  { %v9204_v7 = vunpack.i.h.bf16 %v9202_v52  ;;  %v9203_v3 = vunpack.i.l.bf16 %v9202_v52  ;;  %v9229_v57 = vunpack.i.h.bf16 %v9227_v50  ;;  %v9228_v29 = vunpack.i.l.bf16 %v9227_v50 }
 0x86b   :  { %9516 = vrot.lane.b32.xlu0 %v15343_v44, %s9708_s28  ;;  %9491 = vrot.lane.b32.xlu1 %v9490_v31, %s9706_s22  ;;  %v7308_v31 = vsel %vm1523_vm3, %v7276_v61, %v9074_v53  ;;  %v7371_v48 = vsel %vm1589_vm5, %v7339_v13, %v9208_v51  ;;  %v9535_v50 = vpack.i.bf16 %v6104_v15, %v6103_v18  ;;  %v9114_v18 = vunpack.i.h.bf16 %v15274_v16 }
 0x86c   :  { %v7481_v27 = vsel %vm1721_vm9, %v7449_v33, %v9203_v3  ;;  %v7482_v45 = vsel %vm1721_vm9, %v7450_v60, %v9204_v7  ;;  %v7340_v1 = vsel %vm1556_vm4, %v7308_v31, %v9154_v54  ;;  %v7403_v4 = vsel %vm1622_vm6, %v7371_v48, %v9218_v62  ;;  %v6135_v3 = vld [vmem:[#allocation3 + $0x182] sm:$0xff]  ;;  %v6136_v54 = vld [vmem:[#allocation3 + $0x18a] sm:$0xff] }
 0x86d   :  { %v8247_v34 = vpack.c.bf16 %v7482_v45, %v7481_v27  ;;  %v9237_v23 = vpop.permute.xlu0 %9236  ;;  %v15387_v8 = vpop.permute.xlu1 %9211  ;;  %v7372_v61 = vsel %vm1589_vm5, %v7340_v1, %v9209_v10  ;;  %v7435_v52 = vsel %vm1655_vm7, %v7403_v4, %v9228_v29  ;;  %v8953_v60 = vunpack.i.l.bf16 %v15148_v40  ;;  %v6167_v27 = vld [vmem:[#allocation3 + $0x198] sm:$0xff]  ;;  %v6168_v45 = vld [vmem:[#allocation3 + $0x1a0] sm:$0xff] }
 0x86e   :  { %v9239_v9 = vunpack.i.h.bf16 %v9237_v23  ;;  %v9238_v59 = vunpack.i.l.bf16 %v9237_v23  ;;  %v7404_v53 = vsel %vm1622_vm6, %v7372_v61, %v9219_v38  ;;  %v9545_v23 = vpack.i.bf16 %v6136_v54, %v6135_v3  ;;  %v6200_v29 = vld [vmem:[#allocation3 + $0x1a1] sm:$0xff] }
 0x86f   :  { %9526 = vrot.lane.b32.xlu0 %v15350_v39, %s9709_s30  ;;  %9501 = vrot.lane.b32.xlu1 %v15354_v14, %s9707_s23  ;;  %v7436_v6 = vsel %vm1655_vm7, %v7404_v53, %v9229_v57  ;;  %v9033_v31 = vunpack.i.l.bf16 %v15216_v26  ;;  %v6199_v57 = vld [vmem:[#allocation3 + $0x199] sm:$0xff]  ;;  %v9113_v15 = vunpack.i.l.bf16 %v15274_v16  ;;  %v9555_v40 = vpack.i.bf16 %v6168_v45, %v6167_v27  ;;  %v6232_v3 = vld [vmem:[#allocation3 + $0x1a2] sm:$0xff] }
 0x870   :  { %8249 = vmatpush3.bf16.xpose.msk.msra.mxu1 %vm13294_vm11, %v8247_v34  ;;  %v7467_v47 = vsel %vm1688_vm8, %v7435_v52, %v9238_v59  ;;  %v7468_v33 = vsel %vm1688_vm8, %v7436_v6, %v9239_v9  ;;  %v7259_v13 = vsel %vm24_vm0, %v15038_v41, %v8953_v60  ;;  %v9214_v1 = vunpack.i.h.bf16 %v15387_v8 }
 0x871   :  { %v9247_v2 = vpop.permute.xlu0 %9246  ;;  %v9222_v58 = vpop.permute.xlu1 %9221  ;;  %v9213_v9 = vunpack.i.l.bf16 %v15387_v8  ;;  %v7260_v26 = vsel %vm24_vm0, %v15042_v19, %v8954_v17  ;;  %v9565_v4 = vpack.i.bf16 %v6200_v29, %v6199_v57  ;;  %v7291_v53 = vsel %vm1523_vm3, %v7259_v13, %v9033_v31  ;;  %v6152_v31 = vld [vmem:[#allocation3 + $0xe0] sm:$0xff] }
 0x872   :  { %v9249_v49 = vunpack.i.h.bf16 %v9247_v2  ;;  %v9248_v7 = vunpack.i.l.bf16 %v9247_v2  ;;  %v9224_v59 = vunpack.i.h.bf16 %v9222_v58  ;;  %v9223_v16 = vunpack.i.l.bf16 %v9222_v58  ;;  %v6184_v57 = vld [vmem:[#allocation3 + $0xe1] sm:$0xff] }
 0x873   :  { %9536 = vrot.lane.b32.xlu0 %v9535_v50, %s9705_s21  ;;  %9511 = vrot.lane.b32.xlu1 %v9535_v50, %s9708_s28  ;;  %v7292_v41 = vsel %vm1523_vm3, %v7260_v26, %v9034_v35  ;;  %v7323_v8 = vsel %vm1556_vm4, %v7291_v53, %v9113_v15  ;;  %v6151_v35 = vld [vmem:[#allocation3 + $0xd8] sm:$0xff]  ;;  %v8959_v29 = vunpack.i.h.bf16 %v15138_v28  ;;  %v8999_v26 = vunpack.i.h.bf16 %v15166_v11 }
 0x874   :  { %v7499_v10 = vsel %vm1721_vm9, %v7467_v47, %v9248_v7  ;;  %v7500_v51 = vsel %vm1721_vm9, %v7468_v33, %v9249_v49  ;;  %v7324_v52 = vsel %vm1556_vm4, %v7292_v41, %v9114_v18  ;;  %v7355_v19 = vsel %vm1589_vm5, %v7323_v8, %v9213_v9  ;;  %v6231_v7 = vld [vmem:[#allocation3 + $0x19a] sm:$0xff] }
 0x875   :  { %v8250_v38 = vpack.c.bf16 %v7500_v51, %v7499_v10  ;;  %v15413_v62 = vpop.permute.xlu0 %9256  ;;  %v9232_v34 = vpop.permute.xlu1 %9231  ;;  %v7356_v58 = vsel %vm1589_vm5, %v7324_v52, %v9214_v1  ;;  %v7387_v54 = vsel %vm1622_vm6, %v7355_v19, %v9223_v16  ;;  %v8958_v18 = vunpack.i.l.bf16 %v15138_v28  ;;  %v6183_v1 = vld [vmem:[#allocation3 + $0xd9] sm:$0xff] }
 0x876   :  { %v9234_v2 = vunpack.i.h.bf16 %v9232_v34  ;;  %v9233_v50 = vunpack.i.l.bf16 %v9232_v34  ;;  %v7388_v47 = vsel %vm1622_vm6, %v7356_v58, %v9224_v59  ;;  %v15459_v9 = vld [vmem:[#allocation3 + $0xda] sm:$0xff]  ;;  %v8998_v59 = vunpack.i.l.bf16 %v15166_v11 }
 0x877   :  { %9546 = vrot.lane.b32.xlu0 %v9545_v23, %s9706_s22  ;;  %9521 = vrot.lane.b32.xlu1 %v9545_v23, %s9709_s30  ;;  %v9560_v28 = vpack.i.bf16 %v6152_v31, %v6151_v35  ;;  %v9039_v16 = vunpack.i.h.bf16 %v15202_v21  ;;  %v9570_v53 = vpack.i.bf16 %v6184_v57, %v6183_v1  ;;  %v7261_v41 = vsel %vm24_vm0, %v15059_v0, %v8958_v18 }
 0x878   :  { %8252 = vmatprep.subr.msk.bf16.mxu1 %vm13294_vm11, %v8250_v38  ;;  %v7419_v10 = vsel %vm1655_vm7, %v7387_v54, %v9233_v50  ;;  %v7420_v51 = vsel %vm1655_vm7, %v7388_v47, %v9234_v2  ;;  %v9575_v38 = vpack.i.bf16 %v6232_v3, %v6231_v7  ;;  %v9079_v2 = vunpack.i.h.bf16 %v15229_v56 }
 0x879   :  { %v15429_v48 = vpop.permute.xlu0 %9266  ;;  %v9242_v61 = vpop.permute.xlu1 %9241  ;;  %v7277_v52 = vsel %vm24_vm0, %v15098_v37, %v8998_v59  ;;  %v9118_v19 = vunpack.i.l.bf16 %v15258_v30  ;;  %v9259_v0 = vunpack.i.h.bf16 %v15413_v62  ;;  %v15497_v37 = vld [vmem:[%s15838_s4] sm:$0xff]  ;;  %v9084_v54 = vunpack.i.h.bf16 %v15252_v42 }
 0x87a   :  { %v9244_v6 = vunpack.i.h.bf16 %v9242_v61  ;;  %v9243_v49 = vunpack.i.l.bf16 %v9242_v61  ;;  %v9038_v61 = vunpack.i.l.bf16 %v15202_v21  ;;  %v9078_v21 = vunpack.i.l.bf16 %v15229_v56  ;;  %8030 = vmatprep.mubr.msk.f32.mxu1 %vm1770_vm10, %v15497_v37 }
 0x87b   :  { %9556 = vrot.lane.b32.xlu0 %v9555_v40, %s9707_s23  ;;  %9531 = vrot.lane.b32.xlu1 %v15354_v14, %s9704_s15  ;;  %v9269_v58 = vunpack.i.h.bf16 %v15429_v48  ;;  %v9268_v56 = vunpack.i.l.bf16 %v15429_v48  ;;  %v9083_v47 = vunpack.i.l.bf16 %v15252_v42 }
 0x87c   :  { %v7451_v14 = vsel %vm1688_vm8, %v7419_v10, %v9243_v49  ;;  %v7452_v17 = vsel %vm1688_vm8, %v7420_v51, %v9244_v6  ;;  %v7278_v6 = vsel %vm24_vm0, %v15100_v24, %v8999_v26  ;;  %v9119_v49 = vunpack.i.h.bf16 %v15258_v30 }
 0x87d   :  { %v15442_v33 = vpop.permute.xlu0 %9276  ;;  %v9252_v60 = vpop.permute.xlu1 %9251  ;;  %v9004_v24 = vunpack.i.h.bf16 %v15192_v22  ;;  %v9003_v30 = vunpack.i.l.bf16 %v15192_v22  ;;  %v7310_v48 = vsel %vm1523_vm3, %v7278_v6, %v9079_v2  ;;  %v7309_v3 = vsel %vm1523_vm3, %v7277_v52, %v9078_v21 }
 0x87e   :  { %v9254_v27 = vunpack.i.h.bf16 %v9252_v60  ;;  %v9253_v45 = vunpack.i.l.bf16 %v9252_v60 }
 0x87f   :  { %9566 = vrot.lane.b32.xlu0 %v9565_v4, %s9708_s28  ;;  %9541 = vrot.lane.b32.xlu1 %v15343_v44, %s9705_s21  ;;  %v15461_v44 = vld [vmem:[#allocation3 + $0xe2] sm:$0xff]  ;;  %v7514_v4 = vld [vmem:[%s15839_s5] sm:$0xff] }
 0x880   :  { %v7483_v34 = vsel %vm1721_vm9, %v7451_v14, %v9253_v45  ;;  %v7484_v23 = vsel %vm1721_vm9, %v7452_v17, %v9254_v27  ;;  %v9580_v11 = vpack.i.bf16 %v15461_v44, %v15459_v9  ;;  %v9279_v45 = vunpack.i.h.bf16 %v15442_v33 }
 0x881   :  { %v8253_v15 = vpack.c.bf16 %v7484_v23, %v7483_v34  ;;  %v15455_v40 = vpop.permute.xlu0 %9286  ;;  %v15457_v13 = vpop.permute.xlu1 %9261  ;;  %v9278_v14 = vunpack.i.l.bf16 %v15442_v33  ;;  %v7342_v17 = vsel %vm1556_vm4, %v7310_v48, %v9259_v0 }
 0x882   :  { %v9289_v42 = vunpack.i.h.bf16 %v15455_v40  ;;  %v9288_v35 = vunpack.i.l.bf16 %v15455_v40  ;;  %v9264_v31 = vunpack.i.h.bf16 %v15457_v13  ;;  %v9263_v57 = vunpack.i.l.bf16 %v15457_v13 }
 0x883   :  { %9576 = vrot.lane.b32.xlu0 %v9575_v38, %s9709_s30  ;;  %9551 = vrot.lane.b32.xlu1 %v15350_v39, %s9706_s22  ;;  %v7262_v39 = vsel %vm24_vm0, %v15065_v63, %v8959_v29  ;;  %v9258_v63 = vunpack.i.l.bf16 %v15413_v62  ;;  %v7293_v62 = vsel %vm1523_vm3, %v7261_v41, %v9038_v61 }
 0x884   :  { %8255 = vmatpush3.bf16.xpose.msk.msra.mxu1 %vm13294_vm11, %v8253_v15  ;;  %v7294_v7 = vsel %vm1523_vm3, %v7262_v39, %v9039_v16  ;;  %v7325_v27 = vsel %vm1556_vm4, %v7293_v62, %v9118_v19  ;;  %v7374_v41 = vsel %vm1589_vm5, %v7342_v17, %v9264_v31 }
 0x885   :  { %v9297_v50 = vpop.permute.xlu0 %9296  ;;  %v9272_v8 = vpop.permute.xlu1 %9271  ;;  %v7326_v51 = vsel %vm1556_vm4, %v7294_v7, %v9119_v49  ;;  %v7341_v38 = vsel %vm1556_vm4, %v7309_v3, %v9258_v63  ;;  %v7357_v34 = vsel %vm1589_vm5, %v7325_v27, %v9268_v56  ;;  %v7280_v3 = vsel %vm24_vm0, %v15121_v46, %v9004_v24 }
 0x886   :  { %v7358_v23 = vsel %vm1589_vm5, %v7326_v51, %v9269_v58  ;;  %v9299_v29 = vunpack.i.h.bf16 %v9297_v50  ;;  %v9298_v33 = vunpack.i.l.bf16 %v9297_v50  ;;  %v9274_v18 = vunpack.i.h.bf16 %v9272_v8 }
 0x887   :  { %7517 = vperm.xlu0 %8944, %v7514_v4   ;;  %9561 = vrot.lane.b32.xlu1 %v9560_v28, %s9707_s23  ;;  %v9273_v15 = vunpack.i.l.bf16 %v9272_v8  ;;  %v7389_v44 = vsel %vm1622_vm6, %v7357_v34, %v9278_v14  ;;  %v7390_v26 = vsel %vm1622_vm6, %v7358_v23, %v9279_v45  ;;  %v7373_v39 = vsel %vm1589_vm5, %v7341_v38, %v9263_v57 }
 0x888   :  { %v7421_v13 = vsel %vm1655_vm7, %v7389_v44, %v9288_v35  ;;  %v7406_v8 = vsel %vm1622_vm6, %v7374_v41, %v9274_v18  ;;  %v7279_v27 = vsel %vm24_vm0, %v15119_v12, %v9003_v30  ;;  %v7312_v34 = vsel %vm1523_vm3, %v7280_v3, %v9084_v54 }
 0x889   :  { %v9307_v60 = vpop.permute.xlu0 %9306  ;;  %v9282_v10 = vpop.permute.xlu1 %9281  ;;  %v7453_v2 = vsel %vm1688_vm8, %v7421_v13, %v9298_v33  ;;  %v7405_v50 = vsel %vm1622_vm6, %v7373_v39, %v9273_v15  ;;  %v7311_v38 = vsel %vm1523_vm3, %v7279_v27, %v9083_v47  ;;  %v8964_v13 = vunpack.i.h.bf16 %v15156_v25 }
 0x88a   :  { %v9284_v59 = vunpack.i.h.bf16 %v9282_v10  ;;  %v9283_v28 = vunpack.i.l.bf16 %v9282_v10  ;;  %v9309_v16 = vunpack.i.h.bf16 %v9307_v60  ;;  %v9308_v61 = vunpack.i.l.bf16 %v9307_v60 }
 0x88b   :  { %9571 = vrot.lane.b32.xlu1 %v9570_v53, %s9708_s28  ;;  %v7422_v53 = vsel %vm1655_vm7, %v7390_v26, %v9289_v42  ;;  %s9711_s28 = smov [#allocation4]  }
 0x88c   :  { %v7454_v21 = vsel %vm1688_vm8, %v7422_v53, %v9299_v29  ;;  %v7438_v49 = vsel %vm1655_vm7, %v7406_v8, %v9284_v59  ;;  %v7485_v63 = vsel %vm1721_vm9, %v7453_v2, %v9308_v61  ;;  %v8963_v53 = vunpack.i.l.bf16 %v15156_v25 }
 0x88d   :  { %v9317_v1 = vpop.permute.xlu0 %9316  ;;  %v9292_v9 = vpop.permute.xlu1 %9291  ;;  %v7486_v58 = vsel %vm1721_vm9, %v7454_v21, %v9309_v16  ;;  %v9044_v21 = vunpack.i.h.bf16 %v15223_v36  ;;  %v9124_v8 = vunpack.i.h.bf16 %v15278_v55 }
 0x88e   :  { %v9294_v4 = vunpack.i.h.bf16 %v9292_v9  ;;  %v9293_v40 = vunpack.i.l.bf16 %v9292_v9  ;;  %v8259_v45 = vpack.c.bf16 %v7486_v58, %v7485_v63  ;;  %v9319_v23 = vunpack.i.h.bf16 %v9317_v1 }
 0x88f   :  { %9581 = vrot.lane.b32.xlu1 %v9580_v11, %s9709_s30  ;;  %v7437_v11 = vsel %vm1655_vm7, %v7405_v50, %v9283_v28  ;;  %v9318_v42 = vunpack.i.l.bf16 %v9317_v1  ;;  %v9043_v50 = vunpack.i.l.bf16 %v15223_v36  ;;  %s7705_s30 = sshll.u32 %s9711_s28, 4  ;;  %s7706_s30 = int_to_ptr.vmem [resolvable:$true] %s7705_s30 }
 0x890   :  { %v7469_v56 = vsel %vm1688_vm8, %v7437_v11, %v9293_v40  ;;  %v7470_v7 = vsel %vm1688_vm8, %v7438_v49, %v9294_v4  ;;  %v9661_v49 = vld [vmem:[#allocation3 + $0x50] sm:$0xff]  ;;  %s9677_s12 = scalar_lea.vmem %s7706_s30, 512  ;;  %p9682_p1 = scmp.lt.s32.totalorder %s7706_s30, %s7706_s30 }
 0x891   :  { %v9327_v52 = vpop.permute.xlu0 %9326  ;;  %v9302_v6 = vpop.permute.xlu1 %9301  ;;  %v7264_v25 = vsel %vm24_vm0, %v9661_v49, %v8964_v13  ;;  %v16890_v13 = vld [vmem:[#allocation85_spill] sm:$0xff]  ;;  %p9678_p0 = scmp.ne.s32.totalorder %s7706_s30, %s9677_s12  ;;  %p9683_p2 = scmp.lt.s32.totalorder %s9677_s12, %s9677_s12 }
 0x892   :  { %v9304_v19 = vunpack.i.h.bf16 %v9302_v6  ;;  %v9303_v0 = vunpack.i.l.bf16 %v9302_v6  ;;  %v9329_v46 = vunpack.i.h.bf16 %v9327_v52  ;;  %v9328_v24 = vunpack.i.l.bf16 %v9327_v52 }
 0x893   :  { %v9123_v52 = vunpack.i.l.bf16 %v15278_v55  ;;  %v7296_v55 = vsel %vm1523_vm3, %v7264_v25, %v9044_v21  ;;  %p9684_p3 = por %p9683_p2, %p9682_p1 }
 0x894   :  { %v7501_v62 = vsel %vm1721_vm9, %v7469_v56, %v9303_v0  ;;  %v7502_v48 = vsel %vm1721_vm9, %v7470_v7, %v9304_v19  ;;  %v9662_v19 = vld [vmem:[#allocation3 + $0x48] sm:$0xff] }
 0x895   :  { %v8256_v60 = vpack.c.bf16 %v7502_v48, %v7501_v62  ;;  %v9337_v10 = vpop.permute.xlu0 %9336  ;;  %v9312_v51 = vpop.permute.xlu1 %9311  ;;  %v7263_v0 = vsel %vm24_vm0, %v9662_v19, %v8963_v53  ;;  %p9685_p4 = pnand %p9684_p3, %p9678_p0 }
 0x896   :  { %v9314_v14 = vunpack.i.h.bf16 %v9312_v51  ;;  %v9313_v17 = vunpack.i.l.bf16 %v9312_v51  ;;  %v9339_v31 = vunpack.i.h.bf16 %v9337_v10  ;;  %v9338_v57 = vunpack.i.l.bf16 %v9337_v10 }
 0x897   :  { %8258 = vmatprep.subr.msk.bf16.mxu1 %vm13294_vm11, %v8256_v60  ;;  %v7295_v7 = vsel %vm1523_vm3, %v7263_v0, %v9043_v50  ;;  %v7328_v60 = vsel %vm1556_vm4, %v7296_v55, %v9124_v8 }
 0x898   :  { %v7343_v35 = vsel %vm1556_vm4, %v7311_v38, %v9313_v17  ;;  %v7344_v22 = vsel %vm1556_vm4, %v7312_v34, %v9314_v14  ;;  %8261 = vmatpush3.bf16.xpose.msk.msra.mxu1 %vm13294_vm11, %v8259_v45  ;;  %v7327_v3 = vsel %vm1556_vm4, %v7295_v7, %v9123_v52 }
 0x899   :  { %v7375_v12 = vsel %vm1589_vm5, %v7343_v35, %v9318_v42  ;;  %v7376_v30 = vsel %vm1589_vm5, %v7344_v22, %v9319_v23  ;;  %v9347_v47 = vpop.permute.xlu0 %9346  ;;  %v9322_v54 = vpop.permute.xlu1 %9321 }
 0x89a   :  { %v7407_v29 = vsel %vm1622_vm6, %v7375_v12, %v9328_v24  ;;  %v7408_v33 = vsel %vm1622_vm6, %v7376_v30, %v9329_v46  ;;  %v9349_v18 = vunpack.i.h.bf16 %v9347_v47  ;;  %v9348_v15 = vunpack.i.l.bf16 %v9347_v47 }
 0x89b   :  { %v7439_v1 = vsel %vm1655_vm7, %v7407_v29, %v9338_v57  ;;  %v7440_v9 = vsel %vm1655_vm7, %v7408_v33, %v9339_v31  ;;  %v9324_v6 = vunpack.i.h.bf16 %v9322_v54  ;;  %v9323_v11 = vunpack.i.l.bf16 %v9322_v54 }
 0x89c   :  { %v7471_v16 = vsel %vm1688_vm8, %v7439_v1, %v9348_v15  ;;  %v7472_v61 = vsel %vm1688_vm8, %v7440_v9, %v9349_v18  ;;  %v8969_v47 = vunpack.i.h.bf16 %v15144_v5  ;;  %v8968_v54 = vunpack.i.l.bf16 %v15144_v5  ;;  %v9663_v9 = vld [vmem:[#allocation3 + $0x60] sm:$0xff] }
 0x89d   :  { %v9357_v44 = vpop.permute.xlu0 %9356  ;;  %v9332_v26 = vpop.permute.xlu1 %9331  ;;  %v7359_v27 = vsel %vm1589_vm5, %v7327_v3, %v9323_v11  ;;  %v7360_v45 = vsel %vm1589_vm5, %v7328_v60, %v9324_v6  ;;  %v9009_v33 = vunpack.i.h.bf16 %v15173_v20  ;;  %v9008_v18 = vunpack.i.l.bf16 %v15173_v20  ;;  %v16889_v20 = vld [vmem:[#allocation41_spill] sm:$0xff]  ;;  %v16892_v6 = vld [vmem:[#allocation67_spill] sm:$0xff] }
 0x89e   :  { %v9359_v59 = vunpack.i.h.bf16 %v9357_v44  ;;  %v9358_v28 = vunpack.i.l.bf16 %v9357_v44  ;;  %v9334_v63 = vunpack.i.h.bf16 %v9332_v26  ;;  %v9333_v58 = vunpack.i.l.bf16 %v9332_v26  ;;  %v9664_v26 = vld [vmem:[#allocation3 + $0x68] sm:$0xff] }
 0x89f   :  { %v9049_v15 = vunpack.i.h.bf16 %v15208_v32  ;;  %v9048_v1 = vunpack.i.l.bf16 %v15208_v32  ;;  %v7265_v44 = vsel %vm24_vm0, %v9663_v9, %v8968_v54  ;;  %v7266_v5 = vsel %vm24_vm0, %v9664_v26, %v8969_v47 }
 0x8a0   :  { %v7503_v4 = vsel %vm1721_vm9, %v7471_v16, %v9358_v28  ;;  %v7504_v40 = vsel %vm1721_vm9, %v7472_v61, %v9359_v59  ;;  %v7391_v14 = vsel %vm1622_vm6, %v7359_v27, %v9333_v58  ;;  %v7392_v17 = vsel %vm1622_vm6, %v7360_v45, %v9334_v63  ;;  %v16888_v59 = vld [vmem:[#allocation168_spill] sm:$0xff]  ;;  %v16893_v58 = vld [vmem:[#allocation46_spill] sm:$0xff] }
 0x8a1   :  { %v8262_v41 = vpack.c.bf16 %v7504_v40, %v7503_v4  ;;  %v15567_v39 = vpop.permute.xlu0 %9366  ;;  %v9342_v2 = vpop.permute.xlu1 %9341  ;;  %v9089_v28 = vunpack.i.h.bf16 %v16888_v59  ;;  %v9088_v16 = vunpack.i.l.bf16 %v16888_v59  ;;  %v7281_v40 = vsel %vm24_vm0, %v16889_v20, %v9008_v18 }
 0x8a2   :  { %v9344_v62 = vunpack.i.h.bf16 %v9342_v2  ;;  %v9343_v48 = vunpack.i.l.bf16 %v9342_v2  ;;  %v7282_v53 = vsel %vm24_vm0, %v16890_v13, %v9009_v33  ;;  %v9369_v21 = vunpack.i.h.bf16 %v15567_v39 }
 0x8a3   :  { %8264 = vmatprep.subr.msk.bf16.mxu1 %vm13294_vm11, %v8262_v41  ;;  %v16891_v41 = vld [vmem:[#allocation84_spill] sm:$0xff]  ;;  %v9368_v50 = vunpack.i.l.bf16 %v15567_v39  ;;  %v9014_v11 = vunpack.i.h.bf16 %v16892_v6  ;;  %v9013_v49 = vunpack.i.l.bf16 %v16892_v6  ;;  %v7298_v25 = vsel %vm1523_vm3, %v7266_v5, %v9049_v15 }
 0x8a4   :  { %v7423_v23 = vsel %vm1655_vm7, %v7391_v14, %v9343_v48  ;;  %v7424_v42 = vsel %vm1655_vm7, %v7392_v17, %v9344_v62  ;;  %v9129_v32 = vunpack.i.h.bf16 %v16891_v41  ;;  %v9128_v2 = vunpack.i.l.bf16 %v16891_v41 }
 0x8a5   :  { %v15577_v56 = vpop.permute.xlu0 %9376  ;;  %v9352_v36 = vpop.permute.xlu1 %9351  ;;  %v7297_v19 = vsel %vm1523_vm3, %v7265_v44, %v9048_v1  ;;  %v7314_v0 = vsel %vm1523_vm3, %v7282_v53, %v9089_v28  ;;  %v7313_v63 = vsel %vm1523_vm3, %v7281_v40, %v9088_v16  ;;  %v9093_v39 = vunpack.i.l.bf16 %v16893_v58 }
 0x8a6   :  { %v9354_v10 = vunpack.i.h.bf16 %v9352_v36  ;;  %v9353_v51 = vunpack.i.l.bf16 %v9352_v36  ;;  %v9379_v8 = vunpack.i.h.bf16 %v15577_v56  ;;  %v9378_v52 = vunpack.i.l.bf16 %v15577_v56 }
 0x8a7   :  { %v9094_v36 = vunpack.i.h.bf16 %v16893_v58  ;;  %v7330_v56 = vsel %vm1556_vm4, %v7298_v25, %v9129_v32  ;;  %v7329_v62 = vsel %vm1556_vm4, %v7297_v19, %v9128_v2  ;;  %v7346_v60 = vsel %vm1556_vm4, %v7314_v0, %v9369_v21  ;;  %v9665_v21 = vld [vmem:[#allocation3 + $0x140] sm:$0xff]  ;;  %v9666_v25 = vld [vmem:[#allocation3 + $0x138] sm:$0xff] }
 0x8a8   :  { %v7455_v35 = vsel %vm1688_vm8, %v7423_v23, %v9353_v51  ;;  %v7456_v22 = vsel %vm1688_vm8, %v7424_v42, %v9354_v10  ;;  %v7345_v10 = vsel %vm1556_vm4, %v7313_v63, %v9368_v50  ;;  %v7361_v51 = vsel %vm1589_vm5, %v7329_v62, %v9378_v52 }
 0x8a9   :  { %v15587_v38 = vpop.permute.xlu0 %9386  ;;  %v9362_v34 = vpop.permute.xlu1 %9361  ;;  %v7362_v27 = vsel %vm1589_vm5, %v7330_v56, %v9379_v8  ;;  %v7284_v50 = vsel %vm24_vm0, %v9665_v21, %v9014_v11  ;;  %v7283_v19 = vsel %vm24_vm0, %v9666_v25, %v9013_v49 }
 0x8aa   :  { %v9364_v46 = vunpack.i.h.bf16 %v9362_v34  ;;  %v9363_v24 = vunpack.i.l.bf16 %v9362_v34  ;;  %v9389_v48 = vunpack.i.h.bf16 %v15587_v38  ;;  %v9388_v3 = vunpack.i.l.bf16 %v15587_v38 }
 0x8ac   :  { %v7487_v12 = vsel %vm1721_vm9, %v7455_v35, %v9363_v24  ;;  %v7488_v30 = vsel %vm1721_vm9, %v7456_v22, %v9364_v46  ;;  %v7393_v22 = vsel %vm1622_vm6, %v7361_v51, %v9388_v3 }
 0x8ad   :  { %v8265_v31 = vpack.c.bf16 %v7488_v30, %v7487_v12  ;;  %v9397_v57 = vpop.permute.xlu0 %9396  ;;  %v15597_v29 = vpop.permute.xlu1 %9371  ;;  %v7394_v12 = vsel %vm1622_vm6, %v7362_v27, %v9389_v48 }
 0x8ae   :  { %v9399_v45 = vunpack.i.h.bf16 %v9397_v57  ;;  %v9398_v14 = vunpack.i.l.bf16 %v9397_v57  ;;  %v9374_v17 = vunpack.i.h.bf16 %v15597_v29  ;;  %v9373_v34 = vunpack.i.l.bf16 %v15597_v29 }
 0x8af   :  { %8267 = vmatpush3.bf16.xpose.msk.msra.mxu1 %vm13294_vm11, %v8265_v31 }
 0x8b0   :  { %v7425_v18 = vsel %vm1655_vm7, %v7393_v22, %v9398_v14  ;;  %v7426_v29 = vsel %vm1655_vm7, %v7394_v12, %v9399_v45  ;;  %v7378_v15 = vsel %vm1589_vm5, %v7346_v60, %v9374_v17  ;;  %v7377_v1 = vsel %vm1589_vm5, %v7345_v10, %v9373_v34 }
 0x8b1   :  { %v9407_v61 = vpop.permute.xlu0 %9406  ;;  %v9382_v4 = vpop.permute.xlu1 %9381 }
 0x8b2   :  { %v9409_v23 = vunpack.i.h.bf16 %v9407_v61  ;;  %v9408_v42 = vunpack.i.l.bf16 %v9407_v61  ;;  %v9384_v46 = vunpack.i.h.bf16 %v9382_v4  ;;  %v9383_v24 = vunpack.i.l.bf16 %v9382_v4 }
 0x8b4   :  { %v7457_v9 = vsel %vm1688_vm8, %v7425_v18, %v9408_v42  ;;  %v7458_v44 = vsel %vm1688_vm8, %v7426_v29, %v9409_v23  ;;  %v7409_v26 = vsel %vm1622_vm6, %v7377_v1, %v9383_v24  ;;  %v7410_v5 = vsel %vm1622_vm6, %v7378_v15, %v9384_v46  ;;  %v16895_v15 = vld [vmem:[#allocation143_spill] sm:$0xff] }
 0x8b5   :  { %v9417_v7 = vpop.permute.xlu0 %9416  ;;  %v9392_v55 = vpop.permute.xlu1 %9391  ;;  %v9054_v1 = vunpack.i.h.bf16 %v16895_v15 }
 0x8b6   :  { %v9394_v30 = vunpack.i.h.bf16 %v9392_v55  ;;  %v9393_v47 = vunpack.i.l.bf16 %v9392_v55  ;;  %v9419_v54 = vunpack.i.h.bf16 %v9417_v7  ;;  %v9418_v31 = vunpack.i.l.bf16 %v9417_v7 }
 0x8b7   :  { %v7315_v7 = vsel %vm1523_vm3, %v7283_v19, %v9093_v39  ;;  %v7316_v55 = vsel %vm1523_vm3, %v7284_v50, %v9094_v36 }
 0x8b8   :  { %v7441_v16 = vsel %vm1655_vm7, %v7409_v26, %v9393_v47  ;;  %v7442_v61 = vsel %vm1655_vm7, %v7410_v5, %v9394_v30  ;;  %v7489_v40 = vsel %vm1721_vm9, %v7457_v9, %v9418_v31  ;;  %v7490_v13 = vsel %vm1721_vm9, %v7458_v44, %v9419_v54  ;;  %v16894_v54 = vld [vmem:[#allocation68_spill] sm:$0xff]  ;;  %v16896_v44 = vld [vmem:[#allocation86_spill] sm:$0xff] }
 0x8b9   :  { %v9427_v35 = vpop.permute.xlu0 %9426  ;;  %v9402_v38 = vpop.permute.xlu1 %9401  ;;  %v8271_v0 = vpack.c.bf16 %v7490_v13, %v7489_v40  ;;  %v8974_v31 = vunpack.i.h.bf16 %v16894_v54  ;;  %v9053_v9 = vunpack.i.l.bf16 %v16895_v15  ;;  %v9134_v26 = vunpack.i.h.bf16 %v16896_v44  ;;  %v9672_v15 = vld [vmem:[#allocation3 + $0x158] sm:$0xff] }
 0x8ba   :  { %v9404_v33 = vunpack.i.h.bf16 %v9402_v38  ;;  %v9403_v57 = vunpack.i.l.bf16 %v9402_v38  ;;  %v9429_v56 = vunpack.i.h.bf16 %v9427_v35  ;;  %v9428_v62 = vunpack.i.l.bf16 %v9427_v35 }
 0x8bb   :  { %v9133_v5 = vunpack.i.l.bf16 %v16896_v44 }
 0x8bc   :  { %v7473_v53 = vsel %vm1688_vm8, %v7441_v16, %v9403_v57  ;;  %v7474_v41 = vsel %vm1688_vm8, %v7442_v61, %v9404_v33  ;;  %v8973_v33 = vunpack.i.l.bf16 %v16894_v54  ;;  %v9667_v16 = vld [vmem:[#allocation3 + $0x80] sm:$0xff] }
 0x8bd   :  { %v9437_v59 = vpop.permute.xlu0 %9436  ;;  %v9412_v28 = vpop.permute.xlu1 %9411  ;;  %v7268_v61 = vsel %vm24_vm0, %v9667_v16, %v8974_v31 }
 0x8be   :  { %v9414_v4 = vunpack.i.h.bf16 %v9412_v28  ;;  %v9413_v20 = vunpack.i.l.bf16 %v9412_v28  ;;  %v9439_v48 = vunpack.i.h.bf16 %v9437_v59  ;;  %v9438_v11 = vunpack.i.l.bf16 %v9437_v59 }
 0x8c0   :  { %v7505_v32 = vsel %vm1721_vm9, %v7473_v53, %v9413_v20  ;;  %v7506_v2 = vsel %vm1721_vm9, %v7474_v41, %v9414_v4  ;;  %v9668_v4 = vld [vmem:[#allocation3 + $0x78] sm:$0xff] }
 0x8c1   :  { %v8268_v8 = vpack.c.bf16 %v7506_v2, %v7505_v32  ;;  %v9447_v52 = vpop.permute.xlu0 %9446  ;;  %v9422_v6 = vpop.permute.xlu1 %9421  ;;  %v7267_v20 = vsel %vm24_vm0, %v9668_v4, %v8973_v33  ;;  %v7300_v2 = vsel %vm1523_vm3, %v7268_v61, %v9054_v1  ;;  %v16902_v61 = vld [vmem:[#allocation166_spill] sm:$0xff] }
 0x8c2   :  { %v9424_v63 = vunpack.i.h.bf16 %v9422_v6  ;;  %v9423_v58 = vunpack.i.l.bf16 %v9422_v6  ;;  %v9449_v51 = vunpack.i.h.bf16 %v9447_v52  ;;  %v9448_v27 = vunpack.i.l.bf16 %v9447_v52 }
 0x8c3   :  { %8270 = vmatprep.subr.msk.bf16.mxu1 %vm13294_vm11, %v8268_v8  ;;  %v7299_v32 = vsel %vm1523_vm3, %v7267_v20, %v9053_v9  ;;  %v7332_v52 = vsel %vm1556_vm4, %v7300_v2, %v9134_v26  ;;  %v16901_v9 = vld [vmem:[#allocation72_spill] sm:$0xff]  ;;  %v9024_v4 = vunpack.i.h.bf16 %v16902_v61  ;;  %v9023_v20 = vunpack.i.l.bf16 %v16902_v61  ;;  %v16903_v2 = vld [vmem:[#allocation165_spill] sm:$0xff] }
 0x8c4   :  { %v7347_v3 = vsel %vm1556_vm4, %v7315_v7, %v9423_v58  ;;  %v7348_v60 = vsel %vm1556_vm4, %v7316_v55, %v9424_v63  ;;  %8273 = vmatpush3.bf16.xpose.msk.msra.mxu1 %vm13294_vm11, %v8271_v0  ;;  %v7331_v8 = vsel %vm1556_vm4, %v7299_v32, %v9133_v5  ;;  %v9139_v44 = vunpack.i.h.bf16 %v16901_v9 }
 0x8c5   :  { %v7379_v49 = vsel %vm1589_vm5, %v7347_v3, %v9428_v62  ;;  %v7380_v39 = vsel %vm1589_vm5, %v7348_v60, %v9429_v56  ;;  %v9457_v10 = vpop.permute.xlu0 %9456  ;;  %v9432_v36 = vpop.permute.xlu1 %9431  ;;  %v9138_v26 = vunpack.i.l.bf16 %v16901_v9 }
 0x8c6   :  { %v7411_v45 = vsel %vm1622_vm6, %v7379_v49, %v9438_v11  ;;  %v7412_v14 = vsel %vm1622_vm6, %v7380_v39, %v9439_v48  ;;  %v9459_v17 = vunpack.i.h.bf16 %v9457_v10  ;;  %v9458_v34 = vunpack.i.l.bf16 %v9457_v10  ;;  %v16897_v10 = vld [vmem:[#allocation104_spill] sm:$0xff] }
 0x8c7   :  { %v7443_v23 = vsel %vm1655_vm7, %v7411_v45, %v9448_v27  ;;  %v7444_v42 = vsel %vm1655_vm7, %v7412_v14, %v9449_v51  ;;  %v9434_v59 = vunpack.i.h.bf16 %v9432_v36  ;;  %v9433_v28 = vunpack.i.l.bf16 %v9432_v36 }
 0x8c8   :  { %v7475_v22 = vsel %vm1688_vm8, %v7443_v23, %v9458_v34  ;;  %v7476_v12 = vsel %vm1688_vm8, %v7444_v42, %v9459_v17  ;;  %v8979_v36 = vunpack.i.h.bf16 %v16897_v10  ;;  %v8978_v51 = vunpack.i.l.bf16 %v16897_v10  ;;  %v16898_v17 = vld [vmem:[#allocation167_spill] sm:$0xff]  ;;  %v16899_v42 = vld [vmem:[#allocation28_spill] sm:$0xff] }
 0x8c9   :  { %v9467_v46 = vpop.permute.xlu0 %9466  ;;  %v9442_v24 = vpop.permute.xlu1 %9441  ;;  %v7363_v19 = vsel %vm1589_vm5, %v7331_v8, %v9433_v28  ;;  %v7364_v0 = vsel %vm1589_vm5, %v7332_v52, %v9434_v59  ;;  %v9019_v34 = vunpack.i.h.bf16 %v16898_v17  ;;  %v9018_v23 = vunpack.i.l.bf16 %v16898_v17 }
 0x8ca   :  { %v9469_v35 = vunpack.i.h.bf16 %v9467_v46  ;;  %v9468_v38 = vunpack.i.l.bf16 %v9467_v46  ;;  %v9444_v40 = vunpack.i.h.bf16 %v9442_v24  ;;  %v9443_v13 = vunpack.i.l.bf16 %v9442_v24 }
 0x8cb   :  { %v9059_v46 = vunpack.i.h.bf16 %v16899_v42  ;;  %v9058_v24 = vunpack.i.l.bf16 %v16899_v42  ;;  %v7286_v1 = vsel %vm24_vm0, %v9672_v15, %v9019_v34 }
 0x8cc   :  { %v7507_v30 = vsel %vm1721_vm9, %v7475_v22, %v9468_v38  ;;  %v7508_v47 = vsel %vm1721_vm9, %v7476_v12, %v9469_v35  ;;  %v7395_v63 = vsel %vm1622_vm6, %v7363_v19, %v9443_v13  ;;  %v7396_v58 = vsel %vm1622_vm6, %v7364_v0, %v9444_v40  ;;  %v9669_v35 = vld [vmem:[#allocation3 + $0x90] sm:$0xff]  ;;  %v9670_v22 = vld [vmem:[#allocation3 + $0x98] sm:$0xff] }
 0x8cd   :  { %v8274_v57 = vpack.c.bf16 %v7508_v47, %v7507_v30  ;;  %v15677_v18 = vpop.permute.xlu0 %9476  ;;  %v9452_v29 = vpop.permute.xlu1 %9451  ;;  %v7269_v38 = vsel %vm24_vm0, %v9669_v35, %v8978_v51  ;;  %v7270_v12 = vsel %vm24_vm0, %v9670_v22, %v8979_v36  ;;  %v16900_v30 = vld [vmem:[#allocation45_spill] sm:$0xff] }
 0x8ce   :  { %v9454_v21 = vunpack.i.h.bf16 %v9452_v29  ;;  %v9453_v50 = vunpack.i.l.bf16 %v9452_v29  ;;  %v9099_v47 = vunpack.i.h.bf16 %v16900_v30  ;;  %v9098_v54 = vunpack.i.l.bf16 %v16900_v30 }
 0x8cf   :  { %8276 = vmatprep.subr.msk.bf16.mxu1 %vm13294_vm11, %v8274_v57  ;;  %v9671_v57 = vld [vmem:[#allocation3 + $0x150] sm:$0xff]  ;;  %v9479_v5 = vunpack.i.h.bf16 %v15677_v18  ;;  %v9478_v59 = vunpack.i.l.bf16 %v15677_v18  ;;  %v7302_v40 = vsel %vm1523_vm3, %v7270_v12, %v9059_v46  ;;  %v7301_v13 = vsel %vm1523_vm3, %v7269_v38, %v9058_v24 }
 0x8d0   :  { %v7427_v56 = vsel %vm1655_vm7, %v7395_v63, %v9453_v50  ;;  %v7428_v62 = vsel %vm1655_vm7, %v7396_v58, %v9454_v21  ;;  %v7285_v29 = vsel %vm24_vm0, %v9671_v57, %v9018_v23  ;;  %v7318_v32 = vsel %vm1523_vm3, %v7286_v1, %v9099_v47 }
 0x8d1   :  { %v15687_v53 = vpop.permute.xlu0 %9486  ;;  %v9462_v41 = vpop.permute.xlu1 %9461  ;;  %v9104_v21 = vunpack.i.h.bf16 %v16903_v2  ;;  %v9103_v18 = vunpack.i.l.bf16 %v16903_v2  ;;  %v7333_v52 = vsel %vm1556_vm4, %v7301_v13, %v9138_v26  ;;  %v7350_v19 = vsel %vm1556_vm4, %v7318_v32, %v9479_v5 }
 0x8d2   :  { %v9464_v6 = vunpack.i.h.bf16 %v9462_v41  ;;  %v9463_v25 = vunpack.i.l.bf16 %v9462_v41  ;;  %v9489_v28 = vunpack.i.h.bf16 %v15687_v53  ;;  %v9488_v16 = vunpack.i.l.bf16 %v15687_v53 }
 0x8d3   :  { %v7317_v41 = vsel %vm1523_vm3, %v7285_v29, %v9098_v54  ;;  %v7334_v53 = vsel %vm1556_vm4, %v7302_v40, %v9139_v44  ;;  %v9673_v44 = vld [vmem:[#allocation3 + $0x168] sm:$0xff] }
 0x8d4   :  { %v7459_v3 = vsel %vm1688_vm8, %v7427_v56, %v9463_v25  ;;  %v7460_v60 = vsel %vm1688_vm8, %v7428_v62, %v9464_v6  ;;  %v7349_v0 = vsel %vm1556_vm4, %v7317_v41, %v9478_v59  ;;  %v7365_v63 = vsel %vm1589_vm5, %v7333_v52, %v9488_v16 }
 0x8d5   :  { %v15697_v7 = vpop.permute.xlu0 %9496  ;;  %v9472_v55 = vpop.permute.xlu1 %9471  ;;  %v7366_v58 = vsel %vm1589_vm5, %v7334_v53, %v9489_v28  ;;  %v7287_v26 = vsel %vm24_vm0, %v9673_v44, %v9023_v20  ;;  %v9674_v28 = vld [vmem:[#allocation3 + $0x170] sm:$0xff] }
 0x8d6   :  { %v9474_v48 = vunpack.i.h.bf16 %v9472_v55  ;;  %v9473_v11 = vunpack.i.l.bf16 %v9472_v55  ;;  %v9499_v6 = vunpack.i.h.bf16 %v15697_v7  ;;  %v9498_v25 = vunpack.i.l.bf16 %v15697_v7 }
 0x8d7   :  { %v7288_v16 = vsel %vm24_vm0, %v9674_v28, %v9024_v4  ;;  %v7319_v61 = vsel %vm1523_vm3, %v7287_v26, %v9103_v18 }
 0x8d8   :  { %v7491_v49 = vsel %vm1721_vm9, %v7459_v3, %v9473_v11  ;;  %v7492_v39 = vsel %vm1721_vm9, %v7460_v60, %v9474_v48  ;;  %v7397_v10 = vsel %vm1622_vm6, %v7365_v63, %v9498_v25  ;;  %v7398_v36 = vsel %vm1622_vm6, %v7366_v58, %v9499_v6 }
 0x8d9   :  { %v8277_v27 = vpack.c.bf16 %v7492_v39, %v7491_v49  ;;  %v15707_v45 = vpop.permute.xlu0 %9506  ;;  %v15709_v14 = vpop.permute.xlu1 %9481  ;;  %v7320_v32 = vsel %vm1523_vm3, %v7288_v16, %v9104_v21 }
 0x8da   :  { %v9509_v55 = vunpack.i.h.bf16 %v15707_v45  ;;  %v9508_v56 = vunpack.i.l.bf16 %v15707_v45  ;;  %v9484_v62 = vunpack.i.h.bf16 %v15709_v14  ;;  %v9483_v48 = vunpack.i.l.bf16 %v15709_v14 }
 0x8db   :  { %8279 = vmatpush3.bf16.xpose.msk.msra.mxu1 %vm13294_vm11, %v8277_v27 }
 0x8dc   :  { %v7429_v42 = vsel %vm1655_vm7, %v7397_v10, %v9508_v56  ;;  %v7430_v14 = vsel %vm1655_vm7, %v7398_v36, %v9509_v55  ;;  %v7382_v46 = vsel %vm1589_vm5, %v7350_v19, %v9484_v62  ;;  %v7381_v24 = vsel %vm1589_vm5, %v7349_v0, %v9483_v48 }
 0x8dd   :  { %v9517_v31 = vpop.permute.xlu0 %9516  ;;  %v9492_v33 = vpop.permute.xlu1 %9491 }
 0x8de   :  { %v9519_v11 = vunpack.i.h.bf16 %v9517_v31  ;;  %v9518_v3 = vunpack.i.l.bf16 %v9517_v31  ;;  %v9494_v60 = vunpack.i.h.bf16 %v9492_v33  ;;  %v9493_v7 = vunpack.i.l.bf16 %v9492_v33 }
 0x8e0   :  { %v7461_v35 = vsel %vm1688_vm8, %v7429_v42, %v9518_v3  ;;  %v7462_v38 = vsel %vm1688_vm8, %v7430_v14, %v9519_v11  ;;  %v7413_v22 = vsel %vm1622_vm6, %v7381_v24, %v9493_v7  ;;  %v7414_v12 = vsel %vm1622_vm6, %v7382_v46, %v9494_v60  ;;  %v16905_v14 = vld [vmem:[#allocation31_spill] sm:$0xff] }
 0x8e1   :  { %v9527_v50 = vpop.permute.xlu0 %9526  ;;  %v9502_v8 = vpop.permute.xlu1 %9501  ;;  %v9064_v46 = vunpack.i.h.bf16 %v16905_v14  ;;  %v9063_v24 = vunpack.i.l.bf16 %v16905_v14 }
 0x8e2   :  { %v9504_v51 = vunpack.i.h.bf16 %v9502_v8  ;;  %v9503_v27 = vunpack.i.l.bf16 %v9502_v8  ;;  %v9529_v17 = vunpack.i.h.bf16 %v9527_v50  ;;  %v9528_v34 = vunpack.i.l.bf16 %v9527_v50 }
 0x8e4   :  { %v7445_v54 = vsel %vm1655_vm7, %v7413_v22, %v9503_v27  ;;  %v7446_v31 = vsel %vm1655_vm7, %v7414_v12, %v9504_v51  ;;  %v7493_v29 = vsel %vm1721_vm9, %v7461_v35, %v9528_v34  ;;  %v7494_v15 = vsel %vm1721_vm9, %v7462_v38, %v9529_v17  ;;  %v16904_v17 = vld [vmem:[#allocation105_spill] sm:$0xff]  ;;  %v16906_v35 = vld [vmem:[#allocation32_spill] sm:$0xff] }
 0x8e5   :  { %v9537_v49 = vpop.permute.xlu0 %9536  ;;  %v9512_v39 = vpop.permute.xlu1 %9511  ;;  %v8283_v2 = vpack.c.bf16 %v7494_v15, %v7493_v29  ;;  %v8984_v34 = vunpack.i.h.bf16 %v16904_v17  ;;  %v9144_v38 = vunpack.i.h.bf16 %v16906_v35  ;;  %v9143_v22 = vunpack.i.l.bf16 %v16906_v35 }
 0x8e6   :  { %v9514_v23 = vunpack.i.h.bf16 %v9512_v39  ;;  %v9513_v45 = vunpack.i.l.bf16 %v9512_v39  ;;  %v9539_v53 = vunpack.i.h.bf16 %v9537_v49  ;;  %v9538_v52 = vunpack.i.l.bf16 %v9537_v49 }
 0x8e8   :  { %v7477_v1 = vsel %vm1688_vm8, %v7445_v54, %v9513_v45  ;;  %v7478_v9 = vsel %vm1688_vm8, %v7446_v31, %v9514_v23  ;;  %v8983_v23 = vunpack.i.l.bf16 %v16904_v17  ;;  %v9676_v31 = vld [vmem:[#allocation3 + $0xa8] sm:$0xff] }
 0x8e9   :  { %v9547_v30 = vpop.permute.xlu0 %9546  ;;  %v9522_v47 = vpop.permute.xlu1 %9521 }
 0x8ea   :  { %v9524_v33 = vunpack.i.h.bf16 %v9522_v47  ;;  %v9523_v57 = vunpack.i.l.bf16 %v9522_v47  ;;  %v9549_v20 = vunpack.i.h.bf16 %v9547_v30  ;;  %v9548_v6 = vunpack.i.l.bf16 %v9547_v30  ;;  %v9675_v47 = vld [vmem:[#allocation3 + $0xb0] sm:$0xff] }
 0x8eb   :  { %v7272_v54 = vsel %vm24_vm0, %v9675_v47, %v8984_v34 }
 0x8ec   :  { %v7509_v5 = vsel %vm1721_vm9, %v7477_v1, %v9523_v57  ;;  %v7510_v59 = vsel %vm1721_vm9, %v7478_v9, %v9524_v33  ;;  %v7271_v33 = vsel %vm24_vm0, %v9676_v31, %v8983_v23  ;;  %v7304_v9 = vsel %vm1523_vm3, %v7272_v54, %v9064_v46 }
 0x8ed   :  { %v8280_v40 = vpack.c.bf16 %v7510_v59, %v7509_v5  ;;  %v9557_v13 = vpop.permute.xlu0 %9556  ;;  %v9532_v41 = vpop.permute.xlu1 %9531  ;;  %v7303_v1 = vsel %vm1523_vm3, %v7271_v33, %v9063_v24  ;;  %v7336_v59 = vsel %vm1556_vm4, %v7304_v9, %v9144_v38 }
 0x8ee   :  { %v9534_v50 = vunpack.i.h.bf16 %v9532_v41  ;;  %v9533_v8 = vunpack.i.l.bf16 %v9532_v41  ;;  %v9559_v25 = vunpack.i.h.bf16 %v9557_v13  ;;  %v9558_v19 = vunpack.i.l.bf16 %v9557_v13 }
 0x8ef   :  { %8282 = vmatprep.subr.msk.bf16.mxu1 %vm13294_vm11, %v8280_v40  ;;  %v7335_v5 = vsel %vm1556_vm4, %v7303_v1, %v9143_v22 }
 0x8f0   :  { %v7351_v4 = vsel %vm1556_vm4, %v7319_v61, %v9533_v8  ;;  %v7352_v18 = vsel %vm1556_vm4, %v7320_v32, %v9534_v50  ;;  %8285 = vmatpush3.bf16.xpose.msk.msra.mxu1 %vm13294_vm11, %v8283_v2 }
 0x8f1   :  { %v7383_v21 = vsel %vm1589_vm5, %v7351_v4, %v9538_v52  ;;  %v7384_v0 = vsel %vm1589_vm5, %v7352_v18, %v9539_v53  ;;  %v9567_v63 = vpop.permute.xlu0 %9566  ;;  %v9542_v58 = vpop.permute.xlu1 %9541 }
 0x8f2   :  { %v7415_v55 = vsel %vm1622_vm6, %v7383_v21, %v9548_v6  ;;  %v7416_v56 = vsel %vm1622_vm6, %v7384_v0, %v9549_v20  ;;  %v9569_v62 = vunpack.i.h.bf16 %v9567_v63  ;;  %v9568_v48 = vunpack.i.l.bf16 %v9567_v63  ;;  %v7880_v21 = vld [vmem:[%s15835_s1 + $0x10] sm:$0xff] }
 0x8f3   :  { %v7447_v11 = vsel %vm1655_vm7, %v7415_v55, %v9558_v19  ;;  %v7448_v3 = vsel %vm1655_vm7, %v7416_v56, %v9559_v25  ;;  %v9544_v12 = vunpack.i.h.bf16 %v9542_v58  ;;  %v9543_v30 = vunpack.i.l.bf16 %v9542_v58  ;;  %v7881_v58 = vld [vmem:[%s15835_s1 + $0x18] sm:$0xff] }
 0x8f4   :  { %v7479_v10 = vsel %vm1688_vm8, %v7447_v11, %v9568_v48  ;;  %v7480_v36 = vsel %vm1688_vm8, %v7448_v3, %v9569_v62 }
 0x8f5   :  { %v9577_v60 = vpop.permute.xlu0 %9576  ;;  %v9552_v7 = vpop.permute.xlu1 %9551  ;;  %v7367_v61 = vsel %vm1589_vm5, %v7335_v5, %v9543_v30  ;;  %v7368_v40 = vsel %vm1589_vm5, %v7336_v59, %v9544_v12 }
 0x8f6   :  { %v9579_v49 = vunpack.i.h.bf16 %v9577_v60  ;;  %v9578_v39 = vunpack.i.l.bf16 %v9577_v60  ;;  %v9554_v57 = vunpack.i.h.bf16 %v9552_v7  ;;  %v9553_v29 = vunpack.i.l.bf16 %v9552_v7 }
 0x8f8   :  { %v7511_v51 = vsel %vm1721_vm9, %v7479_v10, %v9578_v39  ;;  %v7512_v27 = vsel %vm1721_vm9, %v7480_v36, %v9579_v49  ;;  %v7399_v13 = vsel %vm1622_vm6, %v7367_v61, %v9553_v29  ;;  %v7400_v41 = vsel %vm1622_vm6, %v7368_v40, %v9554_v57 }
 0x8f9   :  { %v8286_v45 = vpack.c.bf16 %v7512_v27, %v7511_v51  ;;  %v9562_v42 = vpop.permute.xlu1 %9561 }
 0x8fa   :  { %v9564_v44 = vunpack.i.h.bf16 %v9562_v42  ;;  %v9563_v26 = vunpack.i.l.bf16 %v9562_v42 }
 0x8fb   :  { %8288 = vmatprep.subr.msk.bf16.mxu1 %vm13294_vm11, %v8286_v45 }
 0x8fc   :  { %v7431_v2 = vsel %vm1655_vm7, %v7399_v13, %v9563_v26  ;;  %v7432_v50 = vsel %vm1655_vm7, %v7400_v41, %v9564_v44 }
 0x8fd   :  { %v9572_v15 = vpop.permute.xlu1 %9571 }
 0x8fe   :  { %v9574_v28 = vunpack.i.h.bf16 %v9572_v15  ;;  %v9573_v16 = vunpack.i.l.bf16 %v9572_v15 }
 0x900   :  { %v7463_v52 = vsel %vm1688_vm8, %v7431_v2, %v9573_v16  ;;  %v7464_v20 = vsel %vm1688_vm8, %v7432_v50, %v9574_v28 }
 0x901   :  { %v9582_v32 = vpop.permute.xlu1 %9581 }
 0x902   :  { %v9584_v8 = vunpack.i.h.bf16 %v9582_v32  ;;  %v9583_v53 = vunpack.i.l.bf16 %v9582_v32 }
 0x904   :  { %v7495_v6 = vsel %vm1721_vm9, %v7463_v52, %v9583_v53  ;;  %v7496_v25 = vsel %vm1721_vm9, %v7464_v20, %v9584_v8 }
 0x905   :  { %v8289_v19 = vpack.c.bf16 %v7496_v25, %v7495_v6 }
 0x906   :  { %v7518_v4 = vpop.permute.xlu0 %7517 }
 0x907   :  { %8291 = vmatpush3.bf16.xpose.msk.msra.mxu1 %vm13294_vm11, %v8289_v19 }
 0x90e   :  { %8031 = vmatmul.mubr.msk.f32.vlgmr.msra.gmra.mrb[2].mxu1 %vm1770_vm10, %v15497_v37 }
 0x9e1   :  { %v7685_v18 = vpop.f32.mrb[2].mxu1 }
 0x9e2   :  { %v7686_v0 = vadd.f32 %v7685_v18, %v7518_v4  ;;  %v7687_v63 = vpop.f32.mrb[3].mxu1 }
 0x9e3   :  { %v7688_v55 = vadd.f32 %v7687_v63, %v7518_v4 }
 0x9e4   :  { %v7693_v56 = vadd.f32 %v7880_v21, %v7686_v0 }
 0x9e5   :  { %v7694_v43 = vadd.f32 %v7881_v58, %v7688_v55 }
 0x9e6   :  { %v7695_v62 = vmax.f32 %v7693_v56, 0.0 }
 0x9e7   :  { %v7696_v48 = vmax.f32 %v7694_v43, 0.0 }
 0x9e8   :  { %7698 = vst [vmem:[#allocation4 + $0x10] sm:$0xff] %v7695_v62 }
 0x9e9   :  { %7699 = vst [vmem:[#allocation4 + $0x18] sm:$0xff] %v7696_v48 }
 0x9ea   :  { %9688 = shalt.err (!%p9685_p4)
}
 0x9eb   :  { %s9689_s1 = scalar_lea.hbm %s15840_s6, 512 }
 0x9ec   :  { %p9690_p5 = scmp.ne.s32.totalorder %s15840_s6, %s9689_s1  ;;  %p9693_p6 = scmp.lt.u32.totalorder %s9689_s1, %s15840_s6 }
 0x9ee   :  { %p9695_p7 = pnand %p9693_p6, %p9690_p5 }
 0x9f0   :  { %9698 = shalt.err (!%p9695_p7)
}
 0x9f1   :  { %s9712_s24 = smov 256  }
 0x9f2   :  { %7711 = dma.vmem_to_hbm [thread:$0]  %s7706_s30, 512, %s15840_s6, [#allocation5], %s9712_s24, %s9712_s24, %s9703_s14  }
 0x9f3   :  { %9699 = dma.done.wait [#allocation5], 512  }
 0x9f4   :  { %9700 = vsyncadd [#allocation5], 4294966784 }
 0x9f5   :  { %7715 = vsyncpa [#allocation5], 1 }

</bundles_post_ra>
